<compile_context>
chip_gen: v7x
topology: tpu7x:2x2x1
jax: 0.10.0
libtpu: 0.0.40
codegen_flags: <defaults>
</compile_context>

<pallas_src>
import functools

import jax
import jax.numpy as jnp
from jax.experimental import pallas as pl
from jax.experimental.pallas import tpu as pltpu


def _round_up(x, m):
    return (x + m - 1) // m * m


# ---------------------------------------------------------------------------
# Full-K tiled matmul (used for both 7x7 convs via im2col)
#   grid = (M // tm,), every block carries the whole K and N extents -> no K loop,
#   no accumulator scratch, no activation/weight padding copies.
# ---------------------------------------------------------------------------
def _matmul_fullk_kernel(a_ref, b_ref, o_ref):
    o_ref[...] = jnp.dot(a_ref[...], b_ref[...],
                         preferred_element_type=jnp.float32).astype(o_ref.dtype)


def _pick_tm(m, target=512):
    """Largest multiple-of-8 divisor of m that is <= target and gives >= 2 tiles."""
    best = None
    for cand in range(8, min(m, target) + 1, 8):
        if m % cand == 0 and m // cand >= 2:
            best = cand
    return best if best is not None else m


def pallas_matmul_fullk(a, b, target_tm=512):
    """C = A @ B with a 1-D parallel M grid; K and N live whole in each block."""
    M, K = a.shape
    K2, N = b.shape
    assert K == K2
    a = a.astype(jnp.float32)
    b = b.astype(jnp.float32)

    Mp = _round_up(M, 8)
    if Mp != M:                       # tiny row pad only if M is not sublane-aligned
        a = jnp.pad(a, ((0, Mp - M), (0, 0)))
    tm = _pick_tm(Mp, target_tm)

    out = pl.pallas_call(
        _matmul_fullk_kernel,
        out_shape=jax.ShapeDtypeStruct((Mp, N), jnp.float32),
        grid_spec=pltpu.PrefetchScalarGridSpec(
            num_scalar_prefetch=0,
            grid=(Mp // tm,),
            in_specs=[pl.BlockSpec((tm, K), lambda i: (i, 0)),
                      pl.BlockSpec((K, N), lambda i: (0, 0))],
            out_specs=pl.BlockSpec((tm, N), lambda i: (i, 0))),
        compiler_params=pltpu.CompilerParams(
            dimension_semantics=("parallel",)),
    )(a, b)
    return out if Mp == M else out[:M]


# ---------------------------------------------------------------------------
# Fused GroupNorm + ReLU + MaxPool2d(2,2) kernel (one program per batch sample).
# The conv output (B*H*W, C) is viewed as (B, H, W/2, 2C): lanes [0:C] hold the
# even-W pixel, lanes [C:2C] the odd-W pixel, so the W-pool is a lane-half max
# and the H-pool a leading-dim pair max. Group stats via one-hot matmuls.
# ---------------------------------------------------------------------------
def _gn_relu_pool_kernel(x_ref, gmat_ref, gmatt_ref, gamma_ref, beta_ref, o_ref,
                         *, eps, denom, half):
    x = x_ref[0].astype(jnp.float32)                      # (H, W/2, 2C)

    # Per-lane spatial sums (lanes c and c+C carry the same channel).
    s = jnp.sum(x, axis=0)                                # (W/2, 2C)
    ssq = jnp.sum(x * x, axis=0)                          # (W/2, 2C)
    lane_sum = jnp.sum(s, axis=0, keepdims=True)          # (1, 2C)
    lane_sq = jnp.sum(ssq, axis=0, keepdims=True)         # (1, 2C)

    # lane -> group -> lane via one-hot membership matmuls.
    g_sum = jnp.dot(lane_sum, gmat_ref[...], preferred_element_type=jnp.float32)
    g_sq = jnp.dot(lane_sq, gmat_ref[...], preferred_element_type=jnp.float32)
    g_mean = g_sum / denom
    g_var = g_sq / denom - g_mean * g_mean                # biased var (torch GroupNorm)
    g_inv = jax.lax.rsqrt(g_var + eps)
    lane_mean = jnp.dot(g_mean, gmatt_ref[...], preferred_element_type=jnp.float32)
    lane_inv = jnp.dot(g_inv, gmatt_ref[...], preferred_element_type=jnp.float32)

    scale = lane_inv.reshape(1, 1, -1) * gamma_ref[...]           # (1, 1, 2C)
    shift = beta_ref[...] - lane_mean.reshape(1, 1, -1) * scale   # (1, 1, 2C)

    y = jnp.maximum(x * scale + shift, 0.0)               # GN + ReLU, (H, W/2, 2C)

    # MaxPool2d(2, 2): W-pool over the two lane halves, H-pool over row pairs.
    yw = jnp.maximum(y[:, :, :half], y[:, :, half:])      # (H, W/2, C)
    h, w2, c = yw.shape
    yh = yw.reshape(h // 2, 2, w2, c)                     # leading-dim split only
    o_ref[0] = jnp.maximum(yh[:, 0], yh[:, 1]).astype(o_ref.dtype)


def groupnorm_relu_pool(y_flat, gamma, beta, groups, B, H, W, C, eps=1e-5):
    """GroupNorm(groups, C) + ReLU + MaxPool2d(2,2), fused.

    y_flat: (B*H*W, C) conv output in NHWC order -> returns (B, H//2, W//2, C).
    """
    W2 = W // 2
    C2 = 2 * C
    cg = C // groups
    x = y_flat.reshape(B, H, W2, C2)   # free reshape: pairs adjacent-W pixels on lanes

    lane_group = (jnp.arange(C2) % C) // cg
    gmat = (lane_group[:, None] == jnp.arange(groups)[None, :]).astype(jnp.float32)
    gamma2 = jnp.tile(gamma.astype(jnp.float32), 2).reshape(1, 1, C2)
    beta2 = jnp.tile(beta.astype(jnp.float32), 2).reshape(1, 1, C2)

    kern = functools.partial(_gn_relu_pool_kernel, eps=eps,
                             denom=float(H * W * cg), half=C)
    return pl.pallas_call(
        kern,
        out_shape=jax.ShapeDtypeStruct((B, H // 2, W2, C), jnp.float32),
        grid_spec=pltpu.PrefetchScalarGridSpec(
            num_scalar_prefetch=0,
            grid=(B,),
            in_specs=[pl.BlockSpec((1, H, W2, C2), lambda b: (b, 0, 0, 0)),
                      pl.BlockSpec((C2, groups), lambda b: (0, 0)),
                      pl.BlockSpec((groups, C2), lambda b: (0, 0)),
                      pl.BlockSpec((1, 1, C2), lambda b: (0, 0, 0)),
                      pl.BlockSpec((1, 1, C2), lambda b: (0, 0, 0))],
            out_specs=pl.BlockSpec((1, H // 2, W2, C), lambda b: (b, 0, 0, 0))),
        compiler_params=pltpu.CompilerParams(dimension_semantics=("parallel",)),
    )(x.astype(jnp.float32), gmat, gmat.T, gamma2, beta2)


# ---------------------------------------------------------------------------
# Final Linear: single-step Pallas matmul (everything resident, bias in epilogue).
# ---------------------------------------------------------------------------
def _linear_bias_kernel(x_ref, w_ref, b_ref, o_ref):
    o_ref[...] = (jnp.dot(x_ref[...], w_ref[...], preferred_element_type=jnp.float32)
                  + b_ref[...]).astype(o_ref.dtype)


def pallas_linear(x, w, b):
    M, K = x.shape
    N = w.shape[1]
    return pl.pallas_call(
        _linear_bias_kernel,
        out_shape=jax.ShapeDtypeStruct((M, N), jnp.float32),
    )(x.astype(jnp.float32), w.astype(jnp.float32),
      b.reshape(1, N).astype(jnp.float32))


# ---------------------------------------------------------------------------
# im2col (plain JAX glue): NHWC -> (B, OH, OW, k*k*C), ordering (kh, kw, cin)
# ---------------------------------------------------------------------------
def im2col(x, k, stride, pad):
    x = jnp.pad(x, ((0, 0), (pad, pad), (pad, pad), (0, 0)))
    B, H, W, C = x.shape
    oh = (H - k) // stride + 1
    ow = (W - k) // stride + 1
    patches = []
    for i in range(k):
        for j in range(k):
            patches.append(x[:, i:i + stride * oh:stride,
                             j:j + stride * ow:stride, :])
    cols = jnp.stack(patches, axis=3)            # (B, oh, ow, k*k, C)
    return cols.reshape(B, oh, ow, k * k * C)


# ---------------------------------------------------------------------------
# Parameters (deterministic synthetic init, PyTorch shapes converted once)
# ---------------------------------------------------------------------------
def init_params(key, num_input_channels, num_targets):
    ks = jax.random.split(key, 8)
    # conv1: torch weight (64, Cin, 7, 7) -> (kh, kw, Cin, 64) -> (49*Cin, 64)
    w1_pt = jax.random.normal(ks[0], (64, num_input_channels, 7, 7), jnp.float32) * 0.05
    w1 = jnp.transpose(w1_pt, (2, 3, 1, 0)).reshape(49 * num_input_channels, 64)
    g1 = 1.0 + 0.1 * jax.random.normal(ks[1], (64,), jnp.float32)
    b1 = 0.1 * jax.random.normal(ks[2], (64,), jnp.float32)
    # conv2: torch weight (32, 64, 7, 7)
    w2_pt = jax.random.normal(ks[3], (32, 64, 7, 7), jnp.float32) * 0.02
    w2 = jnp.transpose(w2_pt, (2, 3, 1, 0)).reshape(49 * 64, 32)
    g2 = 1.0 + 0.1 * jax.random.normal(ks[4], (32,), jnp.float32)
    b2 = 0.1 * jax.random.normal(ks[5], (32,), jnp.float32)
    # fc: torch Linear weight (num_targets, 1568), bias (num_targets,)
    wfc_pt = jax.random.normal(ks[6], (num_targets, 1568), jnp.float32) * 0.02
    wfc = wfc_pt.T                                  # (1568, num_targets)
    bfc = 0.01 * jax.random.normal(ks[7], (num_targets,), jnp.float32)
    return dict(w1=w1, g1=g1, b1=b1, w2=w2, g2=g2, b2=b2, wfc=wfc, bfc=bfc)


# ---------------------------------------------------------------------------
# Forward pass (eval mode of RasterizedPlanningModel, simple_cnn arch)
# ---------------------------------------------------------------------------
def forward(params, box_img, way_img, rel_img):
    # torch: cat(dim=-1) then permute NHWC->NCHW; here we stay NHWC and keep the
    # weights consistent with the NCHW conv semantics.
    x = jnp.concatenate([box_img, way_img, rel_img], axis=-1)       # (B,112,112,Cin)
    B = x.shape[0]

    # Conv2d(Cin, 64, k=7, s=2, p=3, bias=False) as im2col + full-K Pallas matmul
    cols1 = im2col(x, 7, 2, 3)                                      # (B,56,56,343)
    H1, W1, K1 = cols1.shape[1], cols1.shape[2], cols1.shape[3]
    y = pallas_matmul_fullk(cols1.reshape(B * H1 * W1, K1), params["w1"])
    # GroupNorm(4, 64) + ReLU + MaxPool2d(2,2) fused
    y = groupnorm_relu_pool(y, params["g1"], params["b1"], groups=4,
                            B=B, H=H1, W=W1, C=64)                  # (B,28,28,64)

    # Conv2d(64, 32, k=7, s=2, p=3, bias=False)
    cols2 = im2col(y, 7, 2, 3)                                      # (B,14,14,3136)
    H2, W2, K2 = cols2.shape[1], cols2.shape[2], cols2.shape[3]
    z = pallas_matmul_fullk(cols2.reshape(B * H2 * W2, K2), params["w2"])
    # GroupNorm(2, 32) + ReLU + MaxPool2d(2,2) fused
    z = groupnorm_relu_pool(z, params["g2"], params["b2"], groups=2,
                            B=B, H=H2, W=W2, C=32)                  # (B,7,7,32)

    # nn.Flatten() flattens NCHW -> (B, C*H*W); match that ordering.
    feat = jnp.transpose(z, (0, 3, 1, 2)).reshape(B, -1)            # (B, 1568)

    # nn.Linear(1568, num_targets): single-step matmul, bias in the kernel epilogue.
    outputs = pallas_linear(feat, params["wfc"], params["bfc"])     # (B, num_targets)

    # eval branch of RasterizedPlanningModel.forward
    predicted = outputs.reshape(B, -1, 3)
    pred_positions = predicted[:, :, :2]
    pred_yaws = predicted[:, :, 2:3]
    return {"positions": pred_positions, "yaws": pred_yaws}


if __name__ == "__main__":
    # SimpleCNN_GN's Linear(1568, ...) pins spatial size to 112x112
    # (112 -> conv s2 -> 56 -> pool -> 28 -> conv s2 -> 14 -> pool -> 7; 32*7*7=1568).
    B = 2
    H = W = 112
    c_box, c_way, c_rel = 3, 2, 2          # num_input_channels = 7
    num_targets = 12                       # 4 future steps x (x, y, yaw)

    key = jax.random.PRNGKey(0)
    k_p, k_b, k_w, k_r = jax.random.split(key, 4)

    params = init_params(k_p, c_box + c_way + c_rel, num_targets)
    box_img = jax.random.normal(k_b, (B, H, W, c_box), jnp.float32)
    way_img = jax.random.normal(k_w, (B, H, W, c_way), jnp.float32)
    rel_img = jax.random.normal(k_r, (B, H, W, c_rel), jnp.float32)

    out = jax.jit(forward)(params, box_img, way_img, rel_img)
    out = jax.block_until_ready(out)

    assert out["positions"].shape == (B, num_targets // 3, 2)
    assert out["yaws"].shape == (B, num_targets // 3, 1)
    print("KERNEL_OK")
</pallas_src>

<mosaic_0001>
module attributes {stable_mosaic.version = 11 : i64} {
  func.func @_matmul_fullk_kernel(%arg0: i32, %arg1: memref<448x343xf32, #tpu.memory_space<vmem>>, %arg2: memref<343x64xf32, #tpu.memory_space<vmem>>, %arg3: memref<448x64xf32, #tpu.memory_space<vmem>>) attributes {dimension_semantics = [#tpu.dimension_semantics<parallel>], iteration_bounds = array<i64: 14>, scalar_prefetch = 0 : i64, scratch_operands = 0 : i64, tpu.core_type = #tpu.core_type<tc>, window_params = [{transform_indices = @transform_0, window_bounds = array<i64: 448, 343>}, {pipeline_mode = #tpu.pipeline_mode<synchronous>, transform_indices = @transform_1, window_bounds = array<i64: 343, 64>}, {transform_indices = @transform_2, window_bounds = array<i64: 448, 64>}]} {
    %c0 = arith.constant 0 : index
    %c0_0 = arith.constant 0 : index
    %0 = vector.load %arg1[%c0, %c0_0] : memref<448x343xf32, #tpu.memory_space<vmem>>, vector<448x343xf32>
    %c0_1 = arith.constant 0 : index
    %c0_2 = arith.constant 0 : index
    %1 = vector.load %arg2[%c0_1, %c0_2] : memref<343x64xf32, #tpu.memory_space<vmem>>, vector<343x64xf32>
    %cst = arith.constant dense<0.000000e+00> : vector<448x64xf32>
    %2 = tpu.matmul %0, %1, %cst {dimension_numbers = #tpu.dot_dimension_numbers<[1], [0], [0], [1], [0, 0, 1, 1], [], []>} : vector<448x343xf32>, vector<343x64xf32>, vector<448x64xf32> -> vector<448x64xf32>
    %c0_3 = arith.constant 0 : index
    %c0_4 = arith.constant 0 : index
    %3 = vector.load %arg3[%c0_3, %c0_4] : memref<448x64xf32, #tpu.memory_space<vmem>>, vector<448x64xf32>
    tpu.vector_store %arg3[%c0_3, %c0_4], %2 {strides = array<i32>} : memref<448x64xf32, #tpu.memory_space<vmem>>, vector<448x64xf32>,
    return
  }
  func.func @transform_0(%arg0: i32) -> (i32, i32) {
    %c0_i32 = arith.constant 0 : i32
    %c0_i32_0 = arith.constant 0 : i32
    return %arg0, %c0_i32 : i32, i32
  }
  func.func @transform_1(%arg0: i32) -> (i32, i32) {
    %c0_i32 = arith.constant 0 : i32
    %c0_i32_0 = arith.constant 0 : i32
    %c0_i32_1 = arith.constant 0 : i32
    return %c0_i32, %c0_i32_0 : i32, i32
  }
  func.func @transform_2(%arg0: i32) -> (i32, i32) {
    %c0_i32 = arith.constant 0 : i32
    %c0_i32_0 = arith.constant 0 : i32
    return %arg0, %c0_i32 : i32, i32
  }
}

module attributes {stable_mosaic.version = 11 : i64} {
  func.func @_gn_relu_pool_kernel(%arg0: i32, %arg1: memref<1x56x28x128xf32, #tpu.memory_space<vmem>>, %arg2: memref<128x4xf32, #tpu.memory_space<vmem>>, %arg3: memref<4x128xf32, #tpu.memory_space<vmem>>, %arg4: memref<1x1x128xf32, #tpu.memory_space<vmem>>, %arg5: memref<1x1x128xf32, #tpu.memory_space<vmem>>, %arg6: memref<1x28x28x64xf32, #tpu.memory_space<vmem>>) attributes {dimension_semantics = [#tpu.dimension_semantics<parallel>], iteration_bounds = array<i64: 2>, scalar_prefetch = 0 : i64, scratch_operands = 0 : i64, tpu.core_type = #tpu.core_type<tc>, window_params = [{transform_indices = @transform_0, window_bounds = array<i64: 1, 56, 28, 128>}, {pipeline_mode = #tpu.pipeline_mode<synchronous>, transform_indices = @transform_1, window_bounds = array<i64: 128, 4>}, {pipeline_mode = #tpu.pipeline_mode<synchronous>, transform_indices = @transform_2, window_bounds = array<i64: 4, 128>}, {pipeline_mode = #tpu.pipeline_mode<synchronous>, transform_indices = @transform_3, window_bounds = array<i64: 1, 1, 128>}, {pipeline_mode = #tpu.pipeline_mode<synchronous>, transform_indices = @transform_4, window_bounds = array<i64: 1, 1, 128>}, {transform_indices = @transform_5, window_bounds = array<i64: 1, 28, 28, 64>}]} {
    %c0 = arith.constant 0 : index
    %c0_0 = arith.constant 0 : index
    %c0_1 = arith.constant 0 : index
    %c0_2 = arith.constant 0 : index
    %0 = vector.load %arg1[%c0, %c0_0, %c0_1, %c0_2] : memref<1x56x28x128xf32, #tpu.memory_space<vmem>>, vector<1x56x28x128xf32>
    %1 = vector.shape_cast %0 : vector<1x56x28x128xf32> to vector<56x28x128xf32>
    %cst = arith.constant dense<0.000000e+00> : vector<28x128xf32>
    %2 = vector.multi_reduction <add>, %1, %cst [0] : vector<56x28x128xf32> to vector<28x128xf32>
    %3 = arith.mulf %1, %1 : vector<56x28x128xf32>
    %cst_3 = arith.constant dense<0.000000e+00> : vector<28x128xf32>
    %4 = vector.multi_reduction <add>, %3, %cst_3 [0] : vector<56x28x128xf32> to vector<28x128xf32>
    %cst_4 = arith.constant dense<0.000000e+00> : vector<128xf32>
    %5 = vector.multi_reduction <add>, %2, %cst_4 [0] : vector<28x128xf32> to vector<128xf32>
    %6 = vector.shape_cast %5 : vector<128xf32> to vector<1x128xf32>
    %cst_5 = arith.constant dense<0.000000e+00> : vector<128xf32>
    %7 = vector.multi_reduction <add>, %4, %cst_5 [0] : vector<28x128xf32> to vector<128xf32>
    %8 = vector.shape_cast %7 : vector<128xf32> to vector<1x128xf32>
    %c0_6 = arith.constant 0 : index
    %c0_7 = arith.constant 0 : index
    %9 = vector.load %arg2[%c0_6, %c0_7] : memref<128x4xf32, #tpu.memory_space<vmem>>, vector<128x4xf32>
    %cst_8 = arith.constant dense<0.000000e+00> : vector<1x4xf32>
    %10 = tpu.matmul %6, %9, %cst_8 {dimension_numbers = #tpu.dot_dimension_numbers<[1], [0], [0], [1], [0, 0, 1, 1], [], []>} : vector<1x128xf32>, vector<128x4xf32>, vector<1x4xf32> -> vector<1x4xf32>
    %c0_9 = arith.constant 0 : index
    %c0_10 = arith.constant 0 : index
    %11 = vector.load %arg2[%c0_9, %c0_10] : memref<128x4xf32, #tpu.memory_space<vmem>>, vector<128x4xf32>
    %cst_11 = arith.constant dense<0.000000e+00> : vector<1x4xf32>
    %12 = tpu.matmul %8, %11, %cst_11 {dimension_numbers = #tpu.dot_dimension_numbers<[1], [0], [0], [1], [0, 0, 1, 1], [], []>} : vector<1x128xf32>, vector<128x4xf32>, vector<1x4xf32> -> vector<1x4xf32>
    %cst_12 = arith.constant 5.017600e+04 : f32
    %13 = vector.broadcast %cst_12 : f32 to vector<1x4xf32>
    %14 = arith.divf %10, %13 : vector<1x4xf32>
    %cst_13 = arith.constant 5.017600e+04 : f32
    %15 = vector.broadcast %cst_13 : f32 to vector<1x4xf32>
    %16 = arith.divf %12, %15 : vector<1x4xf32>
    %17 = arith.mulf %14, %14 : vector<1x4xf32>
    %18 = arith.subf %16, %17 : vector<1x4xf32>
    %cst_14 = arith.constant 9.99999974E-6 : f32
    %19 = vector.broadcast %cst_14 : f32 to vector<1x4xf32>
    %20 = arith.addf %18, %19 : vector<1x4xf32>
    %21 = math.rsqrt %20 : vector<1x4xf32>
    %c0_15 = arith.constant 0 : index
    %c0_16 = arith.constant 0 : index
    %22 = vector.load %arg3[%c0_15, %c0_16] : memref<4x128xf32, #tpu.memory_space<vmem>>, vector<4x128xf32>
    %cst_17 = arith.constant dense<0.000000e+00> : vector<1x128xf32>
    %23 = tpu.matmul %14, %22, %cst_17 {dimension_numbers = #tpu.dot_dimension_numbers<[1], [0], [0], [1], [0, 0, 1, 1], [], []>} : vector<1x4xf32>, vector<4x128xf32>, vector<1x128xf32> -> vector<1x128xf32>
    %c0_18 = arith.constant 0 : index
    %c0_19 = arith.constant 0 : index
    %24 = vector.load %arg3[%c0_18, %c0_19] : memref<4x128xf32, #tpu.memory_space<vmem>>, vector<4x128xf32>
    %cst_20 = arith.constant dense<0.000000e+00> : vector<1x128xf32>
    %25 = tpu.matmul %21, %24, %cst_20 {dimension_numbers = #tpu.dot_dimension_numbers<[1], [0], [0], [1], [0, 0, 1, 1], [], []>} : vector<1x4xf32>, vector<4x128xf32>, vector<1x128xf32> -> vector<1x128xf32>
    %26 = vector.shape_cast %25 : vector<1x128xf32> to vector<1x1x128xf32>
    %c0_21 = arith.constant 0 : index
    %c0_22 = arith.constant 0 : index
    %c0_23 = arith.constant 0 : index
    %27 = vector.load %arg4[%c0_21, %c0_22, %c0_23] : memref<1x1x128xf32, #tpu.memory_space<vmem>>, vector<1x1x128xf32>
    %28 = arith.mulf %26, %27 : vector<1x1x128xf32>
    %c0_24 = arith.constant 0 : index
    %c0_25 = arith.constant 0 : index
    %c0_26 = arith.constant 0 : index
    %29 = vector.load %arg5[%c0_24, %c0_25, %c0_26] : memref<1x1x128xf32, #tpu.memory_space<vmem>>, vector<1x1x128xf32>
    %30 = vector.shape_cast %23 : vector<1x128xf32> to vector<1x1x128xf32>
    %31 = arith.mulf %30, %28 : vector<1x1x128xf32>
    %32 = arith.subf %29, %31 : vector<1x1x128xf32>
    %33 = vector.broadcast %28 : vector<1x1x128xf32> to vector<56x28x128xf32>
    %34 = arith.mulf %1, %33 : vector<56x28x128xf32>
    %35 = vector.broadcast %32 : vector<1x1x128xf32> to vector<56x28x128xf32>
    %36 = arith.addf %34, %35 : vector<56x28x128xf32>
    %cst_27 = arith.constant 0.000000e+00 : f32
    %37 = vector.broadcast %cst_27 : f32 to vector<56x28x128xf32>
    %38 = arith.maximumf %36, %37 : vector<56x28x128xf32>
    %39 = vector.extract_strided_slice %38 {offsets = [0, 0, 0], sizes = [56, 28, 64], strides = [1, 1, 1]} : vector<56x28x128xf32> to vector<56x28x64xf32>
    %40 = vector.extract_strided_slice %38 {offsets = [0, 0, 64], sizes = [56, 28, 64], strides = [1, 1, 1]} : vector<56x28x128xf32> to vector<56x28x64xf32>
    %41 = arith.maximumf %39, %40 : vector<56x28x64xf32>
    %42 = vector.shape_cast %41 : vector<56x28x64xf32> to vector<28x2x28x64xf32>
    %43 = vector.extract_strided_slice %42 {offsets = [0, 0, 0, 0], sizes = [28, 1, 28, 64], strides = [1, 1, 1, 1]} : vector<28x2x28x64xf32> to vector<28x1x28x64xf32>
    %44 = vector.shape_cast %43 : vector<28x1x28x64xf32> to vector<28x28x64xf32>
    %45 = vector.extract_strided_slice %42 {offsets = [0, 1, 0, 0], sizes = [28, 1, 28, 64], strides = [1, 1, 1, 1]} : vector<28x2x28x64xf32> to vector<28x1x28x64xf32>
    %46 = vector.shape_cast %45 : vector<28x1x28x64xf32> to vector<28x28x64xf32>
    %47 = arith.maximumf %44, %46 : vector<28x28x64xf32>
    %c0_28 = arith.constant 0 : index
    %c0_29 = arith.constant 0 : index
    %c0_30 = arith.constant 0 : index
    %c0_31 = arith.constant 0 : index
    %48 = vector.load %arg6[%c0_28, %c0_29, %c0_30, %c0_31] : memref<1x28x28x64xf32, #tpu.memory_space<vmem>>, vector<1x28x28x64xf32>
    %49 = vector.shape_cast %48 : vector<1x28x28x64xf32> to vector<28x28x64xf32>
    %50 = vector.shape_cast %47 : vector<28x28x64xf32> to vector<1x28x28x64xf32>
    tpu.vector_store %arg6[%c0_28, %c0_29, %c0_30, %c0_31], %50 {strides = array<i32>} : memref<1x28x28x64xf32, #tpu.memory_space<vmem>>, vector<1x28x28x64xf32>,
    return
  }
  func.func @transform_0(%arg0: i32) -> (i32, i32, i32, i32) {
    %c0_i32 = arith.constant 0 : i32
    %c0_i32_0 = arith.constant 0 : i32
    %c0_i32_1 = arith.constant 0 : i32
    %c0_i32_2 = arith.constant 0 : i32
    return %arg0, %c0_i32, %c0_i32_0, %c0_i32_1 : i32, i32, i32, i32
  }
  func.func @transform_1(%arg0: i32) -> (i32, i32) {
    %c0_i32 = arith.constant 0 : i32
    %c0_i32_0 = arith.constant 0 : i32
    %c0_i32_1 = arith.constant 0 : i32
    return %c0_i32, %c0_i32_0 : i32, i32
  }
  func.func @transform_2(%arg0: i32) -> (i32, i32) {
    %c0_i32 = arith.constant 0 : i32
    %c0_i32_0 = arith.constant 0 : i32
    %c0_i32_1 = arith.constant 0 : i32
    return %c0_i32, %c0_i32_0 : i32, i32
  }
  func.func @transform_3(%arg0: i32) -> (i32, i32, i32) {
    %c0_i32 = arith.constant 0 : i32
    %c0_i32_0 = arith.constant 0 : i32
    %c0_i32_1 = arith.constant 0 : i32
    %c0_i32_2 = arith.constant 0 : i32
    return %c0_i32, %c0_i32_0, %c0_i32_1 : i32, i32, i32
  }
  func.func @transform_4(%arg0: i32) -> (i32, i32, i32) {
    %c0_i32 = arith.constant 0 : i32
    %c0_i32_0 = arith.constant 0 : i32
    %c0_i32_1 = arith.constant 0 : i32
    %c0_i32_2 = arith.constant 0 : i32
    return %c0_i32, %c0_i32_0, %c0_i32_1 : i32, i32, i32
  }
  func.func @transform_5(%arg0: i32) -> (i32, i32, i32, i32) {
    %c0_i32 = arith.constant 0 : i32
    %c0_i32_0 = arith.constant 0 : i32
    %c0_i32_1 = arith.constant 0 : i32
    %c0_i32_2 = arith.constant 0 : i32
    return %arg0, %c0_i32, %c0_i32_0, %c0_i32_1 : i32, i32, i32, i32
  }
}

module attributes {stable_mosaic.version = 11 : i64} {
  func.func @_matmul_fullk_kernel(%arg0: i32, %arg1: memref<56x3136xf32, #tpu.memory_space<vmem>>, %arg2: memref<3136x32xf32, #tpu.memory_space<vmem>>, %arg3: memref<56x32xf32, #tpu.memory_space<vmem>>) attributes {dimension_semantics = [#tpu.dimension_semantics<parallel>], iteration_bounds = array<i64: 7>, scalar_prefetch = 0 : i64, scratch_operands = 0 : i64, tpu.core_type = #tpu.core_type<tc>, window_params = [{transform_indices = @transform_0, window_bounds = array<i64: 56, 3136>}, {pipeline_mode = #tpu.pipeline_mode<synchronous>, transform_indices = @transform_1, window_bounds = array<i64: 3136, 32>}, {transform_indices = @transform_2, window_bounds = array<i64: 56, 32>}]} {
    %c0 = arith.constant 0 : index
    %c0_0 = arith.constant 0 : index
    %0 = vector.load %arg1[%c0, %c0_0] : memref<56x3136xf32, #tpu.memory_space<vmem>>, vector<56x3136xf32>
    %c0_1 = arith.constant 0 : index
    %c0_2 = arith.constant 0 : index
    %1 = vector.load %arg2[%c0_1, %c0_2] : memref<3136x32xf32, #tpu.memory_space<vmem>>, vector<3136x32xf32>
    %cst = arith.constant dense<0.000000e+00> : vector<56x32xf32>
    %2 = tpu.matmul %0, %1, %cst {dimension_numbers = #tpu.dot_dimension_numbers<[1], [0], [0], [1], [0, 0, 1, 1], [], []>} : vector<56x3136xf32>, vector<3136x32xf32>, vector<56x32xf32> -> vector<56x32xf32>
    %c0_3 = arith.constant 0 : index
    %c0_4 = arith.constant 0 : index
    %3 = vector.load %arg3[%c0_3, %c0_4] : memref<56x32xf32, #tpu.memory_space<vmem>>, vector<56x32xf32>
    tpu.vector_store %arg3[%c0_3, %c0_4], %2 {strides = array<i32>} : memref<56x32xf32, #tpu.memory_space<vmem>>, vector<56x32xf32>,
    return
  }
  func.func @transform_0(%arg0: i32) -> (i32, i32) {
    %c0_i32 = arith.constant 0 : i32
    %c0_i32_0 = arith.constant 0 : i32
    return %arg0, %c0_i32 : i32, i32
  }
  func.func @transform_1(%arg0: i32) -> (i32, i32) {
    %c0_i32 = arith.constant 0 : i32
    %c0_i32_0 = arith.constant 0 : i32
    %c0_i32_1 = arith.constant 0 : i32
    return %c0_i32, %c0_i32_0 : i32, i32
  }
  func.func @transform_2(%arg0: i32) -> (i32, i32) {
    %c0_i32 = arith.constant 0 : i32
    %c0_i32_0 = arith.constant 0 : i32
    return %arg0, %c0_i32 : i32, i32
  }
}

module attributes {stable_mosaic.version = 11 : i64} {
  func.func @_gn_relu_pool_kernel(%arg0: i32, %arg1: memref<1x14x7x64xf32, #tpu.memory_space<vmem>>, %arg2: memref<64x2xf32, #tpu.memory_space<vmem>>, %arg3: memref<2x64xf32, #tpu.memory_space<vmem>>, %arg4: memref<1x1x64xf32, #tpu.memory_space<vmem>>, %arg5: memref<1x1x64xf32, #tpu.memory_space<vmem>>, %arg6: memref<1x7x7x32xf32, #tpu.memory_space<vmem>>) attributes {dimension_semantics = [#tpu.dimension_semantics<parallel>], iteration_bounds = array<i64: 2>, scalar_prefetch = 0 : i64, scratch_operands = 0 : i64, tpu.core_type = #tpu.core_type<tc>, window_params = [{transform_indices = @transform_0, window_bounds = array<i64: 1, 14, 7, 64>}, {pipeline_mode = #tpu.pipeline_mode<synchronous>, transform_indices = @transform_1, window_bounds = array<i64: 64, 2>}, {pipeline_mode = #tpu.pipeline_mode<synchronous>, transform_indices = @transform_2, window_bounds = array<i64: 2, 64>}, {pipeline_mode = #tpu.pipeline_mode<synchronous>, transform_indices = @transform_3, window_bounds = array<i64: 1, 1, 64>}, {pipeline_mode = #tpu.pipeline_mode<synchronous>, transform_indices = @transform_4, window_bounds = array<i64: 1, 1, 64>}, {transform_indices = @transform_5, window_bounds = array<i64: 1, 7, 7, 32>}]} {
    %c0 = arith.constant 0 : index
    %c0_0 = arith.constant 0 : index
    %c0_1 = arith.constant 0 : index
    %c0_2 = arith.constant 0 : index
    %0 = vector.load %arg1[%c0, %c0_0, %c0_1, %c0_2] : memref<1x14x7x64xf32, #tpu.memory_space<vmem>>, vector<1x14x7x64xf32>
    %1 = vector.shape_cast %0 : vector<1x14x7x64xf32> to vector<14x7x64xf32>
    %cst = arith.constant dense<0.000000e+00> : vector<7x64xf32>
    %2 = vector.multi_reduction <add>, %1, %cst [0] : vector<14x7x64xf32> to vector<7x64xf32>
    %3 = arith.mulf %1, %1 : vector<14x7x64xf32>
    %cst_3 = arith.constant dense<0.000000e+00> : vector<7x64xf32>
    %4 = vector.multi_reduction <add>, %3, %cst_3 [0] : vector<14x7x64xf32> to vector<7x64xf32>
    %cst_4 = arith.constant dense<0.000000e+00> : vector<64xf32>
    %5 = vector.multi_reduction <add>, %2, %cst_4 [0] : vector<7x64xf32> to vector<64xf32>
    %6 = vector.shape_cast %5 : vector<64xf32> to vector<1x64xf32>
    %cst_5 = arith.constant dense<0.000000e+00> : vector<64xf32>
    %7 = vector.multi_reduction <add>, %4, %cst_5 [0] : vector<7x64xf32> to vector<64xf32>
    %8 = vector.shape_cast %7 : vector<64xf32> to vector<1x64xf32>
    %c0_6 = arith.constant 0 : index
    %c0_7 = arith.constant 0 : index
    %9 = vector.load %arg2[%c0_6, %c0_7] : memref<64x2xf32, #tpu.memory_space<vmem>>, vector<64x2xf32>
    %cst_8 = arith.constant dense<0.000000e+00> : vector<1x2xf32>
    %10 = tpu.matmul %6, %9, %cst_8 {dimension_numbers = #tpu.dot_dimension_numbers<[1], [0], [0], [1], [0, 0, 1, 1], [], []>} : vector<1x64xf32>, vector<64x2xf32>, vector<1x2xf32> -> vector<1x2xf32>
    %c0_9 = arith.constant 0 : index
    %c0_10 = arith.constant 0 : index
    %11 = vector.load %arg2[%c0_9, %c0_10] : memref<64x2xf32, #tpu.memory_space<vmem>>, vector<64x2xf32>
    %cst_11 = arith.constant dense<0.000000e+00> : vector<1x2xf32>
    %12 = tpu.matmul %8, %11, %cst_11 {dimension_numbers = #tpu.dot_dimension_numbers<[1], [0], [0], [1], [0, 0, 1, 1], [], []>} : vector<1x64xf32>, vector<64x2xf32>, vector<1x2xf32> -> vector<1x2xf32>
    %cst_12 = arith.constant 3.136000e+03 : f32
    %13 = vector.broadcast %cst_12 : f32 to vector<1x2xf32>
    %14 = arith.divf %10, %13 : vector<1x2xf32>
    %cst_13 = arith.constant 3.136000e+03 : f32
    %15 = vector.broadcast %cst_13 : f32 to vector<1x2xf32>
    %16 = arith.divf %12, %15 : vector<1x2xf32>
    %17 = arith.mulf %14, %14 : vector<1x2xf32>
    %18 = arith.subf %16, %17 : vector<1x2xf32>
    %cst_14 = arith.constant 9.99999974E-6 : f32
    %19 = vector.broadcast %cst_14 : f32 to vector<1x2xf32>
    %20 = arith.addf %18, %19 : vector<1x2xf32>
    %21 = math.rsqrt %20 : vector<1x2xf32>
    %c0_15 = arith.constant 0 : index
    %c0_16 = arith.constant 0 : index
    %22 = vector.load %arg3[%c0_15, %c0_16] : memref<2x64xf32, #tpu.memory_space<vmem>>, vector<2x64xf32>
    %cst_17 = arith.constant dense<0.000000e+00> : vector<1x64xf32>
    %23 = tpu.matmul %14, %22, %cst_17 {dimension_numbers = #tpu.dot_dimension_numbers<[1], [0], [0], [1], [0, 0, 1, 1], [], []>} : vector<1x2xf32>, vector<2x64xf32>, vector<1x64xf32> -> vector<1x64xf32>
    %c0_18 = arith.constant 0 : index
    %c0_19 = arith.constant 0 : index
    %24 = vector.load %arg3[%c0_18, %c0_19] : memref<2x64xf32, #tpu.memory_space<vmem>>, vector<2x64xf32>
    %cst_20 = arith.constant dense<0.000000e+00> : vector<1x64xf32>
    %25 = tpu.matmul %21, %24, %cst_20 {dimension_numbers = #tpu.dot_dimension_numbers<[1], [0], [0], [1], [0, 0, 1, 1], [], []>} : vector<1x2xf32>, vector<2x64xf32>, vector<1x64xf32> -> vector<1x64xf32>
    %26 = vector.shape_cast %25 : vector<1x64xf32> to vector<1x1x64xf32>
    %c0_21 = arith.constant 0 : index
    %c0_22 = arith.constant 0 : index
    %c0_23 = arith.constant 0 : index
    %27 = vector.load %arg4[%c0_21, %c0_22, %c0_23] : memref<1x1x64xf32, #tpu.memory_space<vmem>>, vector<1x1x64xf32>
    %28 = arith.mulf %26, %27 : vector<1x1x64xf32>
    %c0_24 = arith.constant 0 : index
    %c0_25 = arith.constant 0 : index
    %c0_26 = arith.constant 0 : index
    %29 = vector.load %arg5[%c0_24, %c0_25, %c0_26] : memref<1x1x64xf32, #tpu.memory_space<vmem>>, vector<1x1x64xf32>
    %30 = vector.shape_cast %23 : vector<1x64xf32> to vector<1x1x64xf32>
    %31 = arith.mulf %30, %28 : vector<1x1x64xf32>
    %32 = arith.subf %29, %31 : vector<1x1x64xf32>
    %33 = vector.broadcast %28 : vector<1x1x64xf32> to vector<14x7x64xf32>
    %34 = arith.mulf %1, %33 : vector<14x7x64xf32>
    %35 = vector.broadcast %32 : vector<1x1x64xf32> to vector<14x7x64xf32>
    %36 = arith.addf %34, %35 : vector<14x7x64xf32>
    %cst_27 = arith.constant 0.000000e+00 : f32
    %37 = vector.broadcast %cst_27 : f32 to vector<14x7x64xf32>
    %38 = arith.maximumf %36, %37 : vector<14x7x64xf32>
    %39 = vector.extract_strided_slice %38 {offsets = [0, 0, 0], sizes = [14, 7, 32], strides = [1, 1, 1]} : vector<14x7x64xf32> to vector<14x7x32xf32>
    %40 = vector.extract_strided_slice %38 {offsets = [0, 0, 32], sizes = [14, 7, 32], strides = [1, 1, 1]} : vector<14x7x64xf32> to vector<14x7x32xf32>
    %41 = arith.maximumf %39, %40 : vector<14x7x32xf32>
    %42 = vector.shape_cast %41 : vector<14x7x32xf32> to vector<7x2x7x32xf32>
    %43 = vector.extract_strided_slice %42 {offsets = [0, 0, 0, 0], sizes = [7, 1, 7, 32], strides = [1, 1, 1, 1]} : vector<7x2x7x32xf32> to vector<7x1x7x32xf32>
    %44 = vector.shape_cast %43 : vector<7x1x7x32xf32> to vector<7x7x32xf32>
    %45 = vector.extract_strided_slice %42 {offsets = [0, 1, 0, 0], sizes = [7, 1, 7, 32], strides = [1, 1, 1, 1]} : vector<7x2x7x32xf32> to vector<7x1x7x32xf32>
    %46 = vector.shape_cast %45 : vector<7x1x7x32xf32> to vector<7x7x32xf32>
    %47 = arith.maximumf %44, %46 : vector<7x7x32xf32>
    %c0_28 = arith.constant 0 : index
    %c0_29 = arith.constant 0 : index
    %c0_30 = arith.constant 0 : index
    %c0_31 = arith.constant 0 : index
    %48 = vector.load %arg6[%c0_28, %c0_29, %c0_30, %c0_31] : memref<1x7x7x32xf32, #tpu.memory_space<vmem>>, vector<1x7x7x32xf32>
    %49 = vector.shape_cast %48 : vector<1x7x7x32xf32> to vector<7x7x32xf32>
    %50 = vector.shape_cast %47 : vector<7x7x32xf32> to vector<1x7x7x32xf32>
    tpu.vector_store %arg6[%c0_28, %c0_29, %c0_30, %c0_31], %50 {strides = array<i32>} : memref<1x7x7x32xf32, #tpu.memory_space<vmem>>, vector<1x7x7x32xf32>,
    return
  }
  func.func @transform_0(%arg0: i32) -> (i32, i32, i32, i32) {
    %c0_i32 = arith.constant 0 : i32
    %c0_i32_0 = arith.constant 0 : i32
    %c0_i32_1 = arith.constant 0 : i32
    %c0_i32_2 = arith.constant 0 : i32
    return %arg0, %c0_i32, %c0_i32_0, %c0_i32_1 : i32, i32, i32, i32
  }
  func.func @transform_1(%arg0: i32) -> (i32, i32) {
    %c0_i32 = arith.constant 0 : i32
    %c0_i32_0 = arith.constant 0 : i32
    %c0_i32_1 = arith.constant 0 : i32
    return %c0_i32, %c0_i32_0 : i32, i32
  }
  func.func @transform_2(%arg0: i32) -> (i32, i32) {
    %c0_i32 = arith.constant 0 : i32
    %c0_i32_0 = arith.constant 0 : i32
    %c0_i32_1 = arith.constant 0 : i32
    return %c0_i32, %c0_i32_0 : i32, i32
  }
  func.func @transform_3(%arg0: i32) -> (i32, i32, i32) {
    %c0_i32 = arith.constant 0 : i32
    %c0_i32_0 = arith.constant 0 : i32
    %c0_i32_1 = arith.constant 0 : i32
    %c0_i32_2 = arith.constant 0 : i32
    return %c0_i32, %c0_i32_0, %c0_i32_1 : i32, i32, i32
  }
  func.func @transform_4(%arg0: i32) -> (i32, i32, i32) {
    %c0_i32 = arith.constant 0 : i32
    %c0_i32_0 = arith.constant 0 : i32
    %c0_i32_1 = arith.constant 0 : i32
    %c0_i32_2 = arith.constant 0 : i32
    return %c0_i32, %c0_i32_0, %c0_i32_1 : i32, i32, i32
  }
  func.func @transform_5(%arg0: i32) -> (i32, i32, i32, i32) {
    %c0_i32 = arith.constant 0 : i32
    %c0_i32_0 = arith.constant 0 : i32
    %c0_i32_1 = arith.constant 0 : i32
    %c0_i32_2 = arith.constant 0 : i32
    return %arg0, %c0_i32, %c0_i32_0, %c0_i32_1 : i32, i32, i32, i32
  }
}

module attributes {stable_mosaic.version = 11 : i64} {
  func.func @_linear_bias_kernel(%arg0: memref<2x1568xf32, #tpu.memory_space<vmem>>, %arg1: memref<1568x12xf32, #tpu.memory_space<vmem>>, %arg2: memref<1x12xf32, #tpu.memory_space<vmem>>, %arg3: memref<2x12xf32, #tpu.memory_space<vmem>>) attributes {dimension_semantics = [], scalar_prefetch = 0 : i64, scratch_operands = 0 : i64, tpu.core_type = #tpu.core_type<tc>} {
    %c0 = arith.constant 0 : index
    %c0_0 = arith.constant 0 : index
    %0 = vector.load %arg0[%c0, %c0_0] : memref<2x1568xf32, #tpu.memory_space<vmem>>, vector<2x1568xf32>
    %c0_1 = arith.constant 0 : index
    %c0_2 = arith.constant 0 : index
    %1 = vector.load %arg1[%c0_1, %c0_2] : memref<1568x12xf32, #tpu.memory_space<vmem>>, vector<1568x12xf32>
    %cst = arith.constant dense<0.000000e+00> : vector<2x12xf32>
    %2 = tpu.matmul %0, %1, %cst {dimension_numbers = #tpu.dot_dimension_numbers<[1], [0], [0], [1], [0, 0, 1, 1], [], []>} : vector<2x1568xf32>, vector<1568x12xf32>, vector<2x12xf32> -> vector<2x12xf32>
    %c0_3 = arith.constant 0 : index
    %c0_4 = arith.constant 0 : index
    %3 = vector.load %arg2[%c0_3, %c0_4] : memref<1x12xf32, #tpu.memory_space<vmem>>, vector<1x12xf32>
    %4 = vector.broadcast %3 : vector<1x12xf32> to vector<2x12xf32>
    %5 = arith.addf %2, %4 : vector<2x12xf32>
    %c0_5 = arith.constant 0 : index
    %c0_6 = arith.constant 0 : index
    %6 = vector.load %arg3[%c0_5, %c0_6] : memref<2x12xf32, #tpu.memory_space<vmem>>, vector<2x12xf32>
    tpu.vector_store %arg3[%c0_5, %c0_6], %5 {strides = array<i32>} : memref<2x12xf32, #tpu.memory_space<vmem>>, vector<2x12xf32>,
    return
  }
}

</mosaic_0001>

<bundles_post_ra>
// kernel: forward.5
= control target key start
LH: loop header
LB: loop body
LE: loop exit
PB: predicated region body
PF: predicated region fallthrough
CT: control target
= control target key end

     0   :  { %s1710_s9 = smov 0   ;;  %s2300_s0 = inlined_call_operand.vmem [shape: f32[6272,343], index: 0, kind: input, shape index: {}]   ;;  %s2301_s1 = inlined_call_operand.vmem [shape: f32[343,64], index: 1, kind: input, shape index: {}]   ;;  %s2302_s2 = inlined_call_operand.vmem [shape: f32[6272,64], index: 2, kind: output, shape index: {}]  }
   0x1 LB: > { %s1337_s10 = sadd.s32 4294967295, %s1692_s9   ;;  %p1341_p0 = scmp.ge.s32.totalorder %s1692_s9, 1  ;;  %s1692_s9 = sphi %s1710_s9, %s12_s9  }
   0x2   : > { %p114_p1 = scmp.lt.s32.totalorder %s1692_s9, 15 }
   0x4   : > { %p115_p2 = pnand %p1341_p0, %p114_p1 }
   0x5   : > { %v318_v0 = vld [vmem:[%s2301_s1] sm:$0xff] (!%p115_p2)  ;;  %v319_v1 = vld [vmem:[%s2301_s1 + $0x8] sm:$0xff] (!%p115_p2)  ;;  %v320_v2 = vld [vmem:[%s2301_s1 + $0x10] sm:$0xff] (!%p115_p2)  ;;  %s137_s17 = smul.u32 (!%p115_p2), 56, %s1337_s10  ;;  %v1694_v3 = vmov (!%p115_p2), 0.0|0.0   ;;  %vm530_vm0 = vcmask (!%p115_p2), 1046528  }
   0x6   : > { %118 = sbr.rel (%p115_p2) target bundleno = 451 (0x1c3), region = 28  ;;  %1576 = vmatprep.subr.bf16.mxu0 (!%p115_p2), %v1694_v3  ;;  %1644 = vmatprep.subr.bf16.mxu1 (!%p115_p2), %v1694_v3  ;;  %v1577_v4 = vpack.c.bf16 (!%p115_p2), %v319_v1, %v318_v0  ;;  %v321_v5 = vld [vmem:[%s2301_s1 + $0x18] sm:$0xff] (!%p115_p2)  ;;  %v322_v7 = vld [vmem:[%s2301_s1 + $0x20] sm:$0xff] (!%p115_p2)  ;;  %v323_v8 = vld [vmem:[%s2301_s1 + $0x28] sm:$0xff] (!%p115_p2)  ;;  %vm361_vm1 = vcmask (!%p115_p2), 711680   ;;  %vm1224_vm2 = vcmask (!%p115_p2), 523264  }
   0x7   : > { %p138_p3 = scmp.lt.s32.totalorder (!%p115_p2), %s137_s17, 783  ;;  %v1580_v6 = vpack.c.bf16 (!%p115_p2), %v321_v5, %v320_v2  ;;  %v1583_v9 = vpack.c.bf16 (!%p115_p2), %v323_v8, %v322_v7  ;;  %v324_v10 = vld [vmem:[%s2301_s1 + $0x30] sm:$0xff] (!%p115_p2)  ;;  %v325_v11 = vld [vmem:[%s2301_s1 + $0x38] sm:$0xff] (!%p115_p2)  ;;  %v326_v15 = vld [vmem:[%s2301_s1 + $0x40] sm:$0xff] (!%p115_p2) }
   0x8   : > { %1578 = vmatpush1.bf16.msra.mxu0 (!%p115_p2), %v1577_v4  ;;  %1660 = vmatpush1.bf16.msra.mxu1 (!%p115_p2), %v1577_v4  ;;  %v1586_v13 = vpack.c.bf16 (!%p115_p2), %v325_v11, %v324_v10  ;;  %v327_v16 = vld [vmem:[%s2301_s1 + $0x48] sm:$0xff] (!%p115_p2)  ;;  %v328_v18 = vld [vmem:[%s2301_s1 + $0x50] sm:$0xff] (!%p115_p2)  ;;  %v329_v19 = vld [vmem:[%s2301_s1 + $0x58] sm:$0xff] (!%p115_p2) }
   0x9   : > { %1579 = vmatprep.subr.bf16.mxu0 (!%p115_p2), %v1694_v3  ;;  %1645 = vmatprep.subr.bf16.mxu1 (!%p115_p2), %v1694_v3  ;;  %v1589_v17 = vpack.c.bf16 (!%p115_p2), %v327_v16, %v326_v15  ;;  %v1592_v20 = vpack.c.bf16 (!%p115_p2), %v329_v19, %v328_v18  ;;  %v330_v21 = vld [vmem:[%s2301_s1 + $0x60] sm:$0xff] (!%p115_p2)  ;;  %v331_v22 = vld [vmem:[%s2301_s1 + $0x68] sm:$0xff] (!%p115_p2)  ;;  %v332_v24 = vld [vmem:[%s2301_s1 + $0x70] sm:$0xff] (!%p115_p2) }
   0xa   : > { %v1595_v23 = vpack.c.bf16 (!%p115_p2), %v331_v22, %v330_v21  ;;  %v333_v25 = vld [vmem:[%s2301_s1 + $0x78] sm:$0xff] (!%p115_p2)  ;;  %v334_v27 = vld [vmem:[%s2301_s1 + $0x80] sm:$0xff] (!%p115_p2)  ;;  %v335_v28 = vld [vmem:[%s2301_s1 + $0x88] sm:$0xff] (!%p115_p2) }
   0xb   : > { %v1598_v26 = vpack.c.bf16 (!%p115_p2), %v333_v25, %v332_v24  ;;  %v1601_v29 = vpack.c.bf16 (!%p115_p2), %v335_v28, %v334_v27  ;;  %v336_v30 = vld [vmem:[%s2301_s1 + $0x90] sm:$0xff] (!%p115_p2)  ;;  %v337_v31 = vld [vmem:[%s2301_s1 + $0x98] sm:$0xff] (!%p115_p2)  ;;  %v338_v33 = vld [vmem:[%s2301_s1 + $0xa0] sm:$0xff] (!%p115_p2) }
   0xc   : > { %1581 = vmatpush1.bf16.msra.mxu0 (!%p115_p2), %v1580_v6  ;;  %1661 = vmatpush1.bf16.msra.mxu1 (!%p115_p2), %v1580_v6  ;;  %v1604_v32 = vpack.c.bf16 (!%p115_p2), %v337_v31, %v336_v30  ;;  %v339_v34 = vld [vmem:[%s2301_s1 + $0xa8] sm:$0xff] (!%p115_p2)  ;;  %v340_v36 = vld [vmem:[%s2301_s1 + $0xb0] sm:$0xff] (!%p115_p2)  ;;  %v341_v37 = vld [vmem:[%s2301_s1 + $0xb8] sm:$0xff] (!%p115_p2) }
   0xd   : > { %s2304_s17 = smov (!%p138_p3, %s137_s17), 783  ;;  %1582 = vmatprep.subr.bf16.mxu0 %v1694_v3  ;;  %1646 = vmatprep.subr.bf16.mxu1 %v1694_v3  ;;  %v1607_v35 = vpack.c.bf16 %v339_v34, %v338_v33  ;;  %v1610_v38 = vpack.c.bf16 %v341_v37, %v340_v36  ;;  %v342_v39 = vld [vmem:[%s2301_s1 + $0xc0] sm:$0xff]  ;;  %v343_v40 = vld [vmem:[%s2301_s1 + $0xc8] sm:$0xff]  ;;  %v344_v42 = vld [vmem:[%s2301_s1 + $0xd0] sm:$0xff] }
   0xe   : > { %s1676_s24 = smul.u32 24, %s2304_s17  ;;  %v1613_v41 = vpack.c.bf16 %v343_v40, %v342_v39  ;;  %v345_v43 = vld [vmem:[%s2301_s1 + $0xd8] sm:$0xff]  ;;  %v346_v45 = vld [vmem:[%s2301_s1 + $0xe0] sm:$0xff]  ;;  %v347_v46 = vld [vmem:[%s2301_s1 + $0xe8] sm:$0xff] }
   0xf   : > { %v1616_v44 = vpack.c.bf16 %v345_v43, %v344_v42  ;;  %v1619_v47 = vpack.c.bf16 %v347_v46, %v346_v45  ;;  %v348_v48 = vld [vmem:[%s2301_s1 + $0xf0] sm:$0xff]  ;;  %v349_v49 = vld [vmem:[%s2301_s1 + $0xf8] sm:$0xff]  ;;  %v350_v50 = vld [vmem:[%s2301_s1 + $0x100] sm:$0xff] }
  0x10   : > { %s1754_s3 = scalar_lea.vmem %s2300_s0, %s1676_s24  ;;  %1584 = vmatpush1.bf16.msra.mxu0 %v1583_v9  ;;  %1662 = vmatpush1.bf16.msra.mxu1 %v1583_v9  ;;  %v351_v51 = vld [vmem:[%s2301_s1 + $0x108] sm:$0xff]  ;;  %v1622_v52 = vpack.c.bf16 %v349_v49, %v348_v48  ;;  %v352_v54 = vld [vmem:[%s2301_s1 + $0x110] sm:$0xff]  ;;  %v353_v55 = vld [vmem:[%s2301_s1 + $0x118] sm:$0xff] }
  0x11   : > { %v151_v12 = vld [vmem:[%s1754_s3 + $0x8] sm:$0xff]  ;;  %v277_v14 = vld [vmem:[%s1754_s3 + $0x3f8] sm:$0xff]  ;;  %1585 = vmatprep.subr.bf16.mxu0 %v1694_v3  ;;  %1647 = vmatprep.subr.bf16.mxu1 %v1694_v3  ;;  %v1624_v53 = vpack.c.bf16 %v351_v51, %v350_v50  ;;  %v150_v56 = vld [vmem:[%s1754_s3] sm:$0xff]  ;;  %v1628_v59 = vpack.c.bf16 %v353_v55, %v352_v54 }
  0x12   : > { %598 = vmatprep.mubr.f32.mxu0 %v151_v12  ;;  %808 = vmatprep.mubr.f32.mxu1 %v277_v14  ;;  %v276_v57 = vld [vmem:[%s1754_s3 + $0x3f0] sm:$0xff]  ;;  %v154_v58 = vld [vmem:[%s1754_s3 + $0x20] sm:$0xff]  ;;  %v355_v62 = vld [vmem:[%s2301_s1 + $0x128] sm:$0xff] }
  0x13   : > { %v280_v60 = vld [vmem:[%s1754_s3 + $0x410] sm:$0xff]  ;;  %v354_v61 = vld [vmem:[%s2301_s1 + $0x120] sm:$0xff]  ;;  %v153_v63 = vld [vmem:[%s1754_s3 + $0x18] sm:$0xff] }
  0x14   : > { %1587 = vmatpush1.bf16.msra.mxu0 %v1586_v13  ;;  %1663 = vmatpush1.bf16.msra.mxu1 %v1586_v13  ;;  %v279_v0 = vld [vmem:[%s1754_s3 + $0x408] sm:$0xff]  ;;  %v157_v1 = vld [vmem:[%s1754_s3 + $0x38] sm:$0xff]  ;;  %v356_v4 = vld [vmem:[%s2301_s1 + $0x130] sm:$0xff] }
  0x15   : > { %1588 = vmatprep.subr.bf16.mxu0 %v1694_v3  ;;  %1648 = vmatprep.subr.bf16.mxu1 %v1694_v3  ;;  %v283_v2 = vld [vmem:[%s1754_s3 + $0x428] sm:$0xff]  ;;  %v357_v5 = vld [vmem:[%s2301_s1 + $0x138] sm:$0xff]  ;;  %v156_v6 = vld [vmem:[%s1754_s3 + $0x30] sm:$0xff] }
  0x16   : > { %v282_v7 = vld [vmem:[%s1754_s3 + $0x420] sm:$0xff]  ;;  %v160_v8 = vld [vmem:[%s1754_s3 + $0x50] sm:$0xff]  ;;  %v1636_v10 = vpack.c.bf16 %v357_v5, %v356_v4  ;;  %v359_v12 = vld [vmem:[%s2301_s1 + $0x148] sm:$0xff] }
  0x17   : > { %v286_v9 = vld [vmem:[%s1754_s3 + $0x440] sm:$0xff]  ;;  %v159_v13 = vld [vmem:[%s1754_s3 + $0x48] sm:$0xff]  ;;  %v285_v14 = vld [vmem:[%s1754_s3 + $0x438] sm:$0xff] }
  0x18   : > { %1590 = vmatpush1.bf16.msra.mxu0 %v1589_v17  ;;  %1664 = vmatpush1.bf16.msra.mxu1 %v1589_v17  ;;  %v358_v11 = vld [vmem:[%s2301_s1 + $0x140] sm:$0xff]  ;;  %v163_v15 = vld [vmem:[%s1754_s3 + $0x68] sm:$0xff]  ;;  %v289_v16 = vld [vmem:[%s1754_s3 + $0x458] sm:$0xff] }
  0x19   : > { %1591 = vmatprep.subr.bf16.mxu0 %v1694_v3  ;;  %1649 = vmatprep.subr.bf16.mxu1 %v1694_v3  ;;  %v1640_v17 = vpack.c.bf16 %v359_v12, %v358_v11  ;;  %v162_v18 = vld [vmem:[%s1754_s3 + $0x60] sm:$0xff]  ;;  %v288_v19 = vld [vmem:[%s1754_s3 + $0x450] sm:$0xff]  ;;  %v291_v24 = vld [vmem:[%s1754_s3 + $0x468] sm:$0xff] }
  0x1a   : > { %v292_v21 = vld [vmem:[%s1754_s3 + $0x470] sm:$0xff]  ;;  %v169_v25 = vld [vmem:[%s1754_s3 + $0x98] sm:$0xff]  ;;  %v294_v28 = vld [vmem:[%s1754_s3 + $0x480] sm:$0xff] }
  0x1b   : > { %v360_v22 = vld [vmem:[%s2301_s1 + $0x150] sm:$0x7f]  ;;  %v298_v30 = vld [vmem:[%s1754_s3 + $0x4a0] sm:$0xff]  ;;  %v171_v31 = vld [vmem:[%s1754_s3 + $0xa8] sm:$0xff] }
  0x1c   : > { %1593 = vmatpush1.bf16.msra.mxu0 %v1592_v20  ;;  %1665 = vmatpush1.bf16.msra.mxu1 %v1592_v20  ;;  %v166_v20 = vld [vmem:[%s1754_s3 + $0x80] sm:$0xff]  ;;  %v168_v27 = vld [vmem:[%s1754_s3 + $0x90] sm:$0xff]  ;;  %v175_v33 = vld [vmem:[%s1754_s3 + $0xc8] sm:$0xff] }
  0x1d   : > { %1594 = vmatprep.subr.bf16.mxu0 %v1694_v3  ;;  %1650 = vmatprep.subr.bf16.mxu1 %v1694_v3  ;;  %v301_v34 = vld [vmem:[%s1754_s3 + $0x4b8] sm:$0xff]  ;;  %v300_v36 = vld [vmem:[%s1754_s3 + $0x4b0] sm:$0xff]  ;;  %v178_v37 = vld [vmem:[%s1754_s3 + $0xe0] sm:$0xff] }
  0x1e   : > { %v177_v39 = vld [vmem:[%s1754_s3 + $0xd8] sm:$0xff]  ;;  %v303_v40 = vld [vmem:[%s1754_s3 + $0x4c8] sm:$0xff]  ;;  %v180_v43 = vld [vmem:[%s1754_s3 + $0xf0] sm:$0xff] }
  0x1f   : > { %v307_v42 = vld [vmem:[%s1754_s3 + $0x4e8] sm:$0xff]  ;;  %v184_v45 = vld [vmem:[%s1754_s3 + $0x110] sm:$0xff]  ;;  %v310_v46 = vld [vmem:[%s1754_s3 + $0x500] sm:$0xff] }
  0x20   : > { %1596 = vmatpush1.bf16.msra.mxu0 %v1595_v23  ;;  %1666 = vmatpush1.bf16.msra.mxu1 %v1595_v23  ;;  %v165_v23 = vld [vmem:[%s1754_s3 + $0x78] sm:$0xff]  ;;  %v187_v49 = vld [vmem:[%s1754_s3 + $0x128] sm:$0xff]  ;;  %v186_v51 = vld [vmem:[%s1754_s3 + $0x120] sm:$0xff] }
  0x21   : > { %1597 = vmatprep.subr.bf16.mxu0 %v1694_v3  ;;  %1651 = vmatprep.subr.bf16.mxu1 %v1694_v3  ;;  %v309_v48 = vld [vmem:[%s1754_s3 + $0x4f8] sm:$0xff]  ;;  %v316_v54 = vld [vmem:[%s1754_s3 + $0x530] sm:$0xff]  ;;  %v167_v4 = vld [vmem:[%s1754_s3 + $0x88] sm:$0xff] }
  0x22   : > { %v313_v50 = vld [vmem:[%s1754_s3 + $0x518] sm:$0xff]  ;;  %v202_v5 = vld [vmem:[%s1754_s3 + $0x1a0] sm:$0xff]  ;;  %v204_v11 = vld [vmem:[%s1754_s3 + $0x1b0] sm:$0xff] }
  0x23   : > { %v189_v55 = vld [vmem:[%s1754_s3 + $0x138] sm:$0xff]  ;;  %v179_v12 = vld [vmem:[%s1754_s3 + $0xe8] sm:$0xff] }
  0x24   : > { %1599 = vmatpush1.bf16.msra.mxu0 %v1598_v26  ;;  %1667 = vmatpush1.bf16.msra.mxu1 %v1598_v26  ;;  %v295_v26 = vld [vmem:[%s1754_s3 + $0x488] sm:$0xff] }
  0x25   : > { %1600 = vmatprep.subr.bf16.mxu0 %v1694_v3  ;;  %1652 = vmatprep.subr.bf16.mxu1 %v1694_v3 }
  0x28   : > { %1602 = vmatpush1.bf16.msra.mxu0 %v1601_v29  ;;  %1668 = vmatpush1.bf16.msra.mxu1 %v1601_v29  ;;  %v172_v29 = vld [vmem:[%s1754_s3 + $0xb0] sm:$0xff] }
  0x29   : > { %1603 = vmatprep.subr.bf16.mxu0 %v1694_v3  ;;  %1653 = vmatprep.subr.bf16.mxu1 %v1694_v3 }
  0x2c   : > { %1605 = vmatpush1.bf16.msra.mxu0 %v1604_v32  ;;  %1669 = vmatpush1.bf16.msra.mxu1 %v1604_v32  ;;  %v297_v32 = vld [vmem:[%s1754_s3 + $0x498] sm:$0xff] }
  0x2d   : > { %1606 = vmatprep.subr.bf16.mxu0 %v1694_v3  ;;  %1654 = vmatprep.subr.bf16.mxu1 %v1694_v3 }
  0x30   : > { %1608 = vmatpush1.bf16.msra.mxu0 %v1607_v35  ;;  %1670 = vmatpush1.bf16.msra.mxu1 %v1607_v35  ;;  %v174_v35 = vld [vmem:[%s1754_s3 + $0xc0] sm:$0xff] }
  0x31   : > { %1609 = vmatprep.subr.bf16.mxu0 %v1694_v3  ;;  %1655 = vmatprep.subr.bf16.mxu1 %v1694_v3 }
  0x34   : > { %1611 = vmatpush1.bf16.msra.mxu0 %v1610_v38  ;;  %1671 = vmatpush1.bf16.msra.mxu1 %v1610_v38  ;;  %v304_v38 = vld [vmem:[%s1754_s3 + $0x4d0] sm:$0xff] }
  0x35   : > { %1612 = vmatprep.subr.bf16.mxu0 %v1694_v3  ;;  %1656 = vmatprep.subr.bf16.mxu1 %v1694_v3 }
  0x38   : > { %1614 = vmatpush1.bf16.msra.mxu0 %v1613_v41  ;;  %1672 = vmatpush1.bf16.msra.mxu1 %v1613_v41  ;;  %v181_v41 = vld [vmem:[%s1754_s3 + $0xf8] sm:$0xff] }
  0x39   : > { %1615 = vmatprep.subr.bf16.mxu0 %v1694_v3  ;;  %1657 = vmatprep.subr.bf16.mxu1 %v1694_v3 }
  0x3c   : > { %1617 = vmatpush1.bf16.msra.mxu0 %v1616_v44  ;;  %1673 = vmatpush1.bf16.msra.mxu1 %v1616_v44  ;;  %v306_v44 = vld [vmem:[%s1754_s3 + $0x4e0] sm:$0xff] }
  0x3d   : > { %1618 = vmatprep.subr.bf16.mxu0 %v1694_v3  ;;  %1658 = vmatprep.subr.bf16.mxu1 %v1694_v3 }
  0x40   : > { %1620 = vmatpush1.bf16.msra.mxu0 %v1619_v47  ;;  %1674 = vmatpush1.bf16.msra.mxu1 %v1619_v47  ;;  %v183_v47 = vld [vmem:[%s1754_s3 + $0x108] sm:$0xff] }
  0x41   : > { %1621 = vmatprep.subr.bf16.mxu0 %v1694_v3  ;;  %1659 = vmatprep.subr.bf16.mxu1 %v1694_v3  ;;  %v1632_v3 = vpack.c.bf16 %v355_v62, %v354_v61  ;;  %v196_v61 = vld [vmem:[%s1754_s3 + $0x170] sm:$0xff]  ;;  %v158_v62 = vld [vmem:[%s1754_s3 + $0x40] sm:$0xff] }
  0x44   : > { %1623 = vmatpush1.bf16.msra.mxu0 %v1622_v52  ;;  %1675 = vmatpush1.bf16.msra.mxu1 %v1622_v52  ;;  %v312_v52 = vld [vmem:[%s1754_s3 + $0x510] sm:$0xff] }
  0x45   : > { %1625 = vmatprep.subr.bf16.mxu1 %v1624_v53 }
  0x47   : > { %599 = vmatmul.mubr.f32.vlgmr.msra.gmra.mrb[0].mxu0 %v150_v56  ;;  %809 = vmatmul.mubr.f32.vlgmr.msra.gmra.mrb[0].mxu1 %v276_v57  ;;  %v315_v56 = vld [vmem:[%s1754_s3 + $0x528] sm:$0xff]  ;;  %v193_v57 = vld [vmem:[%s1754_s3 + $0x158] sm:$0xff] }
  0x48   : > { %1627 = vmatpush3.bf16.msra.mxu1 %v1624_v53  ;;  %603 = vmatprep.mubr.f32.mxu0 %v154_v58  ;;  %v190_v53 = vld [vmem:[%s1754_s3 + $0x140] sm:$0xff]  ;;  %v152_v58 = vld [vmem:[%s1754_s3 + $0x10] sm:$0xff] }
  0x49   : > { %813 = vmatprep.mubr.f32.mxu1 %v280_v60  ;;  %1629 = vmatprep.subr.bf16.mxu1 %v1628_v59  ;;  %v155_v60 = vld [vmem:[%s1754_s3 + $0x28] sm:$0xff] }
  0x4b   : > { %604 = vmatmul.mubr.f32.gmra.mrb[2].mxu0 %v153_v63  ;;  %814 = vmatmul.mubr.f32.gmra.mrb[2].mxu1 %v279_v0  ;;  %v195_v63 = vld [vmem:[%s1754_s3 + $0x168] sm:$0xff]  ;;  %v161_v0 = vld [vmem:[%s1754_s3 + $0x58] sm:$0xff] }
  0x4c   : > { %608 = vmatprep.mubr.f32.mxu0 %v157_v1  ;;  %818 = vmatprep.mubr.f32.mxu1 %v283_v2  ;;  %v199_v1 = vld [vmem:[%s1754_s3 + $0x188] sm:$0xff]  ;;  %v164_v2 = vld [vmem:[%s1754_s3 + $0x70] sm:$0xff] }
  0x4d   : > { %1631 = vmatpush3.bf16.msra.mxu1 %v1628_v59  ;;  %v192_v59 = vld [vmem:[%s1754_s3 + $0x150] sm:$0xff] }
  0x4e   : > { %1633 = vmatprep.subr.bf16.mxu1 %v1632_v3 }
  0x4f   : > { %609 = vmatmul.mubr.f32.gmra.mrb[4].mxu0 %v156_v6  ;;  %819 = vmatmul.mubr.f32.gmra.mrb[4].mxu1 %v282_v7  ;;  %v170_v6 = vld [vmem:[%s1754_s3 + $0xa0] sm:$0xff]  ;;  %v201_v7 = vld [vmem:[%s1754_s3 + $0x198] sm:$0xff] }
  0x50   : > { %613 = vmatprep.mubr.f32.mxu0 %v160_v8  ;;  %823 = vmatprep.mubr.f32.mxu1 %v286_v9  ;;  %v173_v8 = vld [vmem:[%s1754_s3 + $0xb8] sm:$0xff] }
  0x51   : > { %1635 = vmatpush3.bf16.msra.mxu1 %v1632_v3  ;;  %v198_v3 = vld [vmem:[%s1754_s3 + $0x180] sm:$0xff]  ;;  %v205_v9 = vld [vmem:[%s1754_s3 + $0x1b8] sm:$0xff] }
  0x52   : > { %1637 = vmatprep.subr.bf16.mxu1 %v1636_v10 }
  0x53   : > { %614 = vmatmul.mubr.f32.gmra.mrb[6].mxu0 %v159_v13  ;;  %824 = vmatmul.mubr.f32.gmra.mrb[6].mxu1 %v285_v14  ;;  %v208_v13 = vld [vmem:[%s1754_s3 + $0x1d0] sm:$0xff]  ;;  %v182_v14 = vld [vmem:[%s1754_s3 + $0x100] sm:$0xff] }
  0x54   : > { %618 = vmatprep.mubr.f32.mxu0 %v163_v15  ;;  %828 = vmatprep.mubr.f32.mxu1 %v289_v16  ;;  %v207_v15 = vld [vmem:[%s1754_s3 + $0x1c8] sm:$0xff]  ;;  %v185_v16 = vld [vmem:[%s1754_s3 + $0x118] sm:$0xff] }
  0x55   : > { %1639 = vmatpush3.bf16.msra.mxu1 %v1636_v10  ;;  %v176_v10 = vld [vmem:[%s1754_s3 + $0xd0] sm:$0xff] }
  0x56   : > { %1641 = vmatprep.subr.bf16.mxu1 %v1640_v17 }
  0x57   : > { %619 = vmatmul.mubr.f32.gmra.mrb[8].mxu0 %v162_v18  ;;  %829 = vmatmul.mubr.f32.gmra.mrb[8].mxu1 %v288_v19  ;;  %v188_v18 = vld [vmem:[%s1754_s3 + $0x130] sm:$0xff]  ;;  %v210_v19 = vld [vmem:[%s1754_s3 + $0x1e0] sm:$0xff] }
  0x58   : > { %623 = vmatprep.mubr.f32.mxu0 %v166_v20  ;;  %833 = vmatprep.mubr.f32.mxu1 %v292_v21  ;;  %v191_v20 = vld [vmem:[%s1754_s3 + $0x148] sm:$0xff]  ;;  %v214_v21 = vld [vmem:[%s1754_s3 + $0x200] sm:$0xff] }
  0x59   : > { %1643 = vmatpush3.bf16.msra.mxu1 %v1640_v17  ;;  %v211_v17 = vld [vmem:[%s1754_s3 + $0x1e8] sm:$0xff] }
  0x5a   : > { %1490 = vmatprep.subr.msk.mxu1 %vm530_vm0, %v360_v22 }
  0x5b   : > { %624 = vmatmul.mubr.f32.gmra.mrb[10].mxu0 %v165_v23  ;;  %834 = vmatmul.mubr.f32.gmra.mrb[10].mxu1 %v291_v24  ;;  %v213_v23 = vld [vmem:[%s1754_s3 + $0x1f8] sm:$0xff] }
  0x5c   : > { %628 = vmatprep.mubr.f32.mxu0 %v169_v25  ;;  %838 = vmatprep.mubr.f32.mxu1 %v295_v26  ;;  %v197_v24 = vld [vmem:[%s1754_s3 + $0x178] sm:$0xff]  ;;  %v200_v26 = vld [vmem:[%s1754_s3 + $0x190] sm:$0xff] }
  0x5d   : > { %1491 = vmatpush3.msk.msra.mxu1 %vm530_vm0, %v360_v22  ;;  %v194_v22 = vld [vmem:[%s1754_s3 + $0x160] sm:$0xff]  ;;  %v217_v25 = vld [vmem:[%s1754_s3 + $0x218] sm:$0xff] }
  0x5f   : > { %629 = vmatmul.mubr.f32.gmra.mrb[12].mxu0 %v168_v27  ;;  %839 = vmatmul.mubr.f32.gmra.mrb[12].mxu1 %v294_v28  ;;  %v216_v27 = vld [vmem:[%s1754_s3 + $0x210] sm:$0xff]  ;;  %v203_v28 = vld [vmem:[%s1754_s3 + $0x1a8] sm:$0xff] }
  0x60   : > { %633 = vmatprep.mubr.f32.mxu0 %v172_v29  ;;  %843 = vmatprep.mubr.f32.mxu1 %v298_v30  ;;  %v220_v29 = vld [vmem:[%s1754_s3 + $0x230] sm:$0xff]  ;;  %v206_v30 = vld [vmem:[%s1754_s3 + $0x1c0] sm:$0xff] }
  0x63   : > { %634 = vmatmul.mubr.f32.gmra.mrb[14].mxu0 %v171_v31  ;;  %844 = vmatmul.mubr.f32.gmra.mrb[14].mxu1 %v297_v32  ;;  %v219_v31 = vld [vmem:[%s1754_s3 + $0x228] sm:$0xff]  ;;  %v209_v32 = vld [vmem:[%s1754_s3 + $0x1d8] sm:$0xff] }
  0x64   : > { %638 = vmatprep.mubr.f32.mxu0 %v175_v33  ;;  %848 = vmatprep.mubr.f32.mxu1 %v301_v34  ;;  %v223_v33 = vld [vmem:[%s1754_s3 + $0x248] sm:$0xff]  ;;  %v212_v34 = vld [vmem:[%s1754_s3 + $0x1f0] sm:$0xff] }
  0x67   : > { %639 = vmatmul.mubr.f32.gmra.mrb[16].mxu0 %v174_v35  ;;  %849 = vmatmul.mubr.f32.gmra.mrb[16].mxu1 %v300_v36  ;;  %v222_v35 = vld [vmem:[%s1754_s3 + $0x240] sm:$0xff]  ;;  %v215_v36 = vld [vmem:[%s1754_s3 + $0x208] sm:$0xff] }
  0x68   : > { %643 = vmatprep.mubr.f32.mxu0 %v178_v37  ;;  %853 = vmatprep.mubr.f32.mxu1 %v304_v38  ;;  %v226_v37 = vld [vmem:[%s1754_s3 + $0x260] sm:$0xff] }
  0x69   : > { %v218_v38 = vld [vmem:[%s1754_s3 + $0x220] sm:$0xff] }
  0x6b   : > { %644 = vmatmul.mubr.f32.gmra.mrb[18].mxu0 %v177_v39  ;;  %854 = vmatmul.mubr.f32.gmra.mrb[18].mxu1 %v303_v40  ;;  %v225_v39 = vld [vmem:[%s1754_s3 + $0x258] sm:$0xff] }
  0x6c   : > { %648 = vmatprep.mubr.f32.mxu0 %v181_v41  ;;  %858 = vmatprep.mubr.f32.mxu1 %v307_v42  ;;  %v221_v40 = vld [vmem:[%s1754_s3 + $0x238] sm:$0xff]  ;;  %v224_v42 = vld [vmem:[%s1754_s3 + $0x250] sm:$0xff] }
  0x6d   : > { %v229_v41 = vld [vmem:[%s1754_s3 + $0x278] sm:$0xff] }
  0x6f   : > { %649 = vmatmul.mubr.f32.gmra.mrb[20].mxu0 %v180_v43  ;;  %859 = vmatmul.mubr.f32.gmra.mrb[20].mxu1 %v306_v44  ;;  %v228_v43 = vld [vmem:[%s1754_s3 + $0x270] sm:$0xff]  ;;  %v227_v44 = vld [vmem:[%s1754_s3 + $0x268] sm:$0xff] }
  0x70   : > { %653 = vmatprep.mubr.f32.mxu0 %v184_v45  ;;  %863 = vmatprep.mubr.f32.mxu1 %v310_v46  ;;  %v232_v45 = vld [vmem:[%s1754_s3 + $0x290] sm:$0xff]  ;;  %v230_v46 = vld [vmem:[%s1754_s3 + $0x280] sm:$0xff] }
  0x73   : > { %654 = vmatmul.mubr.f32.gmra.mrb[22].mxu0 %v183_v47  ;;  %864 = vmatmul.mubr.f32.gmra.mrb[22].mxu1 %v309_v48  ;;  %v231_v47 = vld [vmem:[%s1754_s3 + $0x288] sm:$0xff]  ;;  %v233_v48 = vld [vmem:[%s1754_s3 + $0x298] sm:$0xff] }
  0x74   : > { %658 = vmatprep.mubr.f32.mxu0 %v187_v49  ;;  %868 = vmatprep.mubr.f32.mxu1 %v313_v50  ;;  %v235_v49 = vld [vmem:[%s1754_s3 + $0x2a8] sm:$0xff]  ;;  %v236_v50 = vld [vmem:[%s1754_s3 + $0x2b0] sm:$0xff] }
  0x77   : > { %659 = vmatmul.mubr.f32.gmra.mrb[24].mxu0 %v186_v51  ;;  %869 = vmatmul.mubr.f32.gmra.mrb[24].mxu1 %v312_v52  ;;  %v234_v51 = vld [vmem:[%s1754_s3 + $0x2a0] sm:$0xff]  ;;  %v239_v52 = vld [vmem:[%s1754_s3 + $0x2c8] sm:$0xff] }
  0x78   : > { %663 = vmatprep.mubr.f32.mxu0 %v190_v53  ;;  %873 = vmatprep.mubr.f32.mxu1 %v316_v54  ;;  %v238_v53 = vld [vmem:[%s1754_s3 + $0x2c0] sm:$0xff] }
  0x79   : > { %v242_v54 = vld [vmem:[%s1754_s3 + $0x2e0] sm:$0xff] }
  0x7b   : > { %664 = vmatmul.mubr.f32.gmra.mrb[26].mxu0 %v189_v55  ;;  %874 = vmatmul.mubr.f32.gmra.mrb[26].mxu1 %v315_v56  ;;  %v237_v55 = vld [vmem:[%s1754_s3 + $0x2b8] sm:$0xff] }
  0x7c   : > { %668 = vmatprep.mubr.f32.mxu0 %v193_v57  ;;  %1492 = vmatprep.mubr.msk.f32.mxu1 %vm361_vm1, %v152_v58  ;;  %v245_v56 = vld [vmem:[%s1754_s3 + $0x2f8] sm:$0xff]  ;;  %v248_v58 = vld [vmem:[%s1754_s3 + $0x310] sm:$0xff] }
  0x7d   : > { %v241_v57 = vld [vmem:[%s1754_s3 + $0x2d8] sm:$0xff] }
  0x7f   : > { %669 = vmatmul.mubr.f32.gmra.mrb[28].mxu0 %v192_v59  ;;  %1493 = vmatmul.mubr.msk.f32.vlgmr.msra.gmra.mrb[28].mxu1 %vm361_vm1, %v155_v60  ;;  %v240_v59 = vld [vmem:[%s1754_s3 + $0x2d0] sm:$0xff]  ;;  %v251_v60 = vld [vmem:[%s1754_s3 + $0x328] sm:$0xff] }
  0x80   : > { %673 = vmatprep.mubr.f32.mxu0 %v196_v61  ;;  %1495 = vmatprep.mubr.msk.f32.mxu1 %vm361_vm1, %v158_v62  ;;  %v244_v61 = vld [vmem:[%s1754_s3 + $0x2f0] sm:$0xff]  ;;  %v254_v62 = vld [vmem:[%s1754_s3 + $0x340] sm:$0xff] }
  0x83   : > { %674 = vmatmul.mubr.f32.gmra.mrb[30].mxu0 %v195_v63  ;;  %1496 = vmatmul.mubr.msk.f32.gmra.mrb[30].mxu1 %vm361_vm1, %v161_v0  ;;  %v243_v63 = vld [vmem:[%s1754_s3 + $0x2e8] sm:$0xff]  ;;  %v257_v0 = vld [vmem:[%s1754_s3 + $0x358] sm:$0xff] }
  0x84   : > { %678 = vmatprep.mubr.f32.mxu0 %v199_v1  ;;  %1498 = vmatprep.mubr.msk.f32.mxu1 %vm361_vm1, %v164_v2  ;;  %v247_v1 = vld [vmem:[%s1754_s3 + $0x308] sm:$0xff]  ;;  %v260_v2 = vld [vmem:[%s1754_s3 + $0x370] sm:$0xff] }
  0x87   : > { %679 = vmatmul.mubr.f32.gmra.mrb[32].mxu0 %v198_v3  ;;  %1499 = vmatmul.mubr.msk.f32.gmra.mrb[32].mxu1 %vm361_vm1, %v167_v4  ;;  %v246_v3 = vld [vmem:[%s1754_s3 + $0x300] sm:$0xff]  ;;  %v263_v4 = vld [vmem:[%s1754_s3 + $0x388] sm:$0xff] }
  0x88   : > { %683 = vmatprep.mubr.f32.mxu0 %v202_v5  ;;  %1501 = vmatprep.mubr.msk.f32.mxu1 %vm361_vm1, %v170_v6  ;;  %v250_v5 = vld [vmem:[%s1754_s3 + $0x320] sm:$0xff] }
  0x89   : > { %v266_v6 = vld [vmem:[%s1754_s3 + $0x3a0] sm:$0xff] }
  0x8b   : > { %684 = vmatmul.mubr.f32.gmra.mrb[34].mxu0 %v201_v7  ;;  %1502 = vmatmul.mubr.msk.f32.gmra.mrb[34].mxu1 %vm361_vm1, %v173_v8  ;;  %v249_v7 = vld [vmem:[%s1754_s3 + $0x318] sm:$0xff] }
  0x8c   : > { %688 = vmatprep.mubr.f32.mxu0 %v205_v9  ;;  %1504 = vmatprep.mubr.msk.f32.mxu1 %vm361_vm1, %v176_v10  ;;  %v269_v8 = vld [vmem:[%s1754_s3 + $0x3b8] sm:$0xff]  ;;  %v272_v10 = vld [vmem:[%s1754_s3 + $0x3d0] sm:$0xff] }
  0x8d   : > { %v253_v9 = vld [vmem:[%s1754_s3 + $0x338] sm:$0xff] }
  0x8f   : > { %689 = vmatmul.mubr.f32.gmra.mrb[36].mxu0 %v204_v11  ;;  %1505 = vmatmul.mubr.msk.f32.gmra.mrb[36].mxu1 %vm361_vm1, %v179_v12  ;;  %v252_v11 = vld [vmem:[%s1754_s3 + $0x330] sm:$0xff]  ;;  %v275_v12 = vld [vmem:[%s1754_s3 + $0x3e8] sm:$0xff] }
  0x90   : > { %693 = vmatprep.mubr.f32.mxu0 %v208_v13  ;;  %1507 = vmatprep.mubr.msk.f32.mxu1 %vm361_vm1, %v182_v14  ;;  %v256_v13 = vld [vmem:[%s1754_s3 + $0x350] sm:$0xff]  ;;  %v278_v14 = vld [vmem:[%s1754_s3 + $0x400] sm:$0xff] }
  0x93   : > { %694 = vmatmul.mubr.f32.gmra.mrb[38].mxu0 %v207_v15  ;;  %1508 = vmatmul.mubr.msk.f32.gmra.mrb[38].mxu1 %vm361_vm1, %v185_v16  ;;  %v255_v15 = vld [vmem:[%s1754_s3 + $0x348] sm:$0xff]  ;;  %v281_v16 = vld [vmem:[%s1754_s3 + $0x418] sm:$0xff] }
  0x94   : > { %698 = vmatprep.mubr.f32.mxu0 %v211_v17  ;;  %1510 = vmatprep.mubr.msk.f32.mxu1 %vm361_vm1, %v188_v18  ;;  %v259_v17 = vld [vmem:[%s1754_s3 + $0x368] sm:$0xff]  ;;  %v284_v18 = vld [vmem:[%s1754_s3 + $0x430] sm:$0xff] }
  0x97   : > { %699 = vmatmul.mubr.f32.gmra.mrb[40].mxu0 %v210_v19  ;;  %1511 = vmatmul.mubr.msk.f32.gmra.mrb[40].mxu1 %vm361_vm1, %v191_v20  ;;  %v258_v19 = vld [vmem:[%s1754_s3 + $0x360] sm:$0xff]  ;;  %v287_v20 = vld [vmem:[%s1754_s3 + $0x448] sm:$0xff] }
  0x98   : > { %703 = vmatprep.mubr.f32.mxu0 %v214_v21  ;;  %1513 = vmatprep.mubr.msk.f32.mxu1 %vm361_vm1, %v194_v22  ;;  %v262_v21 = vld [vmem:[%s1754_s3 + $0x380] sm:$0xff] }
  0x99   : > { %v290_v22 = vld [vmem:[%s1754_s3 + $0x460] sm:$0xff] }
  0x9b   : > { %704 = vmatmul.mubr.f32.gmra.mrb[42].mxu0 %v213_v23  ;;  %1514 = vmatmul.mubr.msk.f32.gmra.mrb[42].mxu1 %vm361_vm1, %v197_v24  ;;  %v261_v23 = vld [vmem:[%s1754_s3 + $0x378] sm:$0xff] }
  0x9c   : > { %708 = vmatprep.mubr.f32.mxu0 %v217_v25  ;;  %1516 = vmatprep.mubr.msk.f32.mxu1 %vm361_vm1, %v200_v26  ;;  %v293_v24 = vld [vmem:[%s1754_s3 + $0x478] sm:$0xff]  ;;  %v296_v26 = vld [vmem:[%s1754_s3 + $0x490] sm:$0xff] }
  0x9d   : > { %v265_v25 = vld [vmem:[%s1754_s3 + $0x398] sm:$0xff] }
  0x9f   : > { %709 = vmatmul.mubr.f32.gmra.mrb[44].mxu0 %v216_v27  ;;  %1517 = vmatmul.mubr.msk.f32.gmra.mrb[44].mxu1 %vm361_vm1, %v203_v28  ;;  %v264_v27 = vld [vmem:[%s1754_s3 + $0x390] sm:$0xff]  ;;  %v299_v28 = vld [vmem:[%s1754_s3 + $0x4a8] sm:$0xff] }
  0xa0   : > { %713 = vmatprep.mubr.f32.mxu0 %v220_v29  ;;  %1519 = vmatprep.mubr.msk.f32.mxu1 %vm361_vm1, %v206_v30  ;;  %v268_v29 = vld [vmem:[%s1754_s3 + $0x3b0] sm:$0xff]  ;;  %v302_v30 = vld [vmem:[%s1754_s3 + $0x4c0] sm:$0xff] }
  0xa3   : > { %714 = vmatmul.mubr.f32.gmra.mrb[46].mxu0 %v219_v31  ;;  %1520 = vmatmul.mubr.msk.f32.gmra.mrb[46].mxu1 %vm361_vm1, %v209_v32  ;;  %v267_v31 = vld [vmem:[%s1754_s3 + $0x3a8] sm:$0xff]  ;;  %v305_v32 = vld [vmem:[%s1754_s3 + $0x4d8] sm:$0xff] }
  0xa4   : > { %718 = vmatprep.mubr.f32.mxu0 %v223_v33  ;;  %1522 = vmatprep.mubr.msk.f32.mxu1 %vm361_vm1, %v212_v34  ;;  %v271_v33 = vld [vmem:[%s1754_s3 + $0x3c8] sm:$0xff]  ;;  %v308_v34 = vld [vmem:[%s1754_s3 + $0x4f0] sm:$0xff] }
  0xa7   : > { %719 = vmatmul.mubr.f32.gmra.mrb[48].mxu0 %v222_v35  ;;  %1523 = vmatmul.mubr.msk.f32.gmra.mrb[48].mxu1 %vm361_vm1, %v215_v36  ;;  %v270_v35 = vld [vmem:[%s1754_s3 + $0x3c0] sm:$0xff]  ;;  %v311_v36 = vld [vmem:[%s1754_s3 + $0x508] sm:$0xff] }
  0xa8   : > { %723 = vmatprep.mubr.f32.mxu0 %v226_v37  ;;  %1525 = vmatprep.mubr.msk.f32.mxu1 %vm361_vm1, %v218_v38  ;;  %v274_v37 = vld [vmem:[%s1754_s3 + $0x3e0] sm:$0xff] }
  0xa9   : > { %v314_v38 = vld [vmem:[%s1754_s3 + $0x520] sm:$0xff] }
  0xab   : > { %724 = vmatmul.mubr.f32.gmra.mrb[50].mxu0 %v225_v39  ;;  %1526 = vmatmul.mubr.msk.f32.gmra.mrb[50].mxu1 %vm361_vm1, %v221_v40  ;;  %v273_v39 = vld [vmem:[%s1754_s3 + $0x3d8] sm:$0xff] }
  0xac   : > { %728 = vmatprep.mubr.f32.mxu0 %v229_v41  ;;  %1528 = vmatprep.mubr.msk.f32.mxu1 %vm361_vm1, %v224_v42  ;;  %v317_v40 = vld [vmem:[%s1754_s3 + $0x538] sm:$0xff]  ;;  %s1343_s3 = sshll.u32 %s2304_s17, 3 }
  0xad   : > { %s2159_s28 = scalar_lea.vmem %s2302_s2, %s1343_s3 }
  0xaf   : > { %729 = vmatmul.mubr.f32.gmra.mrb[52].mxu0 %v228_v43  ;;  %1529 = vmatmul.mubr.msk.f32.gmra.mrb[52].mxu1 %vm361_vm1, %v227_v44 }
  0xb0   : > { %733 = vmatprep.mubr.f32.mxu0 %v232_v45  ;;  %1531 = vmatprep.mubr.msk.f32.mxu1 %vm361_vm1, %v230_v46 }
  0xb3   : > { %734 = vmatmul.mubr.f32.gmra.mrb[54].mxu0 %v231_v47  ;;  %1532 = vmatmul.mubr.msk.f32.gmra.mrb[54].mxu1 %vm361_vm1, %v233_v48 }
  0xb4   : > { %738 = vmatprep.mubr.f32.mxu0 %v235_v49  ;;  %1534 = vmatprep.mubr.msk.f32.mxu1 %vm361_vm1, %v236_v50 }
  0xb7   : > { %739 = vmatmul.mubr.f32.gmra.mrb[56].mxu0 %v234_v51  ;;  %1535 = vmatmul.mubr.msk.f32.gmra.mrb[56].mxu1 %vm361_vm1, %v239_v52 }
  0xb8   : > { %743 = vmatprep.mubr.f32.mxu0 %v238_v53  ;;  %1537 = vmatprep.mubr.msk.f32.mxu1 %vm361_vm1, %v242_v54 }
  0xbb   : > { %744 = vmatmul.mubr.f32.gmra.mrb[58].mxu0 %v237_v55  ;;  %1538 = vmatmul.mubr.msk.f32.gmra.mrb[58].mxu1 %vm361_vm1, %v245_v56 }
  0xbc   : > { %748 = vmatprep.mubr.f32.mxu0 %v241_v57  ;;  %1540 = vmatprep.mubr.msk.f32.mxu1 %vm361_vm1, %v248_v58 }
  0xbf   : > { %749 = vmatmul.mubr.f32.gmra.mrb[60].mxu0 %v240_v59  ;;  %1541 = vmatmul.mubr.msk.f32.gmra.mrb[60].mxu1 %vm361_vm1, %v251_v60 }
  0xc0   : > { %753 = vmatprep.mubr.f32.mxu0 %v244_v61  ;;  %1543 = vmatprep.mubr.msk.f32.mxu1 %vm361_vm1, %v254_v62 }
  0xc3   : > { %754 = vmatmul.mubr.f32.gmra.mrb[62].mxu0 %v243_v63  ;;  %1544 = vmatmul.mubr.msk.f32.gmra.mrb[62].mxu1 %vm361_vm1, %v257_v0 }
  0xc4   : > { %758 = vmatprep.mubr.f32.mxu0 %v247_v1  ;;  %1546 = vmatprep.mubr.msk.f32.mxu1 %vm361_vm1, %v260_v2 }
  0xc7   : > { %759 = vmatmul.mubr.f32.gmra.mrb[64].mxu0 %v246_v3  ;;  %1547 = vmatmul.mubr.msk.f32.gmra.mrb[64].mxu1 %vm361_vm1, %v263_v4 }
  0xc8   : > { %763 = vmatprep.mubr.f32.mxu0 %v250_v5  ;;  %1549 = vmatprep.mubr.msk.f32.mxu1 %vm361_vm1, %v266_v6 }
  0xcb   : > { %764 = vmatmul.mubr.f32.gmra.mrb[66].mxu0 %v249_v7  ;;  %1550 = vmatmul.mubr.msk.f32.gmra.mrb[66].mxu1 %vm361_vm1, %v269_v8 }
  0xcc   : > { %768 = vmatprep.mubr.f32.mxu0 %v253_v9  ;;  %1552 = vmatprep.mubr.msk.f32.mxu1 %vm361_vm1, %v272_v10 }
  0xcf   : > { %769 = vmatmul.mubr.f32.gmra.mrb[68].mxu0 %v252_v11  ;;  %1553 = vmatmul.mubr.msk.f32.gmra.mrb[68].mxu1 %vm361_vm1, %v275_v12 }
  0xd0   : > { %773 = vmatprep.mubr.f32.mxu0 %v256_v13  ;;  %1555 = vmatprep.mubr.msk.f32.mxu1 %vm361_vm1, %v278_v14 }
  0xd3   : > { %774 = vmatmul.mubr.f32.gmra.mrb[70].mxu0 %v255_v15  ;;  %1556 = vmatmul.mubr.msk.f32.gmra.mrb[70].mxu1 %vm361_vm1, %v281_v16 }
  0xd4   : > { %778 = vmatprep.mubr.f32.mxu0 %v259_v17  ;;  %1558 = vmatprep.mubr.msk.f32.mxu1 %vm361_vm1, %v284_v18 }
  0xd7   : > { %779 = vmatmul.mubr.f32.gmra.mrb[72].mxu0 %v258_v19  ;;  %1559 = vmatmul.mubr.msk.f32.gmra.mrb[72].mxu1 %vm361_vm1, %v287_v20 }
  0xd8   : > { %783 = vmatprep.mubr.f32.mxu0 %v262_v21  ;;  %1561 = vmatprep.mubr.msk.f32.mxu1 %vm361_vm1, %v290_v22 }
  0xdb   : > { %784 = vmatmul.mubr.f32.gmra.mrb[74].mxu0 %v261_v23  ;;  %1562 = vmatmul.mubr.msk.f32.gmra.mrb[74].mxu1 %vm361_vm1, %v293_v24 }
  0xdc   : > { %788 = vmatprep.mubr.f32.mxu0 %v265_v25  ;;  %1564 = vmatprep.mubr.msk.f32.mxu1 %vm361_vm1, %v296_v26 }
  0xdf   : > { %789 = vmatmul.mubr.f32.gmra.mrb[76].mxu0 %v264_v27  ;;  %1565 = vmatmul.mubr.msk.f32.gmra.mrb[76].mxu1 %vm361_vm1, %v299_v28 }
  0xe0   : > { %793 = vmatprep.mubr.f32.mxu0 %v268_v29  ;;  %1567 = vmatprep.mubr.msk.f32.mxu1 %vm361_vm1, %v302_v30 }
  0xe3   : > { %794 = vmatmul.mubr.f32.gmra.mrb[78].mxu0 %v267_v31  ;;  %1568 = vmatmul.mubr.msk.f32.gmra.mrb[78].mxu1 %vm361_vm1, %v305_v32 }
  0xe4   : > { %798 = vmatprep.mubr.f32.mxu0 %v271_v33  ;;  %1570 = vmatprep.mubr.msk.f32.mxu1 %vm361_vm1, %v308_v34 }
  0xe7   : > { %799 = vmatmul.mubr.f32.gmra.mrb[80].mxu0 %v270_v35  ;;  %1571 = vmatmul.mubr.msk.f32.gmra.mrb[80].mxu1 %vm361_vm1, %v311_v36 }
  0xe8   : > { %803 = vmatprep.mubr.f32.mxu0 %v274_v37  ;;  %1573 = vmatprep.mubr.msk.f32.mxu1 %vm361_vm1, %v314_v38 }
  0xeb   : > { %804 = vmatmul.mubr.f32.gmra.mrb[82].mxu0 %v273_v39  ;;  %1574 = vmatmul.mubr.msk.f32.gmra.mrb[82].mxu1 %vm361_vm1, %v317_v40 }
 0x11a   : > { %v2113_v41 = vpop.f32.mrb[0].mxu1  ;;  %v2115_v42 = vpop.f32.mrb[0].mxu0 }
 0x11b   : > { %v812_v43 = vpop.f32.mrb[1].mxu1  ;;  %v602_v44 = vpop.f32.mrb[1].mxu0 }
 0x11e   : > { %v2117_v45 = vpop.f32.mrb[2].mxu1  ;;  %v605_v46 = vpop.f32.mrb[2].mxu0 }
 0x11f   : > { %v817_v47 = vpop.f32.mrb[3].mxu1  ;;  %v607_v48 = vpop.f32.mrb[3].mxu0 }
 0x122   : > { %v2119_v49 = vpop.f32.mrb[4].mxu1  ;;  %v2121_v50 = vpop.f32.mrb[4].mxu0 }
 0x123   : > { %v822_v51 = vpop.f32.mrb[5].mxu1  ;;  %v612_v52 = vpop.f32.mrb[5].mxu0 }
 0x126   : > { %v2123_v53 = vpop.f32.mrb[6].mxu1  ;;  %v615_v54 = vpop.f32.mrb[6].mxu0 }
 0x127   : > { %v827_v55 = vpop.f32.mrb[7].mxu1  ;;  %v617_v56 = vpop.f32.mrb[7].mxu0 }
 0x12a   : > { %v2125_v57 = vpop.f32.mrb[8].mxu1  ;;  %v2127_v58 = vpop.f32.mrb[8].mxu0 }
 0x12b   : > { %v832_v59 = vpop.f32.mrb[9].mxu1  ;;  %v622_v60 = vpop.f32.mrb[9].mxu0 }
 0x12e   : > { %v2129_v61 = vpop.f32.mrb[10].mxu1  ;;  %v625_v62 = vpop.f32.mrb[10].mxu0 }
 0x12f   : > { %v837_v63 = vpop.f32.mrb[11].mxu1  ;;  %v627_v0 = vpop.f32.mrb[11].mxu0 }
 0x132   : > { %v2131_v1 = vpop.f32.mrb[12].mxu1  ;;  %v2133_v2 = vpop.f32.mrb[12].mxu0 }
 0x133   : > { %v842_v3 = vpop.f32.mrb[13].mxu1  ;;  %v632_v4 = vpop.f32.mrb[13].mxu0 }
 0x136   : > { %v2135_v5 = vpop.f32.mrb[14].mxu1  ;;  %v635_v6 = vpop.f32.mrb[14].mxu0 }
 0x137   : > { %v847_v7 = vpop.f32.mrb[15].mxu1  ;;  %v637_v8 = vpop.f32.mrb[15].mxu0 }
 0x13a   : > { %v2137_v9 = vpop.f32.mrb[16].mxu1  ;;  %v2139_v10 = vpop.f32.mrb[16].mxu0 }
 0x13b   : > { %v852_v11 = vpop.f32.mrb[17].mxu1  ;;  %v642_v12 = vpop.f32.mrb[17].mxu0 }
 0x13e   : > { %v2141_v13 = vpop.f32.mrb[18].mxu1  ;;  %v645_v14 = vpop.f32.mrb[18].mxu0 }
 0x13f   : > { %v857_v15 = vpop.f32.mrb[19].mxu1  ;;  %v647_v16 = vpop.f32.mrb[19].mxu0 }
 0x142   : > { %v2143_v17 = vpop.f32.mrb[20].mxu1  ;;  %v2145_v18 = vpop.f32.mrb[20].mxu0 }
 0x143   : > { %v862_v19 = vpop.f32.mrb[21].mxu1  ;;  %v652_v20 = vpop.f32.mrb[21].mxu0 }
 0x146   : > { %v2147_v21 = vpop.f32.mrb[22].mxu1  ;;  %v655_v22 = vpop.f32.mrb[22].mxu0 }
 0x147   : > { %v867_v23 = vpop.f32.mrb[23].mxu1  ;;  %v657_v24 = vpop.f32.mrb[23].mxu0 }
 0x14a   : > { %v2149_v25 = vpop.f32.mrb[24].mxu1  ;;  %v2151_v26 = vpop.f32.mrb[24].mxu0 }
 0x14b   : > { %v872_v27 = vpop.f32.mrb[25].mxu1  ;;  %v662_v28 = vpop.f32.mrb[25].mxu0 }
 0x14e   : > { %v2153_v29 = vpop.f32.mrb[26].mxu1  ;;  %v665_v30 = vpop.f32.mrb[26].mxu0 }
 0x14f   : > { %v877_v31 = vpop.f32.mrb[27].mxu1  ;;  %v667_v32 = vpop.f32.mrb[27].mxu0 }
 0x152   : > { %v1494_v33 = vpop.f32.mrb[28].mxu1  ;;  %v670_v34 = vpop.f32.mrb[28].mxu0 }
 0x153   : > { %v951_v35 = vadd.f32 %v1494_v33, %v605_v46  ;;  %v945_v36 = vpop.f32.mrb[29].mxu1  ;;  %v672_v37 = vpop.f32.mrb[29].mxu0 }
 0x154   : > { %v946_v38 = vadd.f32 %v945_v36, %v2115_v42 }
 0x155   : > { %1226 = vst.msk [vmem:[%s2159_s28 + $0x8] sm:$0xff] %vm1224_vm2, %v951_v35 }
 0x156   : > { %1225 = vst.msk [vmem:[%s2159_s28] sm:$0xff] %vm1224_vm2, %v946_v38  ;;  %v1497_v39 = vpop.f32.mrb[30].mxu1  ;;  %v675_v40 = vpop.f32.mrb[30].mxu0 }
 0x157   : > { %v961_v43 = vadd.f32 %v1497_v39, %v615_v54  ;;  %v955_v44 = vpop.f32.mrb[31].mxu1  ;;  %v677_v47 = vpop.f32.mrb[31].mxu0 }
 0x158   : > { %v956_v48 = vadd.f32 %v955_v44, %v2121_v50 }
 0x159   : > { %1228 = vst.msk [vmem:[%s2159_s28 + $0x18] sm:$0xff] %vm1224_vm2, %v961_v43 }
 0x15a   : > { %1227 = vst.msk [vmem:[%s2159_s28 + $0x10] sm:$0xff] %vm1224_vm2, %v956_v48  ;;  %v1500_v42 = vpop.f32.mrb[32].mxu1  ;;  %v680_v46 = vpop.f32.mrb[32].mxu0 }
 0x15b   : > { %v971_v51 = vadd.f32 %v1500_v42, %v625_v62  ;;  %v965_v52 = vpop.f32.mrb[33].mxu1  ;;  %v682_v55 = vpop.f32.mrb[33].mxu0 }
 0x15c   : > { %v966_v56 = vadd.f32 %v965_v52, %v2127_v58 }
 0x15d   : > { %1230 = vst.msk [vmem:[%s2159_s28 + $0x28] sm:$0xff] %vm1224_vm2, %v971_v51 }
 0x15e   : > { %1229 = vst.msk [vmem:[%s2159_s28 + $0x20] sm:$0xff] %vm1224_vm2, %v966_v56  ;;  %v1503_v50 = vpop.f32.mrb[34].mxu1  ;;  %v685_v54 = vpop.f32.mrb[34].mxu0 }
 0x15f   : > { %v981_v59 = vadd.f32 %v1503_v50, %v635_v6  ;;  %v975_v60 = vpop.f32.mrb[35].mxu1  ;;  %v687_v63 = vpop.f32.mrb[35].mxu0 }
 0x160   : > { %v976_v0 = vadd.f32 %v975_v60, %v2133_v2 }
 0x161   : > { %1232 = vst.msk [vmem:[%s2159_s28 + $0x38] sm:$0xff] %vm1224_vm2, %v981_v59 }
 0x162   : > { %1231 = vst.msk [vmem:[%s2159_s28 + $0x30] sm:$0xff] %vm1224_vm2, %v976_v0  ;;  %v1506_v58 = vpop.f32.mrb[36].mxu1  ;;  %v690_v62 = vpop.f32.mrb[36].mxu0 }
 0x163   : > { %v991_v3 = vadd.f32 %v1506_v58, %v645_v14  ;;  %v985_v4 = vpop.f32.mrb[37].mxu1  ;;  %v692_v7 = vpop.f32.mrb[37].mxu0 }
 0x164   : > { %v986_v8 = vadd.f32 %v985_v4, %v2139_v10 }
 0x165   : > { %1234 = vst.msk [vmem:[%s2159_s28 + $0x48] sm:$0xff] %vm1224_vm2, %v991_v3 }
 0x166   : > { %1233 = vst.msk [vmem:[%s2159_s28 + $0x40] sm:$0xff] %vm1224_vm2, %v986_v8  ;;  %v1509_v2 = vpop.f32.mrb[38].mxu1  ;;  %v695_v6 = vpop.f32.mrb[38].mxu0 }
 0x167   : > { %v1001_v11 = vadd.f32 %v1509_v2, %v655_v22  ;;  %v995_v12 = vpop.f32.mrb[39].mxu1  ;;  %v697_v15 = vpop.f32.mrb[39].mxu0 }
 0x168   : > { %v996_v16 = vadd.f32 %v995_v12, %v2145_v18 }
 0x169   : > { %1236 = vst.msk [vmem:[%s2159_s28 + $0x58] sm:$0xff] %vm1224_vm2, %v1001_v11 }
 0x16a   : > { %1235 = vst.msk [vmem:[%s2159_s28 + $0x50] sm:$0xff] %vm1224_vm2, %v996_v16  ;;  %v1512_v10 = vpop.f32.mrb[40].mxu1  ;;  %v700_v14 = vpop.f32.mrb[40].mxu0 }
 0x16b   : > { %v1011_v19 = vadd.f32 %v1512_v10, %v665_v30  ;;  %v1005_v20 = vpop.f32.mrb[41].mxu1  ;;  %v702_v23 = vpop.f32.mrb[41].mxu0 }
 0x16c   : > { %v1006_v24 = vadd.f32 %v1005_v20, %v2151_v26 }
 0x16d   : > { %1238 = vst.msk [vmem:[%s2159_s28 + $0x68] sm:$0xff] %vm1224_vm2, %v1011_v19 }
 0x16e   : > { %1237 = vst.msk [vmem:[%s2159_s28 + $0x60] sm:$0xff] %vm1224_vm2, %v1006_v24  ;;  %v1515_v18 = vpop.f32.mrb[42].mxu1  ;;  %v705_v22 = vpop.f32.mrb[42].mxu0 }
 0x16f   : > { %v1021_v27 = vadd.f32 %v1515_v18, %v675_v40  ;;  %v1015_v28 = vpop.f32.mrb[43].mxu1  ;;  %v707_v31 = vpop.f32.mrb[43].mxu0 }
 0x170   : > { %v1016_v32 = vadd.f32 %v1015_v28, %v670_v34 }
 0x171   : > { %1240 = vst.msk [vmem:[%s2159_s28 + $0x78] sm:$0xff] %vm1224_vm2, %v1021_v27 }
 0x172   : > { %1239 = vst.msk [vmem:[%s2159_s28 + $0x70] sm:$0xff] %vm1224_vm2, %v1016_v32  ;;  %v1518_v30 = vpop.f32.mrb[44].mxu1  ;;  %v710_v26 = vpop.f32.mrb[44].mxu0 }
 0x173   : > { %v1031_v33 = vadd.f32 %v1518_v30, %v685_v54  ;;  %v1025_v35 = vpop.f32.mrb[45].mxu1  ;;  %v712_v36 = vpop.f32.mrb[45].mxu0 }
 0x174   : > { %v1026_v37 = vadd.f32 %v1025_v35, %v680_v46 }
 0x175   : > { %1242 = vst.msk [vmem:[%s2159_s28 + $0x88] sm:$0xff] %vm1224_vm2, %v1031_v33 }
 0x176   : > { %1241 = vst.msk [vmem:[%s2159_s28 + $0x80] sm:$0xff] %vm1224_vm2, %v1026_v37  ;;  %v1521_v38 = vpop.f32.mrb[46].mxu1  ;;  %v715_v34 = vpop.f32.mrb[46].mxu0 }
 0x177   : > { %v1041_v39 = vadd.f32 %v1521_v38, %v695_v6  ;;  %v1035_v40 = vpop.f32.mrb[47].mxu1  ;;  %v717_v43 = vpop.f32.mrb[47].mxu0 }
 0x178   : > { %v1036_v44 = vadd.f32 %v1035_v40, %v690_v62 }
 0x179   : > { %1244 = vst.msk [vmem:[%s2159_s28 + $0x98] sm:$0xff] %vm1224_vm2, %v1041_v39 }
 0x17a   : > { %1243 = vst.msk [vmem:[%s2159_s28 + $0x90] sm:$0xff] %vm1224_vm2, %v1036_v44  ;;  %v1524_v47 = vpop.f32.mrb[48].mxu1  ;;  %v720_v48 = vpop.f32.mrb[48].mxu0 }
 0x17b   : > { %v1051_v42 = vadd.f32 %v1524_v47, %v705_v22  ;;  %v1045_v46 = vpop.f32.mrb[49].mxu1  ;;  %v722_v51 = vpop.f32.mrb[49].mxu0 }
 0x17c   : > { %v1046_v52 = vadd.f32 %v1045_v46, %v700_v14 }
 0x17d   : > { %1246 = vst.msk [vmem:[%s2159_s28 + $0xa8] sm:$0xff] %vm1224_vm2, %v1051_v42 }
 0x17e   : > { %1245 = vst.msk [vmem:[%s2159_s28 + $0xa0] sm:$0xff] %vm1224_vm2, %v1046_v52  ;;  %v1527_v55 = vpop.f32.mrb[50].mxu1  ;;  %v725_v56 = vpop.f32.mrb[50].mxu0 }
 0x17f   : > { %v1061_v50 = vadd.f32 %v1527_v55, %v715_v34  ;;  %v1055_v54 = vpop.f32.mrb[51].mxu1  ;;  %v727_v59 = vpop.f32.mrb[51].mxu0 }
 0x180   : > { %v1056_v60 = vadd.f32 %v1055_v54, %v710_v26 }
 0x181   : > { %1248 = vst.msk [vmem:[%s2159_s28 + $0xb8] sm:$0xff] %vm1224_vm2, %v1061_v50 }
 0x182   : > { %1247 = vst.msk [vmem:[%s2159_s28 + $0xb0] sm:$0xff] %vm1224_vm2, %v1056_v60  ;;  %v1530_v63 = vpop.f32.mrb[52].mxu1  ;;  %v730_v0 = vpop.f32.mrb[52].mxu0 }
 0x183   : > { %v1071_v58 = vadd.f32 %v1530_v63, %v725_v56  ;;  %v1065_v62 = vpop.f32.mrb[53].mxu1  ;;  %v732_v3 = vpop.f32.mrb[53].mxu0 }
 0x184   : > { %v1066_v4 = vadd.f32 %v1065_v62, %v720_v48 }
 0x185   : > { %1250 = vst.msk [vmem:[%s2159_s28 + $0xc8] sm:$0xff] %vm1224_vm2, %v1071_v58 }
 0x186   : > { %1249 = vst.msk [vmem:[%s2159_s28 + $0xc0] sm:$0xff] %vm1224_vm2, %v1066_v4  ;;  %v1533_v7 = vpop.f32.mrb[54].mxu1  ;;  %v735_v8 = vpop.f32.mrb[54].mxu0 }
 0x187   : > { %v1081_v2 = vadd.f32 %v1533_v7, %v735_v8  ;;  %v1075_v6 = vpop.f32.mrb[55].mxu1  ;;  %v737_v11 = vpop.f32.mrb[55].mxu0 }
 0x188   : > { %v1076_v12 = vadd.f32 %v1075_v6, %v730_v0 }
 0x189   : > { %1252 = vst.msk [vmem:[%s2159_s28 + $0xd8] sm:$0xff] %vm1224_vm2, %v1081_v2 }
 0x18a   : > { %1251 = vst.msk [vmem:[%s2159_s28 + $0xd0] sm:$0xff] %vm1224_vm2, %v1076_v12  ;;  %v1536_v15 = vpop.f32.mrb[56].mxu1  ;;  %v740_v16 = vpop.f32.mrb[56].mxu0 }
 0x18b   : > { %v1085_v10 = vpop.f32.mrb[57].mxu1  ;;  %v742_v14 = vpop.f32.mrb[57].mxu0 }
 0x18c   : > { %v1086_v19 = vadd.f32 %v1085_v10, %v740_v16 }
 0x18e   : > { %1253 = vst.msk [vmem:[%s2159_s28 + $0xe0] sm:$0xff] %vm1224_vm2, %v1086_v19  ;;  %v745_v20 = vpop.f32.mrb[58].mxu0  ;;  %v1539_v23 = vpop.f32.mrb[58].mxu1 }
 0x18f   : > { %v1091_v24 = vadd.f32 %v1536_v15, %v745_v20  ;;  %v1095_v18 = vpop.f32.mrb[59].mxu1  ;;  %v747_v22 = vpop.f32.mrb[59].mxu0 }
 0x191   : > { %1254 = vst.msk [vmem:[%s2159_s28 + $0xe8] sm:$0xff] %vm1224_vm2, %v1091_v24 }
 0x192   : > { %v750_v27 = vpop.f32.mrb[60].mxu0  ;;  %v1542_v28 = vpop.f32.mrb[60].mxu1 }
 0x193   : > { %v1096_v31 = vadd.f32 %v1095_v18, %v750_v27  ;;  %v1105_v32 = vpop.f32.mrb[61].mxu1  ;;  %v752_v30 = vpop.f32.mrb[61].mxu0 }
 0x195   : > { %1255 = vst.msk [vmem:[%s2159_s28 + $0xf0] sm:$0xff] %vm1224_vm2, %v1096_v31 }
 0x196   : > { %v755_v26 = vpop.f32.mrb[62].mxu0  ;;  %v1545_v33 = vpop.f32.mrb[62].mxu1 }
 0x197   : > { %v1101_v35 = vadd.f32 %v1539_v23, %v755_v26  ;;  %v1115_v36 = vpop.f32.mrb[63].mxu1  ;;  %v757_v37 = vpop.f32.mrb[63].mxu0 }
 0x199   : > { %1256 = vst.msk [vmem:[%s2159_s28 + $0xf8] sm:$0xff] %vm1224_vm2, %v1101_v35 }
 0x19a   : > { %v760_v38 = vpop.f32.mrb[64].mxu0  ;;  %v1548_v34 = vpop.f32.mrb[64].mxu1 }
 0x19b   : > { %v1106_v39 = vadd.f32 %v1105_v32, %v760_v38  ;;  %v1125_v40 = vpop.f32.mrb[65].mxu1  ;;  %v762_v43 = vpop.f32.mrb[65].mxu0 }
 0x19d   : > { %1257 = vst.msk [vmem:[%s2159_s28 + $0x100] sm:$0xff] %vm1224_vm2, %v1106_v39 }
 0x19e   : > { %v765_v44 = vpop.f32.mrb[66].mxu0  ;;  %v1551_v47 = vpop.f32.mrb[66].mxu1 }
 0x19f   : > { %v1111_v48 = vadd.f32 %v1542_v28, %v765_v44  ;;  %v1135_v42 = vpop.f32.mrb[67].mxu1  ;;  %v767_v46 = vpop.f32.mrb[67].mxu0 }
 0x1a1   : > { %1258 = vst.msk [vmem:[%s2159_s28 + $0x108] sm:$0xff] %vm1224_vm2, %v1111_v48 }
 0x1a2   : > { %v770_v51 = vpop.f32.mrb[68].mxu0  ;;  %v2236_v52 = vpop.f32.mrb[68].mxu1 }
 0x1a3   : > { %v1116_v55 = vadd.f32 %v1115_v36, %v770_v51  ;;  %v1145_v56 = vpop.f32.mrb[69].mxu1  ;;  %v772_v50 = vpop.f32.mrb[69].mxu0 }
 0x1a5   : > { %1259 = vst.msk [vmem:[%s2159_s28 + $0x110] sm:$0xff] %vm1224_vm2, %v1116_v55 }
 0x1a6   : > { %v775_v54 = vpop.f32.mrb[70].mxu0  ;;  %v1557_v59 = vpop.f32.mrb[70].mxu1 }
 0x1a7   : > { %v1121_v60 = vadd.f32 %v1545_v33, %v775_v54  ;;  %v1161_v63 = vadd.f32 %v1557_v59, %v2117_v45  ;;  %v1155_v0 = vpop.f32.mrb[71].mxu1  ;;  %v777_v58 = vpop.f32.mrb[71].mxu0 }
 0x1a8   : > { %v1156_v62 = vadd.f32 %v1155_v0, %v2113_v41 }
 0x1a9   : > { %1260 = vst.msk [vmem:[%s2159_s28 + $0x118] sm:$0xff] %vm1224_vm2, %v1121_v60  ;;  %1268 = vst.msk [vmem:[%s2159_s28 + $0x158] sm:$0xff] %vm1224_vm2, %v1161_v63 }
 0x1aa   : > { %1267 = vst.msk [vmem:[%s2159_s28 + $0x150] sm:$0xff] %vm1224_vm2, %v1156_v62  ;;  %v780_v3 = vpop.f32.mrb[72].mxu0  ;;  %v1560_v4 = vpop.f32.mrb[72].mxu1 }
 0x1ab   : > { %v1126_v7 = vadd.f32 %v1125_v40, %v780_v3  ;;  %v1171_v8 = vadd.f32 %v1560_v4, %v2123_v53  ;;  %v1165_v45 = vpop.f32.mrb[73].mxu1  ;;  %v782_v2 = vpop.f32.mrb[73].mxu0 }
 0x1ac   : > { %v1166_v6 = vadd.f32 %v1165_v45, %v2119_v49 }
 0x1ad   : > { %1261 = vst.msk [vmem:[%s2159_s28 + $0x120] sm:$0xff] %vm1224_vm2, %v1126_v7  ;;  %1270 = vst.msk [vmem:[%s2159_s28 + $0x168] sm:$0xff] %vm1224_vm2, %v1171_v8 }
 0x1ae   : > { %1269 = vst.msk [vmem:[%s2159_s28 + $0x160] sm:$0xff] %vm1224_vm2, %v1166_v6  ;;  %v785_v41 = vpop.f32.mrb[74].mxu0  ;;  %v1563_v11 = vpop.f32.mrb[74].mxu1 }
 0x1af   : > { %v1131_v12 = vadd.f32 %v1548_v34, %v785_v41  ;;  %v1181_v15 = vadd.f32 %v1563_v11, %v2129_v61  ;;  %v1175_v53 = vpop.f32.mrb[75].mxu1  ;;  %v787_v16 = vpop.f32.mrb[75].mxu0 }
 0x1b0   : > { %v1176_v10 = vadd.f32 %v1175_v53, %v2125_v57 }
 0x1b1   : > { %1262 = vst.msk [vmem:[%s2159_s28 + $0x128] sm:$0xff] %vm1224_vm2, %v1131_v12  ;;  %1272 = vst.msk [vmem:[%s2159_s28 + $0x178] sm:$0xff] %vm1224_vm2, %v1181_v15 }
 0x1b2   : > { %1271 = vst.msk [vmem:[%s2159_s28 + $0x170] sm:$0xff] %vm1224_vm2, %v1176_v10  ;;  %v790_v49 = vpop.f32.mrb[76].mxu0  ;;  %v1566_v14 = vpop.f32.mrb[76].mxu1 }
 0x1b3   : > { %v1136_v19 = vadd.f32 %v1135_v42, %v790_v49  ;;  %v1191_v20 = vadd.f32 %v1566_v14, %v2135_v5  ;;  %v1185_v61 = vpop.f32.mrb[77].mxu1  ;;  %v792_v23 = vpop.f32.mrb[77].mxu0 }
 0x1b4   : > { %v1186_v24 = vadd.f32 %v1185_v61, %v2131_v1 }
 0x1b5   : > { %1263 = vst.msk [vmem:[%s2159_s28 + $0x130] sm:$0xff] %vm1224_vm2, %v1136_v19  ;;  %1274 = vst.msk [vmem:[%s2159_s28 + $0x188] sm:$0xff] %vm1224_vm2, %v1191_v20 }
 0x1b6   : > { %1273 = vst.msk [vmem:[%s2159_s28 + $0x180] sm:$0xff] %vm1224_vm2, %v1186_v24  ;;  %v795_v57 = vpop.f32.mrb[78].mxu0  ;;  %v1569_v18 = vpop.f32.mrb[78].mxu1 }
 0x1b7   : > { %v1141_v22 = vadd.f32 %v1551_v47, %v795_v57  ;;  %v1201_v27 = vadd.f32 %v1569_v18, %v2141_v13  ;;  %v1195_v5 = vpop.f32.mrb[79].mxu1  ;;  %v797_v28 = vpop.f32.mrb[79].mxu0 }
 0x1b8   : > { %v1196_v31 = vadd.f32 %v1195_v5, %v2137_v9 }
 0x1b9   : > { %1264 = vst.msk [vmem:[%s2159_s28 + $0x138] sm:$0xff] %vm1224_vm2, %v1141_v22  ;;  %1276 = vst.msk [vmem:[%s2159_s28 + $0x198] sm:$0xff] %vm1224_vm2, %v1201_v27 }
 0x1ba   : > { %1275 = vst.msk [vmem:[%s2159_s28 + $0x190] sm:$0xff] %vm1224_vm2, %v1196_v31  ;;  %v800_v1 = vpop.f32.mrb[80].mxu0  ;;  %v1572_v32 = vpop.f32.mrb[80].mxu1 }
 0x1bb   : > { %v1146_v30 = vadd.f32 %v1145_v56, %v800_v1  ;;  %v1211_v26 = vadd.f32 %v1572_v32, %v2147_v21  ;;  %v1205_v13 = vpop.f32.mrb[81].mxu1  ;;  %v802_v33 = vpop.f32.mrb[81].mxu0 }
 0x1bc   : > { %v1206_v35 = vadd.f32 %v1205_v13, %v2143_v17 }
 0x1bd   : > { %1265 = vst.msk [vmem:[%s2159_s28 + $0x140] sm:$0xff] %vm1224_vm2, %v1146_v30  ;;  %1278 = vst.msk [vmem:[%s2159_s28 + $0x1a8] sm:$0xff] %vm1224_vm2, %v1211_v26 }
 0x1be   : > { %1277 = vst.msk [vmem:[%s2159_s28 + $0x1a0] sm:$0xff] %vm1224_vm2, %v1206_v35  ;;  %v805_v9 = vpop.f32.mrb[82].mxu0  ;;  %v1575_v36 = vpop.f32.mrb[82].mxu1 }
 0x1bf   : > { %v1151_v37 = vadd.f32 %v2236_v52, %v805_v9  ;;  %v1221_v38 = vadd.f32 %v1575_v36, %v2153_v29  ;;  %v1215_v34 = vpop.f32.mrb[83].mxu1  ;;  %v807_v39 = vpop.f32.mrb[83].mxu0 }
 0x1c0   : > { %v1216_v21 = vadd.f32 %v1215_v34, %v2149_v25 }
 0x1c1   : > { %1266 = vst.msk [vmem:[%s2159_s28 + $0x148] sm:$0xff] %vm1224_vm2, %v1151_v37  ;;  %1280 = vst.msk [vmem:[%s2159_s28 + $0x1b8] sm:$0xff] %vm1224_vm2, %v1221_v38 }
 0x1c2   : > { %1279 = vst.msk [vmem:[%s2159_s28 + $0x1b0] sm:$0xff] %vm1224_vm2, %v1216_v21 }
 0x1c3 PF: > { %s12_s9 = sadd.s32 1, %s1692_s9  }
 0x1c4   : > { %p9_p4 = scmp.ge.s32.totalorder %s12_s9, 16  }
 0x1c6   :  { %11 = sbr.rel (!%p9_p4) target bundleno = 1 (0x1), region = 58 }

// kernel: tile.23
= control target key start
LH: loop header
LB: loop body
LE: loop exit
PB: predicated region body
PF: predicated region fallthrough
CT: control target
= control target key end

     0   :  { %s22_s0 = inlined_call_operand.vmem [shape: f32[64], index: 0, kind: input, shape index: {}]   ;;  %s23_s1 = inlined_call_operand.vmem [shape: f32[2,64], index: 1, kind: output, shape index: {}]  }
   0x1   :  { %v4_v0 = vld [vmem:[%s22_s0] ss:$0 sm:$0xff] }
   0x2   :  { %5 = vst [vmem:[%s23_s1] sm:$0x3] %v4_v0 }

// kernel: tile.24
= control target key start
LH: loop header
LB: loop body
LE: loop exit
PB: predicated region body
PF: predicated region fallthrough
CT: control target
= control target key end

     0   :  { %vm7_vm0 = vcmask 523264   ;;  %vm13_vm1 = vcmask 1048064   ;;  %s39_s0 = inlined_call_operand.vmem [shape: f32[2,64], index: 0, kind: input, shape index: {}]   ;;  %s40_s1 = inlined_call_operand.vmem [shape: f32[1,1,128], index: 1, kind: output, shape index: {}]  }
   0x1   :  { %v4_v0 = vld [vmem:[%s39_s0] sm:$0x3]  ;;  %s22_s0 = smov 64  }
   0x2   :  { %5 = vst [vmem:[#allocation1] sm:$0x3] %v4_v0 }
   0x9   :  { %v10_v1 = vld [vmem:[#allocation1 + $0x1] sm:$0x1]   ;;  %v6_v2 = vld [vmem:[#allocation1] sm:$0x1]  }
   0xa   :  { %11 = vrot.lane.b32.xlu0 %v10_v1, %s22_s0  ;;  %8 = vst.msk [vmem:[#allocation0] sm:$0x1] %vm7_vm0, %v6_v2  }
  0x7c   :  { %v12_v3 = vpop.permute.xlu0 %11  }
  0x7d   :  { %14 = vst.msk [vmem:[#allocation0] sm:$0x1] %vm13_vm1, %v12_v3  }
  0x84   :  { %v18_v4 = vld [vmem:[#allocation0] sm:$0x1] }
  0x85   :  { %20 = vst [vmem:[%s40_s1] sm:$0x1] %v18_v4 }

// kernel: forward.6
= control target key start
LH: loop header
LB: loop body
LE: loop exit
PB: predicated region body
PF: predicated region fallthrough
CT: control target
= control target key end

     0   :  { %s4133_s18 = smov 0   ;;  %s8762_s0 = inlined_call_operand.vmem [shape: f32[2,56,28,128], index: 0, kind: input, shape index: {}]   ;;  %s8763_s1 = inlined_call_operand.vmem [shape: f32[128,4], index: 1, kind: input, shape index: {}]   ;;  %s8764_s2 = inlined_call_operand.vmem [shape: f32[4,128], index: 2, kind: input, shape index: {}]   ;;  %s8765_s3 = inlined_call_operand.vmem [shape: f32[1,1,128], index: 3, kind: input, shape index: {}]   ;;  %s8766_s4 = inlined_call_operand.vmem [shape: f32[1,1,128], index: 4, kind: input, shape index: {}]   ;;  %s8767_s5 = inlined_call_operand.vmem [shape: f32[2,28,28,64], index: 5, kind: output, shape index: {}]  }
   0x1 LB: > { %s3648_s19 = sadd.s32 4294967295, %s4097_s18   ;;  %p3652_p0 = scmp.ge.s32.totalorder %s4097_s18, 1  ;;  %s4097_s18 = sphi %s4133_s18, %s15_s18  }
   0x2   : > { %p187_p1 = scmp.lt.s32.totalorder %s4097_s18, 3 }
   0x4   : > { %p188_p2 = pnand %p3652_p0, %p187_p1 }
   0x6   : > { %191 = sbr.rel (%p188_p2) target bundleno = 1296 (0x510), region = 40 }
   0xd   : > { %v1246_v0 = vld [vmem:[%s8763_s1] sm:$0xff]  ;;  %v1247_v1 = vld [vmem:[%s8763_s1 + $0x8] sm:$0xff]  ;;  %v1248_v2 = vld [vmem:[%s8763_s1 + $0x10] sm:$0xff]  ;;  %v4099_v3 = vmov 0.0|0.0   ;;  %p215_p3 = scmp.lt.s32.totalorder %s3648_s19, 1  ;;  %vm4100_vm0 = vmmov 0  }
   0xe   : > { %3779 = vmatprep.subr.bf16.mxu0 %v4099_v3  ;;  %v3780_v4 = vpack.c.bf16 %v1247_v1, %v1246_v0  ;;  %3803 = vmatprep.subr.bf16.mxu1 %v4099_v3  ;;  %v1249_v5 = vld [vmem:[%s8763_s1 + $0x18] sm:$0xff]  ;;  %v8768_v6 = vmov 0.0   ;;  %v1250_v8 = vld [vmem:[%s8763_s1 + $0x20] sm:$0xff]  ;;  %v1251_v9 = vld [vmem:[%s8763_s1 + $0x28] sm:$0xff]  ;;  %vm614_vm1 = vcmask 1043456   ;;  %vm1410_vm2 = vcmask 31744  }
   0xf   : > { %3731 = vmatprep.mubr.msk.f32.mxu0 %vm4100_vm0, %v8768_v6  ;;  %3766 = vmatprep.mubr.msk.f32.mxu1 %vm4100_vm0, %v8768_v6  ;;  %v3783_v7 = vpack.c.bf16 %v1249_v5, %v1248_v2  ;;  %s9955_s19 = smov (!%p215_p3, %s3648_s19), 1  ;;  %v3786_v10 = vpack.c.bf16 %v1251_v9, %v1250_v8  ;;  %v1252_v11 = vld [vmem:[%s8763_s1 + $0x30] sm:$0xff]  ;;  %v1253_v12 = vld [vmem:[%s8763_s1 + $0x38] sm:$0xff]  ;;  %v1254_v19 = vld [vmem:[%s8763_s1 + $0x40] sm:$0xff]  ;;  %s4102_s15 = smov 64   ;;  %vm3479_vm3 = vcmask 523264  }
  0x10   : > { %3781 = vmatpush3.bf16.msra.mxu0 %v3780_v4  ;;  %3805 = vmatpush3.bf16.msra.mxu1 %v3780_v4  ;;  %s3827_s7 = smul.u32 1792, %s9955_s19  ;;  %v1255_v20 = vld [vmem:[%s8763_s1 + $0x48] sm:$0xff]  ;;  %v3789_v27 = vpack.c.bf16 %v1253_v12, %v1252_v11  ;;  %v1256_v56 = vld [vmem:[%s8763_s1 + $0x50] sm:$0xff]  ;;  %v1257_v57 = vld [vmem:[%s8763_s1 + $0x58] sm:$0xff]  ;;  %vm3483_vm4 = vcmask 519168  }
  0x11   : > { %3782 = vmatprep.subr.bf16.mxu0 %v4099_v3  ;;  %3806 = vmatprep.subr.bf16.mxu1 %v4099_v3  ;;  %v3792_v50 = vpack.c.bf16 %v1255_v20, %v1254_v19  ;;  %v1258_v11 = vld [vmem:[%s8763_s1 + $0x60] sm:$0xff]  ;;  %s3828_s16 = smul.u32 896, %s9955_s19 }
  0x12   : > { %s4179_s14 = scalar_lea.vmem %s8762_s0, %s3827_s7 }
  0x13   : > { %v225_v13 = vld [vmem:[%s4179_s14] sm:$0xff]  ;;  %v226_v14 = vld [vmem:[%s4179_s14 + $0x8] sm:$0xff]  ;;  %v227_v15 = vld [vmem:[%s4179_s14 + $0x10] sm:$0xff]  ;;  %s6657_s20 = scalar_lea.vmem %s8767_s5, %s3828_s16 }
  0x14   : > { %3784 = vmatpush3.bf16.msra.mxu0 %v3783_v7  ;;  %3808 = vmatpush3.bf16.msra.mxu1 %v3783_v7  ;;  %v228_v16 = vld [vmem:[%s4179_s14 + $0x18] sm:$0xf]  ;;  %v229_v17 = vld [vmem:[%s4179_s14 + $0x20] sm:$0xff]  ;;  %v230_v18 = vld [vmem:[%s4179_s14 + $0x28] sm:$0xff] }
  0x15   : > { %3785 = vmatprep.subr.bf16.mxu0 %v4099_v3  ;;  %3809 = vmatprep.subr.bf16.mxu1 %v4099_v3  ;;  %v231_v21 = vld [vmem:[%s4179_s14 + $0x30] sm:$0xff]  ;;  %v232_v22 = vld [vmem:[%s4179_s14 + $0x38] sm:$0xf]  ;;  %v233_v23 = vld [vmem:[%s4179_s14 + $0x40] sm:$0xff]  ;;  %v449_v24 = vadd.f32 %v229_v17, %v225_v13  ;;  %v504_v25 = vadd.f32 %v230_v18, %v226_v14  ;;  %v615_v26 = vsel %vm614_vm1, %v228_v16, 0.0 }
  0x16   : > { %v234_v28 = vld [vmem:[%s4179_s14 + $0x48] sm:$0xff]  ;;  %v235_v29 = vld [vmem:[%s4179_s14 + $0x50] sm:$0xff]  ;;  %v236_v30 = vld [vmem:[%s4179_s14 + $0x58] sm:$0xf]  ;;  %v559_v31 = vadd.f32 %v231_v21, %v227_v15  ;;  %v616_v32 = vsel %vm614_vm1, %v232_v22, 0.0 }
  0x17   : > { %v237_v33 = vld [vmem:[%s4179_s14 + $0x60] sm:$0xff]  ;;  %v238_v34 = vld [vmem:[%s4179_s14 + $0x68] sm:$0xff]  ;;  %v239_v35 = vld [vmem:[%s4179_s14 + $0x70] sm:$0xff]  ;;  %v450_v36 = vadd.f32 %v449_v24, %v233_v23  ;;  %v505_v37 = vadd.f32 %v504_v25, %v234_v28  ;;  %v617_v38 = vadd.f32 %v616_v32, %v615_v26  ;;  %v618_v39 = vsel %vm614_vm1, %v236_v30, 0.0 }
  0x18   : > { %3787 = vmatpush3.bf16.msra.mxu0 %v3786_v10  ;;  %3811 = vmatpush3.bf16.msra.mxu1 %v3786_v10  ;;  %v240_v40 = vld [vmem:[%s4179_s14 + $0x78] sm:$0xf]  ;;  %v241_v41 = vld [vmem:[%s4179_s14 + $0x80] sm:$0xff]  ;;  %v242_v42 = vld [vmem:[%s4179_s14 + $0x88] sm:$0xff]  ;;  %v560_v43 = vadd.f32 %v559_v31, %v235_v29  ;;  %v3795_v10 = vpack.c.bf16 %v1257_v57, %v1256_v56 }
  0x19   : > { %3788 = vmatprep.subr.bf16.mxu0 %v4099_v3  ;;  %3812 = vmatprep.subr.bf16.mxu1 %v4099_v3  ;;  %v243_v44 = vld [vmem:[%s4179_s14 + $0x90] sm:$0xff]  ;;  %v244_v45 = vld [vmem:[%s4179_s14 + $0x98] sm:$0xf]  ;;  %v451_v46 = vadd.f32 %v450_v36, %v237_v33  ;;  %v506_v47 = vadd.f32 %v505_v37, %v238_v34  ;;  %v619_v48 = vadd.f32 %v618_v39, %v617_v38  ;;  %v620_v49 = vsel %vm614_vm1, %v240_v40, 0.0  ;;  %v245_v51 = vld [vmem:[%s4179_s14 + $0xa0] sm:$0xff] }
  0x1a   : > { %v246_v52 = vld [vmem:[%s4179_s14 + $0xa8] sm:$0xff]  ;;  %v248_v53 = vld [vmem:[%s4179_s14 + $0xb8] sm:$0xf]  ;;  %v561_v54 = vadd.f32 %v560_v43, %v239_v35  ;;  %v622_v55 = vsel %vm614_vm1, %v244_v45, 0.0  ;;  %v4228_v58 = vld [vmem:[%s4179_s14 + $0xb0] sm:$0xff] }
  0x1b   : > { %v452_v59 = vadd.f32 %v451_v46, %v241_v41  ;;  %v507_v60 = vadd.f32 %v506_v47, %v242_v42  ;;  %v621_v61 = vadd.f32 %v620_v49, %v619_v48  ;;  %v4231_v62 = vld [vmem:[%s4179_s14 + $0xc0] sm:$0xff]  ;;  %v4234_v63 = vld [vmem:[%s4179_s14 + $0xc8] sm:$0xff]  ;;  %v4237_v0 = vld [vmem:[%s4179_s14 + $0xd8] sm:$0xf]  ;;  %v624_v2 = vsel %vm614_vm1, %v248_v53, 0.0 }
  0x1c   : > { %3790 = vmatpush3.bf16.msra.mxu0 %v3789_v27  ;;  %3814 = vmatpush3.bf16.msra.mxu1 %v3789_v27  ;;  %v562_v1 = vadd.f32 %v561_v54, %v243_v44  ;;  %v4241_v4 = vld [vmem:[%s4179_s14 + $0xd0] sm:$0xff]  ;;  %v4244_v5 = vld [vmem:[%s4179_s14 + $0xf8] sm:$0xf]  ;;  %v4250_v12 = vld [vmem:[%s4179_s14 + $0xe0] sm:$0xff]  ;;  %v626_v15 = vsel %vm614_vm1, %v4237_v0, 0.0 }
  0x1d   : > { %3791 = vmatprep.subr.bf16.mxu0 %v4099_v3  ;;  %3815 = vmatprep.subr.bf16.mxu1 %v4099_v3  ;;  %v453_v7 = vadd.f32 %v452_v59, %v245_v51  ;;  %v508_v8 = vadd.f32 %v507_v60, %v246_v52  ;;  %v623_v9 = vadd.f32 %v622_v55, %v621_v61  ;;  %v4253_v13 = vld [vmem:[%s4179_s14 + $0xe8] sm:$0xff]  ;;  %v4264_v17 = vld [vmem:[%s4179_s14 + $0xf0] sm:$0xff]  ;;  %v4267_v18 = vld [vmem:[%s4179_s14 + $0x118] sm:$0xf]  ;;  %v628_v25 = vsel %vm614_vm1, %v4244_v5, 0.0 }
  0x1e   : > { %v563_v14 = vadd.f32 %v562_v1, %v4228_v58  ;;  %v1259_v16 = vld [vmem:[%s8763_s1 + $0x68] sm:$0xff]  ;;  %v4272_v22 = vld [vmem:[%s4179_s14 + $0x100] sm:$0xff]  ;;  %v4281_v26 = vld [vmem:[%s4179_s14 + $0x110] sm:$0xff]  ;;  %v630_v36 = vsel %vm614_vm1, %v4267_v18, 0.0 }
  0x1f   : > { %v454_v19 = vadd.f32 %v453_v7, %v4231_v62  ;;  %v509_v20 = vadd.f32 %v508_v8, %v4234_v63  ;;  %v625_v21 = vadd.f32 %v624_v2, %v623_v9  ;;  %v4275_v23 = vld [vmem:[%s4179_s14 + $0x108] sm:$0xff]  ;;  %v4284_v27 = vld [vmem:[%s4179_s14 + $0x138] sm:$0xf]  ;;  %v3798_v31 = vpack.c.bf16 %v1259_v16, %v1258_v11  ;;  %v1260_v32 = vld [vmem:[%s8763_s1 + $0x70] sm:$0xff] }
  0x20   : > { %3793 = vmatpush3.bf16.msra.mxu0 %v3792_v50  ;;  %3817 = vmatpush3.bf16.msra.mxu1 %v3792_v50  ;;  %v564_v24 = vadd.f32 %v563_v14, %v4241_v4  ;;  %v4292_v33 = vld [vmem:[%s4179_s14 + $0x120] sm:$0xff]  ;;  %v4295_v34 = vld [vmem:[%s4179_s14 + $0x128] sm:$0xff]  ;;  %v1261_v37 = vld [vmem:[%s8763_s1 + $0x78] sm:$0xff]  ;;  %v632_v46 = vsel %vm614_vm1, %v4284_v27, 0.0 }
  0x21   : > { %3794 = vmatprep.subr.bf16.mxu0 %v4099_v3  ;;  %3818 = vmatprep.subr.bf16.mxu1 %v4099_v3  ;;  %v455_v28 = vadd.f32 %v454_v19, %v4250_v12  ;;  %v510_v29 = vadd.f32 %v509_v20, %v4253_v13  ;;  %v627_v30 = vadd.f32 %v626_v15, %v625_v21  ;;  %v4306_v38 = vld [vmem:[%s4179_s14 + $0x130] sm:$0xff]  ;;  %v4309_v39 = vld [vmem:[%s4179_s14 + $0x158] sm:$0xf]  ;;  %v4314_v43 = vld [vmem:[%s4179_s14 + $0x140] sm:$0xff] }
  0x22   : > { %v565_v35 = vadd.f32 %v564_v24, %v4264_v17  ;;  %v4317_v44 = vld [vmem:[%s4179_s14 + $0x148] sm:$0xff]  ;;  %v4323_v47 = vld [vmem:[%s4179_s14 + $0x150] sm:$0xff]  ;;  %v4326_v48 = vld [vmem:[%s4179_s14 + $0x178] sm:$0xf]  ;;  %v3801_v52 = vpack.c.bf16 %v1261_v37, %v1260_v32  ;;  %v634_v56 = vsel %vm614_vm1, %v4309_v39, 0.0 }
  0x23   : > { %v456_v40 = vadd.f32 %v455_v28, %v4272_v22  ;;  %v511_v41 = vadd.f32 %v510_v29, %v4275_v23  ;;  %v629_v42 = vadd.f32 %v628_v25, %v627_v30  ;;  %v4331_v53 = vld [vmem:[%s4179_s14 + $0x160] sm:$0xff]  ;;  %v4334_v54 = vld [vmem:[%s4179_s14 + $0x168] sm:$0xff]  ;;  %v4342_v57 = vld [vmem:[%s4179_s14 + $0x170] sm:$0xff] }
  0x24   : > { %3796 = vmatpush3.bf16.msra.mxu0 %v3795_v10  ;;  %3820 = vmatpush3.bf16.msra.mxu1 %v3795_v10  ;;  %v566_v45 = vadd.f32 %v565_v35, %v4281_v26  ;;  %v4345_v59 = vld [vmem:[%s4179_s14 + $0x198] sm:$0xf]  ;;  %v4350_v2 = vld [vmem:[%s4179_s14 + $0x180] sm:$0xff]  ;;  %v4353_v7 = vld [vmem:[%s4179_s14 + $0x188] sm:$0xff] }
  0x25   : > { %3797 = vmatprep.subr.bf16.mxu0 %v4099_v3  ;;  %3821 = vmatprep.subr.bf16.mxu1 %v4099_v3  ;;  %v457_v49 = vadd.f32 %v456_v40, %v4292_v33  ;;  %v512_v50 = vadd.f32 %v511_v41, %v4295_v34  ;;  %v631_v51 = vadd.f32 %v630_v36, %v629_v42  ;;  %v4359_v9 = vld [vmem:[%s4179_s14 + $0x190] sm:$0xff]  ;;  %v4362_v10 = vld [vmem:[%s4179_s14 + $0x1b8] sm:$0xf]  ;;  %v4367_v16 = vld [vmem:[%s4179_s14 + $0x1a0] sm:$0xff]  ;;  %v638_v21 = vsel %vm614_vm1, %v4345_v59, 0.0 }
  0x26   : > { %v567_v55 = vadd.f32 %v566_v45, %v4306_v38  ;;  %v4370_v19 = vld [vmem:[%s4179_s14 + $0x1a8] sm:$0xff]  ;;  %v4376_v24 = vld [vmem:[%s4179_s14 + $0x1b0] sm:$0xff]  ;;  %v4379_v25 = vld [vmem:[%s4179_s14 + $0x1d8] sm:$0xf]  ;;  %v640_v36 = vsel %vm614_vm1, %v4362_v10, 0.0 }
  0x27   : > { %v458_v60 = vadd.f32 %v457_v49, %v4314_v43  ;;  %v513_v61 = vadd.f32 %v512_v50, %v4317_v44  ;;  %v633_v1 = vadd.f32 %v632_v46, %v631_v51  ;;  %v4389_v32 = vld [vmem:[%s4179_s14 + $0x1c8] sm:$0xff]  ;;  %v4395_v37 = vld [vmem:[%s4179_s14 + $0x1d0] sm:$0xff]  ;;  %v4398_v40 = vld [vmem:[%s4179_s14 + $0x1f8] sm:$0xf]  ;;  %v642_v51 = vsel %vm614_vm1, %v4379_v25, 0.0 }
  0x28   : > { %3799 = vmatpush3.bf16.msra.mxu0 %v3798_v31  ;;  %3823 = vmatpush3.bf16.msra.mxu1 %v3798_v31  ;;  %v568_v8 = vadd.f32 %v567_v55, %v4323_v47  ;;  %v4386_v31 = vld [vmem:[%s4179_s14 + $0x1c0] sm:$0xff]  ;;  %9176 = vst [vmem:[#allocation2_spill] sm:$0xff] %v4398_v40  ;;  %v4406_v49 = vld [vmem:[%s4179_s14 + $0x1e8] sm:$0xff]  ;;  %v4415_v55 = vld [vmem:[%s4179_s14 + $0x218] sm:$0xf] }
  0x29   : > { %3800 = vmatprep.subr.bf16.mxu0 %v4099_v3  ;;  %3824 = vmatprep.subr.bf16.mxu1 %v4099_v3  ;;  %v636_v3 = vsel %vm614_vm1, %v4326_v48, 0.0  ;;  %v459_v11 = vadd.f32 %v458_v60, %v4331_v53  ;;  %v514_v14 = vadd.f32 %v513_v61, %v4334_v54  ;;  %v635_v15 = vadd.f32 %v634_v56, %v633_v1  ;;  %v4403_v46 = vld [vmem:[%s4179_s14 + $0x1e0] sm:$0xff] }
  0x2a   : > { %v569_v20 = vadd.f32 %v568_v8, %v4342_v57  ;;  %9177 = vst [vmem:[#allocation3_spill] sm:$0xff] %v4415_v55  ;;  %v4420_v1 = vld [vmem:[%s4179_s14 + $0x200] sm:$0xff]  ;;  %v4423_v8 = vld [vmem:[%s4179_s14 + $0x208] sm:$0xff] }
  0x2b   : > { %v460_v28 = vadd.f32 %v459_v11, %v4350_v2  ;;  %v515_v29 = vadd.f32 %v514_v14, %v4353_v7  ;;  %v637_v30 = vadd.f32 %v636_v3, %v635_v15  ;;  %9178 = vst [vmem:[#allocation4_spill] sm:$0xff] %v4420_v1  ;;  %9179 = vst [vmem:[#allocation5_spill] sm:$0xff] %v4423_v8  ;;  %v644_v11 = vsel %vm614_vm1, %v4398_v40, 0.0  ;;  %v4429_v14 = vld [vmem:[%s4179_s14 + $0x210] sm:$0xff]  ;;  %v4432_v15 = vld [vmem:[%s4179_s14 + $0x238] sm:$0xf] }
  0x2c   : > { %3802 = vmatpush3.bf16.msra.mxu0 %v3801_v52  ;;  %3826 = vmatpush3.bf16.msra.mxu1 %v3801_v52  ;;  %v570_v35 = vadd.f32 %v569_v20, %v4359_v9  ;;  %v4412_v52 = vld [vmem:[%s4179_s14 + $0x1f0] sm:$0xff]  ;;  %9180 = vst [vmem:[#allocation6_spill] sm:$0xff] %v4429_v14  ;;  %9181 = vst [vmem:[#allocation7_spill] sm:$0xff] %v4432_v15  ;;  %v3847_v40 = vld [vmem:[%s4179_s14 + $0x20] sm:$0xff] }
  0x2d   : > { %3769 = vmatprep.subr.mxu0 %v8768_v6  ;;  %3774 = vmatprep.subr.mxu1 %v8768_v6  ;;  %v461_v41 = vadd.f32 %v460_v28, %v4367_v16  ;;  %v516_v42 = vadd.f32 %v515_v29, %v4370_v19  ;;  %v639_v45 = vadd.f32 %v638_v21, %v637_v30  ;;  %v4437_v29 = vld [vmem:[%s4179_s14 + $0x220] sm:$0xff]  ;;  %v4440_v30 = vld [vmem:[%s4179_s14 + $0x228] sm:$0xff]  ;;  %v4463_v6 = vld [vmem:[%s4179_s14 + $0x250] sm:$0xff] }
  0x2e   : > { %v571_v50 = vadd.f32 %v570_v35, %v4376_v24  ;;  %9182 = vst [vmem:[#allocation8_spill] sm:$0xff] %v4437_v29  ;;  %9183 = vst [vmem:[#allocation9_spill] sm:$0xff] %v4440_v30 }
  0x2f   : > { %v462_v56 = vadd.f32 %v461_v41, %v4386_v31  ;;  %v517_v60 = vadd.f32 %v516_v42, %v4389_v32  ;;  %v641_v61 = vadd.f32 %v640_v36, %v639_v45  ;;  %v646_v36 = vsel %vm614_vm1, %v4415_v55, 0.0  ;;  %v4446_v41 = vld [vmem:[%s4179_s14 + $0x230] sm:$0xff]  ;;  %v4449_v42 = vld [vmem:[%s4179_s14 + $0x258] sm:$0xf]  ;;  %9188 = vst [vmem:[#allocation14_spill] sm:$0xff] %v4463_v6 }
  0x30   : > { %v572_v3 = vadd.f32 %v571_v50, %v4395_v37  ;;  %9184 = vst [vmem:[#allocation10_spill] sm:$0xff] %v4446_v41  ;;  %9185 = vst [vmem:[#allocation11_spill] sm:$0xff] %v4449_v42  ;;  %v4466_v55 = vld [vmem:[%s4179_s14 + $0x278] sm:$0xf] }
  0x31   : > { %v463_v20 = vadd.f32 %v462_v56, %v4403_v46  ;;  %v518_v21 = vadd.f32 %v517_v60, %v4406_v49  ;;  %v643_v28 = vadd.f32 %v642_v51, %v641_v61  ;;  %v4454_v56 = vld [vmem:[%s4179_s14 + $0x240] sm:$0xff]  ;;  %v4457_v60 = vld [vmem:[%s4179_s14 + $0x248] sm:$0xff]  ;;  %9189 = vst [vmem:[#allocation15_spill] sm:$0xff] %v4466_v55 }
  0x32   : > { %v573_v35 = vadd.f32 %v572_v3, %v4412_v52  ;;  %9186 = vst [vmem:[#allocation12_spill] sm:$0xff] %v4454_v56  ;;  %9187 = vst [vmem:[#allocation13_spill] sm:$0xff] %v4457_v60  ;;  %v648_v3 = vsel %vm614_vm1, %v4432_v15, 0.0  ;;  %v650_v15 = vsel %vm614_vm1, %v4449_v42, 0.0  ;;  %v652_v42 = vsel %vm614_vm1, %v4466_v55, 0.0 }
  0x33   : > { %v464_v45 = vadd.f32 %v463_v20, %v4420_v1  ;;  %v519_v50 = vadd.f32 %v518_v21, %v4423_v8  ;;  %v645_v51 = vadd.f32 %v644_v11, %v643_v28  ;;  %v4471_v28 = vld [vmem:[%s4179_s14 + $0x260] sm:$0xff]  ;;  %v4474_v8 = vld [vmem:[%s4179_s14 + $0x268] sm:$0xff]  ;;  %v4483_v1 = vld [vmem:[%s4179_s14 + $0x298] sm:$0xf] }
  0x34   : > { %v574_v61 = vadd.f32 %v573_v35, %v4429_v14  ;;  %9190 = vst [vmem:[#allocation16_spill] sm:$0xff] %v4471_v28  ;;  %9191 = vst [vmem:[#allocation17_spill] sm:$0xff] %v4474_v8  ;;  %v4480_v14 = vld [vmem:[%s4179_s14 + $0x270] sm:$0xff]  ;;  %v654_v55 = vsel %vm614_vm1, %v4483_v1, 0.0 }
  0x35   : > { %v465_v20 = vadd.f32 %v464_v45, %v4437_v29  ;;  %v520_v11 = vadd.f32 %v519_v50, %v4440_v30  ;;  %v647_v21 = vadd.f32 %v646_v36, %v645_v51  ;;  %9192 = vst [vmem:[#allocation18_spill] sm:$0xff] %v4480_v14  ;;  %9193 = vst [vmem:[#allocation19_spill] sm:$0xff] %v4483_v1  ;;  %v4488_v51 = vld [vmem:[%s4179_s14 + $0x280] sm:$0xff]  ;;  %v4491_v30 = vld [vmem:[%s4179_s14 + $0x288] sm:$0xff] }
  0x36   : > { %v575_v35 = vadd.f32 %v574_v61, %v4446_v41  ;;  %9194 = vst [vmem:[#allocation20_spill] sm:$0xff] %v4488_v51  ;;  %9195 = vst [vmem:[#allocation21_spill] sm:$0xff] %v4491_v30  ;;  %v4497_v41 = vld [vmem:[%s4179_s14 + $0x290] sm:$0xff]  ;;  %v4500_v29 = vld [vmem:[%s4179_s14 + $0x2b8] sm:$0xf] }
  0x37   : > { %v466_v45 = vadd.f32 %v465_v20, %v4454_v56  ;;  %v521_v36 = vadd.f32 %v520_v11, %v4457_v60  ;;  %v649_v50 = vadd.f32 %v648_v3, %v647_v21  ;;  %9196 = vst [vmem:[#allocation22_spill] sm:$0xff] %v4497_v41  ;;  %9197 = vst [vmem:[#allocation23_spill] sm:$0xff] %v4500_v29  ;;  %v4505_v21 = vld [vmem:[%s4179_s14 + $0x2a0] sm:$0xff]  ;;  %v4508_v60 = vld [vmem:[%s4179_s14 + $0x2a8] sm:$0xff]  ;;  %v656_v1 = vsel %vm614_vm1, %v4500_v29, 0.0 }
  0x38   : > { %v576_v61 = vadd.f32 %v575_v35, %v4463_v6  ;;  %9198 = vst [vmem:[#allocation24_spill] sm:$0xff] %v4505_v21  ;;  %9199 = vst [vmem:[#allocation25_spill] sm:$0xff] %v4508_v60  ;;  %v4514_v6 = vld [vmem:[%s4179_s14 + $0x2b0] sm:$0xff]  ;;  %v4517_v56 = vld [vmem:[%s4179_s14 + $0x2d8] sm:$0xf] }
  0x39   : > { %v467_v20 = vadd.f32 %v466_v45, %v4471_v28  ;;  %v522_v3 = vadd.f32 %v521_v36, %v4474_v8  ;;  %v651_v11 = vadd.f32 %v650_v15, %v649_v50  ;;  %9200 = vst [vmem:[#allocation26_spill] sm:$0xff] %v4514_v6  ;;  %9201 = vst [vmem:[#allocation27_spill] sm:$0xff] %v4517_v56  ;;  %v4522_v50 = vld [vmem:[%s4179_s14 + $0x2c0] sm:$0xff]  ;;  %v4525_v8 = vld [vmem:[%s4179_s14 + $0x2c8] sm:$0xff]  ;;  %v658_v29 = vsel %vm614_vm1, %v4517_v56, 0.0 }
  0x3a   : > { %v577_v35 = vadd.f32 %v576_v61, %v4480_v14  ;;  %9202 = vst [vmem:[#allocation28_spill] sm:$0xff] %v4522_v50  ;;  %9203 = vst [vmem:[#allocation29_spill] sm:$0xff] %v4525_v8  ;;  %v4531_v14 = vld [vmem:[%s4179_s14 + $0x2d0] sm:$0xff]  ;;  %v4534_v28 = vld [vmem:[%s4179_s14 + $0x2f8] sm:$0xf] }
  0x3b   : > { %v468_v45 = vadd.f32 %v467_v20, %v4488_v51  ;;  %v523_v15 = vadd.f32 %v522_v3, %v4491_v30  ;;  %v653_v36 = vadd.f32 %v652_v42, %v651_v11  ;;  %9204 = vst [vmem:[#allocation30_spill] sm:$0xff] %v4531_v14  ;;  %9205 = vst [vmem:[#allocation31_spill] sm:$0xff] %v4534_v28  ;;  %v4539_v11 = vld [vmem:[%s4179_s14 + $0x2e0] sm:$0xff]  ;;  %v4542_v30 = vld [vmem:[%s4179_s14 + $0x2e8] sm:$0xff]  ;;  %v660_v56 = vsel %vm614_vm1, %v4534_v28, 0.0 }
  0x3c   : > { %v578_v61 = vadd.f32 %v577_v35, %v4497_v41  ;;  %9206 = vst [vmem:[#allocation32_spill] sm:$0xff] %v4539_v11  ;;  %9207 = vst [vmem:[#allocation33_spill] sm:$0xff] %v4542_v30  ;;  %v4548_v41 = vld [vmem:[%s4179_s14 + $0x2f0] sm:$0xff]  ;;  %v4551_v51 = vld [vmem:[%s4179_s14 + $0x318] sm:$0xf] }
  0x3d   : > { %v469_v20 = vadd.f32 %v468_v45, %v4505_v21  ;;  %v524_v42 = vadd.f32 %v523_v15, %v4508_v60  ;;  %v655_v3 = vadd.f32 %v654_v55, %v653_v36  ;;  %9208 = vst [vmem:[#allocation34_spill] sm:$0xff] %v4548_v41  ;;  %9209 = vst [vmem:[#allocation35_spill] sm:$0xff] %v4551_v51  ;;  %v4556_v36 = vld [vmem:[%s4179_s14 + $0x300] sm:$0xff]  ;;  %v4559_v60 = vld [vmem:[%s4179_s14 + $0x308] sm:$0xff]  ;;  %v662_v28 = vsel %vm614_vm1, %v4551_v51, 0.0 }
  0x3e   : > { %v579_v35 = vadd.f32 %v578_v61, %v4514_v6  ;;  %9210 = vst [vmem:[#allocation36_spill] sm:$0xff] %v4556_v36  ;;  %9211 = vst [vmem:[#allocation37_spill] sm:$0xff] %v4559_v60  ;;  %v4565_v6 = vld [vmem:[%s4179_s14 + $0x310] sm:$0xff]  ;;  %v4568_v21 = vld [vmem:[%s4179_s14 + $0x338] sm:$0xf] }
  0x3f   : > { %v470_v45 = vadd.f32 %v469_v20, %v4522_v50  ;;  %v525_v55 = vadd.f32 %v524_v42, %v4525_v8  ;;  %v657_v15 = vadd.f32 %v656_v1, %v655_v3  ;;  %9212 = vst [vmem:[#allocation38_spill] sm:$0xff] %v4565_v6  ;;  %9213 = vst [vmem:[#allocation39_spill] sm:$0xff] %v4568_v21  ;;  %v4573_v3 = vld [vmem:[%s4179_s14 + $0x320] sm:$0xff]  ;;  %v4576_v8 = vld [vmem:[%s4179_s14 + $0x328] sm:$0xff]  ;;  %v664_v51 = vsel %vm614_vm1, %v4568_v21, 0.0 }
  0x40   : > { %v580_v61 = vadd.f32 %v579_v35, %v4531_v14  ;;  %9214 = vst [vmem:[#allocation40_spill] sm:$0xff] %v4573_v3  ;;  %9215 = vst [vmem:[#allocation41_spill] sm:$0xff] %v4576_v8  ;;  %v4582_v14 = vld [vmem:[%s4179_s14 + $0x330] sm:$0xff]  ;;  %v4585_v50 = vld [vmem:[%s4179_s14 + $0x358] sm:$0xf] }
  0x41   : > { %v471_v20 = vadd.f32 %v470_v45, %v4539_v11  ;;  %v526_v1 = vadd.f32 %v525_v55, %v4542_v30  ;;  %v659_v42 = vadd.f32 %v658_v29, %v657_v15  ;;  %9216 = vst [vmem:[#allocation42_spill] sm:$0xff] %v4582_v14  ;;  %9217 = vst [vmem:[#allocation43_spill] sm:$0xff] %v4585_v50  ;;  %v4590_v15 = vld [vmem:[%s4179_s14 + $0x340] sm:$0xff]  ;;  %v4593_v30 = vld [vmem:[%s4179_s14 + $0x348] sm:$0xff]  ;;  %v666_v21 = vsel %vm614_vm1, %v4585_v50, 0.0 }
  0x42   : > { %v581_v35 = vadd.f32 %v580_v61, %v4548_v41  ;;  %9218 = vst [vmem:[#allocation44_spill] sm:$0xff] %v4590_v15  ;;  %9219 = vst [vmem:[#allocation45_spill] sm:$0xff] %v4593_v30  ;;  %v4599_v41 = vld [vmem:[%s4179_s14 + $0x350] sm:$0xff]  ;;  %v4602_v11 = vld [vmem:[%s4179_s14 + $0x378] sm:$0xf] }
  0x43   : > { %v472_v45 = vadd.f32 %v471_v20, %v4556_v36  ;;  %v527_v29 = vadd.f32 %v526_v1, %v4559_v60  ;;  %v661_v55 = vadd.f32 %v660_v56, %v659_v42  ;;  %9220 = vst [vmem:[#allocation46_spill] sm:$0xff] %v4599_v41  ;;  %9221 = vst [vmem:[#allocation47_spill] sm:$0xff] %v4602_v11  ;;  %v4607_v42 = vld [vmem:[%s4179_s14 + $0x360] sm:$0xff]  ;;  %v4610_v60 = vld [vmem:[%s4179_s14 + $0x368] sm:$0xff]  ;;  %v668_v50 = vsel %vm614_vm1, %v4602_v11, 0.0 }
  0x44   : > { %v582_v61 = vadd.f32 %v581_v35, %v4565_v6  ;;  %9222 = vst [vmem:[#allocation48_spill] sm:$0xff] %v4607_v42  ;;  %9223 = vst [vmem:[#allocation49_spill] sm:$0xff] %v4610_v60  ;;  %v4616_v6 = vld [vmem:[%s4179_s14 + $0x370] sm:$0xff]  ;;  %v4619_v36 = vld [vmem:[%s4179_s14 + $0x398] sm:$0xf] }
  0x45   : > { %v473_v20 = vadd.f32 %v472_v45, %v4573_v3  ;;  %v528_v56 = vadd.f32 %v527_v29, %v4576_v8  ;;  %v663_v1 = vadd.f32 %v662_v28, %v661_v55  ;;  %9224 = vst [vmem:[#allocation50_spill] sm:$0xff] %v4616_v6  ;;  %9225 = vst [vmem:[#allocation51_spill] sm:$0xff] %v4619_v36  ;;  %v4624_v55 = vld [vmem:[%s4179_s14 + $0x380] sm:$0xff]  ;;  %v4627_v8 = vld [vmem:[%s4179_s14 + $0x388] sm:$0xff]  ;;  %v670_v11 = vsel %vm614_vm1, %v4619_v36, 0.0 }
  0x46   : > { %v583_v35 = vadd.f32 %v582_v61, %v4582_v14  ;;  %9226 = vst [vmem:[#allocation52_spill] sm:$0xff] %v4624_v55  ;;  %9227 = vst [vmem:[#allocation53_spill] sm:$0xff] %v4627_v8  ;;  %v4633_v14 = vld [vmem:[%s4179_s14 + $0x390] sm:$0xff]  ;;  %v4636_v3 = vld [vmem:[%s4179_s14 + $0x3b8] sm:$0xf] }
  0x47   : > { %v474_v45 = vadd.f32 %v473_v20, %v4590_v15  ;;  %v529_v28 = vadd.f32 %v528_v56, %v4593_v30  ;;  %v665_v29 = vadd.f32 %v664_v51, %v663_v1  ;;  %9228 = vst [vmem:[#allocation54_spill] sm:$0xff] %v4633_v14  ;;  %9229 = vst [vmem:[#allocation55_spill] sm:$0xff] %v4636_v3  ;;  %v4641_v1 = vld [vmem:[%s4179_s14 + $0x3a0] sm:$0xff]  ;;  %v4644_v30 = vld [vmem:[%s4179_s14 + $0x3a8] sm:$0xff]  ;;  %v672_v36 = vsel %vm614_vm1, %v4636_v3, 0.0 }
  0x48   : > { %v584_v61 = vadd.f32 %v583_v35, %v4599_v41  ;;  %9230 = vst [vmem:[#allocation56_spill] sm:$0xff] %v4641_v1  ;;  %9231 = vst [vmem:[#allocation57_spill] sm:$0xff] %v4644_v30  ;;  %v4650_v41 = vld [vmem:[%s4179_s14 + $0x3b0] sm:$0xff]  ;;  %v4653_v15 = vld [vmem:[%s4179_s14 + $0x3d8] sm:$0xf] }
  0x49   : > { %v475_v20 = vadd.f32 %v474_v45, %v4607_v42  ;;  %v530_v51 = vadd.f32 %v529_v28, %v4610_v60  ;;  %v667_v56 = vadd.f32 %v666_v21, %v665_v29  ;;  %9232 = vst [vmem:[#allocation58_spill] sm:$0xff] %v4650_v41  ;;  %9233 = vst [vmem:[#allocation59_spill] sm:$0xff] %v4653_v15  ;;  %v4658_v29 = vld [vmem:[%s4179_s14 + $0x3c0] sm:$0xff]  ;;  %v4661_v60 = vld [vmem:[%s4179_s14 + $0x3c8] sm:$0xff]  ;;  %v674_v3 = vsel %vm614_vm1, %v4653_v15, 0.0 }
  0x4a   : > { %v585_v35 = vadd.f32 %v584_v61, %v4616_v6  ;;  %9234 = vst [vmem:[#allocation60_spill] sm:$0xff] %v4658_v29  ;;  %9235 = vst [vmem:[#allocation61_spill] sm:$0xff] %v4661_v60  ;;  %v4667_v6 = vld [vmem:[%s4179_s14 + $0x3d0] sm:$0xff]  ;;  %v4670_v42 = vld [vmem:[%s4179_s14 + $0x3f8] sm:$0xf] }
  0x4b   : > { %v476_v45 = vadd.f32 %v475_v20, %v4624_v55  ;;  %v531_v21 = vadd.f32 %v530_v51, %v4627_v8  ;;  %v669_v28 = vadd.f32 %v668_v50, %v667_v56  ;;  %9236 = vst [vmem:[#allocation62_spill] sm:$0xff] %v4667_v6  ;;  %9237 = vst [vmem:[#allocation63_spill] sm:$0xff] %v4670_v42  ;;  %v4675_v56 = vld [vmem:[%s4179_s14 + $0x3e0] sm:$0xff]  ;;  %v4678_v8 = vld [vmem:[%s4179_s14 + $0x3e8] sm:$0xff]  ;;  %v676_v15 = vsel %vm614_vm1, %v4670_v42, 0.0 }
  0x4c   : > { %v586_v61 = vadd.f32 %v585_v35, %v4633_v14  ;;  %9238 = vst [vmem:[#allocation64_spill] sm:$0xff] %v4675_v56  ;;  %9239 = vst [vmem:[#allocation65_spill] sm:$0xff] %v4678_v8  ;;  %v4684_v14 = vld [vmem:[%s4179_s14 + $0x3f0] sm:$0xff]  ;;  %v4687_v55 = vld [vmem:[%s4179_s14 + $0x418] sm:$0xf] }
  0x4d   : > { %v477_v20 = vadd.f32 %v476_v45, %v4641_v1  ;;  %v532_v50 = vadd.f32 %v531_v21, %v4644_v30  ;;  %v671_v51 = vadd.f32 %v670_v11, %v669_v28  ;;  %9240 = vst [vmem:[#allocation66_spill] sm:$0xff] %v4684_v14  ;;  %9241 = vst [vmem:[#allocation67_spill] sm:$0xff] %v4687_v55  ;;  %v4692_v28 = vld [vmem:[%s4179_s14 + $0x400] sm:$0xff]  ;;  %v4695_v30 = vld [vmem:[%s4179_s14 + $0x408] sm:$0xff]  ;;  %v678_v42 = vsel %vm614_vm1, %v4687_v55, 0.0 }
  0x4e   : > { %v587_v35 = vadd.f32 %v586_v61, %v4650_v41  ;;  %9242 = vst [vmem:[#allocation68_spill] sm:$0xff] %v4692_v28  ;;  %9243 = vst [vmem:[#allocation69_spill] sm:$0xff] %v4695_v30  ;;  %v4701_v41 = vld [vmem:[%s4179_s14 + $0x410] sm:$0xff]  ;;  %v4704_v1 = vld [vmem:[%s4179_s14 + $0x438] sm:$0xf] }
  0x4f   : > { %v478_v45 = vadd.f32 %v477_v20, %v4658_v29  ;;  %v533_v11 = vadd.f32 %v532_v50, %v4661_v60  ;;  %v673_v21 = vadd.f32 %v672_v36, %v671_v51  ;;  %9244 = vst [vmem:[#allocation70_spill] sm:$0xff] %v4701_v41  ;;  %9245 = vst [vmem:[#allocation71_spill] sm:$0xff] %v4704_v1  ;;  %v4709_v51 = vld [vmem:[%s4179_s14 + $0x420] sm:$0xff]  ;;  %v4712_v60 = vld [vmem:[%s4179_s14 + $0x428] sm:$0xff]  ;;  %v680_v55 = vsel %vm614_vm1, %v4704_v1, 0.0 }
  0x50   : > { %v588_v61 = vadd.f32 %v587_v35, %v4667_v6  ;;  %9246 = vst [vmem:[#allocation72_spill] sm:$0xff] %v4709_v51  ;;  %9247 = vst [vmem:[#allocation73_spill] sm:$0xff] %v4712_v60  ;;  %v4718_v6 = vld [vmem:[%s4179_s14 + $0x430] sm:$0xff]  ;;  %v4721_v29 = vld [vmem:[%s4179_s14 + $0x458] sm:$0xf] }
  0x51   : > { %v479_v20 = vadd.f32 %v478_v45, %v4675_v56  ;;  %v534_v36 = vadd.f32 %v533_v11, %v4678_v8  ;;  %v675_v50 = vadd.f32 %v674_v3, %v673_v21  ;;  %9248 = vst [vmem:[#allocation74_spill] sm:$0xff] %v4718_v6  ;;  %9249 = vst [vmem:[#allocation75_spill] sm:$0xff] %v4721_v29  ;;  %v4726_v21 = vld [vmem:[%s4179_s14 + $0x440] sm:$0xff]  ;;  %v4729_v8 = vld [vmem:[%s4179_s14 + $0x448] sm:$0xff]  ;;  %v682_v1 = vsel %vm614_vm1, %v4721_v29, 0.0 }
  0x52   : > { %v589_v35 = vadd.f32 %v588_v61, %v4684_v14  ;;  %9250 = vst [vmem:[#allocation76_spill] sm:$0xff] %v4726_v21  ;;  %9251 = vst [vmem:[#allocation77_spill] sm:$0xff] %v4729_v8  ;;  %v4735_v14 = vld [vmem:[%s4179_s14 + $0x450] sm:$0xff]  ;;  %v4738_v56 = vld [vmem:[%s4179_s14 + $0x478] sm:$0xf] }
  0x53   : > { %v480_v45 = vadd.f32 %v479_v20, %v4692_v28  ;;  %v535_v3 = vadd.f32 %v534_v36, %v4695_v30  ;;  %v677_v11 = vadd.f32 %v676_v15, %v675_v50  ;;  %9252 = vst [vmem:[#allocation78_spill] sm:$0xff] %v4735_v14  ;;  %9253 = vst [vmem:[#allocation79_spill] sm:$0xff] %v4738_v56  ;;  %v4743_v50 = vld [vmem:[%s4179_s14 + $0x460] sm:$0xff]  ;;  %v4746_v30 = vld [vmem:[%s4179_s14 + $0x468] sm:$0xff]  ;;  %v684_v29 = vsel %vm614_vm1, %v4738_v56, 0.0 }
  0x54   : > { %v590_v61 = vadd.f32 %v589_v35, %v4701_v41  ;;  %9254 = vst [vmem:[#allocation80_spill] sm:$0xff] %v4743_v50  ;;  %9255 = vst [vmem:[#allocation81_spill] sm:$0xff] %v4746_v30  ;;  %v4752_v41 = vld [vmem:[%s4179_s14 + $0x470] sm:$0xff]  ;;  %v4755_v28 = vld [vmem:[%s4179_s14 + $0x498] sm:$0xf] }
  0x55   : > { %v481_v20 = vadd.f32 %v480_v45, %v4709_v51  ;;  %v536_v15 = vadd.f32 %v535_v3, %v4712_v60  ;;  %v679_v36 = vadd.f32 %v678_v42, %v677_v11  ;;  %9256 = vst [vmem:[#allocation82_spill] sm:$0xff] %v4752_v41  ;;  %9257 = vst [vmem:[#allocation83_spill] sm:$0xff] %v4755_v28  ;;  %v4760_v11 = vld [vmem:[%s4179_s14 + $0x480] sm:$0xff]  ;;  %v4763_v60 = vld [vmem:[%s4179_s14 + $0x488] sm:$0xff]  ;;  %v686_v56 = vsel %vm614_vm1, %v4755_v28, 0.0 }
  0x56   : > { %v591_v35 = vadd.f32 %v590_v61, %v4718_v6  ;;  %9258 = vst [vmem:[#allocation84_spill] sm:$0xff] %v4760_v11  ;;  %9259 = vst [vmem:[#allocation85_spill] sm:$0xff] %v4763_v60  ;;  %v4769_v6 = vld [vmem:[%s4179_s14 + $0x490] sm:$0xff]  ;;  %v4772_v51 = vld [vmem:[%s4179_s14 + $0x4b8] sm:$0xf] }
  0x57   : > { %v482_v45 = vadd.f32 %v481_v20, %v4726_v21  ;;  %v537_v42 = vadd.f32 %v536_v15, %v4729_v8  ;;  %v681_v3 = vadd.f32 %v680_v55, %v679_v36  ;;  %9260 = vst [vmem:[#allocation86_spill] sm:$0xff] %v4769_v6  ;;  %9261 = vst [vmem:[#allocation87_spill] sm:$0xff] %v4772_v51  ;;  %v4777_v36 = vld [vmem:[%s4179_s14 + $0x4a0] sm:$0xff]  ;;  %v4780_v8 = vld [vmem:[%s4179_s14 + $0x4a8] sm:$0xff]  ;;  %v688_v28 = vsel %vm614_vm1, %v4772_v51, 0.0 }
  0x58   : > { %v592_v61 = vadd.f32 %v591_v35, %v4735_v14  ;;  %9262 = vst [vmem:[#allocation88_spill] sm:$0xff] %v4777_v36  ;;  %9263 = vst [vmem:[#allocation89_spill] sm:$0xff] %v4780_v8  ;;  %v4786_v14 = vld [vmem:[%s4179_s14 + $0x4b0] sm:$0xff]  ;;  %v4789_v21 = vld [vmem:[%s4179_s14 + $0x4d8] sm:$0xf] }
  0x59   : > { %v483_v20 = vadd.f32 %v482_v45, %v4743_v50  ;;  %v538_v55 = vadd.f32 %v537_v42, %v4746_v30  ;;  %v683_v15 = vadd.f32 %v682_v1, %v681_v3  ;;  %9264 = vst [vmem:[#allocation90_spill] sm:$0xff] %v4786_v14  ;;  %9265 = vst [vmem:[#allocation91_spill] sm:$0xff] %v4789_v21  ;;  %v4794_v3 = vld [vmem:[%s4179_s14 + $0x4c0] sm:$0xff]  ;;  %v4797_v30 = vld [vmem:[%s4179_s14 + $0x4c8] sm:$0xff]  ;;  %v690_v51 = vsel %vm614_vm1, %v4789_v21, 0.0 }
  0x5a   : > { %v593_v35 = vadd.f32 %v592_v61, %v4752_v41  ;;  %9266 = vst [vmem:[#allocation92_spill] sm:$0xff] %v4794_v3  ;;  %9267 = vst [vmem:[#allocation93_spill] sm:$0xff] %v4797_v30  ;;  %v4803_v41 = vld [vmem:[%s4179_s14 + $0x4d0] sm:$0xff]  ;;  %v4806_v50 = vld [vmem:[%s4179_s14 + $0x4f8] sm:$0xf] }
  0x5b   : > { %v484_v45 = vadd.f32 %v483_v20, %v4760_v11  ;;  %v539_v1 = vadd.f32 %v538_v55, %v4763_v60  ;;  %v685_v42 = vadd.f32 %v684_v29, %v683_v15  ;;  %9268 = vst [vmem:[#allocation94_spill] sm:$0xff] %v4803_v41  ;;  %9269 = vst [vmem:[#allocation95_spill] sm:$0xff] %v4806_v50  ;;  %v4811_v15 = vld [vmem:[%s4179_s14 + $0x4e0] sm:$0xff]  ;;  %v4814_v60 = vld [vmem:[%s4179_s14 + $0x4e8] sm:$0xff]  ;;  %v692_v21 = vsel %vm614_vm1, %v4806_v50, 0.0 }
  0x5c   : > { %v594_v61 = vadd.f32 %v593_v35, %v4769_v6  ;;  %9270 = vst [vmem:[#allocation96_spill] sm:$0xff] %v4811_v15  ;;  %9271 = vst [vmem:[#allocation97_spill] sm:$0xff] %v4814_v60  ;;  %v4820_v6 = vld [vmem:[%s4179_s14 + $0x4f0] sm:$0xff]  ;;  %v4823_v11 = vld [vmem:[%s4179_s14 + $0x518] sm:$0xf] }
  0x5d   : > { %v485_v20 = vadd.f32 %v484_v45, %v4777_v36  ;;  %v540_v29 = vadd.f32 %v539_v1, %v4780_v8  ;;  %v687_v55 = vadd.f32 %v686_v56, %v685_v42  ;;  %9272 = vst [vmem:[#allocation98_spill] sm:$0xff] %v4820_v6  ;;  %9273 = vst [vmem:[#allocation99_spill] sm:$0xff] %v4823_v11  ;;  %v4828_v42 = vld [vmem:[%s4179_s14 + $0x500] sm:$0xff]  ;;  %v4831_v8 = vld [vmem:[%s4179_s14 + $0x508] sm:$0xff]  ;;  %v694_v50 = vsel %vm614_vm1, %v4823_v11, 0.0 }
  0x5e   : > { %v595_v35 = vadd.f32 %v594_v61, %v4786_v14  ;;  %9274 = vst [vmem:[#allocation100_spill] sm:$0xff] %v4828_v42  ;;  %9275 = vst [vmem:[#allocation101_spill] sm:$0xff] %v4831_v8  ;;  %v4837_v14 = vld [vmem:[%s4179_s14 + $0x510] sm:$0xff]  ;;  %v4840_v36 = vld [vmem:[%s4179_s14 + $0x538] sm:$0xf] }
  0x5f   : > { %v486_v45 = vadd.f32 %v485_v20, %v4794_v3  ;;  %v541_v56 = vadd.f32 %v540_v29, %v4797_v30  ;;  %v689_v1 = vadd.f32 %v688_v28, %v687_v55  ;;  %9276 = vst [vmem:[#allocation102_spill] sm:$0xff] %v4837_v14  ;;  %9277 = vst [vmem:[#allocation103_spill] sm:$0xff] %v4840_v36  ;;  %v4845_v55 = vld [vmem:[%s4179_s14 + $0x520] sm:$0xff]  ;;  %v4848_v30 = vld [vmem:[%s4179_s14 + $0x528] sm:$0xff]  ;;  %v696_v11 = vsel %vm614_vm1, %v4840_v36, 0.0 }
  0x60   : > { %v596_v61 = vadd.f32 %v595_v35, %v4803_v41  ;;  %9278 = vst [vmem:[#allocation104_spill] sm:$0xff] %v4845_v55  ;;  %9279 = vst [vmem:[#allocation105_spill] sm:$0xff] %v4848_v30  ;;  %v4854_v41 = vld [vmem:[%s4179_s14 + $0x530] sm:$0xff]  ;;  %v4857_v3 = vld [vmem:[%s4179_s14 + $0x558] sm:$0xf] }
  0x61   : > { %v487_v20 = vadd.f32 %v486_v45, %v4811_v15  ;;  %v542_v28 = vadd.f32 %v541_v56, %v4814_v60  ;;  %v691_v29 = vadd.f32 %v690_v51, %v689_v1  ;;  %9280 = vst [vmem:[#allocation106_spill] sm:$0xff] %v4854_v41  ;;  %9281 = vst [vmem:[#allocation107_spill] sm:$0xff] %v4857_v3  ;;  %v4862_v1 = vld [vmem:[%s4179_s14 + $0x540] sm:$0xff]  ;;  %v4865_v60 = vld [vmem:[%s4179_s14 + $0x548] sm:$0xff]  ;;  %v698_v36 = vsel %vm614_vm1, %v4857_v3, 0.0 }
  0x62   : > { %v597_v35 = vadd.f32 %v596_v61, %v4820_v6  ;;  %9282 = vst [vmem:[#allocation108_spill] sm:$0xff] %v4862_v1  ;;  %9283 = vst [vmem:[#allocation109_spill] sm:$0xff] %v4865_v60  ;;  %v4871_v6 = vld [vmem:[%s4179_s14 + $0x550] sm:$0xff]  ;;  %v4874_v15 = vld [vmem:[%s4179_s14 + $0x578] sm:$0xf] }
  0x63   : > { %v488_v45 = vadd.f32 %v487_v20, %v4828_v42  ;;  %v543_v51 = vadd.f32 %v542_v28, %v4831_v8  ;;  %v693_v56 = vadd.f32 %v692_v21, %v691_v29  ;;  %9284 = vst [vmem:[#allocation110_spill] sm:$0xff] %v4871_v6  ;;  %9285 = vst [vmem:[#allocation111_spill] sm:$0xff] %v4874_v15  ;;  %v4879_v29 = vld [vmem:[%s4179_s14 + $0x560] sm:$0xff]  ;;  %v4882_v8 = vld [vmem:[%s4179_s14 + $0x568] sm:$0xff]  ;;  %v700_v3 = vsel %vm614_vm1, %v4874_v15, 0.0 }
  0x64   : > { %v598_v61 = vadd.f32 %v597_v35, %v4837_v14  ;;  %9286 = vst [vmem:[#allocation112_spill] sm:$0xff] %v4879_v29  ;;  %9287 = vst [vmem:[#allocation113_spill] sm:$0xff] %v4882_v8  ;;  %v4888_v14 = vld [vmem:[%s4179_s14 + $0x570] sm:$0xff]  ;;  %v4891_v42 = vld [vmem:[%s4179_s14 + $0x598] sm:$0xf] }
  0x65   : > { %v489_v20 = vadd.f32 %v488_v45, %v4845_v55  ;;  %v544_v21 = vadd.f32 %v543_v51, %v4848_v30  ;;  %v695_v28 = vadd.f32 %v694_v50, %v693_v56  ;;  %9288 = vst [vmem:[#allocation114_spill] sm:$0xff] %v4888_v14  ;;  %9289 = vst [vmem:[#allocation115_spill] sm:$0xff] %v4891_v42  ;;  %v4896_v56 = vld [vmem:[%s4179_s14 + $0x580] sm:$0xff]  ;;  %v4899_v30 = vld [vmem:[%s4179_s14 + $0x588] sm:$0xff]  ;;  %v702_v15 = vsel %vm614_vm1, %v4891_v42, 0.0 }
  0x66   : > { %v599_v35 = vadd.f32 %v598_v61, %v4854_v41  ;;  %9290 = vst [vmem:[#allocation116_spill] sm:$0xff] %v4896_v56  ;;  %9291 = vst [vmem:[#allocation117_spill] sm:$0xff] %v4899_v30  ;;  %v4905_v41 = vld [vmem:[%s4179_s14 + $0x590] sm:$0xff]  ;;  %v4908_v55 = vld [vmem:[%s4179_s14 + $0x5b8] sm:$0xf] }
  0x67   : > { %v490_v45 = vadd.f32 %v489_v20, %v4862_v1  ;;  %v545_v50 = vadd.f32 %v544_v21, %v4865_v60  ;;  %v697_v51 = vadd.f32 %v696_v11, %v695_v28  ;;  %9292 = vst [vmem:[#allocation118_spill] sm:$0xff] %v4905_v41  ;;  %9293 = vst [vmem:[#allocation119_spill] sm:$0xff] %v4908_v55  ;;  %v4913_v28 = vld [vmem:[%s4179_s14 + $0x5a0] sm:$0xff]  ;;  %v4916_v60 = vld [vmem:[%s4179_s14 + $0x5a8] sm:$0xff]  ;;  %v704_v42 = vsel %vm614_vm1, %v4908_v55, 0.0 }
  0x68   : > { %v600_v61 = vadd.f32 %v599_v35, %v4871_v6  ;;  %9294 = vst [vmem:[#allocation120_spill] sm:$0xff] %v4913_v28  ;;  %9295 = vst [vmem:[#allocation121_spill] sm:$0xff] %v4916_v60  ;;  %v4922_v6 = vld [vmem:[%s4179_s14 + $0x5b0] sm:$0xff]  ;;  %v4925_v1 = vld [vmem:[%s4179_s14 + $0x5d8] sm:$0xf] }
  0x69   : > { %v491_v20 = vadd.f32 %v490_v45, %v4879_v29  ;;  %v546_v11 = vadd.f32 %v545_v50, %v4882_v8  ;;  %v699_v21 = vadd.f32 %v698_v36, %v697_v51  ;;  %9296 = vst [vmem:[#allocation122_spill] sm:$0xff] %v4922_v6  ;;  %9297 = vst [vmem:[#allocation123_spill] sm:$0xff] %v4925_v1  ;;  %v4930_v51 = vld [vmem:[%s4179_s14 + $0x5c0] sm:$0xff]  ;;  %v4933_v8 = vld [vmem:[%s4179_s14 + $0x5c8] sm:$0xff]  ;;  %v706_v55 = vsel %vm614_vm1, %v4925_v1, 0.0 }
  0x6a   : > { %v601_v35 = vadd.f32 %v600_v61, %v4888_v14  ;;  %9298 = vst [vmem:[#allocation124_spill] sm:$0xff] %v4930_v51  ;;  %9299 = vst [vmem:[#allocation125_spill] sm:$0xff] %v4933_v8  ;;  %v4939_v14 = vld [vmem:[%s4179_s14 + $0x5d0] sm:$0xff]  ;;  %v4942_v29 = vld [vmem:[%s4179_s14 + $0x5f8] sm:$0xf] }
  0x6b   : > { %v492_v45 = vadd.f32 %v491_v20, %v4896_v56  ;;  %v547_v36 = vadd.f32 %v546_v11, %v4899_v30  ;;  %v701_v50 = vadd.f32 %v700_v3, %v699_v21  ;;  %9300 = vst [vmem:[#allocation126_spill] sm:$0xff] %v4939_v14  ;;  %9301 = vst [vmem:[#allocation127_spill] sm:$0xff] %v4942_v29  ;;  %v4947_v21 = vld [vmem:[%s4179_s14 + $0x5e0] sm:$0xff]  ;;  %v4950_v30 = vld [vmem:[%s4179_s14 + $0x5e8] sm:$0xff]  ;;  %v708_v1 = vsel %vm614_vm1, %v4942_v29, 0.0 }
  0x6c   : > { %v602_v61 = vadd.f32 %v601_v35, %v4905_v41  ;;  %9302 = vst [vmem:[#allocation128_spill] sm:$0xff] %v4947_v21  ;;  %9303 = vst [vmem:[#allocation129_spill] sm:$0xff] %v4950_v30  ;;  %v4956_v41 = vld [vmem:[%s4179_s14 + $0x5f0] sm:$0xff]  ;;  %v4959_v56 = vld [vmem:[%s4179_s14 + $0x618] sm:$0xf] }
  0x6d   : > { %v493_v20 = vadd.f32 %v492_v45, %v4913_v28  ;;  %v548_v3 = vadd.f32 %v547_v36, %v4916_v60  ;;  %v703_v11 = vadd.f32 %v702_v15, %v701_v50  ;;  %9304 = vst [vmem:[#allocation130_spill] sm:$0xff] %v4956_v41  ;;  %9305 = vst [vmem:[#allocation131_spill] sm:$0xff] %v4959_v56  ;;  %v4964_v50 = vld [vmem:[%s4179_s14 + $0x600] sm:$0xff]  ;;  %v4967_v60 = vld [vmem:[%s4179_s14 + $0x608] sm:$0xff]  ;;  %v710_v29 = vsel %vm614_vm1, %v4959_v56, 0.0 }
  0x6e   : > { %v603_v35 = vadd.f32 %v602_v61, %v4922_v6  ;;  %9306 = vst [vmem:[#allocation132_spill] sm:$0xff] %v4964_v50  ;;  %9307 = vst [vmem:[#allocation133_spill] sm:$0xff] %v4967_v60  ;;  %v4973_v6 = vld [vmem:[%s4179_s14 + $0x610] sm:$0xff]  ;;  %v4976_v28 = vld [vmem:[%s4179_s14 + $0x638] sm:$0xf] }
  0x6f   : > { %v494_v45 = vadd.f32 %v493_v20, %v4930_v51  ;;  %v549_v15 = vadd.f32 %v548_v3, %v4933_v8  ;;  %v705_v36 = vadd.f32 %v704_v42, %v703_v11  ;;  %9308 = vst [vmem:[#allocation134_spill] sm:$0xff] %v4973_v6  ;;  %9309 = vst [vmem:[#allocation135_spill] sm:$0xff] %v4976_v28  ;;  %v4981_v11 = vld [vmem:[%s4179_s14 + $0x620] sm:$0xff]  ;;  %v4984_v8 = vld [vmem:[%s4179_s14 + $0x628] sm:$0xff]  ;;  %v712_v56 = vsel %vm614_vm1, %v4976_v28, 0.0 }
  0x70   : > { %v604_v61 = vadd.f32 %v603_v35, %v4939_v14  ;;  %9310 = vst [vmem:[#allocation136_spill] sm:$0xff] %v4981_v11  ;;  %9311 = vst [vmem:[#allocation137_spill] sm:$0xff] %v4984_v8  ;;  %v4990_v14 = vld [vmem:[%s4179_s14 + $0x630] sm:$0xff]  ;;  %v4993_v51 = vld [vmem:[%s4179_s14 + $0x658] sm:$0xf] }
  0x71   : > { %v495_v20 = vadd.f32 %v494_v45, %v4947_v21  ;;  %v550_v42 = vadd.f32 %v549_v15, %v4950_v30  ;;  %v707_v3 = vadd.f32 %v706_v55, %v705_v36  ;;  %9312 = vst [vmem:[#allocation138_spill] sm:$0xff] %v4990_v14  ;;  %9313 = vst [vmem:[#allocation139_spill] sm:$0xff] %v4993_v51  ;;  %v4998_v36 = vld [vmem:[%s4179_s14 + $0x640] sm:$0xff]  ;;  %v5001_v30 = vld [vmem:[%s4179_s14 + $0x648] sm:$0xff]  ;;  %v714_v28 = vsel %vm614_vm1, %v4993_v51, 0.0 }
  0x72   : > { %v605_v35 = vadd.f32 %v604_v61, %v4956_v41  ;;  %9314 = vst [vmem:[#allocation140_spill] sm:$0xff] %v4998_v36  ;;  %9315 = vst [vmem:[#allocation141_spill] sm:$0xff] %v5001_v30  ;;  %v5007_v41 = vld [vmem:[%s4179_s14 + $0x650] sm:$0xff]  ;;  %v5010_v21 = vld [vmem:[%s4179_s14 + $0x678] sm:$0xf] }
  0x73   : > { %v496_v45 = vadd.f32 %v495_v20, %v4964_v50  ;;  %v551_v55 = vadd.f32 %v550_v42, %v4967_v60  ;;  %v709_v15 = vadd.f32 %v708_v1, %v707_v3  ;;  %9316 = vst [vmem:[#allocation142_spill] sm:$0xff] %v5007_v41  ;;  %9317 = vst [vmem:[#allocation143_spill] sm:$0xff] %v5010_v21  ;;  %v5015_v3 = vld [vmem:[%s4179_s14 + $0x660] sm:$0xff]  ;;  %v5018_v60 = vld [vmem:[%s4179_s14 + $0x668] sm:$0xff]  ;;  %v716_v51 = vsel %vm614_vm1, %v5010_v21, 0.0 }
  0x74   : > { %v606_v61 = vadd.f32 %v605_v35, %v4973_v6  ;;  %9318 = vst [vmem:[#allocation144_spill] sm:$0xff] %v5015_v3  ;;  %9319 = vst [vmem:[#allocation145_spill] sm:$0xff] %v5018_v60  ;;  %v5024_v6 = vld [vmem:[%s4179_s14 + $0x670] sm:$0xff]  ;;  %v436_v50 = vld [vmem:[%s4179_s14 + $0x698] sm:$0xf] }
  0x75   : > { %v497_v20 = vadd.f32 %v496_v45, %v4981_v11  ;;  %v552_v1 = vadd.f32 %v551_v55, %v4984_v8  ;;  %v711_v42 = vadd.f32 %v710_v29, %v709_v15  ;;  %9320 = vst [vmem:[#allocation146_spill] sm:$0xff] %v5024_v6  ;;  %v5030_v15 = vld [vmem:[%s4179_s14 + $0x680] sm:$0xff]  ;;  %v5033_v8 = vld [vmem:[%s4179_s14 + $0x688] sm:$0xff]  ;;  %v5042_v11 = vld [vmem:[%s4179_s14 + $0x6b8] sm:$0xf]  ;;  %v718_v21 = vsel %vm614_vm1, %v436_v50, 0.0 }
  0x76   : > { %v607_v35 = vadd.f32 %v606_v61, %v4990_v14  ;;  %9321 = vst [vmem:[#allocation147_spill] sm:$0xff] %v5030_v15  ;;  %9322 = vst [vmem:[#allocation148_spill] sm:$0xff] %v5033_v8  ;;  %v5039_v14 = vld [vmem:[%s4179_s14 + $0x690] sm:$0xff]  ;;  %v5069_v50 = vld [vmem:[%s4179_s14 + $0x6c8] sm:$0xff] }
  0x77   : > { %v498_v45 = vadd.f32 %v497_v20, %v4998_v36  ;;  %v553_v55 = vadd.f32 %v552_v1, %v5001_v30  ;;  %v713_v29 = vadd.f32 %v712_v56, %v711_v42  ;;  %9323 = vst [vmem:[#allocation149_spill] sm:$0xff] %v5039_v14  ;;  %9324 = vst [vmem:[#allocation150_spill] sm:$0xff] %v5042_v11  ;;  %v5047_v42 = vld [vmem:[%s4179_s14 + $0x6a0] sm:$0xff]  ;;  %v5050_v30 = vld [vmem:[%s4179_s14 + $0x6a8] sm:$0xff] }
  0x78   : > { %v608_v61 = vadd.f32 %v607_v35, %v5007_v41  ;;  %9325 = vst [vmem:[#allocation151_spill] sm:$0xff] %v5047_v42  ;;  %9326 = vst [vmem:[#allocation152_spill] sm:$0xff] %v5050_v30  ;;  %v5055_v41 = vld [vmem:[%s4179_s14 + $0x6b0] sm:$0xff]  ;;  %v5058_v36 = vld [vmem:[%s4179_s14 + $0x6d8] sm:$0xf] }
  0x79   : > { %v499_v20 = vadd.f32 %v498_v45, %v5015_v3  ;;  %v554_v56 = vadd.f32 %v553_v55, %v5018_v60  ;;  %v715_v1 = vadd.f32 %v714_v28, %v713_v29  ;;  %9327 = vst [vmem:[#allocation153_spill] sm:$0xff] %v5055_v41  ;;  %9328 = vst [vmem:[#allocation154_spill] sm:$0xff] %v5058_v36  ;;  %v3843_v29 = vld [vmem:[%s4179_s14] sm:$0xff] }
  0x7a   : > { %v609_v35 = vadd.f32 %v608_v61, %v5024_v6  ;;  %v5063_v60 = vmul.f32 %v3843_v29, %v3843_v29  ;;  %v5066_v3 = vld [vmem:[%s4179_s14 + $0x6c0] sm:$0xff]  ;;  %9331 = vst [vmem:[#allocation157_spill] sm:$0xff] %v5069_v50  ;;  %v720_v6 = vsel %vm614_vm1, %v5042_v11, 0.0  ;;  %v5084_v29 = vld [vmem:[%s4179_s14 + $0x6f8] sm:$0xf] }
  0x7b   : > { %v500_v45 = vadd.f32 %v499_v20, %v5030_v15  ;;  %v555_v28 = vadd.f32 %v554_v56, %v5033_v8  ;;  %v717_v55 = vadd.f32 %v716_v51, %v715_v1  ;;  %9330 = vst [vmem:[#allocation156_spill] sm:$0xff] %v5066_v3  ;;  %v3844_v20 = vld [vmem:[%s4179_s14 + $0x8] sm:$0xff]  ;;  %v3845_v51 = vld [vmem:[%s4179_s14 + $0x10] sm:$0xff]  ;;  %9335 = vst [vmem:[#allocation161_spill] sm:$0xff] %v5084_v29 }
  0x7c   : > { %9329 = vst [vmem:[#allocation155_spill] sm:$0xff] %v5063_v60  ;;  %v610_v61 = vadd.f32 %v609_v35, %v5039_v14  ;;  %v5075_v15 = vmul.f32 %v3844_v20, %v3844_v20  ;;  %v5078_v56 = vmul.f32 %v3845_v51, %v3845_v51  ;;  %v5081_v1 = vld [vmem:[%s4179_s14 + $0x6d0] sm:$0xff]  ;;  %v3846_v11 = vld [vmem:[%s4179_s14 + $0x18] sm:$0xf]  ;;  %v5092_v20 = vld [vmem:[%s4179_s14 + $0x6e0] sm:$0xff] }
  0x7d   : > { %9334 = vst [vmem:[#allocation160_spill] sm:$0xff] %v5081_v1  ;;  %v501_v8 = vadd.f32 %v500_v45, %v5047_v42  ;;  %v556_v35 = vadd.f32 %v555_v28, %v5050_v30  ;;  %v719_v14 = vadd.f32 %v718_v21, %v717_v55  ;;  %v5089_v60 = vmul.f32 %v3846_v11, %v3846_v11  ;;  %v3848_v28 = vld [vmem:[%s4179_s14 + $0x28] sm:$0xff]  ;;  %v5107_v21 = vld [vmem:[%s4179_s14 + $0x6f0] sm:$0xff] }
  0x7e   : > { %9332 = vst [vmem:[#allocation158_spill] sm:$0xff] %v5075_v15  ;;  %9333 = vst [vmem:[#allocation159_spill] sm:$0xff] %v5078_v56  ;;  %v5095_v15 = vld [vmem:[%s4179_s14 + $0x6e8] sm:$0xff]  ;;  %v611_v51 = vadd.f32 %v610_v61, %v5055_v41  ;;  %v722_v56 = vsel %vm614_vm1, %v5058_v36, 0.0  ;;  %v5101_v45 = vmul.f32 %v3847_v40, %v3847_v40  ;;  %v5104_v30 = vmul.f32 %v3848_v28, %v3848_v28  ;;  %v3849_v61 = vld [vmem:[%s4179_s14 + $0x30] sm:$0xff] }
  0x7f   : > { %9336 = vst [vmem:[#allocation162_spill] sm:$0xff] %v5089_v60  ;;  %9337 = vst [vmem:[#allocation163_spill] sm:$0xff] %v5092_v20  ;;  %v502_v11 = vadd.f32 %v501_v8, %v5066_v3  ;;  %v557_v55 = vadd.f32 %v556_v35, %v5069_v50  ;;  %v721_v42 = vadd.f32 %v720_v6, %v719_v14  ;;  %v724_v40 = vsel %vm614_vm1, %v5084_v29, 0.0  ;;  %v3850_v28 = vld [vmem:[%s4179_s14 + $0x38] sm:$0xf] }
  0x80   : > { %9338 = vst [vmem:[#allocation164_spill] sm:$0xff] %v5095_v15  ;;  %9339 = vst [vmem:[#allocation165_spill] sm:$0xff] %v5104_v30  ;;  %v5112_v41 = vmul.f32 %v3849_v61, %v3849_v61  ;;  %v612_v36 = vadd.f32 %v611_v51, %v5081_v1  ;;  %v5118_v60 = vmul.f32 %v3850_v28, %v3850_v28  ;;  %v3851_v30 = vld [vmem:[%s4179_s14 + $0x40] sm:$0xff]  ;;  %v3852_v61 = vld [vmem:[%s4179_s14 + $0x48] sm:$0xff] }
  0x81   : > { %9340 = vst [vmem:[#allocation166_spill] sm:$0xff] %v5107_v21  ;;  %v5121_v8 = vmul.f32 %v3851_v30, %v3851_v30  ;;  %v503_v35 = vadd.f32 %v502_v11, %v5092_v20  ;;  %v558_v6 = vadd.f32 %v557_v55, %v5095_v15  ;;  %v723_v14 = vadd.f32 %v722_v56, %v721_v42  ;;  %v3853_v1 = vld [vmem:[%s4179_s14 + $0x50] sm:$0xff]  ;;  %v3854_v50 = vld [vmem:[%s4179_s14 + $0x58] sm:$0xf]  ;;  %v3855_v11 = vld [vmem:[%s4179_s14 + $0x60] sm:$0xff] }
  0x82   : > { %v5126_v51 = vmul.f32 %v3852_v61, %v3852_v61  ;;  %v613_v29 = vadd.f32 %v612_v36, %v5107_v21  ;;  %v5130_v28 = vmul.f32 %v3853_v1, %v3853_v1  ;;  %v5133_v30 = vmul.f32 %v3854_v50, %v3854_v50  ;;  %v3856_v56 = vld [vmem:[%s4179_s14 + $0x68] sm:$0xff]  ;;  %v3857_v15 = vld [vmem:[%s4179_s14 + $0x70] sm:$0xff]  ;;  %v3858_v1 = vld [vmem:[%s4179_s14 + $0x78] sm:$0xf] }
  0x83   : > { %v5136_v20 = vmul.f32 %v3855_v11, %v3855_v11  ;;  %v725_v55 = vadd.f32 %v724_v40, %v723_v14  ;;  %v1226_v42 = vadd.f32 %v558_v6, %v503_v35  ;;  %v5139_v61 = vmul.f32 %v3856_v56, %v3856_v56  ;;  %v3859_v50 = vld [vmem:[%s4179_s14 + $0x80] sm:$0xff]  ;;  %v3860_v11 = vld [vmem:[%s4179_s14 + $0x88] sm:$0xff]  ;;  %v3861_v40 = vld [vmem:[%s4179_s14 + $0x90] sm:$0xff] }
  0x84   : > { %v5142_v36 = vmul.f32 %v3857_v15, %v3857_v15  ;;  %v5145_v21 = vmul.f32 %v3858_v1, %v3858_v1  ;;  %v5148_v3 = vmul.f32 %v3859_v50, %v3859_v50  ;;  %v5154_v35 = vmul.f32 %v3861_v40, %v3861_v40  ;;  %v3862_v56 = vld [vmem:[%s4179_s14 + $0x98] sm:$0xf]  ;;  %v3863_v15 = vld [vmem:[%s4179_s14 + $0xa0] sm:$0xff]  ;;  %v3864_v1 = vld [vmem:[%s4179_s14 + $0xa8] sm:$0xff] }
  0x85   : > { %9341 = vst [vmem:[#allocation167_spill] sm:$0xff] %v5136_v20  ;;  %9342 = vst [vmem:[#allocation168_spill] sm:$0xff] %v5139_v61  ;;  %v5151_v20 = vmul.f32 %v3860_v11, %v3860_v11  ;;  %v1227_v6 = vadd.f32 %v1226_v42, %v613_v29  ;;  %v1228_v14 = vsel %vm614_vm1, %v725_v55, 0.0  ;;  %v5158_v61 = vmul.f32 %v3862_v56, %v3862_v56  ;;  %v3865_v11 = vld [vmem:[%s4179_s14 + $0xb8] sm:$0xf] }
  0x86   : > { %9343 = vst [vmem:[#allocation169_spill] sm:$0xff] %v5142_v36  ;;  %9344 = vst [vmem:[#allocation170_spill] sm:$0xff] %v5145_v21  ;;  %v5161_v36 = vmul.f32 %v3863_v15, %v3863_v15  ;;  %v5164_v21 = vmul.f32 %v3864_v1, %v3864_v1  ;;  %v5168_v50 = vmul.f32 %v4228_v58, %v4228_v58 }
  0x87   : > { %9345 = vst [vmem:[#allocation171_spill] sm:$0xff] %v5151_v20  ;;  %v5171_v20 = vmul.f32 %v3865_v11, %v3865_v11  ;;  %v5175_v29 = vmul.f32 %v4231_v62, %v4231_v62  ;;  %v1229_v55 = vadd.f32 %v1228_v14, %v1227_v6  ;;  %v5179_v42 = vmul.f32 %v4234_v63, %v4234_v63 }
  0x88   : > { %v5183_v40 = vmul.f32 %v4241_v4, %v4241_v4  ;;  %v5187_v58 = vmul.f32 %v4237_v0, %v4237_v0  ;;  %v5191_v56 = vmul.f32 %v4250_v12, %v4250_v12  ;;  %v5195_v62 = vmul.f32 %v4253_v13, %v4253_v13 }
  0x89   : > { %v5199_v63 = vmul.f32 %v4264_v17, %v4264_v17  ;;  %v5203_v4 = vmul.f32 %v4244_v5, %v4244_v5  ;;  %v1230_v6 = vrot.slane %v1229_v55, 4  ;;  %v5207_v0 = vmul.f32 %v4272_v22, %v4272_v22 }
  0x8a   : > { %v5211_v12 = vmul.f32 %v4275_v23, %v4275_v23  ;;  %v5215_v13 = vmul.f32 %v4281_v26, %v4281_v26  ;;  %v5219_v17 = vmul.f32 %v4267_v18, %v4267_v18  ;;  %v5223_v5 = vmul.f32 %v4292_v33, %v4292_v33 }
  0x8b   : > { %v5227_v22 = vmul.f32 %v4295_v34, %v4295_v34  ;;  %v5231_v23 = vmul.f32 %v4306_v38, %v4306_v38  ;;  %v1231_v14 = vadd.f32 %v1230_v6, %v1229_v55  ;;  %v5235_v26 = vmul.f32 %v4284_v27, %v4284_v27  ;;  %v9351_v55 = vld [vmem:[#allocation2_spill] sm:$0xff]  ;;  %v9353_v6 = vld [vmem:[#allocation4_spill] sm:$0xff] }
  0x8c   : > { %v5239_v18 = vmul.f32 %v4314_v43, %v4314_v43  ;;  %v5243_v33 = vmul.f32 %v4317_v44, %v4317_v44  ;;  %v5247_v34 = vmul.f32 %v4323_v47, %v4323_v47  ;;  %v5251_v38 = vmul.f32 %v4309_v39, %v4309_v39 }
  0x8d   : > { %v5255_v27 = vmul.f32 %v4331_v53, %v4331_v53  ;;  %v5259_v43 = vmul.f32 %v4334_v54, %v4334_v54  ;;  %v1232_v15 = vrot.slane %v1231_v14, 2  ;;  %v5263_v44 = vmul.f32 %v4342_v57, %v4342_v57 }
  0x8e   : > { %v5267_v47 = vmul.f32 %v4326_v48, %v4326_v48  ;;  %v5271_v39 = vmul.f32 %v4350_v2, %v4350_v2  ;;  %v5275_v53 = vmul.f32 %v4353_v7, %v4353_v7  ;;  %v5279_v54 = vmul.f32 %v4359_v9, %v4359_v9 }
  0x8f   : > { %v5283_v57 = vmul.f32 %v4345_v59, %v4345_v59  ;;  %v5287_v48 = vmul.f32 %v4367_v16, %v4367_v16  ;;  %v1233_v1 = vadd.f32 %v1232_v15, %v1231_v14  ;;  %v5291_v2 = vmul.f32 %v4370_v19, %v4370_v19  ;;  %v9355_v14 = vld [vmem:[#allocation5_spill] sm:$0xff]  ;;  %v9357_v15 = vld [vmem:[#allocation6_spill] sm:$0xff] }
  0x90   : > { %v5295_v7 = vmul.f32 %v4376_v24, %v4376_v24  ;;  %v5299_v9 = vmul.f32 %v4362_v10, %v4362_v10  ;;  %v5303_v59 = vmul.f32 %v4386_v31, %v4386_v31  ;;  %v5307_v16 = vmul.f32 %v4389_v32, %v4389_v32 }
  0x91   : > { %v5311_v19 = vmul.f32 %v4395_v37, %v4395_v37  ;;  %v5315_v24 = vmul.f32 %v4379_v25, %v4379_v25  ;;  %v1234_v11 = vrot.slane %v1233_v1, 1  ;;  %v5319_v10 = vmul.f32 %v4403_v46, %v4403_v46 }
  0x92   : > { %9346 = vst [vmem:[#allocation172_spill] sm:$0xff] %v5307_v16  ;;  %v5323_v31 = vmul.f32 %v4406_v49, %v4406_v49  ;;  %v5327_v32 = vmul.f32 %v4412_v52, %v4412_v52  ;;  %v5331_v37 = vmul.f32 %v9351_v55, %v9351_v55  ;;  %v5335_v25 = vmul.f32 %v9353_v6, %v9353_v6 }
  0x93   : > { %9347 = vst [vmem:[#allocation173_spill] sm:$0xff] %v5311_v19  ;;  %9348 = vst [vmem:[#allocation174_spill] sm:$0xff] %v5319_v10  ;;  %v5339_v46 = vmul.f32 %v9355_v14, %v9355_v14  ;;  %v5343_v49 = vmul.f32 %v9357_v15, %v9357_v15  ;;  %v9358_v10 = vld [vmem:[#allocation3_spill] sm:$0xff]  ;;  %v9363_v19 = vld [vmem:[#allocation165_spill] sm:$0xff] }
  0x94   : > { %9349 = vst [vmem:[#allocation175_spill] sm:$0xff] %v5323_v31  ;;  %9350 = vst [vmem:[#allocation176_spill] sm:$0xff] %v5327_v32  ;;  %v1235_v31 = vadd.f32 %v1234_v11, %v1233_v1  ;;  %v5347_v52 = vmul.f32 %v9358_v10, %v9358_v10  ;;  %v9359_v32 = vld [vmem:[#allocation8_spill] sm:$0xff]  ;;  %v9365_v15 = vld [vmem:[#allocation162_spill] sm:$0xff]  ;;  %v1116_v11 = vsel %vm614_vm1, %v5118_v60, 0.0 }
  0x95   : > { %9352 = vst [vmem:[#allocation2_spill] sm:$0xff] %v5331_v37  ;;  %9354 = vst [vmem:[#allocation4_spill] sm:$0xff] %v5335_v25  ;;  %v5351_v55 = vmul.f32 %v9359_v32, %v9359_v32  ;;  %v9361_v37 = vld [vmem:[#allocation155_spill] sm:$0xff]  ;;  %v9362_v25 = vld [vmem:[#allocation158_spill] sm:$0xff]  ;;  %v1115_v1 = vsel %vm614_vm1, %v9365_v15, 0.0  ;;  %v9371_v15 = vmov 0.0  }
  0x96   : > { %9356 = vst [vmem:[#allocation5_spill] sm:$0xff] %v5339_v46  ;;  %v950_v6 = vadd.f32 %v5101_v45, %v9361_v37  ;;  %v1005_v14 = vadd.f32 %v9363_v19, %v9362_v25  ;;  %v9364_v46 = vld [vmem:[#allocation159_spill] sm:$0xff]  ;;  %3732 = vmatmul.mubr.f32.vlgmr.msra.gmra.mrb[0].mxu0 %v1235_v31  ;;  %v9366_v10 = vld [vmem:[#allocation9_spill] sm:$0xff]  ;;  %v1117_v45 = vadd.f32 %v1116_v11, %v1115_v1  ;;  %v1118_v19 = vsel %vm614_vm1, %v5133_v30, 0.0  ;;  %v9368_v37 = vld [vmem:[#allocation10_spill] sm:$0xff] }
  0x97   : > { %9360 = vst [vmem:[#allocation6_spill] sm:$0xff] %v5351_v55  ;;  %v1060_v16 = vadd.f32 %v5112_v41, %v9364_v46  ;;  %v5365_v32 = vmul.f32 %v9366_v10, %v9366_v10  ;;  %v5372_v41 = vmul.f32 %v9368_v37, %v9368_v37  ;;  %v9370_v60 = vld [vmem:[#allocation170_spill] sm:$0xff]  ;;  %3771 = vmatprep.mubr.msk.f32.mxu0 %vm4100_vm0, %v9371_v15  ;;  %v9372_v10 = vld [vmem:[#allocation7_spill] sm:$0xff]  ;;  %v1122_v15 = vsel %vm614_vm1, %v5158_v61, 0.0 }
  0x98   : > { %v951_v55 = vadd.f32 %v950_v6, %v5121_v8  ;;  %v1006_v25 = vadd.f32 %v1005_v14, %v5126_v51  ;;  %v1120_v31 = vsel %vm614_vm1, %v9370_v60, 0.0  ;;  %v5382_v8 = vmul.f32 %v9372_v10, %v9372_v10  ;;  %v9373_v6 = vld [vmem:[#allocation12_spill] sm:$0xff]  ;;  %v9375_v1 = vld [vmem:[#allocation167_spill] sm:$0xff]  ;;  %v9376_v51 = vld [vmem:[#allocation13_spill] sm:$0xff] }
  0x99   : > { %9367 = vst [vmem:[#allocation3_spill] sm:$0xff] %v5365_v32  ;;  %9369 = vst [vmem:[#allocation8_spill] sm:$0xff] %v5372_v41  ;;  %v1061_v46 = vadd.f32 %v1060_v16, %v5130_v28  ;;  %v5386_v30 = vmul.f32 %v9373_v6, %v9373_v6  ;;  %v1119_v37 = vadd.f32 %v1118_v19, %v1117_v45  ;;  %v9377_v16 = vld [vmem:[#allocation168_spill] sm:$0xff]  ;;  %v9378_v60 = vld [vmem:[#allocation169_spill] sm:$0xff]  ;;  %v1124_v61 = vsel %vm614_vm1, %v5171_v20, 0.0 }
  0x9a   : > { %v952_v11 = vadd.f32 %v951_v55, %v9375_v1  ;;  %v5391_v28 = vmul.f32 %v9376_v51, %v9376_v51  ;;  %v1007_v14 = vadd.f32 %v1006_v25, %v9377_v16  ;;  %v9379_v10 = vld [vmem:[#allocation14_spill] sm:$0xff]  ;;  %v9380_v6 = vld [vmem:[#allocation11_spill] sm:$0xff]  ;;  %v9381_v19 = vld [vmem:[#allocation16_spill] sm:$0xff]  ;;  %v1126_v20 = vsel %vm614_vm1, %v5187_v58, 0.0 }
  0x9b   : > { %9374 = vst [vmem:[#allocation155_spill] sm:$0xff] %v5386_v30  ;;  %v1062_v41 = vadd.f32 %v1061_v46, %v9378_v60  ;;  %v5399_v32 = vmul.f32 %v9379_v10, %v9379_v10  ;;  %v5403_v30 = vmul.f32 %v9380_v6, %v9380_v6  ;;  %v1121_v45 = vadd.f32 %v1120_v31, %v1119_v37  ;;  %v9382_v25 = vld [vmem:[#allocation171_spill] sm:$0xff]  ;;  %v9383_v16 = vld [vmem:[#allocation17_spill] sm:$0xff]  ;;  %v9384_v10 = vld [vmem:[#allocation18_spill] sm:$0xff] }
  0x9c   : > { %v953_v55 = vadd.f32 %v952_v11, %v5148_v3  ;;  %v5408_v1 = vmul.f32 %v9381_v19, %v9381_v19  ;;  %v1008_v46 = vadd.f32 %v1007_v14, %v9382_v25  ;;  %v5416_v60 = vmul.f32 %v9383_v16, %v9383_v16  ;;  %v9385_v11 = vld [vmem:[#allocation15_spill] sm:$0xff]  ;;  %v9386_v14 = vld [vmem:[#allocation20_spill] sm:$0xff]  ;;  %v9387_v25 = vld [vmem:[#allocation21_spill] sm:$0xff] }
  0x9d   : > { %v1063_v51 = vadd.f32 %v1062_v41, %v5154_v35  ;;  %v5420_v6 = vmul.f32 %v9384_v10, %v9384_v10  ;;  %v1123_v31 = vadd.f32 %v1122_v15, %v1121_v45  ;;  %v5425_v37 = vmul.f32 %v9385_v11, %v9385_v11  ;;  %v9390_v10 = vld [vmem:[#allocation24_spill] sm:$0xff] }
  0x9e   : > { %v954_v3 = vadd.f32 %v953_v55, %v5161_v36  ;;  %v1009_v35 = vadd.f32 %v1008_v46, %v5164_v21  ;;  %v5433_v19 = vmul.f32 %v9386_v14, %v9386_v14  ;;  %v5437_v16 = vmul.f32 %v9387_v25, %v9387_v25  ;;  %v9388_v55 = vld [vmem:[#allocation22_spill] sm:$0xff]  ;;  %v9389_v46 = vld [vmem:[#allocation19_spill] sm:$0xff] }
  0x9f   : > { %v1064_v41 = vadd.f32 %v1063_v51, %v5168_v50  ;;  %v1125_v15 = vadd.f32 %v1124_v61, %v1123_v31  ;;  %v5442_v45 = vmul.f32 %v9388_v55, %v9388_v55  ;;  %v1128_v58 = vsel %vm614_vm1, %v5203_v4, 0.0  ;;  %v9393_v14 = vld [vmem:[#allocation23_spill] sm:$0xff]  ;;  %v9395_v55 = vld [vmem:[#allocation29_spill] sm:$0xff] }
  0xa0   : > { %v955_v36 = vadd.f32 %v954_v3, %v5175_v29  ;;  %v1010_v21 = vadd.f32 %v1009_v35, %v5179_v42  ;;  %v5450_v51 = vmul.f32 %v9389_v46, %v9389_v46  ;;  %v5454_v11 = vmul.f32 %v9390_v10, %v9390_v10  ;;  %v9391_v3 = vld [vmem:[#allocation25_spill] sm:$0xff]  ;;  %v9392_v35 = vld [vmem:[#allocation26_spill] sm:$0xff]  ;;  %v9397_v10 = vld [vmem:[#allocation27_spill] sm:$0xff] }
  0xa1   : > { %v1065_v50 = vadd.f32 %v1064_v41, %v5183_v40  ;;  %v1127_v61 = vadd.f32 %v1126_v20, %v1125_v15  ;;  %v5459_v31 = vmul.f32 %v9391_v3, %v9391_v3  ;;  %v1130_v4 = vsel %vm614_vm1, %v5219_v17, 0.0 }
  0xa2   : > { %v956_v29 = vadd.f32 %v955_v36, %v5191_v56  ;;  %v1011_v42 = vadd.f32 %v1010_v21, %v5195_v62  ;;  %v5467_v41 = vmul.f32 %v9392_v35, %v9392_v35  ;;  %v5471_v25 = vmul.f32 %v9393_v14, %v9393_v14  ;;  %v9394_v36 = vld [vmem:[#allocation28_spill] sm:$0xff]  ;;  %v9400_v35 = vld [vmem:[#allocation34_spill] sm:$0xff] }
  0xa3   : > { %v1066_v40 = vadd.f32 %v1065_v50, %v5199_v63  ;;  %v1129_v20 = vadd.f32 %v1128_v58, %v1127_v61  ;;  %v5476_v15 = vmul.f32 %v9394_v36, %v9394_v36  ;;  %v1132_v17 = vsel %vm614_vm1, %v5235_v26, 0.0  ;;  %v9396_v50 = vld [vmem:[#allocation30_spill] sm:$0xff]  ;;  %v9398_v61 = vld [vmem:[#allocation32_spill] sm:$0xff] }
  0xa4   : > { %v957_v56 = vadd.f32 %v956_v29, %v5207_v0  ;;  %v1012_v62 = vadd.f32 %v1011_v42, %v5211_v12  ;;  %v5484_v21 = vmul.f32 %v9395_v55, %v9395_v55  ;;  %v5488_v46 = vmul.f32 %v9396_v50, %v9396_v50  ;;  %v9399_v42 = vld [vmem:[#allocation33_spill] sm:$0xff]  ;;  %v9402_v36 = vld [vmem:[#allocation36_spill] sm:$0xff]  ;;  %v9404_v50 = vld [vmem:[#allocation38_spill] sm:$0xff] }
  0xa5   : > { %v1067_v63 = vadd.f32 %v1066_v40, %v5215_v13  ;;  %v1131_v58 = vadd.f32 %v1130_v4, %v1129_v20  ;;  %v5493_v29 = vmul.f32 %v9397_v10, %v9397_v10  ;;  %v1134_v26 = vsel %vm614_vm1, %v5251_v38, 0.0 }
  0xa6   : > { %v958_v0 = vadd.f32 %v957_v56, %v5223_v5  ;;  %v1013_v12 = vadd.f32 %v1012_v62, %v5227_v22  ;;  %v5501_v3 = vmul.f32 %v9398_v61, %v9398_v61  ;;  %v5505_v40 = vmul.f32 %v9399_v42, %v9399_v42  ;;  %v9401_v56 = vld [vmem:[#allocation31_spill] sm:$0xff]  ;;  %v9407_v61 = vld [vmem:[#allocation41_spill] sm:$0xff] }
  0xa7   : > { %v1068_v13 = vadd.f32 %v1067_v63, %v5231_v23  ;;  %v1133_v4 = vadd.f32 %v1132_v17, %v1131_v58  ;;  %v5510_v14 = vmul.f32 %v9400_v35, %v9400_v35  ;;  %v1136_v38 = vsel %vm614_vm1, %v5267_v47, 0.0  ;;  %v9403_v17 = vld [vmem:[#allocation37_spill] sm:$0xff]  ;;  %v9405_v58 = vld [vmem:[#allocation35_spill] sm:$0xff] }
  0xa8   : > { %v959_v5 = vadd.f32 %v958_v0, %v5239_v18  ;;  %v1014_v22 = vadd.f32 %v1013_v12, %v5243_v33  ;;  %v5518_v20 = vmul.f32 %v9401_v56, %v9401_v56  ;;  %v5522_v62 = vmul.f32 %v9402_v36, %v9402_v36  ;;  %v9411_v36 = vld [vmem:[#allocation45_spill] sm:$0xff] }
  0xa9   : > { %v1069_v23 = vadd.f32 %v1068_v13, %v5247_v34  ;;  %v1135_v63 = vadd.f32 %v1134_v26, %v1133_v4  ;;  %v5527_v55 = vmul.f32 %v9403_v17, %v9403_v17  ;;  %v1138_v47 = vsel %vm614_vm1, %v5283_v57, 0.0  ;;  %v9406_v13 = vld [vmem:[#allocation40_spill] sm:$0xff]  ;;  %v9412_v17 = vld [vmem:[#allocation46_spill] sm:$0xff] }
  0xaa   : > { %v960_v18 = vadd.f32 %v959_v5, %v5255_v27  ;;  %v1015_v33 = vadd.f32 %v1014_v22, %v5259_v43  ;;  %v5535_v0 = vmul.f32 %v9404_v50, %v9404_v50  ;;  %v5539_v10 = vmul.f32 %v9405_v58, %v9405_v58  ;;  %v9408_v5 = vld [vmem:[#allocation42_spill] sm:$0xff]  ;;  %v9409_v22 = vld [vmem:[#allocation39_spill] sm:$0xff] }
  0xab   : > { %v1070_v34 = vadd.f32 %v1069_v23, %v5263_v44  ;;  %v1137_v12 = vadd.f32 %v1136_v38, %v1135_v63  ;;  %v5544_v26 = vmul.f32 %v9406_v13, %v9406_v13  ;;  %v1140_v57 = vsel %vm614_vm1, %v5299_v9, 0.0  ;;  %v9410_v38 = vld [vmem:[#allocation44_spill] sm:$0xff]  ;;  %v9416_v58 = vld [vmem:[#allocation43_spill] sm:$0xff] }
  0xac   : > { %v961_v27 = vadd.f32 %v960_v18, %v5271_v39  ;;  %v1016_v43 = vadd.f32 %v1015_v33, %v5275_v53  ;;  %v5552_v42 = vmul.f32 %v9407_v61, %v9407_v61  ;;  %v5556_v4 = vmul.f32 %v9408_v5, %v9408_v5  ;;  %v9420_v5 = vld [vmem:[#allocation175_spill] sm:$0xff] }
  0xad   : > { %v1071_v44 = vadd.f32 %v1070_v34, %v5279_v54  ;;  %v1139_v35 = vadd.f32 %v1138_v47, %v1137_v12  ;;  %v5561_v23 = vmul.f32 %v9409_v22, %v9409_v22  ;;  %v1142_v9 = vsel %vm614_vm1, %v5315_v24, 0.0  ;;  %v9414_v34 = vld [vmem:[#allocation173_spill] sm:$0xff]  ;;  %v9415_v24 = vld [vmem:[#allocation2_spill] sm:$0xff]  ;;  %v9417_v12 = vld [vmem:[#allocation48_spill] sm:$0xff] }
  0xae   : > { %v962_v39 = vadd.f32 %v961_v27, %v5287_v48  ;;  %v1017_v53 = vadd.f32 %v1016_v43, %v5291_v2  ;;  %v5569_v56 = vmul.f32 %v9410_v38, %v9410_v38  ;;  %v5573_v18 = vmul.f32 %v9411_v36, %v9411_v36  ;;  %v9413_v2 = vld [vmem:[#allocation172_spill] sm:$0xff]  ;;  %v9423_v36 = vld [vmem:[#allocation47_spill] sm:$0xff] }
  0xaf   : > { %v1072_v54 = vadd.f32 %v1071_v44, %v5295_v7  ;;  %v1141_v63 = vadd.f32 %v1140_v57, %v1139_v35  ;;  %v5578_v33 = vmul.f32 %v9412_v17, %v9412_v17  ;;  %v1144_v50 = vsel %vm614_vm1, %v9415_v24, 0.0  ;;  %v9419_v57 = vld [vmem:[#allocation49_spill] sm:$0xff]  ;;  %v9421_v35 = vld [vmem:[#allocation176_spill] sm:$0xff] }
  0xb0   : > { %v963_v48 = vadd.f32 %v962_v39, %v5303_v59  ;;  %v1018_v7 = vadd.f32 %v1017_v53, %v9413_v2  ;;  %v5586_v27 = vmul.f32 %v9416_v58, %v9416_v58  ;;  %v5590_v13 = vmul.f32 %v9417_v12, %v9417_v12  ;;  %v9418_v59 = vld [vmem:[#allocation174_spill] sm:$0xff]  ;;  %v9425_v2 = vld [vmem:[#allocation52_spill] sm:$0xff]  ;;  %v9427_v58 = vld [vmem:[#allocation53_spill] sm:$0xff] }
  0xb1   : > { %v1073_v47 = vadd.f32 %v1072_v54, %v9414_v34  ;;  %v1143_v44 = vadd.f32 %v1142_v9, %v1141_v63  ;;  %v5595_v61 = vmul.f32 %v9419_v57, %v9419_v57  ;;  %v1146_v53 = vsel %vm614_vm1, %v5347_v52, 0.0  ;;  %v9422_v54 = vld [vmem:[#allocation50_spill] sm:$0xff]  ;;  %v9424_v9 = vld [vmem:[#allocation4_spill] sm:$0xff] }
  0xb2   : > { %v964_v43 = vadd.f32 %v963_v48, %v9418_v59  ;;  %v1019_v39 = vadd.f32 %v1018_v7, %v9420_v5  ;;  %v5603_v38 = vmul.f32 %v9422_v54, %v9422_v54  ;;  %v5607_v17 = vmul.f32 %v9423_v36, %v9423_v36  ;;  %v9426_v7 = vld [vmem:[#allocation5_spill] sm:$0xff]  ;;  %v9428_v59 = vld [vmem:[#allocation54_spill] sm:$0xff]  ;;  %v9430_v5 = vld [vmem:[#allocation51_spill] sm:$0xff] }
  0xb3   : > { %v1074_v22 = vadd.f32 %v1073_v47, %v9421_v35  ;;  %v1145_v63 = vadd.f32 %v1144_v50, %v1143_v44  ;;  %v5612_v34 = vmul.f32 %v9425_v2, %v9425_v2  ;;  %v1148_v52 = vsel %vm614_vm1, %v5382_v8, 0.0  ;;  %v9429_v50 = vld [vmem:[#allocation6_spill] sm:$0xff]  ;;  %v9433_v36 = vld [vmem:[#allocation56_spill] sm:$0xff]  ;;  %v9434_v2 = vld [vmem:[#allocation57_spill] sm:$0xff] }
  0xb4   : > { %v965_v48 = vadd.f32 %v964_v43, %v9424_v9  ;;  %v1020_v47 = vadd.f32 %v1019_v39, %v9426_v7  ;;  %v5620_v12 = vmul.f32 %v9427_v58, %v9427_v58  ;;  %v5624_v57 = vmul.f32 %v9428_v59, %v9428_v59  ;;  %v9431_v39 = vld [vmem:[#allocation3_spill] sm:$0xff]  ;;  %v9436_v58 = vld [vmem:[#allocation58_spill] sm:$0xff] }
  0xb5   : > { %v1075_v24 = vadd.f32 %v1074_v22, %v5343_v49  ;;  %v1147_v44 = vadd.f32 %v1146_v53, %v1145_v63  ;;  %v5629_v35 = vmul.f32 %v9430_v5, %v9430_v5  ;;  %v9432_v22 = vld [vmem:[#allocation8_spill] sm:$0xff]  ;;  %v1150_v8 = vsel %vm614_vm1, %v5403_v30, 0.0  ;;  %v9435_v53 = vld [vmem:[#allocation155_spill] sm:$0xff] }
  0xb6   : > { %v966_v43 = vadd.f32 %v965_v48, %v9429_v50  ;;  %v1021_v49 = vadd.f32 %v1020_v47, %v9431_v39  ;;  %v5637_v9 = vmul.f32 %v9433_v36, %v9433_v36  ;;  %v5641_v7 = vmul.f32 %v9434_v2, %v9434_v2  ;;  %v9437_v50 = vld [vmem:[#allocation55_spill] sm:$0xff]  ;;  %v9438_v39 = vld [vmem:[#allocation60_spill] sm:$0xff] }
  0xb7   : > { %v1076_v54 = vadd.f32 %v1075_v24, %v9432_v22  ;;  %v1149_v63 = vadd.f32 %v1148_v52, %v1147_v44  ;;  %v5646_v59 = vmul.f32 %v9436_v58, %v9436_v58  ;;  %v1152_v30 = vsel %vm614_vm1, %v5425_v37, 0.0  ;;  %v9439_v44 = vld [vmem:[#allocation61_spill] sm:$0xff]  ;;  %v9441_v2 = vld [vmem:[#allocation59_spill] sm:$0xff] }
  0xb8   : > { %v967_v48 = vadd.f32 %v966_v43, %v9435_v53  ;;  %v1022_v47 = vadd.f32 %v1021_v49, %v5391_v28  ;;  %v5654_v5 = vmul.f32 %v9437_v50, %v9437_v50  ;;  %v5658_v22 = vmul.f32 %v9438_v39, %v9438_v39  ;;  %v9440_v49 = vld [vmem:[#allocation62_spill] sm:$0xff]  ;;  %v9443_v58 = vld [vmem:[#allocation65_spill] sm:$0xff]  ;;  %v9445_v39 = vld [vmem:[#allocation63_spill] sm:$0xff] }
  0xb9   : > { %v1077_v24 = vadd.f32 %v1076_v54, %v5399_v32  ;;  %v1151_v43 = vadd.f32 %v1150_v8, %v1149_v63  ;;  %v5663_v36 = vmul.f32 %v9439_v44, %v9439_v44  ;;  %v1154_v37 = vsel %vm614_vm1, %v5450_v51, 0.0 }
  0xba   : > { %v968_v52 = vadd.f32 %v967_v48, %v5408_v1  ;;  %v1023_v32 = vadd.f32 %v1022_v47, %v5416_v60  ;;  %v5671_v54 = vmul.f32 %v9440_v49, %v9440_v49  ;;  %v5675_v53 = vmul.f32 %v9441_v2, %v9441_v2  ;;  %v9442_v48 = vld [vmem:[#allocation64_spill] sm:$0xff]  ;;  %v9448_v49 = vld [vmem:[#allocation70_spill] sm:$0xff] }
  0xbb   : > { %v1078_v28 = vadd.f32 %v1077_v24, %v5420_v6  ;;  %v1153_v8 = vadd.f32 %v1152_v30, %v1151_v43  ;;  %v5680_v63 = vmul.f32 %v9442_v48, %v9442_v48  ;;  %v1156_v51 = vsel %vm614_vm1, %v5471_v25, 0.0  ;;  %v9444_v24 = vld [vmem:[#allocation66_spill] sm:$0xff]  ;;  %v9446_v43 = vld [vmem:[#allocation68_spill] sm:$0xff] }
  0xbc   : > { %v969_v1 = vadd.f32 %v968_v52, %v5433_v19  ;;  %v1024_v60 = vadd.f32 %v1023_v32, %v5437_v16  ;;  %v5688_v47 = vmul.f32 %v9443_v58, %v9443_v58  ;;  %v5692_v50 = vmul.f32 %v9444_v24, %v9444_v24  ;;  %v9447_v32 = vld [vmem:[#allocation69_spill] sm:$0xff]  ;;  %v9450_v48 = vld [vmem:[#allocation72_spill] sm:$0xff]  ;;  %v9452_v24 = vld [vmem:[#allocation74_spill] sm:$0xff] }
  0xbd   : > { %v1079_v6 = vadd.f32 %v1078_v28, %v5442_v45  ;;  %v1155_v30 = vadd.f32 %v1154_v37, %v1153_v8  ;;  %v5697_v52 = vmul.f32 %v9445_v39, %v9445_v39  ;;  %v1158_v25 = vsel %vm614_vm1, %v5493_v29, 0.0 }
  0xbe   : > { %v970_v19 = vadd.f32 %v969_v1, %v5454_v11  ;;  %v1025_v16 = vadd.f32 %v1024_v60, %v5459_v31  ;;  %v5705_v44 = vmul.f32 %v9446_v43, %v9446_v43  ;;  %v5709_v28 = vmul.f32 %v9447_v32, %v9447_v32  ;;  %v9449_v1 = vld [vmem:[#allocation67_spill] sm:$0xff]  ;;  %v9455_v43 = vld [vmem:[#allocation77_spill] sm:$0xff] }
  0xbf   : > { %v1080_v45 = vadd.f32 %v1079_v6, %v5467_v41  ;;  %v1157_v37 = vadd.f32 %v1156_v51, %v1155_v30  ;;  %v5714_v2 = vmul.f32 %v9448_v49, %v9448_v49  ;;  %v1160_v29 = vsel %vm614_vm1, %v5518_v20, 0.0  ;;  %v9451_v51 = vld [vmem:[#allocation73_spill] sm:$0xff]  ;;  %v9453_v30 = vld [vmem:[#allocation71_spill] sm:$0xff] }
  0xc0   : > { %v971_v11 = vadd.f32 %v970_v19, %v5476_v15  ;;  %v1026_v31 = vadd.f32 %v1025_v16, %v5484_v21  ;;  %v5722_v8 = vmul.f32 %v9449_v1, %v9449_v1  ;;  %v5726_v60 = vmul.f32 %v9450_v48, %v9450_v48  ;;  %v9459_v48 = vld [vmem:[#allocation81_spill] sm:$0xff] }
  0xc1   : > { %v1081_v41 = vadd.f32 %v1080_v45, %v5488_v46  ;;  %v1159_v6 = vadd.f32 %v1158_v25, %v1157_v37  ;;  %v5731_v58 = vmul.f32 %v9451_v51, %v9451_v51  ;;  %v1162_v20 = vsel %vm614_vm1, %v5539_v10, 0.0  ;;  %v9454_v45 = vld [vmem:[#allocation76_spill] sm:$0xff]  ;;  %v9460_v51 = vld [vmem:[#allocation82_spill] sm:$0xff] }
  0xc2   : > { %v972_v15 = vadd.f32 %v971_v11, %v5501_v3  ;;  %v1027_v21 = vadd.f32 %v1026_v31, %v5505_v40  ;;  %v5739_v19 = vmul.f32 %v9452_v24, %v9452_v24  ;;  %v5743_v39 = vmul.f32 %v9453_v30, %v9453_v30  ;;  %v9456_v11 = vld [vmem:[#allocation78_spill] sm:$0xff]  ;;  %v9457_v31 = vld [vmem:[#allocation75_spill] sm:$0xff]  ;;  %v9462_v24 = vld [vmem:[#allocation84_spill] sm:$0xff] }
  0xc3   : > { %v1082_v46 = vadd.f32 %v1081_v41, %v5510_v14  ;;  %v1161_v16 = vadd.f32 %v1160_v29, %v1159_v6  ;;  %v5748_v25 = vmul.f32 %v9454_v45, %v9454_v45  ;;  %v1164_v10 = vsel %vm614_vm1, %v5561_v23, 0.0  ;;  %v9458_v29 = vld [vmem:[#allocation80_spill] sm:$0xff] }
  0xc4   : > { %v973_v3 = vadd.f32 %v972_v15, %v5522_v62  ;;  %v1028_v40 = vadd.f32 %v1027_v21, %v5527_v55  ;;  %v5756_v32 = vmul.f32 %v9455_v43, %v9455_v43  ;;  %v5760_v37 = vmul.f32 %v9456_v11, %v9456_v11 }
  0xc5   : > { %v1083_v14 = vadd.f32 %v1082_v46, %v5535_v0  ;;  %v1163_v49 = vadd.f32 %v1162_v20, %v1161_v16  ;;  %v5765_v41 = vmul.f32 %v9457_v31, %v9457_v31  ;;  %v1166_v23 = vsel %vm614_vm1, %v5586_v27, 0.0  ;;  %v9461_v46 = vld [vmem:[#allocation79_spill] sm:$0xff]  ;;  %v9463_v16 = vld [vmem:[#allocation85_spill] sm:$0xff] }
  0xc6   : > { %v974_v62 = vadd.f32 %v973_v3, %v5544_v26  ;;  %v1029_v55 = vadd.f32 %v1028_v40, %v5552_v42  ;;  %v5773_v1 = vmul.f32 %v9458_v29, %v9458_v29  ;;  %v5777_v15 = vmul.f32 %v9459_v48, %v9459_v48  ;;  %v9464_v40 = vld [vmem:[#allocation86_spill] sm:$0xff]  ;;  %v9467_v31 = vld [vmem:[#allocation89_spill] sm:$0xff]  ;;  %v9469_v48 = vld [vmem:[#allocation87_spill] sm:$0xff] }
  0xc7   : > { %v1084_v0 = vadd.f32 %v1083_v14, %v5556_v4  ;;  %v1165_v6 = vadd.f32 %v1164_v10, %v1163_v49  ;;  %v5782_v21 = vmul.f32 %v9460_v51, %v9460_v51  ;;  %v1168_v27 = vsel %vm614_vm1, %v5607_v17, 0.0  ;;  %v9465_v10 = vld [vmem:[#allocation83_spill] sm:$0xff] }
  0xc8   : > { %v975_v26 = vadd.f32 %v974_v62, %v5569_v56  ;;  %v1030_v42 = vadd.f32 %v1029_v55, %v5573_v18  ;;  %v5790_v20 = vmul.f32 %v9461_v46, %v9461_v46  ;;  %v5794_v30 = vmul.f32 %v9462_v24, %v9462_v24  ;;  %v9466_v62 = vld [vmem:[#allocation88_spill] sm:$0xff]  ;;  %v9472_v46 = vld [vmem:[#allocation94_spill] sm:$0xff] }
  0xc9   : > { %v1085_v4 = vadd.f32 %v1084_v0, %v5578_v33  ;;  %v1167_v3 = vadd.f32 %v1166_v23, %v1165_v6  ;;  %v5799_v45 = vmul.f32 %v9463_v16, %v9463_v16  ;;  %v1170_v17 = vsel %vm614_vm1, %v5629_v35, 0.0  ;;  %v9468_v0 = vld [vmem:[#allocation90_spill] sm:$0xff]  ;;  %v9470_v6 = vld [vmem:[#allocation92_spill] sm:$0xff] }
  0xca   : > { %v976_v56 = vadd.f32 %v975_v26, %v5590_v13  ;;  %v1031_v18 = vadd.f32 %v1030_v42, %v5595_v61  ;;  %v5807_v14 = vmul.f32 %v9464_v40, %v9464_v40  ;;  %v873_v43 = vmul.f32 %v9465_v10, %v9465_v10  ;;  %v9471_v42 = vld [vmem:[#allocation93_spill] sm:$0xff]  ;;  %v9474_v16 = vld [vmem:[#allocation96_spill] sm:$0xff]  ;;  %v9476_v10 = vld [vmem:[#allocation98_spill] sm:$0xff] }
  0xcb   : > { %v1086_v33 = vadd.f32 %v1085_v4, %v5603_v38  ;;  %v1169_v11 = vadd.f32 %v1168_v27, %v1167_v3  ;;  %v5814_v49 = vmul.f32 %v9466_v62, %v9466_v62  ;;  %v1172_v35 = vsel %vm614_vm1, %v5654_v5, 0.0 }
  0xcc   : > { %v977_v13 = vadd.f32 %v976_v56, %v5612_v34  ;;  %v1032_v61 = vadd.f32 %v1031_v18, %v5620_v12  ;;  %v5822_v55 = vmul.f32 %v9467_v31, %v9467_v31  ;;  %v5826_v23 = vmul.f32 %v9468_v0, %v9468_v0  ;;  %v9473_v56 = vld [vmem:[#allocation91_spill] sm:$0xff] }
  0xcd   : > { %v1087_v38 = vadd.f32 %v1086_v33, %v5624_v57  ;;  %v1171_v29 = vadd.f32 %v1170_v17, %v1169_v11  ;;  %v877_v26 = vmul.f32 %v9469_v48, %v9469_v48  ;;  %v1174_v5 = vsel %vm614_vm1, %v5675_v53, 0.0  ;;  %v9475_v17 = vld [vmem:[#allocation97_spill] sm:$0xff]  ;;  %v9477_v11 = vld [vmem:[#allocation95_spill] sm:$0xff] }
  0xce   : > { %v978_v34 = vadd.f32 %v977_v13, %v5637_v9  ;;  %v1033_v12 = vadd.f32 %v1032_v61, %v5641_v7  ;;  %v5837_v51 = vmul.f32 %v9470_v6, %v9470_v6  ;;  %v5841_v4 = vmul.f32 %v9471_v42, %v9471_v42  ;;  %v9483_v42 = vld [vmem:[#allocation105_spill] sm:$0xff] }
  0xcf   : > { %v1088_v57 = vadd.f32 %v1087_v38, %v5646_v59  ;;  %v1173_v27 = vadd.f32 %v1172_v35, %v1171_v29  ;;  %v5846_v24 = vmul.f32 %v9472_v46, %v9472_v46  ;;  %v1176_v53 = vsel %vm614_vm1, %v5697_v52, 0.0  ;;  %v9478_v38 = vld [vmem:[#allocation100_spill] sm:$0xff]  ;;  %v9484_v46 = vld [vmem:[#allocation106_spill] sm:$0xff] }
  0xd0   : > { %v979_v9 = vadd.f32 %v978_v34, %v5658_v22  ;;  %v1034_v7 = vadd.f32 %v1033_v12, %v5663_v36  ;;  %v881_v3 = vmul.f32 %v9473_v56, %v9473_v56  ;;  %v5856_v18 = vmul.f32 %v9474_v16, %v9474_v16  ;;  %v9480_v34 = vld [vmem:[#allocation102_spill] sm:$0xff]  ;;  %v9481_v12 = vld [vmem:[#allocation99_spill] sm:$0xff]  ;;  %v9486_v56 = vld [vmem:[#allocation108_spill] sm:$0xff] }
  0xd1   : > { %v1089_v59 = vadd.f32 %v1088_v57, %v5671_v54  ;;  %v1175_v33 = vadd.f32 %v1174_v5, %v1173_v27  ;;  %v5861_v40 = vmul.f32 %v9475_v17, %v9475_v17  ;;  %v1178_v52 = vsel %vm614_vm1, %v5722_v8, 0.0  ;;  %v9479_v8 = vld [vmem:[#allocation101_spill] sm:$0xff] }
  0xd2   : > { %v980_v22 = vadd.f32 %v979_v9, %v5680_v63  ;;  %v1035_v36 = vadd.f32 %v1034_v7, %v5688_v47  ;;  %v884_v13 = vmul.f32 %v9476_v10, %v9476_v10  ;;  %v885_v62 = vmul.f32 %v9477_v11, %v9477_v11 }
  0xd3   : > { %v1090_v54 = vadd.f32 %v1089_v59, %v5692_v50  ;;  %v1177_v61 = vadd.f32 %v1176_v53, %v1175_v33  ;;  %v886_v35 = vmul.f32 %v9478_v38, %v9478_v38  ;;  %v1180_v50 = vsel %vm614_vm1, %v5743_v39, 0.0  ;;  %v9482_v39 = vld [vmem:[#allocation104_spill] sm:$0xff]  ;;  %v9487_v33 = vld [vmem:[#allocation109_spill] sm:$0xff] }
  0xd4   : > { %v981_v63 = vadd.f32 %v980_v22, %v5705_v44  ;;  %v1036_v31 = vadd.f32 %v1035_v36, %v5709_v28  ;;  %v887_v0 = vmul.f32 %v9479_v8, %v9479_v8  ;;  %v888_v29 = vmul.f32 %v9480_v34, %v9480_v34 }
  0xd5   : > { %v1091_v47 = vadd.f32 %v1090_v54, %v5714_v2  ;;  %v1179_v44 = vadd.f32 %v1178_v52, %v1177_v61  ;;  %v889_v57 = vmul.f32 %v9481_v12, %v9481_v12  ;;  %v1182_v2 = vsel %vm614_vm1, %v5765_v41, 0.0  ;;  %v9485_v41 = vld [vmem:[#allocation103_spill] sm:$0xff]  ;;  %v9488_v54 = vld [vmem:[#allocation110_spill] sm:$0xff]  ;;  %v9494_v12 = vld [vmem:[#allocation116_spill] sm:$0xff] }
  0xd6   : > { %v982_v48 = vadd.f32 %v981_v63, %v5726_v60  ;;  %v1037_v5 = vadd.f32 %v1036_v31, %v5731_v58  ;;  %v890_v6 = vmul.f32 %v9482_v39, %v9482_v39  ;;  %v891_v9 = vmul.f32 %v9483_v42, %v9483_v42  ;;  %v9489_v52 = vld [vmem:[#allocation107_spill] sm:$0xff]  ;;  %v9491_v31 = vld [vmem:[#allocation113_spill] sm:$0xff] }
  0xd7   : > { %v1092_v28 = vadd.f32 %v1091_v47, %v5739_v19  ;;  %v1181_v60 = vadd.f32 %v1180_v50, %v1179_v44  ;;  %v892_v7 = vmul.f32 %v9484_v46, %v9484_v46  ;;  %v1184_v19 = vsel %vm614_vm1, %v5790_v20, 0.0  ;;  %v9492_v47 = vld [vmem:[#allocation114_spill] sm:$0xff]  ;;  %v9498_v46 = vld [vmem:[#allocation120_spill] sm:$0xff] }
  0xd8   : > { %v983_v27 = vadd.f32 %v982_v48, %v5748_v25  ;;  %v1038_v59 = vadd.f32 %v1037_v5, %v5756_v32  ;;  %v893_v53 = vmul.f32 %v9485_v41, %v9485_v41  ;;  %v894_v16 = vmul.f32 %v9486_v56, %v9486_v56  ;;  %v9495_v5 = vld [vmem:[#allocation117_spill] sm:$0xff] }
  0xd9   : > { %v1093_v58 = vadd.f32 %v1092_v28, %v5760_v37  ;;  %v1183_v25 = vadd.f32 %v1182_v2, %v1181_v60  ;;  %v895_v17 = vmul.f32 %v9487_v33, %v9487_v33  ;;  %v1186_v37 = vsel %vm614_vm1, %v873_v43, 0.0  ;;  %v9497_v60 = vld [vmem:[#allocation115_spill] sm:$0xff] }
  0xda   : > { %v984_v22 = vadd.f32 %v983_v27, %v5773_v1  ;;  %v1039_v36 = vadd.f32 %v1038_v59, %v5777_v15  ;;  %v896_v20 = vmul.f32 %v9488_v54, %v9488_v54  ;;  %v897_v10 = vmul.f32 %v9489_v52, %v9489_v52  ;;  %v9490_v1 = vld [vmem:[#allocation112_spill] sm:$0xff] }
  0xdb   : > { %v1094_v32 = vadd.f32 %v1093_v58, %v5782_v21  ;;  %v1185_v63 = vadd.f32 %v1184_v19, %v1183_v25  ;;  %v898_v61 = vmul.f32 %v9490_v1, %v9490_v1  ;;  %v1188_v21 = vsel %vm614_vm1, %v877_v26, 0.0  ;;  %v9501_v25 = vld [vmem:[#allocation119_spill] sm:$0xff] }
  0xdc   : > { %v985_v11 = vadd.f32 %v984_v22, %v5794_v30  ;;  %v1040_v38 = vadd.f32 %v1039_v36, %v5799_v45  ;;  %v899_v43 = vmul.f32 %v9491_v31, %v9491_v31  ;;  %v900_v50 = vmul.f32 %v9492_v47, %v9492_v47  ;;  %v9493_v30 = vld [vmem:[#allocation111_spill] sm:$0xff] }
  0xdd   : > { %v1095_v15 = vadd.f32 %v1094_v32, %v5807_v14  ;;  %v1187_v34 = vadd.f32 %v1186_v37, %v1185_v63  ;;  %v901_v48 = vmul.f32 %v9493_v30, %v9493_v30  ;;  %v1190_v14 = vsel %vm614_vm1, %v881_v3, 0.0  ;;  %v9502_v37 = vld [vmem:[#allocation124_spill] sm:$0xff]  ;;  %v9503_v63 = vld [vmem:[#allocation125_spill] sm:$0xff] }
  0xde   : > { %v986_v8 = vadd.f32 %v985_v11, %v5814_v49  ;;  %v1041_v44 = vadd.f32 %v1040_v38, %v5822_v55  ;;  %v902_v26 = vmul.f32 %v9494_v12, %v9494_v12  ;;  %v903_v28 = vmul.f32 %v9495_v5, %v9495_v5  ;;  %v9496_v49 = vld [vmem:[#allocation118_spill] sm:$0xff]  ;;  %v9509_v5 = vld [vmem:[#allocation127_spill] sm:$0xff] }
  0xdf   : > { %v1096_v45 = vadd.f32 %v1095_v15, %v5826_v23  ;;  %v1189_v39 = vadd.f32 %v1188_v21, %v1187_v34  ;;  %v904_v42 = vmul.f32 %v9496_v49, %v9496_v49  ;;  %v1192_v23 = vsel %vm614_vm1, %v885_v62, 0.0  ;;  %v9505_v15 = vld [vmem:[#allocation123_spill] sm:$0xff]  ;;  %v9511_v49 = vld [vmem:[#allocation133_spill] sm:$0xff] }
  0xe0   : > { %v987_v2 = vadd.f32 %v986_v8, %v5837_v51  ;;  %v1042_v27 = vadd.f32 %v1041_v44, %v5841_v4  ;;  %v905_v3 = vmul.f32 %v9497_v60, %v9497_v60  ;;  %v906_v59 = vmul.f32 %v9498_v46, %v9498_v46  ;;  %v9499_v51 = vld [vmem:[#allocation121_spill] sm:$0xff]  ;;  %v9506_v8 = vld [vmem:[#allocation128_spill] sm:$0xff]  ;;  %v9508_v44 = vld [vmem:[#allocation130_spill] sm:$0xff] }
  0xe1   : > { %v1097_v55 = vadd.f32 %v1096_v45, %v5846_v24  ;;  %v1191_v19 = vadd.f32 %v1190_v14, %v1189_v39  ;;  %v907_v41 = vmul.f32 %v9499_v51, %v9499_v51  ;;  %v1194_v4 = vsel %vm614_vm1, %v889_v57, 0.0  ;;  %v9500_v24 = vld [vmem:[#allocation122_spill] sm:$0xff] }
  0xe2   : > { %v988_v58 = vadd.f32 %v987_v2, %v5856_v18  ;;  %v1043_v56 = vadd.f32 %v1042_v27, %v5861_v40  ;;  %v908_v62 = vmul.f32 %v9500_v24, %v9500_v24  ;;  %v909_v33 = vmul.f32 %v9501_v25, %v9501_v25  ;;  %v9512_v60 = vld [vmem:[#allocation134_spill] sm:$0xff] }
  0xe3   : > { %v1098_v22 = vadd.f32 %v1097_v55, %v884_v13  ;;  %v1193_v32 = vadd.f32 %v1192_v23, %v1191_v19  ;;  %v910_v18 = vmul.f32 %v9502_v37, %v9502_v37  ;;  %v1196_v11 = vsel %vm614_vm1, %v893_v53, 0.0  ;;  %v9504_v13 = vld [vmem:[#allocation126_spill] sm:$0xff]  ;;  %v9514_v19 = vld [vmem:[#allocation136_spill] sm:$0xff] }
  0xe4   : > { %v989_v36 = vadd.f32 %v988_v58, %v886_v35  ;;  %v1044_v54 = vadd.f32 %v1043_v56, %v887_v0  ;;  %v911_v40 = vmul.f32 %v9503_v63, %v9503_v63  ;;  %v912_v57 = vmul.f32 %v9504_v13, %v9504_v13  ;;  %v9520_v13 = vld [vmem:[#allocation142_spill] sm:$0xff] }
  0xe5   : > { %v1099_v52 = vadd.f32 %v1098_v22, %v888_v29  ;;  %v1195_v38 = vadd.f32 %v1194_v4, %v1193_v32  ;;  %v913_v21 = vmul.f32 %v9505_v15, %v9505_v15  ;;  %v1198_v47 = vsel %vm614_vm1, %v897_v10, 0.0  ;;  %v9507_v29 = vld [vmem:[#allocation129_spill] sm:$0xff] }
  0xe6   : > { %v990_v1 = vadd.f32 %v989_v36, %v890_v6  ;;  %v1045_v35 = vadd.f32 %v1044_v54, %v891_v9  ;;  %v914_v0 = vmul.f32 %v9506_v8, %v9506_v8  ;;  %v915_v53 = vmul.f32 %v9507_v29, %v9507_v29  ;;  %v9515_v4 = vld [vmem:[#allocation137_spill] sm:$0xff]  ;;  %v9517_v36 = vld [vmem:[#allocation135_spill] sm:$0xff] }
  0xe7   : > { %v1100_v31 = vadd.f32 %v1099_v52, %v892_v7  ;;  %v1197_v30 = vadd.f32 %v1196_v11, %v1195_v38  ;;  %v916_v45 = vmul.f32 %v9508_v44, %v9508_v44  ;;  %v1200_v12 = vsel %vm614_vm1, %v901_v48, 0.0  ;;  %v9510_v7 = vld [vmem:[#allocation132_spill] sm:$0xff]  ;;  %v9523_v8 = vld [vmem:[#allocation145_spill] sm:$0xff]  ;;  %v9525_v44 = vld [vmem:[#allocation143_spill] sm:$0xff] }
  0xe8   : > { %v991_v34 = vadd.f32 %v990_v1, %v894_v16  ;;  %v1046_v6 = vadd.f32 %v1045_v35, %v895_v17  ;;  %v917_v9 = vmul.f32 %v9509_v5, %v9509_v5  ;;  %v918_v10 = vmul.f32 %v9510_v7, %v9510_v7  ;;  %v9518_v52 = vld [vmem:[#allocation140_spill] sm:$0xff]  ;;  %v9521_v35 = vld [vmem:[#allocation139_spill] sm:$0xff] }
  0xe9   : > { %v1101_v14 = vadd.f32 %v1100_v31, %v896_v20  ;;  %v1199_v39 = vadd.f32 %v1198_v47, %v1197_v30  ;;  %v919_v27 = vmul.f32 %v9511_v49, %v9511_v49  ;;  %v1202_v23 = vsel %vm614_vm1, %v905_v3, 0.0  ;;  %v9513_v20 = vld [vmem:[#allocation131_spill] sm:$0xff] }
  0xea   : > { %v992_v2 = vadd.f32 %v991_v34, %v898_v61  ;;  %v1047_v16 = vadd.f32 %v1046_v6, %v899_v43  ;;  %v920_v17 = vmul.f32 %v9512_v60, %v9512_v60  ;;  %v921_v48 = vmul.f32 %v9513_v20, %v9513_v20  ;;  %v9526_v5 = vld [vmem:[#allocation147_spill] sm:$0xff] }
  0xeb   : > { %v1102_v55 = vadd.f32 %v1101_v14, %v900_v50  ;;  %v1201_v58 = vadd.f32 %v1200_v12, %v1199_v39  ;;  %v922_v51 = vmul.f32 %v9514_v19, %v9514_v19  ;;  %v1204_v22 = vsel %vm614_vm1, %v909_v33, 0.0  ;;  %v9516_v50 = vld [vmem:[#allocation138_spill] sm:$0xff]  ;;  %v9527_v39 = vld [vmem:[#allocation148_spill] sm:$0xff] }
  0xec   : > { %v993_v46 = vadd.f32 %v992_v2, %v902_v26  ;;  %v1048_v61 = vadd.f32 %v1047_v16, %v903_v28  ;;  %v923_v43 = vmul.f32 %v9515_v4, %v9515_v4  ;;  %v924_v3 = vmul.f32 %v9516_v50, %v9516_v50 }
  0xed   : > { %v1103_v56 = vadd.f32 %v1102_v55, %v904_v42  ;;  %v1203_v25 = vadd.f32 %v1202_v23, %v1201_v58  ;;  %v925_v32 = vmul.f32 %v9517_v36, %v9517_v36  ;;  %v1206_v54 = vsel %vm614_vm1, %v913_v21, 0.0  ;;  %v9519_v42 = vld [vmem:[#allocation141_spill] sm:$0xff] }
  0xee   : > { %v994_v24 = vadd.f32 %v993_v46, %v906_v59  ;;  %v1049_v26 = vadd.f32 %v1048_v61, %v907_v41  ;;  %v926_v28 = vmul.f32 %v9518_v52, %v9518_v52  ;;  %v927_v33 = vmul.f32 %v9519_v42, %v9519_v42  ;;  %v3866_v23 = vld [vmem:[%s4179_s14 + $0x698] sm:$0xf]  ;;  %v9529_v46 = vld [vmem:[#allocation151_spill] sm:$0xff] }
  0xef   : > { %v1104_v37 = vadd.f32 %v1103_v56, %v908_v62  ;;  %v1205_v63 = vadd.f32 %v1204_v22, %v1203_v25  ;;  %v928_v1 = vmul.f32 %v9520_v13, %v9520_v13  ;;  %v1208_v15 = vsel %vm614_vm1, %v917_v9, 0.0  ;;  %v9522_v62 = vld [vmem:[#allocation144_spill] sm:$0xff]  ;;  %v9531_v56 = vld [vmem:[#allocation150_spill] sm:$0xff]  ;;  %v9535_v42 = vld [vmem:[#allocation157_spill] sm:$0xff] }
  0xf0   : > { %v995_v11 = vadd.f32 %v994_v24, %v910_v18  ;;  %v1050_v59 = vadd.f32 %v1049_v26, %v911_v40  ;;  %v929_v41 = vmul.f32 %v9521_v35, %v9521_v35  ;;  %v930_v21 = vmul.f32 %v9522_v62, %v9522_v62  ;;  %v9524_v40 = vld [vmem:[#allocation146_spill] sm:$0xff]  ;;  %v9532_v24 = vld [vmem:[#allocation153_spill] sm:$0xff]  ;;  %v9538_v62 = vld [vmem:[#allocation163_spill] sm:$0xff] }
  0xf1   : > { %v1105_v38 = vadd.f32 %v1104_v37, %v912_v57  ;;  %v1207_v47 = vadd.f32 %v1206_v54, %v1205_v63  ;;  %v931_v29 = vmul.f32 %v9523_v8, %v9523_v8  ;;  %v1210_v30 = vsel %vm614_vm1, %v921_v48, 0.0  ;;  %v9534_v26 = vld [vmem:[#allocation154_spill] sm:$0xff] }
  0xf2   : > { %v996_v31 = vadd.f32 %v995_v11, %v914_v0  ;;  %v1051_v18 = vadd.f32 %v1050_v59, %v915_v53  ;;  %v932_v57 = vmul.f32 %v9524_v40, %v9524_v40  ;;  %v933_v6 = vmul.f32 %v9525_v44, %v9525_v44  ;;  %v9536_v11 = vld [vmem:[#allocation160_spill] sm:$0xff]  ;;  %v9537_v59 = vld [vmem:[#allocation161_spill] sm:$0xff] }
  0xf3   : > { %v1106_v34 = vadd.f32 %v1105_v38, %v916_v45  ;;  %v1209_v12 = vadd.f32 %v1208_v15, %v1207_v47  ;;  %v934_v0 = vmul.f32 %v9526_v5, %v9526_v5  ;;  %v1212_v2 = vsel %vm614_vm1, %v925_v32, 0.0  ;;  %v9528_v45 = vld [vmem:[#allocation149_spill] sm:$0xff] }
  0xf4   : > { %v997_v14 = vadd.f32 %v996_v31, %v918_v10  ;;  %v1052_v9 = vadd.f32 %v1051_v18, %v919_v27  ;;  %v935_v53 = vmul.f32 %v9527_v39, %v9527_v39  ;;  %v936_v49 = vmul.f32 %v9528_v45, %v9528_v45  ;;  %v9539_v31 = vld [vmem:[#allocation164_spill] sm:$0xff]  ;;  %v9540_v18 = vld [vmem:[#allocation166_spill] sm:$0xff] }
  0xf5   : > { %v1107_v7 = vadd.f32 %v1106_v34, %v920_v17  ;;  %v1211_v55 = vadd.f32 %v1210_v30, %v1209_v12  ;;  %v937_v60 = vmul.f32 %v3866_v23, %v3866_v23  ;;  %v1214_v48 = vsel %vm614_vm1, %v929_v41, 0.0  ;;  %v9530_v17 = vld [vmem:[#allocation152_spill] sm:$0xff] }
  0xf6   : > { %v998_v16 = vadd.f32 %v997_v14, %v922_v51  ;;  %v1053_v20 = vadd.f32 %v1052_v9, %v923_v43  ;;  %v938_v27 = vmul.f32 %v9529_v46, %v9529_v46  ;;  %v939_v58 = vmul.f32 %v9530_v17, %v9530_v17 }
  0xf7   : > { %v1108_v10 = vadd.f32 %v1107_v7, %v924_v3  ;;  %v1213_v61 = vadd.f32 %v1212_v2, %v1211_v55  ;;  %v941_v22 = vmul.f32 %v9531_v56, %v9531_v56  ;;  %v1216_v50 = vsel %vm614_vm1, %v933_v6, 0.0  ;;  %v9533_v3 = vld [vmem:[#allocation156_spill] sm:$0xff] }
  0xf8   : > { %v999_v19 = vadd.f32 %v998_v16, %v926_v28  ;;  %v1054_v4 = vadd.f32 %v1053_v20, %v927_v33  ;;  %v940_v43 = vmul.f32 %v9532_v24, %v9532_v24  ;;  %v942_v25 = vmul.f32 %v9533_v3, %v9533_v3 }
  0xf9   : > { %v1109_v51 = vadd.f32 %v1108_v10, %v928_v1  ;;  %v1215_v32 = vadd.f32 %v1214_v48, %v1213_v61  ;;  %v945_v37 = vmul.f32 %v9534_v26, %v9534_v26  ;;  %v1218_v28 = vsel %vm614_vm1, %v937_v60, 0.0 }
  0xfa   : > { %v1000_v36 = vadd.f32 %v999_v19, %v930_v21  ;;  %v1055_v54 = vadd.f32 %v1054_v4, %v931_v29  ;;  %v943_v33 = vmul.f32 %v9535_v42, %v9535_v42  ;;  %v944_v63 = vmul.f32 %v9536_v11, %v9536_v11 }
  0xfb   : > { %v1110_v52 = vadd.f32 %v1109_v51, %v932_v57  ;;  %v1217_v1 = vadd.f32 %v1216_v50, %v1215_v32  ;;  %v949_v38 = vmul.f32 %v9537_v59, %v9537_v59  ;;  %v1220_v41 = vsel %vm614_vm1, %v941_v22, 0.0  ;;  %v1560_v32 = vld [vmem:[%s8765_s3] sm:$0x1] }
  0xfc   : > { %v1001_v13 = vadd.f32 %v1000_v36, %v934_v0  ;;  %v1056_v15 = vadd.f32 %v1055_v54, %v935_v53  ;;  %v946_v21 = vmul.f32 %v9538_v62, %v9538_v62  ;;  %v947_v47 = vmul.f32 %v9539_v31, %v9539_v31  ;;  %v3868_v59 = vld [vmem:[%s4179_s14] sm:$0xff] }
  0xfd   : > { %v1111_v35 = vadd.f32 %v1110_v52, %v936_v49  ;;  %v1219_v29 = vadd.f32 %v1218_v28, %v1217_v1  ;;  %v948_v34 = vmul.f32 %v9540_v18, %v9540_v18  ;;  %v1222_v57 = vsel %vm614_vm1, %v945_v37, 0.0  ;;  %v1562_v28 = vld [vmem:[%s8766_s4] sm:$0x1] }
  0xfe   : > { %v1002_v8 = vadd.f32 %v1001_v13, %v938_v27  ;;  %v1057_v30 = vadd.f32 %v1056_v15, %v939_v58  ;;  %v1224_v5 = vsel %vm614_vm1, %v949_v38, 0.0  ;;  %v9541_v46 = vmov 0.0   ;;  %v1409_v27 = vld [vmem:[%s8764_s2] sm:$0xf]  ;;  %v3867_v13 = vld [vmem:[%s4179_s14 + $0x10] sm:$0xff] }
  0xff   : > { %v1112_v40 = vadd.f32 %v1111_v35, %v940_v43  ;;  %v1221_v6 = vadd.f32 %v1220_v41, %v1219_v29  ;;  %3770 = vmatpush3.msk.msra.mxu0 %vm614_vm1, %v1409_v27  ;;  %v3869_v41 = vld [vmem:[%s4179_s14 + $0x18] sm:$0xf] }
 0x100   : > { %v1003_v44 = vadd.f32 %v1002_v8, %v942_v25  ;;  %v1058_v14 = vadd.f32 %v1057_v30, %v943_v33  ;;  %v1565_v25 = vlaneseq }
 0x101   : > { %v1113_v12 = vadd.f32 %v1112_v40, %v944_v63  ;;  %v1223_v9 = vadd.f32 %v1222_v57, %v1221_v6  ;;  %v3872_v40 = vld [vmem:[%s4179_s14 + $0x20] sm:$0xff] }
 0x102   : > { %v1004_v0 = vadd.f32 %v1003_v44, %v946_v21  ;;  %v1059_v7 = vadd.f32 %v1058_v14, %v947_v47  ;;  %v1566_v36 = vshrl.u32 %v1565_v25, 7  ;;  %v3870_v21 = vld [vmem:[%s4179_s14 + $0x8] sm:$0xff] }
 0x103   : > { %v1114_v2 = vadd.f32 %v1113_v12, %v948_v34  ;;  %v1225_v39 = vadd.f32 %v1224_v5, %v1223_v9  ;;  %v3871_v34 = vld [vmem:[%s4179_s14 + $0x28] sm:$0xff]  ;;  %v3873_v5 = vld [vmem:[%s4179_s14 + $0x38] sm:$0xf]  ;;  %v3874_v9 = vld [vmem:[%s4179_s14 + $0x30] sm:$0xff] }
 0x104   : > { %v1236_v53 = vadd.f32 %v1059_v7, %v1004_v0  ;;  %v1567_v26 = vsub.s32 0, %v1566_v36 }
 0x105   : > { %v1238_v45 = vsel %vm614_vm1, %v1225_v39, 0.0 }
 0x106   : > { %v1237_v49 = vadd.f32 %v1236_v53, %v1114_v2 }
 0x108   : > { %v1239_v16 = vadd.f32 %v1238_v45, %v1237_v49  ;;  %v3875_v49 = vld [vmem:[%s4179_s14 + $0x48] sm:$0xff] }
 0x10a   : > { %v1240_v55 = vrot.slane %v1239_v16, 4 }
 0x10c   : > { %v1241_v23 = vadd.f32 %v1240_v55, %v1239_v16  ;;  %v3876_v55 = vld [vmem:[%s4179_s14 + $0x40] sm:$0xff] }
 0x10e   : > { %v1242_v60 = vrot.slane %v1241_v23, 2 }
 0x110   : > { %v1243_v20 = vadd.f32 %v1242_v60, %v1241_v23 }
 0x112   : > { %v1244_v10 = vrot.slane %v1243_v20, 1 }
 0x114   : > { %v1245_v48 = vadd.f32 %v1244_v10, %v1243_v20 }
 0x116   : > { %3767 = vmatmul.mubr.f32.vlgmr.msra.gmra.mrb[0].mxu1 %v1245_v48 }
 0x117   : > { %3776 = vmatprep.mubr.msk.f32.mxu1 %vm4100_vm0, %v9541_v46  ;;  %3775 = vmatpush3.msk.msra.mxu1 %vm614_vm1, %v1409_v27  ;;  %v3877_v46 = vld [vmem:[%s4179_s14 + $0x58] sm:$0xf] }
 0x169   : > { %v1328_v17 = vpop.f32.mrb[0].mxu0 }
 0x16a   : > { %v1403_v58 = vmul.f32 1.9929847e-05, %v1328_v17  ;;  %v3733_v19 = vpop.f32.mrb[1].mxu0  ;;  %v3878_v17 = vld [vmem:[%s4179_s14 + $0x50] sm:$0xff] }
 0x16c   : > { %3772 = vmatmul.mubr.msk.f32.vlgmr.msra.gmra.mrb[2].mxu0 %vm1410_vm2, %v1403_v58  ;;  %v1405_v61 = vmul.f32 %v1403_v58, %v1403_v58 }
 0x1e9   : > { %v1398_v56 = vpop.f32.mrb[0].mxu1 }
 0x1ea   : > { %v1404_v22 = vmul.f32 1.9929847e-05, %v1398_v56  ;;  %v3768_v4 = vpop.f32.mrb[1].mxu1 }
 0x1eb   : > { %v3879_v4 = vld [vmem:[%s4179_s14 + $0x68] sm:$0xff] }
 0x1ec   : > { %v1406_v51 = vsub.f32 %v1404_v22, %v1405_v61 }
 0x1ee   : > { %v1407_v50 = vadd.f32 1e-05, %v1406_v51 }
 0x1f0   : > { %3841 = vrsqrt.f32 %v1407_v50  ;;  %v3880_v50 = vld [vmem:[%s4179_s14 + $0x60] sm:$0xff] }
 0x1fa   : > { %v3842_v24 = vpop.eup %3841 }
 0x1fb   : > { %3777 = vmatmul.mubr.msk.f32.vlgmr.msra.gmra.mrb[2].mxu1 %vm1410_vm2, %v3842_v24 }
 0x23f   : > { %v1483_v43 = vpop.f32.mrb[2].mxu0 }
 0x240   : > { %v3773_v3 = vpop.f32.mrb[3].mxu0 }
 0x2ce   : > { %v1556_v37 = vpop.f32.mrb[2].mxu1 }
 0x2cf   : > { %v1561_v54 = vmul.f32 %v1560_v32, %v1556_v37  ;;  %v3778_v52 = vpop.f32.mrb[3].mxu1  ;;  %v3881_v32 = vld [vmem:[%s4179_s14 + $0x78] sm:$0xf]  ;;  %v3882_v37 = vld [vmem:[%s4179_s14 + $0x70] sm:$0xff] }
 0x2d1   : > { %v1563_v42 = vmul.f32 %v1561_v54, %v1483_v43  ;;  %v6061_v33 = vrot.slane %v1561_v54, %v1567_v26 }
 0x2d3   : > { %v1564_v11 = vsub.f32 %v1562_v28, %v1563_v42  ;;  %v1571_v1 = vmul.f32 %v3867_v13, %v6061_v33  ;;  %v1569_v38 = vmul.f32 %v3868_v59, %v6061_v33  ;;  %v1572_v62 = vmul.f32 %v3869_v41, %v6061_v33  ;;  %v3883_v13 = vld [vmem:[%s4179_s14 + $0x88] sm:$0xff]  ;;  %v3884_v59 = vld [vmem:[%s4179_s14 + $0x80] sm:$0xff] }
 0x2d4   : > { %v1570_v31 = vmul.f32 %v3870_v21, %v6061_v33  ;;  %v1574_v30 = vmul.f32 %v3871_v34, %v6061_v33  ;;  %v1573_v57 = vmul.f32 %v3872_v40, %v6061_v33  ;;  %v1576_v0 = vmul.f32 %v3873_v5, %v6061_v33  ;;  %v3885_v34 = vld [vmem:[%s4179_s14 + $0x98] sm:$0xf]  ;;  %v3886_v40 = vld [vmem:[%s4179_s14 + $0x90] sm:$0xff] }
 0x2d5   : > { %v6063_v63 = vrot.slane %v1564_v11, %v1567_v26  ;;  %v1575_v7 = vmul.f32 %v3874_v9, %v6061_v33  ;;  %v1578_v16 = vmul.f32 %v3875_v49, %v6061_v33  ;;  %v1577_v23 = vmul.f32 %v3876_v55, %v6061_v33  ;;  %v3887_v49 = vld [vmem:[%s4179_s14 + $0xa8] sm:$0xff]  ;;  %v3888_v55 = vld [vmem:[%s4179_s14 + $0xa0] sm:$0xff] }
 0x2d6   : > { %v1580_v27 = vmul.f32 %v3877_v46, %v6061_v33  ;;  %v1579_v58 = vmul.f32 %v3878_v17, %v6061_v33  ;;  %v1582_v51 = vmul.f32 %v3879_v4, %v6061_v33  ;;  %v1581_v24 = vmul.f32 %v3880_v50, %v6061_v33  ;;  %v3889_v4 = vld [vmem:[%s4179_s14 + $0xb8] sm:$0xf]  ;;  %v3890_v50 = vld [vmem:[%s4179_s14 + $0xb0] sm:$0xff] }
 0x2d7   : > { %v6070_v15 = vadd.f32 %v6063_v63, %v1571_v1  ;;  %v6073_v35 = vadd.f32 %v6063_v63, %v1569_v38  ;;  %v6082_v29 = vadd.f32 %v6063_v63, %v1572_v62  ;;  %v6085_v18 = vadd.f32 %v6063_v63, %v1570_v31 }
 0x2d8   : > { %v6100_v14 = vadd.f32 %v6063_v63, %v1574_v30  ;;  %v6103_v12 = vadd.f32 %v6063_v63, %v1573_v57  ;;  %v6118_v53 = vadd.f32 %v6063_v63, %v1576_v0  ;;  %v6121_v45 = vadd.f32 %v6063_v63, %v1575_v7 }
 0x2d9   : > { %v8971_v47 = vmax.f32 %v6070_v15, 0.0  ;;  %v8979_v8 = vmax.f32 %v6073_v35, 0.0  ;;  %v8968_v44 = vmax.f32 %v6082_v29, 0.0  ;;  %v8976_v6 = vmax.f32 %v6085_v18, 0.0 }
 0x2da   : > { %v8975_v2 = vmax.f32 %v6100_v14, 0.0  ;;  %v8972_v39 = vmax.f32 %v6103_v12, 0.0  ;;  %v8967_v60 = vmax.f32 %v6118_v53, 0.0  ;;  %v8964_v20 = vmax.f32 %v6121_v45, 0.0 }
 0x2db   : > { %2475 = vrot.lane.b32.xlu1 %v8971_v47, %s4102_s15  ;;  %2471 = vrot.lane.b32.xlu0 %v8979_v8, %s4102_s15  ;;  %v6136_v10 = vadd.f32 %v6063_v63, %v1578_v16  ;;  %v6139_v48 = vadd.f32 %v6063_v63, %v1577_v23  ;;  %v6154_v56 = vadd.f32 %v6063_v63, %v1580_v27 }
 0x2dc   : > { %v6157_v22 = vadd.f32 %v6063_v63, %v1579_v58  ;;  %v6172_v25 = vadd.f32 %v6063_v63, %v1582_v51  ;;  %v6175_v36 = vadd.f32 %v6063_v63, %v1581_v24  ;;  %v1584_v26 = vmul.f32 %v3881_v32, %v6061_v33 }
 0x2dd   : > { %v8963_v19 = vmax.f32 %v6136_v10, 0.0  ;;  %v8960_v61 = vmax.f32 %v6139_v48, 0.0  ;;  %v8955_v43 = vmax.f32 %v6154_v56, 0.0  ;;  %v1583_v54 = vmul.f32 %v3882_v37, %v6061_v33 }
 0x2de   : > { %v8952_v3 = vmax.f32 %v6157_v22, 0.0  ;;  %v8959_v52 = vmax.f32 %v6172_v25, 0.0  ;;  %v8956_v28 = vmax.f32 %v6175_v36, 0.0  ;;  %v6190_v42 = vadd.f32 %v6063_v63, %v1584_v26 }
 0x2df   : > { %2477 = vrot.lane.b32.xlu1 %v8968_v44, %s4102_s15  ;;  %2473 = vrot.lane.b32.xlu0 %v8976_v6, %s4102_s15  ;;  %v6193_v11 = vadd.f32 %v6063_v63, %v1583_v54  ;;  %v1586_v1 = vmul.f32 %v3883_v13, %v6061_v33  ;;  %v1585_v38 = vmul.f32 %v3884_v59, %v6061_v33  ;;  %v3891_v13 = vld [vmem:[%s4179_s14 + $0xc8] sm:$0xff]  ;;  %v3892_v59 = vld [vmem:[%s4179_s14 + $0xc0] sm:$0xff] }
 0x2e0   : > { %v8951_v41 = vmax.f32 %v6190_v42, 0.0  ;;  %v1588_v30 = vmul.f32 %v3885_v34, %v6061_v33  ;;  %v1587_v57 = vmul.f32 %v3886_v40, %v6061_v33  ;;  %v1590_v16 = vmul.f32 %v3887_v49, %v6061_v33  ;;  %v3893_v49 = vld [vmem:[%s4179_s14 + $0xd8] sm:$0xf] }
 0x2e1   : > { %v8948_v62 = vmax.f32 %v6193_v11, 0.0  ;;  %v6208_v21 = vadd.f32 %v6063_v63, %v1586_v1  ;;  %v6211_v31 = vadd.f32 %v6063_v63, %v1585_v38  ;;  %v1589_v23 = vmul.f32 %v3888_v55, %v6061_v33  ;;  %v3894_v55 = vld [vmem:[%s4179_s14 + $0xd0] sm:$0xff] }
 0x2e2   : > { %v6226_v9 = vadd.f32 %v6063_v63, %v1588_v30  ;;  %v6229_v7 = vadd.f32 %v6063_v63, %v1587_v57  ;;  %v6244_v17 = vadd.f32 %v6063_v63, %v1590_v16  ;;  %v1592_v51 = vmul.f32 %v3889_v4, %v6061_v33 }
 0x2e3   : > { %2481 = vrot.lane.b32.xlu1 %v8975_v2, %s4102_s15  ;;  %2479 = vrot.lane.b32.xlu0 %v8972_v39, %s4102_s15  ;;  %v8947_v5 = vmax.f32 %v6208_v21, 0.0  ;;  %v8944_v0 = vmax.f32 %v6211_v31, 0.0  ;;  %v6247_v58 = vadd.f32 %v6063_v63, %v1589_v23  ;;  %v1591_v24 = vmul.f32 %v3890_v50, %v6061_v33 }
 0x2e4   : > { %v8939_v46 = vmax.f32 %v6226_v9, 0.0  ;;  %v8936_v27 = vmax.f32 %v6229_v7, 0.0  ;;  %v8943_v32 = vmax.f32 %v6244_v17, 0.0  ;;  %v6262_v37 = vadd.f32 %v6063_v63, %v1592_v51 }
 0x2e5   : > { %v8940_v26 = vmax.f32 %v6247_v58, 0.0  ;;  %v6265_v54 = vadd.f32 %v6063_v63, %v1591_v24  ;;  %v1594_v1 = vmul.f32 %v3891_v13, %v6061_v33  ;;  %v1593_v38 = vmul.f32 %v3892_v59, %v6061_v33  ;;  %v3895_v13 = vld [vmem:[%s4179_s14 + $0xe8] sm:$0xff]  ;;  %v3896_v59 = vld [vmem:[%s4179_s14 + $0xe0] sm:$0xff] }
 0x2e6   : > { %v8935_v34 = vmax.f32 %v6262_v37, 0.0  ;;  %v1596_v16 = vmul.f32 %v3893_v49, %v6061_v33  ;;  %v1595_v23 = vmul.f32 %v3894_v55, %v6061_v33 }
 0x2e7   : > { %2485 = vrot.lane.b32.xlu1 %v8967_v60, %s4102_s15  ;;  %2483 = vrot.lane.b32.xlu0 %v8964_v20, %s4102_s15  ;;  %v8932_v30 = vmax.f32 %v6265_v54, 0.0  ;;  %v6280_v40 = vadd.f32 %v6063_v63, %v1594_v1  ;;  %v6283_v57 = vadd.f32 %v6063_v63, %v1593_v38  ;;  %v1598_v1 = vmul.f32 %v3895_v13, %v6061_v33  ;;  %v3897_v13 = vld [vmem:[%s4179_s14 + $0xf8] sm:$0xf] }
 0x2e8   : > { %v6298_v50 = vadd.f32 %v6063_v63, %v1596_v16  ;;  %v6301_v24 = vadd.f32 %v6063_v63, %v1595_v23  ;;  %v1597_v38 = vmul.f32 %v3896_v59, %v6061_v33  ;;  %v1600_v59 = vmul.f32 %v3897_v13, %v6061_v33 }
 0x2e9   : > { %v8931_v4 = vmax.f32 %v6280_v40, 0.0  ;;  %v8930_v51 = vmax.f32 %v6283_v57, 0.0  ;;  %v6316_v55 = vadd.f32 %v6063_v63, %v1598_v1 }
 0x2ea   : > { %v8933_v49 = vmax.f32 %v6298_v50, 0.0  ;;  %v8934_v16 = vmax.f32 %v6301_v24, 0.0  ;;  %v6319_v23 = vadd.f32 %v6063_v63, %v1597_v38 }
 0x2eb   : > { %2489 = vrot.lane.b32.xlu1 %v8963_v19, %s4102_s15  ;;  %2487 = vrot.lane.b32.xlu0 %v8960_v61, %s4102_s15  ;;  %v8937_v1 = vmax.f32 %v6316_v55, 0.0 }
 0x2ec   : > { %v8938_v38 = vmax.f32 %v6319_v23, 0.0 }
 0x2ef   : > { %2493 = vrot.lane.b32.xlu1 %v8955_v43, %s4102_s15  ;;  %2491 = vrot.lane.b32.xlu0 %v8952_v3, %s4102_s15 }
 0x2f3   : > { %2497 = vrot.lane.b32.xlu1 %v8959_v52, %s4102_s15  ;;  %2495 = vrot.lane.b32.xlu0 %v8956_v28, %s4102_s15 }
 0x2f7   : > { %2501 = vrot.lane.b32.xlu1 %v8951_v41, %s4102_s15  ;;  %2499 = vrot.lane.b32.xlu0 %v8948_v62, %s4102_s15 }
 0x2fb   : > { %2505 = vrot.lane.b32.xlu1 %v8947_v5, %s4102_s15  ;;  %2503 = vrot.lane.b32.xlu0 %v8944_v0, %s4102_s15 }
 0x2ff   : > { %2509 = vrot.lane.b32.xlu1 %v8939_v46, %s4102_s15  ;;  %2507 = vrot.lane.b32.xlu0 %v8936_v27, %s4102_s15 }
 0x303   : > { %2513 = vrot.lane.b32.xlu1 %v8943_v32, %s4102_s15  ;;  %2511 = vrot.lane.b32.xlu0 %v8940_v26, %s4102_s15 }
 0x307   : > { %2517 = vrot.lane.b32.xlu1 %v8935_v34, %s4102_s15  ;;  %2515 = vrot.lane.b32.xlu0 %v8932_v30, %s4102_s15  ;;  %v6334_v30 = vadd.f32 %v6063_v63, %v1600_v59 }
 0x309   : > { %v8941_v59 = vmax.f32 %v6334_v30, 0.0 }
 0x30b   : > { %2521 = vrot.lane.b32.xlu1 %v8931_v4, %s4102_s15  ;;  %2519 = vrot.lane.b32.xlu0 %v8930_v51, %s4102_s15  ;;  %v3898_v51 = vld [vmem:[%s4179_s14 + $0xf0] sm:$0xff] }
 0x30c   : > { %v1599_v4 = vmul.f32 %v3898_v51, %v6061_v33  ;;  %v3899_v51 = vld [vmem:[%s4179_s14 + $0x108] sm:$0xff] }
 0x30d   : > { %v1602_v13 = vmul.f32 %v3899_v51, %v6061_v33 }
 0x30f   : > { %2525 = vrot.lane.b32.xlu1 %v8933_v49, %s4102_s15  ;;  %2523 = vrot.lane.b32.xlu0 %v8934_v16, %s4102_s15  ;;  %v6337_v49 = vadd.f32 %v6063_v63, %v1599_v4  ;;  %v3900_v16 = vld [vmem:[%s4179_s14 + $0x100] sm:$0xff]  ;;  %v6352_v27 = vadd.f32 %v6063_v63, %v1602_v13 }
 0x310   : > { %v1601_v34 = vmul.f32 %v3900_v16, %v6061_v33  ;;  %v3901_v16 = vld [vmem:[%s4179_s14 + $0x118] sm:$0xf] }
 0x311   : > { %v8942_v4 = vmax.f32 %v6337_v49, 0.0  ;;  %v1604_v51 = vmul.f32 %v3901_v16, %v6061_v33  ;;  %v8945_v13 = vmax.f32 %v6352_v27, 0.0 }
 0x313   : > { %2529 = vrot.lane.b32.xlu1 %v8937_v1, %s4102_s15  ;;  %2527 = vrot.lane.b32.xlu0 %v8938_v38, %s4102_s15  ;;  %v6355_v1 = vadd.f32 %v6063_v63, %v1601_v34  ;;  %v3902_v38 = vld [vmem:[%s4179_s14 + $0x110] sm:$0xff]  ;;  %v6370_v26 = vadd.f32 %v6063_v63, %v1604_v51 }
 0x314   : > { %v1603_v46 = vmul.f32 %v3902_v38, %v6061_v33  ;;  %v3903_v38 = vld [vmem:[%s4179_s14 + $0x128] sm:$0xff] }
 0x315   : > { %v8946_v34 = vmax.f32 %v6355_v1, 0.0  ;;  %v1606_v16 = vmul.f32 %v3903_v38, %v6061_v33  ;;  %v8949_v51 = vmax.f32 %v6370_v26, 0.0 }
 0x317   : > { %2533 = vrot.lane.b32.xlu1 %v8941_v59, %s4102_s15  ;;  %2531 = vrot.lane.b32.xlu0 %v8942_v4, %s4102_s15  ;;  %v6373_v59 = vadd.f32 %v6063_v63, %v1603_v46  ;;  %v3904_v4 = vld [vmem:[%s4179_s14 + $0x120] sm:$0xff]  ;;  %v6388_v0 = vadd.f32 %v6063_v63, %v1606_v16 }
 0x318   : > { %v1605_v32 = vmul.f32 %v3904_v4, %v6061_v33  ;;  %v3905_v4 = vld [vmem:[%s4179_s14 + $0x138] sm:$0xf] }
 0x319   : > { %v8950_v46 = vmax.f32 %v6373_v59, 0.0  ;;  %v1608_v38 = vmul.f32 %v3905_v4, %v6061_v33  ;;  %v8953_v16 = vmax.f32 %v6388_v0, 0.0 }
 0x31b   : > { %2537 = vrot.lane.b32.xlu1 %v8945_v13, %s4102_s15  ;;  %2535 = vrot.lane.b32.xlu0 %v8946_v34, %s4102_s15  ;;  %v6391_v13 = vadd.f32 %v6063_v63, %v1605_v32  ;;  %v3906_v34 = vld [vmem:[%s4179_s14 + $0x130] sm:$0xff]  ;;  %v6406_v62 = vadd.f32 %v6063_v63, %v1608_v38 }
 0x31c   : > { %v1607_v5 = vmul.f32 %v3906_v34, %v6061_v33  ;;  %v3907_v34 = vld [vmem:[%s4179_s14 + $0x148] sm:$0xff] }
 0x31d   : > { %v8954_v32 = vmax.f32 %v6391_v13, 0.0  ;;  %v1610_v4 = vmul.f32 %v3907_v34, %v6061_v33  ;;  %v8957_v38 = vmax.f32 %v6406_v62, 0.0 }
 0x31f   : > { %2541 = vrot.lane.b32.xlu1 %v8949_v51, %s4102_s15  ;;  %2539 = vrot.lane.b32.xlu0 %v8950_v46, %s4102_s15  ;;  %v6409_v51 = vadd.f32 %v6063_v63, %v1607_v5  ;;  %v3908_v46 = vld [vmem:[%s4179_s14 + $0x140] sm:$0xff]  ;;  %v6424_v3 = vadd.f32 %v6063_v63, %v1610_v4 }
 0x320   : > { %v1609_v41 = vmul.f32 %v3908_v46, %v6061_v33  ;;  %v3909_v46 = vld [vmem:[%s4179_s14 + $0x158] sm:$0xf] }
 0x321   : > { %v8958_v5 = vmax.f32 %v6409_v51, 0.0  ;;  %v1612_v34 = vmul.f32 %v3909_v46, %v6061_v33  ;;  %v8961_v4 = vmax.f32 %v6424_v3, 0.0 }
 0x323   : > { %2545 = vrot.lane.b32.xlu1 %v8953_v16, %s4102_s15  ;;  %2543 = vrot.lane.b32.xlu0 %v8954_v32, %s4102_s15  ;;  %v6427_v16 = vadd.f32 %v6063_v63, %v1609_v41  ;;  %v3910_v32 = vld [vmem:[%s4179_s14 + $0x150] sm:$0xff]  ;;  %v6442_v28 = vadd.f32 %v6063_v63, %v1612_v34 }
 0x324   : > { %v1611_v43 = vmul.f32 %v3910_v32, %v6061_v33  ;;  %v3911_v32 = vld [vmem:[%s4179_s14 + $0x168] sm:$0xff] }
 0x325   : > { %9542 = vst [vmem:[#allocation158_spill] sm:$0xff] %v6427_v16  ;;  %v8962_v41 = vmax.f32 %v6427_v16, 0.0  ;;  %9543 = vst [vmem:[#allocation165_spill] sm:$0xff] %v6442_v28  ;;  %v1614_v46 = vmul.f32 %v3911_v32, %v6061_v33  ;;  %v8965_v34 = vmax.f32 %v6442_v28, 0.0  ;;  %v9564_v28 = vmax.f32 %v6085_v18, 0.0 }
 0x326   : > { %v9566_v16 = vmax.f32 %v6103_v12, 0.0 }
 0x327   : > { %2549 = vrot.lane.b32.xlu1 %v8957_v38, %s4102_s15  ;;  %2547 = vrot.lane.b32.xlu0 %v8958_v5, %s4102_s15  ;;  %v6445_v38 = vadd.f32 %v6063_v63, %v1611_v43  ;;  %v3912_v5 = vld [vmem:[%s4179_s14 + $0x160] sm:$0xff]  ;;  %v6460_v61 = vadd.f32 %v6063_v63, %v1614_v46 }
 0x328   : > { %v1613_v52 = vmul.f32 %v3912_v5, %v6061_v33  ;;  %v3913_v5 = vld [vmem:[%s4179_s14 + $0x178] sm:$0xf] }
 0x329   : > { %9544 = vst [vmem:[#allocation159_spill] sm:$0xff] %v6445_v38  ;;  %v8966_v43 = vmax.f32 %v6445_v38, 0.0  ;;  %9545 = vst [vmem:[#allocation162_spill] sm:$0xff] %v6460_v61  ;;  %v1616_v32 = vmul.f32 %v3913_v5, %v6061_v33  ;;  %v8969_v46 = vmax.f32 %v6460_v61, 0.0 }
 0x32b   : > { %2553 = vrot.lane.b32.xlu1 %v8961_v4, %s4102_s15  ;;  %2551 = vrot.lane.b32.xlu0 %v8962_v41, %s4102_s15  ;;  %v6463_v4 = vadd.f32 %v6063_v63, %v1613_v52  ;;  %v3914_v41 = vld [vmem:[%s4179_s14 + $0x170] sm:$0xff]  ;;  %v6478_v20 = vadd.f32 %v6063_v63, %v1616_v32 }
 0x32c   : > { %v1615_v19 = vmul.f32 %v3914_v41, %v6061_v33  ;;  %v3915_v41 = vld [vmem:[%s4179_s14 + $0x188] sm:$0xff] }
 0x32d   : > { %9546 = vst [vmem:[#allocation9_spill] sm:$0xff] %v6463_v4  ;;  %v8970_v52 = vmax.f32 %v6463_v4, 0.0  ;;  %9547 = vst [vmem:[#allocation10_spill] sm:$0xff] %v6478_v20  ;;  %v1618_v5 = vmul.f32 %v3915_v41, %v6061_v33  ;;  %v8973_v32 = vmax.f32 %v6478_v20, 0.0 }
 0x32f   : > { %2557 = vrot.lane.b32.xlu1 %v8965_v34, %s4102_s15  ;;  %2555 = vrot.lane.b32.xlu0 %v8966_v43, %s4102_s15  ;;  %v6481_v34 = vadd.f32 %v6063_v63, %v1615_v19  ;;  %v3916_v43 = vld [vmem:[%s4179_s14 + $0x180] sm:$0xff]  ;;  %v6496_v44 = vadd.f32 %v6063_v63, %v1618_v5 }
 0x330   : > { %v1617_v60 = vmul.f32 %v3916_v43, %v6061_v33  ;;  %v3917_v43 = vld [vmem:[%s4179_s14 + $0x198] sm:$0xf] }
 0x331   : > { %9548 = vst [vmem:[#allocation170_spill] sm:$0xff] %v6481_v34  ;;  %v8974_v19 = vmax.f32 %v6481_v34, 0.0  ;;  %9549 = vst [vmem:[#allocation7_spill] sm:$0xff] %v6496_v44  ;;  %v1620_v41 = vmul.f32 %v3917_v43, %v6061_v33  ;;  %v8977_v5 = vmax.f32 %v6496_v44, 0.0 }
 0x333   : > { %2561 = vrot.lane.b32.xlu1 %v8969_v46, %s4102_s15  ;;  %2559 = vrot.lane.b32.xlu0 %v8970_v52, %s4102_s15  ;;  %v6499_v46 = vadd.f32 %v6063_v63, %v1617_v60  ;;  %v3918_v52 = vld [vmem:[%s4179_s14 + $0x190] sm:$0xff]  ;;  %v6514_v39 = vadd.f32 %v6063_v63, %v1620_v41 }
 0x334   : > { %v1619_v47 = vmul.f32 %v3918_v52, %v6061_v33  ;;  %v3919_v52 = vld [vmem:[%s4179_s14 + $0x1a8] sm:$0xff] }
 0x335   : > { %9550 = vst [vmem:[#allocation12_spill] sm:$0xff] %v6499_v46  ;;  %v8978_v60 = vmax.f32 %v6499_v46, 0.0  ;;  %9551 = vst [vmem:[#allocation167_spill] sm:$0xff] %v6514_v39  ;;  %v1622_v43 = vmul.f32 %v3919_v52, %v6061_v33  ;;  %v8981_v41 = vmax.f32 %v6514_v39, 0.0 }
 0x337   : > { %2565 = vrot.lane.b32.xlu1 %v8973_v32, %s4102_s15  ;;  %2563 = vrot.lane.b32.xlu0 %v8974_v19, %s4102_s15  ;;  %v6517_v32 = vadd.f32 %v6063_v63, %v1619_v47  ;;  %v3920_v19 = vld [vmem:[%s4179_s14 + $0x1a0] sm:$0xff]  ;;  %v6532_v6 = vadd.f32 %v6063_v63, %v1622_v43 }
 0x338   : > { %v1621_v2 = vmul.f32 %v3920_v19, %v6061_v33  ;;  %v3921_v19 = vld [vmem:[%s4179_s14 + $0x1b8] sm:$0xf] }
 0x339   : > { %9552 = vst [vmem:[#allocation13_spill] sm:$0xff] %v6517_v32  ;;  %v8982_v47 = vmax.f32 %v6517_v32, 0.0  ;;  %9553 = vst [vmem:[#allocation168_spill] sm:$0xff] %v6532_v6  ;;  %v1624_v52 = vmul.f32 %v3921_v19, %v6061_v33  ;;  %v8985_v43 = vmax.f32 %v6532_v6, 0.0 }
 0x33b   : > { %2569 = vrot.lane.b32.xlu1 %v8977_v5, %s4102_s15  ;;  %2567 = vrot.lane.b32.xlu0 %v8978_v60, %s4102_s15  ;;  %v6535_v5 = vadd.f32 %v6063_v63, %v1621_v2  ;;  %v3922_v60 = vld [vmem:[%s4179_s14 + $0x1b0] sm:$0xff]  ;;  %v6550_v46 = vadd.f32 %v6063_v63, %v1624_v52 }
 0x33c   : > { %v1623_v8 = vmul.f32 %v3922_v60, %v6061_v33  ;;  %v3923_v60 = vld [vmem:[%s4179_s14 + $0x1c8] sm:$0xff] }
 0x33d   : > { %9554 = vst [vmem:[#allocation169_spill] sm:$0xff] %v6535_v5  ;;  %v8986_v2 = vmax.f32 %v6535_v5, 0.0  ;;  %9555 = vst [vmem:[#allocation14_spill] sm:$0xff] %v6550_v46  ;;  %v1626_v19 = vmul.f32 %v3923_v60, %v6061_v33  ;;  %v8989_v52 = vmax.f32 %v6550_v46, 0.0 }
 0x33f   : > { %2573 = vrot.lane.b32.xlu1 %v8981_v41, %s4102_s15  ;;  %2571 = vrot.lane.b32.xlu0 %v8982_v47, %s4102_s15  ;;  %v6553_v41 = vadd.f32 %v6063_v63, %v1623_v8  ;;  %v3924_v47 = vld [vmem:[%s4179_s14 + $0x1c0] sm:$0xff]  ;;  %v6568_v39 = vadd.f32 %v6063_v63, %v1626_v19 }
 0x340   : > { %v1625_v32 = vmul.f32 %v3924_v47, %v6061_v33  ;;  %v3925_v47 = vld [vmem:[%s4179_s14 + $0x1d8] sm:$0xf] }
 0x341   : > { %9556 = vst [vmem:[#allocation11_spill] sm:$0xff] %v6553_v41  ;;  %v8990_v8 = vmax.f32 %v6553_v41, 0.0  ;;  %9557 = vst [vmem:[#allocation16_spill] sm:$0xff] %v6568_v39  ;;  %v1628_v60 = vmul.f32 %v3925_v47, %v6061_v33  ;;  %v8995_v19 = vmax.f32 %v6568_v39, 0.0 }
 0x343   : > { %2577 = vrot.lane.b32.xlu1 %v8985_v43, %s4102_s15  ;;  %2575 = vrot.lane.b32.xlu0 %v8986_v2, %s4102_s15  ;;  %v6571_v43 = vadd.f32 %v6063_v63, %v1625_v32  ;;  %v3926_v2 = vld [vmem:[%s4179_s14 + $0x1d0] sm:$0xff]  ;;  %v6586_v32 = vadd.f32 %v6063_v63, %v1628_v60 }
 0x344   : > { %v1627_v5 = vmul.f32 %v3926_v2, %v6061_v33  ;;  %v3927_v2 = vld [vmem:[%s4179_s14 + $0x1e8] sm:$0xff] }
 0x345   : > { %9558 = vst [vmem:[#allocation171_spill] sm:$0xff] %v6571_v43  ;;  %v8996_v6 = vmax.f32 %v6571_v43, 0.0  ;;  %9559 = vst [vmem:[#allocation17_spill] sm:$0xff] %v6586_v32  ;;  %v1630_v47 = vmul.f32 %v3927_v2, %v6061_v33 }
 0x347   : > { %2581 = vrot.lane.b32.xlu1 %v8989_v52, %s4102_s15  ;;  %2579 = vrot.lane.b32.xlu0 %v8990_v8, %s4102_s15  ;;  %v6589_v52 = vadd.f32 %v6063_v63, %v1627_v5  ;;  %v3928_v8 = vld [vmem:[%s4179_s14 + $0x1e0] sm:$0xff]  ;;  %v9001_v5 = vmax.f32 %v6586_v32, 0.0  ;;  %v6604_v39 = vadd.f32 %v6063_v63, %v1630_v47 }
 0x348   : > { %v1629_v60 = vmul.f32 %v3928_v8, %v6061_v33  ;;  %v3929_v8 = vld [vmem:[%s4179_s14 + $0x1f8] sm:$0xf] }
 0x349   : > { %9560 = vst [vmem:[#allocation18_spill] sm:$0xff] %v6589_v52  ;;  %v9002_v44 = vmax.f32 %v6589_v52, 0.0  ;;  %9561 = vst [vmem:[#allocation15_spill] sm:$0xff] %v6604_v39  ;;  %v1632_v2 = vmul.f32 %v3929_v8, %v6061_v33 }
 0x34b   : > { %2585 = vrot.lane.b32.xlu1 %v8995_v19, %s4102_s15  ;;  %2583 = vrot.lane.b32.xlu0 %v8996_v6, %s4102_s15  ;;  %v6607_v19 = vadd.f32 %v6063_v63, %v1629_v60  ;;  %v3930_v6 = vld [vmem:[%s4179_s14 + $0x1f0] sm:$0xff]  ;;  %v9006_v60 = vmax.f32 %v6604_v39, 0.0  ;;  %v6622_v32 = vadd.f32 %v6063_v63, %v1632_v2 }
 0x34c   : > { %v1631_v47 = vmul.f32 %v3930_v6, %v6061_v33  ;;  %v3931_v6 = vld [vmem:[%s4179_s14 + $0x208] sm:$0xff] }
 0x34d   : > { %v2476_v41 = vpop.permute.xlu1 %2475  ;;  %v2472_v46 = vpop.permute.xlu0 %2471  ;;  %9562 = vst [vmem:[#allocation20_spill] sm:$0xff] %v6607_v19  ;;  %v9007_v20 = vmax.f32 %v6607_v19, 0.0  ;;  %v1634_v8 = vmul.f32 %v3931_v6, %v6061_v33  ;;  %v9563_v19 = vmax.f32 %v6073_v35, 0.0  ;;  %v3933_v35 = vld [vmem:[%s4179_s14 + $0x218] sm:$0xf] }
 0x34e   : > { %v1636_v18 = vmul.f32 %v3933_v35, %v6061_v33  ;;  %v9571_v35 = vmax.f32 %v6121_v45, 0.0 }
 0x34f   : > { %2589 = vrot.lane.b32.xlu1 %v9001_v5, %s4102_s15  ;;  %2587 = vrot.lane.b32.xlu0 %v9002_v44, %s4102_s15  ;;  %v6625_v5 = vadd.f32 %v6063_v63, %v1631_v47  ;;  %v3932_v44 = vld [vmem:[%s4179_s14 + $0x200] sm:$0xff]  ;;  %v3143_v6 = vmax.f32 %v9563_v19, %v2472_v46 }
 0x350   : > { %v1633_v2 = vmul.f32 %v3932_v44, %v6061_v33  ;;  %v9565_v44 = vmax.f32 %v6100_v14, 0.0  ;;  %v3934_v14 = vld [vmem:[%s4179_s14 + $0x210] sm:$0xff] }
 0x351   : > { %v2478_v43 = vpop.permute.xlu1 %2477  ;;  %v2474_v34 = vpop.permute.xlu0 %2473  ;;  %v9019_v39 = vmax.f32 %v6625_v5, 0.0  ;;  %v1635_v12 = vmul.f32 %v3934_v14, %v6061_v33 }
 0x352   : > { %v3144_v4 = vmax.f32 %v9564_v28, %v2474_v34 }
 0x353   : > { %2593 = vrot.lane.b32.xlu1 %v9006_v60, %s4102_s15  ;;  %2591 = vrot.lane.b32.xlu0 %v9007_v20, %s4102_s15  ;;  %v6641_v60 = vadd.f32 %v6063_v63, %v1634_v8  ;;  %v6644_v20 = vadd.f32 %v6063_v63, %v1633_v2  ;;  %v9567_v8 = vmax.f32 %v6622_v32, 0.0  ;;  %v6672_v2 = vadd.f32 %v6063_v63, %v1636_v18 }
 0x355   : > { %v2482_v52 = vpop.permute.xlu1 %2481  ;;  %v2480_v47 = vpop.permute.xlu0 %2479  ;;  %v9017_v19 = vmax.f32 %v6644_v20, 0.0 }
 0x356   : > { %v3148_v61 = vmax.f32 %v9565_v44, %v2482_v52  ;;  %v3147_v38 = vmax.f32 %v9566_v16, %v2480_v47  ;;  %v9018_v52 = vmax.f32 %v6641_v60, 0.0  ;;  %v6675_v47 = vadd.f32 %v6063_v63, %v1635_v12 }
 0x357   : > { %2597 = vrot.lane.b32.xlu1 %v9567_v8, %s4102_s15  ;;  %2595 = vrot.lane.b32.xlu0 %v9019_v39, %s4102_s15  ;;  %v9568_v44 = vmax.f32 %v6070_v15, 0.0  ;;  %v3935_v15 = vld [vmem:[%s4179_s14 + $0x228] sm:$0xff]  ;;  %v9575_v39 = vmax.f32 %v6175_v36, 0.0 }
 0x358   : > { %v3368_v28 = vmax.f32 %v3144_v4, %v3148_v61  ;;  %v3367_v16 = vmax.f32 %v3143_v6, %v3147_v38  ;;  %v9569_v61 = vmax.f32 %v6082_v29, 0.0  ;;  %v9570_v4 = vmax.f32 %v6118_v53, 0.0  ;;  %v3936_v53 = vld [vmem:[%s4179_s14 + $0x220] sm:$0xff] }
 0x359   : > { %v2486_v34 = vpop.permute.xlu1 %2485  ;;  %v2484_v46 = vpop.permute.xlu0 %2483  ;;  %v3145_v8 = vmax.f32 %v9568_v44, %v2476_v41  ;;  %v1638_v29 = vmul.f32 %v3935_v15, %v6061_v33  ;;  %v1637_v45 = vmul.f32 %v3936_v53, %v6061_v33  ;;  %v3937_v44 = vld [vmem:[%s4179_s14 + $0x238] sm:$0xf]  ;;  %v3939_v53 = vld [vmem:[%s4179_s14 + $0x248] sm:$0xff] }
 0x35a   : > { %v3146_v38 = vmax.f32 %v9569_v61, %v2478_v43  ;;  %3481 = vst.msk [vmem:[%s6657_s20 + $0x8] sm:$0xff] %vm3479_vm3, %v3368_v28  ;;  %3480 = vst.msk [vmem:[%s6657_s20] sm:$0xff] %vm3479_vm3, %v3367_v16  ;;  %v3150_v6 = vmax.f32 %v9570_v4, %v2486_v34  ;;  %v3149_v18 = vmax.f32 %v9571_v35, %v2484_v46  ;;  %v9014_v28 = vmax.f32 %v6672_v2, 0.0  ;;  %v3938_v61 = vld [vmem:[%s4179_s14 + $0x230] sm:$0xff] }
 0x35b   : > { %2601 = vrot.lane.b32.xlu1 %v9018_v52, %s4102_s15  ;;  %2599 = vrot.lane.b32.xlu0 %v9017_v19, %s4102_s15  ;;  %v9013_v16 = vmax.f32 %v6675_v47, 0.0  ;;  %v6702_v34 = vadd.f32 %v6063_v63, %v1638_v29  ;;  %v6705_v46 = vadd.f32 %v6063_v63, %v1637_v45  ;;  %v1642_v45 = vmul.f32 %v3939_v53, %v6061_v33 }
 0x35c   : > { %v3370_v41 = vmax.f32 %v3146_v38, %v3150_v6  ;;  %v3369_v43 = vmax.f32 %v3145_v8, %v3149_v18  ;;  %v1640_v8 = vmul.f32 %v3937_v44, %v6061_v33  ;;  %v1639_v38 = vmul.f32 %v3938_v61, %v6061_v33 }
 0x35d   : > { %v2490_v14 = vpop.permute.xlu1 %2489  ;;  %v2488_v12 = vpop.permute.xlu0 %2487  ;;  %v9016_v35 = vmax.f32 %v6702_v34, 0.0  ;;  %v9015_v18 = vmax.f32 %v6705_v46, 0.0  ;;  %v9573_v53 = vmax.f32 %v6139_v48, 0.0 }
 0x35e   : > { %3484 = vst.msk [vmem:[%s6657_s20 + $0x18] sm:$0xf] %vm3483_vm4, %v3370_v41  ;;  %v6724_v15 = vadd.f32 %v6063_v63, %v1640_v8  ;;  %v6727_v29 = vadd.f32 %v6063_v63, %v1639_v38  ;;  %v3940_v41 = vld [vmem:[%s4179_s14 + $0x240] sm:$0xff] }
 0x35f   : > { %3482 = vst.msk [vmem:[%s6657_s20 + $0x10] sm:$0xff] %vm3479_vm3, %v3369_v43  ;;  %2605 = vrot.lane.b32.xlu1 %v9014_v28, %s4102_s15  ;;  %2603 = vrot.lane.b32.xlu0 %v9013_v16, %s4102_s15  ;;  %v1641_v43 = vmul.f32 %v3940_v41, %v6061_v33  ;;  %v6742_v16 = vadd.f32 %v6063_v63, %v1642_v45  ;;  %v9574_v41 = vmax.f32 %v6172_v25, 0.0 }
 0x360   : > { %v3151_v19 = vmax.f32 %v9573_v53, %v2488_v12  ;;  %v9576_v38 = vmax.f32 %v6724_v15, 0.0  ;;  %v9577_v45 = vmax.f32 %v6727_v29, 0.0  ;;  %v9578_v53 = vmax.f32 %v6154_v56, 0.0  ;;  %v3943_v56 = vld [vmem:[%s4179_s14 + $0x268] sm:$0xff] }
 0x361   : > { %v2494_v4 = vpop.permute.xlu1 %2493  ;;  %v2492_v6 = vpop.permute.xlu0 %2491  ;;  %v6745_v28 = vadd.f32 %v6063_v63, %v1641_v43  ;;  %v9025_v43 = vmax.f32 %v6742_v16, 0.0 }
 0x363   : > { %2609 = vrot.lane.b32.xlu1 %v9016_v35, %s4102_s15  ;;  %2607 = vrot.lane.b32.xlu0 %v9015_v18, %s4102_s15  ;;  %v9572_v18 = vmax.f32 %v6136_v10, 0.0  ;;  %v3941_v10 = vld [vmem:[%s4179_s14 + $0x258] sm:$0xf] }
 0x364   : > { %v1644_v48 = vmul.f32 %v3941_v10, %v6061_v33 }
 0x365   : > { %v2498_v44 = vpop.permute.xlu1 %2497  ;;  %v2496_v8 = vpop.permute.xlu0 %2495  ;;  %v3152_v35 = vmax.f32 %v9572_v18, %v2490_v14  ;;  %v3942_v14 = vld [vmem:[%s4179_s14 + $0x250] sm:$0xff] }
 0x366   : > { %v3156_v52 = vmax.f32 %v9574_v41, %v2498_v44  ;;  %v3155_v61 = vmax.f32 %v9575_v39, %v2496_v8  ;;  %v1643_v25 = vmul.f32 %v3942_v14, %v6061_v33  ;;  %v9024_v44 = vmax.f32 %v6745_v28, 0.0 }
 0x367   : > { %2613 = vrot.lane.b32.xlu1 %v9576_v38, %s4102_s15  ;;  %2611 = vrot.lane.b32.xlu0 %v9577_v45, %s4102_s15  ;;  %v6768_v8 = vadd.f32 %v6063_v63, %v1644_v48  ;;  %v3154_v41 = vmax.f32 %v9578_v53, %v2494_v4  ;;  %v9581_v45 = vmax.f32 %v6193_v11, 0.0  ;;  %v3944_v4 = vld [vmem:[%s4179_s14 + $0x260] sm:$0xff] }
 0x368   : > { %v3372_v12 = vmax.f32 %v3152_v35, %v3156_v52  ;;  %v3371_v36 = vmax.f32 %v3151_v19, %v3155_v61  ;;  %v6771_v38 = vadd.f32 %v6063_v63, %v1643_v25  ;;  %v9579_v52 = vmax.f32 %v6157_v22, 0.0 }
 0x369   : > { %v2502_v39 = vpop.permute.xlu1 %2501  ;;  %v2500_v18 = vpop.permute.xlu0 %2499  ;;  %v9580_v19 = vmax.f32 %v6190_v42, 0.0  ;;  %v1646_v22 = vmul.f32 %v3943_v56, %v6061_v33  ;;  %v1645_v42 = vmul.f32 %v3944_v4, %v6061_v33  ;;  %v9021_v25 = vmax.f32 %v6768_v8, 0.0 }
 0x36a   : > { %v3153_v35 = vmax.f32 %v9579_v52, %v2492_v6  ;;  %3486 = vst.msk [vmem:[%s6657_s20 + $0x28] sm:$0xff] %vm3479_vm3, %v3372_v12  ;;  %3485 = vst.msk [vmem:[%s6657_s20 + $0x20] sm:$0xff] %vm3479_vm3, %v3371_v36  ;;  %v3157_v10 = vmax.f32 %v9581_v45, %v2500_v18  ;;  %v9020_v12 = vmax.f32 %v6771_v38, 0.0  ;;  %v3945_v18 = vld [vmem:[%s4179_s14 + $0x278] sm:$0xf] }
 0x36b   : > { %v3158_v61 = vmax.f32 %v9580_v19, %v2502_v39  ;;  %2617 = vrot.lane.b32.xlu1 %v9025_v43, %s4102_s15  ;;  %2615 = vrot.lane.b32.xlu0 %v9024_v44, %s4102_s15  ;;  %v6798_v36 = vadd.f32 %v6063_v63, %v1646_v22  ;;  %v6801_v39 = vadd.f32 %v6063_v63, %v1645_v42  ;;  %v3947_v22 = vld [vmem:[%s4179_s14 + $0x288] sm:$0xff]  ;;  %v3948_v42 = vld [vmem:[%s4179_s14 + $0x280] sm:$0xff]  ;;  %v9585_v43 = vmax.f32 %v6247_v58, 0.0 }
 0x36c   : > { %v3373_v6 = vmax.f32 %v3153_v35, %v3157_v10  ;;  %v1648_v53 = vmul.f32 %v3945_v18, %v6061_v33  ;;  %v1650_v4 = vmul.f32 %v3947_v22, %v6061_v33  ;;  %v9583_v22 = vmax.f32 %v6211_v31, 0.0 }
 0x36d   : > { %v3374_v11 = vmax.f32 %v3154_v41, %v3158_v61  ;;  %v2506_v48 = vpop.permute.xlu1 %2505  ;;  %v2504_v14 = vpop.permute.xlu0 %2503  ;;  %v3946_v41 = vld [vmem:[%s4179_s14 + $0x270] sm:$0xff]  ;;  %v9023_v61 = vmax.f32 %v6798_v36, 0.0  ;;  %v9022_v45 = vmax.f32 %v6801_v39, 0.0 }
 0x36e   : > { %3487 = vst.msk [vmem:[%s6657_s20 + $0x30] sm:$0xff] %vm3479_vm3, %v3373_v6  ;;  %v1647_v52 = vmul.f32 %v3946_v41, %v6061_v33  ;;  %v6820_v10 = vadd.f32 %v6063_v63, %v1648_v53 }
 0x36f   : > { %3488 = vst.msk [vmem:[%s6657_s20 + $0x38] sm:$0xf] %vm3483_vm4, %v3374_v11  ;;  %2621 = vrot.lane.b32.xlu1 %v9021_v25, %s4102_s15  ;;  %2619 = vrot.lane.b32.xlu0 %v9020_v12, %s4102_s15  ;;  %v1649_v11 = vmul.f32 %v3948_v42, %v6061_v33  ;;  %v9582_v25 = vmax.f32 %v6208_v21, 0.0  ;;  %v9584_v42 = vmax.f32 %v6244_v17, 0.0  ;;  %v3949_v21 = vld [vmem:[%s4179_s14 + $0x298] sm:$0xf] }
 0x370   : > { %v6823_v56 = vadd.f32 %v6063_v63, %v1647_v52  ;;  %v6838_v52 = vadd.f32 %v6063_v63, %v1650_v4  ;;  %v9586_v41 = vmax.f32 %v6820_v10, 0.0  ;;  %v1652_v31 = vmul.f32 %v3949_v21, %v6061_v33 }
 0x371   : > { %v2510_v35 = vpop.permute.xlu1 %2509  ;;  %v2508_v19 = vpop.permute.xlu0 %2507  ;;  %v6841_v12 = vadd.f32 %v6063_v63, %v1649_v11 }
 0x372   : > { %v9587_v4 = vmax.f32 %v6823_v56, 0.0  ;;  %v9031_v11 = vmax.f32 %v6838_v52, 0.0 }
 0x373   : > { %2625 = vrot.lane.b32.xlu1 %v9023_v61, %s4102_s15  ;;  %2623 = vrot.lane.b32.xlu0 %v9022_v45, %s4102_s15  ;;  %v3160_v45 = vmax.f32 %v9582_v25, %v2506_v48  ;;  %v3159_v61 = vmax.f32 %v9583_v22, %v2504_v14  ;;  %v3950_v48 = vld [vmem:[%s4179_s14 + $0x290] sm:$0xff]  ;;  %v9588_v22 = vmax.f32 %v6226_v9, 0.0  ;;  %v3951_v9 = vld [vmem:[%s4179_s14 + $0x2a8] sm:$0xff] }
 0x374   : > { %v1651_v17 = vmul.f32 %v3950_v48, %v6061_v33 }
 0x375   : > { %v2514_v6 = vpop.permute.xlu1 %2513  ;;  %v2512_v18 = vpop.permute.xlu0 %2511 }
 0x376   : > { %v3164_v44 = vmax.f32 %v9584_v42, %v2514_v6  ;;  %v3163_v53 = vmax.f32 %v9585_v43, %v2512_v18  ;;  %v9030_v6 = vmax.f32 %v6841_v12, 0.0  ;;  %v6864_v18 = vadd.f32 %v6063_v63, %v1652_v31 }
 0x377   : > { %2629 = vrot.lane.b32.xlu1 %v9586_v41, %s4102_s15  ;;  %2627 = vrot.lane.b32.xlu0 %v9587_v4, %s4102_s15  ;;  %v6867_v41 = vadd.f32 %v6063_v63, %v1651_v17  ;;  %v3162_v42 = vmax.f32 %v9588_v22, %v2510_v35  ;;  %v9591_v4 = vmax.f32 %v6265_v54, 0.0  ;;  %v3952_v35 = vld [vmem:[%s4179_s14 + $0x2a0] sm:$0xff] }
 0x378   : > { %v3376_v14 = vmax.f32 %v3160_v45, %v3164_v44  ;;  %v3375_v58 = vmax.f32 %v3159_v61, %v3163_v53  ;;  %v9589_v44 = vmax.f32 %v6229_v7, 0.0  ;;  %v9590_v61 = vmax.f32 %v6262_v37, 0.0 }
 0x379   : > { %v2518_v43 = vpop.permute.xlu1 %2517  ;;  %v2516_v25 = vpop.permute.xlu0 %2515  ;;  %v1654_v7 = vmul.f32 %v3951_v9, %v6061_v33  ;;  %v1653_v37 = vmul.f32 %v3952_v35, %v6061_v33  ;;  %v9027_v17 = vmax.f32 %v6864_v18, 0.0 }
 0x37a   : > { %v3161_v45 = vmax.f32 %v9589_v44, %v2508_v19  ;;  %3490 = vst.msk [vmem:[%s6657_s20 + $0x48] sm:$0xff] %vm3479_vm3, %v3376_v14  ;;  %3489 = vst.msk [vmem:[%s6657_s20 + $0x40] sm:$0xff] %vm3479_vm3, %v3375_v58  ;;  %v3166_v53 = vmax.f32 %v9590_v61, %v2518_v43  ;;  %v3165_v21 = vmax.f32 %v9591_v4, %v2516_v25  ;;  %v9026_v14 = vmax.f32 %v6867_v41, 0.0  ;;  %v3953_v25 = vld [vmem:[%s4179_s14 + $0x2b8] sm:$0xf] }
 0x37b   : > { %2633 = vrot.lane.b32.xlu1 %v9031_v11, %s4102_s15  ;;  %2631 = vrot.lane.b32.xlu0 %v9030_v6, %s4102_s15  ;;  %v6894_v58 = vadd.f32 %v6063_v63, %v1654_v7  ;;  %v6897_v43 = vadd.f32 %v6063_v63, %v1653_v37  ;;  %v1656_v22 = vmul.f32 %v3953_v25, %v6061_v33  ;;  %v3955_v7 = vld [vmem:[%s4179_s14 + $0x2c8] sm:$0xff]  ;;  %v3956_v37 = vld [vmem:[%s4179_s14 + $0x2c0] sm:$0xff]  ;;  %v9595_v11 = vmax.f32 %v6319_v23, 0.0 }
 0x37c   : > { %v3378_v54 = vmax.f32 %v3162_v42, %v3166_v53  ;;  %v3377_v19 = vmax.f32 %v3161_v45, %v3165_v21  ;;  %v3954_v42 = vld [vmem:[%s4179_s14 + $0x2b0] sm:$0xff]  ;;  %v1658_v35 = vmul.f32 %v3955_v7, %v6061_v33  ;;  %v9593_v7 = vmax.f32 %v6283_v57, 0.0 }
 0x37d   : > { %v2522_v31 = vpop.permute.xlu1 %2521  ;;  %v2520_v48 = vpop.permute.xlu0 %2519  ;;  %v1655_v44 = vmul.f32 %v3954_v42, %v6061_v33  ;;  %v9029_v53 = vmax.f32 %v6894_v58, 0.0  ;;  %v9028_v4 = vmax.f32 %v6897_v43, 0.0  ;;  %v6916_v21 = vadd.f32 %v6063_v63, %v1656_v22 }
 0x37e   : > { %3492 = vst.msk [vmem:[%s6657_s20 + $0x58] sm:$0xf] %vm3483_vm4, %v3378_v54  ;;  %v1657_v54 = vmul.f32 %v3956_v37, %v6061_v33  ;;  %v9594_v37 = vmax.f32 %v6316_v55, 0.0 }
 0x37f   : > { %3491 = vst.msk [vmem:[%s6657_s20 + $0x50] sm:$0xff] %vm3479_vm3, %v3377_v19  ;;  %2637 = vrot.lane.b32.xlu1 %v9027_v17, %s4102_s15  ;;  %2635 = vrot.lane.b32.xlu0 %v9026_v14, %s4102_s15  ;;  %v6919_v9 = vadd.f32 %v6063_v63, %v1655_v44  ;;  %v6934_v44 = vadd.f32 %v6063_v63, %v1658_v35  ;;  %v9592_v17 = vmax.f32 %v6280_v40, 0.0  ;;  %v9596_v42 = vmax.f32 %v6916_v21, 0.0  ;;  %v3957_v40 = vld [vmem:[%s4179_s14 + $0x2d8] sm:$0xf] }
 0x380   : > { %v6937_v14 = vadd.f32 %v6063_v63, %v1657_v54  ;;  %v1660_v57 = vmul.f32 %v3957_v40, %v6061_v33 }
 0x381   : > { %v2526_v45 = vpop.permute.xlu1 %2525  ;;  %v2524_v61 = vpop.permute.xlu0 %2523  ;;  %v9597_v35 = vmax.f32 %v6919_v9, 0.0  ;;  %v9037_v54 = vmax.f32 %v6934_v44, 0.0 }
 0x383   : > { %2641 = vrot.lane.b32.xlu1 %v9029_v53, %s4102_s15  ;;  %2639 = vrot.lane.b32.xlu0 %v9028_v4, %s4102_s15  ;;  %v3168_v4 = vmax.f32 %v9592_v17, %v2522_v31  ;;  %v3167_v53 = vmax.f32 %v9593_v7, %v2520_v48  ;;  %v3958_v31 = vld [vmem:[%s4179_s14 + $0x2d0] sm:$0xff]  ;;  %v9598_v7 = vmax.f32 %v6298_v50, 0.0  ;;  %v3959_v50 = vld [vmem:[%s4179_s14 + $0x2e8] sm:$0xff] }
 0x384   : > { %v1659_v55 = vmul.f32 %v3958_v31, %v6061_v33 }
 0x385   : > { %v2530_v19 = vpop.permute.xlu1 %2529  ;;  %v2528_v25 = vpop.permute.xlu0 %2527 }
 0x386   : > { %v3172_v6 = vmax.f32 %v9594_v37, %v2530_v19  ;;  %v3171_v22 = vmax.f32 %v9595_v11, %v2528_v25  ;;  %v9036_v19 = vmax.f32 %v6937_v14, 0.0  ;;  %v6960_v25 = vadd.f32 %v6063_v63, %v1660_v57 }
 0x387   : > { %2645 = vrot.lane.b32.xlu1 %v9596_v42, %s4102_s15  ;;  %2643 = vrot.lane.b32.xlu0 %v9597_v35, %s4102_s15  ;;  %v6963_v42 = vadd.f32 %v6063_v63, %v1659_v55  ;;  %v3170_v37 = vmax.f32 %v9598_v7, %v2526_v45  ;;  %v9601_v35 = vmax.f32 %v6337_v49, 0.0  ;;  %v3960_v45 = vld [vmem:[%s4179_s14 + $0x2e0] sm:$0xff] }
 0x388   : > { %v3380_v48 = vmax.f32 %v3168_v4, %v3172_v6  ;;  %v3379_v23 = vmax.f32 %v3167_v53, %v3171_v22  ;;  %v9599_v6 = vmax.f32 %v6301_v24, 0.0  ;;  %v9600_v53 = vmax.f32 %v6334_v30, 0.0 }
 0x389   : > { %v2534_v11 = vpop.permute.xlu1 %2533  ;;  %v2532_v17 = vpop.permute.xlu0 %2531  ;;  %v1662_v24 = vmul.f32 %v3959_v50, %v6061_v33  ;;  %v1661_v30 = vmul.f32 %v3960_v45, %v6061_v33  ;;  %v9033_v55 = vmax.f32 %v6960_v25, 0.0 }
 0x38a   : > { %v3169_v4 = vmax.f32 %v9599_v6, %v2524_v61  ;;  %3494 = vst.msk [vmem:[%s6657_s20 + $0x68] sm:$0xff] %vm3479_vm3, %v3380_v48  ;;  %3493 = vst.msk [vmem:[%s6657_s20 + $0x60] sm:$0xff] %vm3479_vm3, %v3379_v23  ;;  %v3174_v22 = vmax.f32 %v9600_v53, %v2534_v11  ;;  %v3173_v40 = vmax.f32 %v9601_v35, %v2532_v17  ;;  %v9032_v48 = vmax.f32 %v6963_v42, 0.0  ;;  %v3961_v17 = vld [vmem:[%s4179_s14 + $0x2f8] sm:$0xf] }
 0x38b   : > { %2649 = vrot.lane.b32.xlu1 %v9037_v54, %s4102_s15  ;;  %2647 = vrot.lane.b32.xlu0 %v9036_v19, %s4102_s15  ;;  %v6990_v23 = vadd.f32 %v6063_v63, %v1662_v24  ;;  %v6993_v11 = vadd.f32 %v6063_v63, %v1661_v30  ;;  %v1664_v7 = vmul.f32 %v3961_v17, %v6061_v33  ;;  %v3963_v24 = vld [vmem:[%s4179_s14 + $0x308] sm:$0xff]  ;;  %v3964_v30 = vld [vmem:[%s4179_s14 + $0x300] sm:$0xff]  ;;  %v9605_v54 = vmax.f32 %v6391_v13, 0.0 }
 0x38c   : > { %v3382_v49 = vmax.f32 %v3170_v37, %v3174_v22  ;;  %v3381_v61 = vmax.f32 %v3169_v4, %v3173_v40  ;;  %v3962_v37 = vld [vmem:[%s4179_s14 + $0x2f0] sm:$0xff]  ;;  %v1666_v45 = vmul.f32 %v3963_v24, %v6061_v33  ;;  %v9603_v24 = vmax.f32 %v6355_v1, 0.0 }
 0x38d   : > { %v2538_v57 = vpop.permute.xlu1 %2537  ;;  %v2536_v31 = vpop.permute.xlu0 %2535  ;;  %v1663_v6 = vmul.f32 %v3962_v37, %v6061_v33  ;;  %v9035_v22 = vmax.f32 %v6990_v23, 0.0  ;;  %v9034_v35 = vmax.f32 %v6993_v11, 0.0  ;;  %v7012_v40 = vadd.f32 %v6063_v63, %v1664_v7 }
 0x38e   : > { %3496 = vst.msk [vmem:[%s6657_s20 + $0x78] sm:$0xf] %vm3483_vm4, %v3382_v49  ;;  %v1665_v49 = vmul.f32 %v3964_v30, %v6061_v33  ;;  %v9604_v30 = vmax.f32 %v6388_v0, 0.0 }
 0x38f   : > { %3495 = vst.msk [vmem:[%s6657_s20 + $0x70] sm:$0xff] %vm3479_vm3, %v3381_v61  ;;  %2653 = vrot.lane.b32.xlu1 %v9033_v55, %s4102_s15  ;;  %2651 = vrot.lane.b32.xlu0 %v9032_v48, %s4102_s15  ;;  %v7015_v50 = vadd.f32 %v6063_v63, %v1663_v6  ;;  %v7030_v6 = vadd.f32 %v6063_v63, %v1666_v45  ;;  %v9602_v55 = vmax.f32 %v6352_v27, 0.0  ;;  %v9606_v37 = vmax.f32 %v7012_v40, 0.0  ;;  %v3965_v27 = vld [vmem:[%s4179_s14 + $0x318] sm:$0xf] }
 0x390   : > { %v7033_v48 = vadd.f32 %v6063_v63, %v1665_v49  ;;  %v1668_v1 = vmul.f32 %v3965_v27, %v6061_v33 }
 0x391   : > { %v2542_v4 = vpop.permute.xlu1 %2541  ;;  %v2540_v53 = vpop.permute.xlu0 %2539  ;;  %v9607_v45 = vmax.f32 %v7015_v50, 0.0  ;;  %v9043_v49 = vmax.f32 %v7030_v6, 0.0 }
 0x393   : > { %2657 = vrot.lane.b32.xlu1 %v9035_v22, %s4102_s15  ;;  %2655 = vrot.lane.b32.xlu0 %v9034_v35, %s4102_s15  ;;  %v3176_v35 = vmax.f32 %v9602_v55, %v2538_v57  ;;  %v3175_v22 = vmax.f32 %v9603_v24, %v2536_v31  ;;  %v3966_v57 = vld [vmem:[%s4179_s14 + $0x310] sm:$0xff]  ;;  %v9610_v24 = vmax.f32 %v6370_v26, 0.0  ;;  %v3967_v26 = vld [vmem:[%s4179_s14 + $0x328] sm:$0xff] }
 0x394   : > { %v1667_v0 = vmul.f32 %v3966_v57, %v6061_v33 }
 0x395   : > { %v2546_v61 = vpop.permute.xlu1 %2545  ;;  %v2544_v17 = vpop.permute.xlu0 %2543 }
 0x396   : > { %v3180_v19 = vmax.f32 %v9604_v30, %v2546_v61  ;;  %v3179_v7 = vmax.f32 %v9605_v54, %v2544_v17  ;;  %v9042_v61 = vmax.f32 %v7033_v48, 0.0  ;;  %v7056_v17 = vadd.f32 %v6063_v63, %v1668_v1 }
 0x397   : > { %2661 = vrot.lane.b32.xlu1 %v9606_v37, %s4102_s15  ;;  %2659 = vrot.lane.b32.xlu0 %v9607_v45, %s4102_s15  ;;  %v7059_v37 = vadd.f32 %v6063_v63, %v1667_v0  ;;  %v3178_v30 = vmax.f32 %v9610_v24, %v2542_v4  ;;  %v9613_v45 = vmax.f32 %v6409_v51, 0.0  ;;  %v3968_v4 = vld [vmem:[%s4179_s14 + $0x320] sm:$0xff] }
 0x398   : > { %v3384_v31 = vmax.f32 %v3176_v35, %v3180_v19  ;;  %v3383_v13 = vmax.f32 %v3175_v22, %v3179_v7  ;;  %9608 = vst [vmem:[#allocation21_spill] sm:$0xff] %v7056_v17  ;;  %v9611_v19 = vmax.f32 %v6373_v59, 0.0  ;;  %v9612_v22 = vmax.f32 %v6406_v62, 0.0 }
 0x399   : > { %v2550_v54 = vpop.permute.xlu1 %2549  ;;  %v2548_v55 = vpop.permute.xlu0 %2547  ;;  %9609 = vst [vmem:[#allocation22_spill] sm:$0xff] %v7059_v37  ;;  %v1670_v59 = vmul.f32 %v3967_v26, %v6061_v33  ;;  %v1669_v62 = vmul.f32 %v3968_v4, %v6061_v33  ;;  %v9039_v0 = vmax.f32 %v7056_v17, 0.0  ;;  %v9624_v17 = vld [vmem:[#allocation9_spill] sm:$0xff] }
 0x39a   : > { %v3177_v35 = vmax.f32 %v9611_v19, %v2540_v53  ;;  %3498 = vst.msk [vmem:[%s6657_s20 + $0x88] sm:$0xff] %vm3479_vm3, %v3384_v31  ;;  %3497 = vst.msk [vmem:[%s6657_s20 + $0x80] sm:$0xff] %vm3479_vm3, %v3383_v13  ;;  %v3182_v7 = vmax.f32 %v9612_v22, %v2550_v54  ;;  %v3181_v27 = vmax.f32 %v9613_v45, %v2548_v55  ;;  %v9038_v31 = vmax.f32 %v7059_v37, 0.0  ;;  %v3969_v55 = vld [vmem:[%s4179_s14 + $0x338] sm:$0xf] }
 0x39b   : > { %2665 = vrot.lane.b32.xlu1 %v9043_v49, %s4102_s15  ;;  %2663 = vrot.lane.b32.xlu0 %v9042_v61, %s4102_s15  ;;  %v7086_v13 = vadd.f32 %v6063_v63, %v1670_v59  ;;  %v7089_v54 = vadd.f32 %v6063_v63, %v1669_v62  ;;  %v1672_v24 = vmul.f32 %v3969_v55, %v6061_v33  ;;  %v3971_v59 = vld [vmem:[%s4179_s14 + $0x348] sm:$0xff]  ;;  %v3972_v62 = vld [vmem:[%s4179_s14 + $0x340] sm:$0xff] }
 0x39c   : > { %v3386_v51 = vmax.f32 %v3178_v30, %v3182_v7  ;;  %v3385_v53 = vmax.f32 %v3177_v35, %v3181_v27  ;;  %v3970_v30 = vld [vmem:[%s4179_s14 + $0x330] sm:$0xff]  ;;  %v1674_v4 = vmul.f32 %v3971_v59, %v6061_v33  ;;  %v9620_v59 = vld [vmem:[#allocation158_spill] sm:$0xff] }
 0x39d   : > { %v2554_v1 = vpop.permute.xlu1 %2553  ;;  %v2552_v57 = vpop.permute.xlu0 %2551  ;;  %9614 = vst [vmem:[#allocation19_spill] sm:$0xff] %v7089_v54  ;;  %v1671_v19 = vmul.f32 %v3970_v30, %v6061_v33  ;;  %v9041_v7 = vmax.f32 %v7086_v13, 0.0  ;;  %v9040_v45 = vmax.f32 %v7089_v54, 0.0  ;;  %v7108_v27 = vadd.f32 %v6063_v63, %v1672_v24  ;;  %v9622_v49 = vld [vmem:[#allocation162_spill] sm:$0xff] }
 0x39e   : > { %3500 = vst.msk [vmem:[%s6657_s20 + $0x98] sm:$0xf] %vm3483_vm4, %v3386_v51  ;;  %v1673_v51 = vmul.f32 %v3972_v62, %v6061_v33  ;;  %v9623_v62 = vmax.f32 %v9622_v49, 0.0  ;;  %v9625_v54 = vmax.f32 %v9624_v17, 0.0 }
 0x39f   : > { %3499 = vst.msk [vmem:[%s6657_s20 + $0x90] sm:$0xff] %vm3479_vm3, %v3385_v53  ;;  %2669 = vrot.lane.b32.xlu1 %v9039_v0, %s4102_s15  ;;  %2667 = vrot.lane.b32.xlu0 %v9038_v31, %s4102_s15  ;;  %9615 = vst [vmem:[#allocation24_spill] sm:$0xff] %v7108_v27  ;;  %v7111_v26 = vadd.f32 %v6063_v63, %v1671_v19  ;;  %v7126_v19 = vadd.f32 %v6063_v63, %v1674_v4  ;;  %v9619_v0 = vmax.f32 %v6424_v3, 0.0  ;;  %v3973_v3 = vld [vmem:[%s4179_s14 + $0x358] sm:$0xf] }
 0x3a0   : > { %v7129_v31 = vadd.f32 %v6063_v63, %v1673_v51  ;;  %v9626_v30 = vmax.f32 %v7108_v27, 0.0 }
 0x3a1   : > { %v2558_v35 = vpop.permute.xlu1 %2557  ;;  %v2556_v22 = vpop.permute.xlu0 %2555  ;;  %9616 = vst [vmem:[#allocation25_spill] sm:$0xff] %v7111_v26  ;;  %9617 = vst [vmem:[#allocation26_spill] sm:$0xff] %v7126_v19  ;;  %v9627_v4 = vmax.f32 %v7111_v26, 0.0  ;;  %v9652_v26 = vld [vmem:[#allocation169_spill] sm:$0xff] }
 0x3a2   : > { %9618 = vst [vmem:[#allocation23_spill] sm:$0xff] %v7129_v31  ;;  %v9653_v27 = vmax.f32 %v9652_v26, 0.0 }
 0x3a3   : > { %2673 = vrot.lane.b32.xlu1 %v9041_v7, %s4102_s15  ;;  %2671 = vrot.lane.b32.xlu0 %v9040_v45, %s4102_s15  ;;  %v3184_v45 = vmax.f32 %v9619_v0, %v2554_v1  ;;  %v9621_v7 = vmax.f32 %v9620_v59, 0.0  ;;  %v1676_v1 = vmul.f32 %v3973_v3, %v6061_v33  ;;  %v9630_v59 = vld [vmem:[#allocation165_spill] sm:$0xff]  ;;  %v9632_v3 = vld [vmem:[#allocation159_spill] sm:$0xff] }
 0x3a5   : > { %v2562_v53 = vpop.permute.xlu1 %2561  ;;  %v2560_v55 = vpop.permute.xlu0 %2559  ;;  %v3183_v61 = vmax.f32 %v9621_v7, %v2552_v57  ;;  %v3974_v57 = vld [vmem:[%s4179_s14 + $0x350] sm:$0xff] }
 0x3a6   : > { %v3188_v37 = vmax.f32 %v9623_v62, %v2562_v53  ;;  %v3187_v24 = vmax.f32 %v9625_v54, %v2560_v55  ;;  %v1675_v49 = vmul.f32 %v3974_v57, %v6061_v33  ;;  %v7152_v55 = vadd.f32 %v6063_v63, %v1676_v1  ;;  %v9636_v53 = vld [vmem:[#allocation170_spill] sm:$0xff] }
 0x3a7   : > { %2677 = vrot.lane.b32.xlu1 %v9626_v30, %s4102_s15  ;;  %2675 = vrot.lane.b32.xlu0 %v9627_v4, %s4102_s15  ;;  %v9631_v62 = vmax.f32 %v9630_v59, 0.0  ;;  %v9637_v51 = vmax.f32 %v9636_v53, 0.0 }
 0x3a8   : > { %v3388_v0 = vmax.f32 %v3184_v45, %v3188_v37  ;;  %v3387_v17 = vmax.f32 %v3183_v61, %v3187_v24  ;;  %9628 = vst [vmem:[#allocation28_spill] sm:$0xff] %v7152_v55  ;;  %v7155_v30 = vadd.f32 %v6063_v63, %v1675_v49  ;;  %v9633_v37 = vmax.f32 %v9632_v3, 0.0  ;;  %v9634_v61 = vld [vmem:[#allocation10_spill] sm:$0xff] }
 0x3a9   : > { %v2566_v54 = vpop.permute.xlu1 %2565  ;;  %v2564_v7 = vpop.permute.xlu0 %2563  ;;  %v3186_v4 = vmax.f32 %v9631_v62, %v2558_v35  ;;  %v9635_v24 = vmax.f32 %v9634_v61, 0.0  ;;  %v9638_v49 = vmax.f32 %v7126_v19, 0.0  ;;  %v9639_v35 = vmax.f32 %v7129_v31, 0.0  ;;  %v9650_v31 = vld [vmem:[#allocation168_spill] sm:$0xff] }
 0x3aa   : > { %9629 = vst [vmem:[#allocation29_spill] sm:$0xff] %v7155_v30  ;;  %v3185_v45 = vmax.f32 %v9633_v37, %v2556_v22  ;;  %3502 = vst.msk [vmem:[%s6657_s20 + $0xa8] sm:$0xff] %vm3479_vm3, %v3388_v0  ;;  %v3189_v1 = vmax.f32 %v9637_v51, %v2564_v7  ;;  %v3975_v22 = vld [vmem:[%s4179_s14 + $0x368] sm:$0xff]  ;;  %v9048_v62 = vmax.f32 %v7152_v55, 0.0  ;;  %v9047_v3 = vmax.f32 %v7155_v30, 0.0 }
 0x3ab   : > { %3501 = vst.msk [vmem:[%s6657_s20 + $0xa0] sm:$0xff] %vm3479_vm3, %v3387_v17  ;;  %v3190_v57 = vmax.f32 %v9635_v24, %v2566_v54  ;;  %2681 = vrot.lane.b32.xlu1 %v9638_v49, %s4102_s15  ;;  %2679 = vrot.lane.b32.xlu0 %v9639_v35, %s4102_s15  ;;  %v1678_v0 = vmul.f32 %v3975_v22, %v6061_v33  ;;  %v3976_v17 = vld [vmem:[%s4179_s14 + $0x360] sm:$0xff] }
 0x3ac   : > { %v1677_v54 = vmul.f32 %v3976_v17, %v6061_v33  ;;  %v3389_v59 = vmax.f32 %v3185_v45, %v3189_v1  ;;  %v3978_v24 = vld [vmem:[%s4179_s14 + $0x370] sm:$0xff] }
 0x3ad   : > { %v3390_v53 = vmax.f32 %v3186_v4, %v3190_v57  ;;  %v2570_v7 = vpop.permute.xlu1 %2569  ;;  %v2568_v51 = vpop.permute.xlu0 %2567  ;;  %v7182_v37 = vadd.f32 %v6063_v63, %v1678_v0  ;;  %v3977_v4 = vld [vmem:[%s4179_s14 + $0x378] sm:$0xf]  ;;  %v1679_v57 = vmul.f32 %v3978_v24, %v6061_v33 }
 0x3ae   : > { %v7185_v61 = vadd.f32 %v6063_v63, %v1677_v54  ;;  %3503 = vst.msk [vmem:[%s6657_s20 + $0xb0] sm:$0xff] %vm3479_vm3, %v3389_v59  ;;  %v1680_v45 = vmul.f32 %v3977_v4, %v6061_v33  ;;  %v3979_v54 = vld [vmem:[%s4179_s14 + $0x388] sm:$0xff]  ;;  %v3980_v59 = vld [vmem:[%s4179_s14 + $0x380] sm:$0xff] }
 0x3af   : > { %9640 = vst [vmem:[#allocation30_spill] sm:$0xff] %v7182_v37  ;;  %3504 = vst.msk [vmem:[%s6657_s20 + $0xb8] sm:$0xf] %vm3483_vm4, %v3390_v53  ;;  %2685 = vrot.lane.b32.xlu1 %v9048_v62, %s4102_s15  ;;  %2683 = vrot.lane.b32.xlu0 %v9047_v3, %s4102_s15  ;;  %v9049_v35 = vmax.f32 %v7182_v37, 0.0  ;;  %v7207_v17 = vadd.f32 %v6063_v63, %v1679_v57  ;;  %v1682_v53 = vmul.f32 %v3979_v54, %v6061_v33  ;;  %v9648_v54 = vld [vmem:[#allocation12_spill] sm:$0xff] }
 0x3b0   : > { %9641 = vst [vmem:[#allocation27_spill] sm:$0xff] %v7185_v61  ;;  %v9050_v22 = vmax.f32 %v7185_v61, 0.0  ;;  %v7204_v0 = vadd.f32 %v6063_v63, %v1680_v45  ;;  %v1681_v4 = vmul.f32 %v3980_v59, %v6061_v33  ;;  %v9649_v61 = vmax.f32 %v9648_v54, 0.0  ;;  %v9658_v54 = vld [vmem:[#allocation167_spill] sm:$0xff] }
 0x3b1   : > { %v2574_v1 = vpop.permute.xlu1 %2573  ;;  %v2572_v49 = vpop.permute.xlu0 %2571  ;;  %9643 = vst [vmem:[#allocation33_spill] sm:$0xff] %v7207_v17  ;;  %v7222_v62 = vadd.f32 %v6063_v63, %v1682_v53  ;;  %v9651_v59 = vmax.f32 %v9650_v31, 0.0  ;;  %v9655_v53 = vmax.f32 %v7207_v17, 0.0  ;;  %v9676_v17 = vld [vmem:[#allocation20_spill] sm:$0xff] }
 0x3b2   : > { %9642 = vst [vmem:[#allocation32_spill] sm:$0xff] %v7204_v0  ;;  %v3191_v37 = vmax.f32 %v9649_v61, %v2568_v51  ;;  %v9654_v3 = vmax.f32 %v7204_v0, 0.0  ;;  %v3982_v51 = vld [vmem:[%s4179_s14 + $0x390] sm:$0xff]  ;;  %v9677_v0 = vmax.f32 %v9676_v17, 0.0 }
 0x3b3   : > { %2689 = vrot.lane.b32.xlu1 %v9049_v35, %s4102_s15  ;;  %2687 = vrot.lane.b32.xlu0 %v9050_v22, %s4102_s15  ;;  %9644 = vst [vmem:[#allocation34_spill] sm:$0xff] %v7222_v62  ;;  %v7225_v35 = vadd.f32 %v6063_v63, %v1681_v4  ;;  %v9646_v22 = vld [vmem:[#allocation7_spill] sm:$0xff]  ;;  %v1683_v31 = vmul.f32 %v3982_v51, %v6061_v33 }
 0x3b4   : > { %v9647_v30 = vmax.f32 %v9646_v22, 0.0  ;;  %v9664_v4 = vld [vmem:[#allocation11_spill] sm:$0xff] }
 0x3b5   : > { %v2578_v45 = vpop.permute.xlu1 %2577  ;;  %v2576_v24 = vpop.permute.xlu0 %2575  ;;  %9645 = vst [vmem:[#allocation31_spill] sm:$0xff] %v7225_v35 }
 0x3b6   : > { %v3192_v55 = vmax.f32 %v9647_v30, %v2570_v7  ;;  %v3196_v19 = vmax.f32 %v9651_v59, %v2578_v45  ;;  %v3195_v57 = vmax.f32 %v9653_v27, %v2576_v24  ;;  %v3981_v30 = vld [vmem:[%s4179_s14 + $0x398] sm:$0xf]  ;;  %v7251_v24 = vadd.f32 %v6063_v63, %v1683_v31 }
 0x3b7   : > { %2693 = vrot.lane.b32.xlu1 %v9654_v3, %s4102_s15  ;;  %2691 = vrot.lane.b32.xlu0 %v9655_v53, %s4102_s15  ;;  %v1684_v7 = vmul.f32 %v3981_v30, %v6061_v33  ;;  %v9659_v59 = vmax.f32 %v9658_v54, 0.0  ;;  %v9660_v30 = vld [vmem:[#allocation13_spill] sm:$0xff]  ;;  %v9665_v3 = vmax.f32 %v9664_v4, 0.0  ;;  %v9666_v31 = vmax.f32 %v7222_v62, 0.0 }
 0x3b8   : > { %v3392_v61 = vmax.f32 %v3192_v55, %v3196_v19  ;;  %v3391_v26 = vmax.f32 %v3191_v37, %v3195_v57  ;;  %9657 = vst [vmem:[#allocation37_spill] sm:$0xff] %v7251_v24  ;;  %v9661_v19 = vmax.f32 %v9660_v30, 0.0  ;;  %v9662_v37 = vld [vmem:[#allocation14_spill] sm:$0xff]  ;;  %v9059_v30 = vmax.f32 %v7251_v24, 0.0 }
 0x3b9   : > { %v2582_v27 = vpop.permute.xlu1 %2581  ;;  %v2580_v22 = vpop.permute.xlu0 %2579  ;;  %v7248_v45 = vadd.f32 %v6063_v63, %v1684_v7  ;;  %v3194_v53 = vmax.f32 %v9659_v59, %v2574_v1  ;;  %v9663_v57 = vmax.f32 %v9662_v37, 0.0  ;;  %v9667_v1 = vmax.f32 %v7225_v35, 0.0  ;;  %v9674_v35 = vld [vmem:[#allocation15_spill] sm:$0xff] }
 0x3ba   : > { %v3193_v55 = vmax.f32 %v9661_v19, %v2572_v49  ;;  %3506 = vst.msk [vmem:[%s6657_s20 + $0xc8] sm:$0xff] %vm3479_vm3, %v3392_v61  ;;  %3505 = vst.msk [vmem:[%s6657_s20 + $0xc0] sm:$0xff] %vm3479_vm3, %v3391_v26  ;;  %v3197_v7 = vmax.f32 %v9665_v3, %v2580_v22  ;;  %v3983_v49 = vld [vmem:[%s4179_s14 + $0x3a8] sm:$0xff]  ;;  %v3984_v26 = vld [vmem:[%s4179_s14 + $0x3a0] sm:$0xff] }
 0x3bb   : > { %9656 = vst [vmem:[#allocation36_spill] sm:$0xff] %v7248_v45  ;;  %v3198_v51 = vmax.f32 %v9663_v57, %v2582_v27  ;;  %2697 = vrot.lane.b32.xlu1 %v9666_v31, %s4102_s15  ;;  %2695 = vrot.lane.b32.xlu0 %v9667_v1, %s4102_s15  ;;  %v1686_v61 = vmul.f32 %v3983_v49, %v6061_v33  ;;  %v9060_v59 = vmax.f32 %v7248_v45, 0.0  ;;  %v3986_v57 = vld [vmem:[%s4179_s14 + $0x3b0] sm:$0xff] }
 0x3bc   : > { %v1685_v27 = vmul.f32 %v3984_v26, %v6061_v33  ;;  %v3393_v54 = vmax.f32 %v3193_v55, %v3197_v7 }
 0x3bd   : > { %v3394_v4 = vmax.f32 %v3194_v53, %v3198_v51  ;;  %v2586_v22 = vpop.permute.xlu1 %2585  ;;  %v2584_v3 = vpop.permute.xlu0 %2583  ;;  %v7278_v19 = vadd.f32 %v6063_v63, %v1686_v61  ;;  %v3985_v53 = vld [vmem:[%s4179_s14 + $0x3b8] sm:$0xf]  ;;  %v1687_v51 = vmul.f32 %v3986_v57, %v6061_v33 }
 0x3be   : > { %v7281_v37 = vadd.f32 %v6063_v63, %v1685_v27  ;;  %3507 = vst.msk [vmem:[%s6657_s20 + $0xd0] sm:$0xff] %vm3479_vm3, %v3393_v54  ;;  %v1688_v55 = vmul.f32 %v3985_v53, %v6061_v33  ;;  %v3987_v27 = vld [vmem:[%s4179_s14 + $0x3c8] sm:$0xff]  ;;  %v3988_v54 = vld [vmem:[%s4179_s14 + $0x3c0] sm:$0xff] }
 0x3bf   : > { %9668 = vst [vmem:[#allocation38_spill] sm:$0xff] %v7278_v19  ;;  %3508 = vst.msk [vmem:[%s6657_s20 + $0xd8] sm:$0xf] %vm3483_vm4, %v3394_v4  ;;  %2701 = vrot.lane.b32.xlu1 %v9060_v59, %s4102_s15  ;;  %2699 = vrot.lane.b32.xlu0 %v9059_v30, %s4102_s15  ;;  %v9061_v1 = vmax.f32 %v7278_v19, 0.0  ;;  %v7303_v26 = vadd.f32 %v6063_v63, %v1687_v51  ;;  %v1690_v4 = vmul.f32 %v3987_v27, %v6061_v33  ;;  %v9672_v27 = vld [vmem:[#allocation171_spill] sm:$0xff] }
 0x3c0   : > { %9669 = vst [vmem:[#allocation35_spill] sm:$0xff] %v7281_v37  ;;  %v9062_v49 = vmax.f32 %v7281_v37, 0.0  ;;  %v7300_v61 = vadd.f32 %v6063_v63, %v1688_v55  ;;  %v1689_v53 = vmul.f32 %v3988_v54, %v6061_v33  ;;  %v9673_v37 = vmax.f32 %v9672_v27, 0.0  ;;  %v9682_v27 = vld [vmem:[#allocation17_spill] sm:$0xff] }
 0x3c1   : > { %v2590_v7 = vpop.permute.xlu1 %2589  ;;  %v2588_v31 = vpop.permute.xlu0 %2587  ;;  %v7318_v59 = vadd.f32 %v6063_v63, %v1690_v4  ;;  %v9675_v54 = vmax.f32 %v9674_v35, 0.0  ;;  %v9679_v4 = vmax.f32 %v7303_v26, 0.0 }
 0x3c2   : > { %v3199_v19 = vmax.f32 %v9673_v37, %v2584_v3  ;;  %v9678_v30 = vmax.f32 %v7300_v61, 0.0  ;;  %v3990_v3 = vld [vmem:[%s4179_s14 + $0x3d0] sm:$0xff] }
 0x3c3   : > { %2705 = vrot.lane.b32.xlu1 %v9061_v1, %s4102_s15  ;;  %2703 = vrot.lane.b32.xlu0 %v9062_v49, %s4102_s15  ;;  %v7321_v1 = vadd.f32 %v6063_v63, %v1689_v53  ;;  %v9670_v49 = vld [vmem:[#allocation16_spill] sm:$0xff]  ;;  %v1691_v35 = vmul.f32 %v3990_v3, %v6061_v33  ;;  %v9687_v3 = vmax.f32 %v6625_v5, 0.0 }
 0x3c4   : > { %v9671_v24 = vmax.f32 %v9670_v49, 0.0 }
 0x3c5   : > { %v2594_v55 = vpop.permute.xlu1 %2593  ;;  %v2592_v57 = vpop.permute.xlu0 %2591  ;;  %v9075_v53 = vmax.f32 %v7321_v1, 0.0 }
 0x3c6   : > { %v3200_v45 = vmax.f32 %v9671_v24, %v2586_v22  ;;  %v3204_v62 = vmax.f32 %v9675_v54, %v2594_v55  ;;  %v3203_v51 = vmax.f32 %v9677_v0, %v2592_v57  ;;  %v3989_v24 = vld [vmem:[%s4179_s14 + $0x3d8] sm:$0xf]  ;;  %v7347_v57 = vadd.f32 %v6063_v63, %v1691_v35  ;;  %v3992_v35 = vld [vmem:[%s4179_s14 + $0x3e0] sm:$0xff] }
 0x3c7   : > { %2709 = vrot.lane.b32.xlu1 %v9678_v30, %s4102_s15  ;;  %2707 = vrot.lane.b32.xlu0 %v9679_v4, %s4102_s15  ;;  %v1692_v22 = vmul.f32 %v3989_v24, %v6061_v33  ;;  %v9076_v30 = vmax.f32 %v7318_v59, 0.0  ;;  %v9683_v54 = vmax.f32 %v9682_v27, 0.0  ;;  %v9684_v24 = vld [vmem:[#allocation18_spill] sm:$0xff] }
 0x3c8   : > { %v3396_v37 = vmax.f32 %v3200_v45, %v3204_v62  ;;  %v3395_v17 = vmax.f32 %v3199_v19, %v3203_v51  ;;  %9681 = vst [vmem:[#allocation41_spill] sm:$0xff] %v7347_v57  ;;  %v9685_v62 = vmax.f32 %v9684_v24, 0.0  ;;  %v9686_v19 = vmax.f32 %v6622_v32, 0.0 }
 0x3c9   : > { %v2598_v0 = vpop.permute.xlu1 %2597  ;;  %v2596_v49 = vpop.permute.xlu0 %2595  ;;  %v7344_v55 = vadd.f32 %v6063_v63, %v1692_v22  ;;  %v3202_v4 = vmax.f32 %v9683_v54, %v2590_v7  ;;  %v3991_v7 = vld [vmem:[%s4179_s14 + $0x3e8] sm:$0xff]  ;;  %v1693_v32 = vmul.f32 %v3992_v35, %v6061_v33  ;;  %v9071_v27 = vmax.f32 %v7347_v57, 0.0 }
 0x3ca   : > { %v3201_v45 = vmax.f32 %v9685_v62, %v2588_v31  ;;  %3510 = vst.msk [vmem:[%s6657_s20 + $0xe8] sm:$0xff] %vm3479_vm3, %v3396_v37  ;;  %3509 = vst.msk [vmem:[%s6657_s20 + $0xe0] sm:$0xff] %vm3479_vm3, %v3395_v17  ;;  %v3206_v51 = vmax.f32 %v9686_v19, %v2598_v0  ;;  %v3205_v22 = vmax.f32 %v9687_v3, %v2596_v49 }
 0x3cb   : > { %9680 = vst [vmem:[#allocation40_spill] sm:$0xff] %v7344_v55  ;;  %2713 = vrot.lane.b32.xlu1 %v9076_v30, %s4102_s15  ;;  %2711 = vrot.lane.b32.xlu0 %v9075_v53, %s4102_s15  ;;  %v1694_v31 = vmul.f32 %v3991_v7, %v6061_v33  ;;  %v9072_v49 = vmax.f32 %v7344_v55, 0.0  ;;  %v7377_v24 = vadd.f32 %v6063_v63, %v1693_v32  ;;  %v3995_v32 = vld [vmem:[%s4179_s14 + $0x408] sm:$0xff]  ;;  %v9691_v55 = vmax.f32 %v6705_v46, 0.0 }
 0x3cc   : > { %v3398_v5 = vmax.f32 %v3202_v4, %v3206_v51  ;;  %v3397_v37 = vmax.f32 %v3201_v45, %v3205_v22  ;;  %v3993_v4 = vld [vmem:[%s4179_s14 + $0x3f8] sm:$0xf]  ;;  %v3994_v45 = vld [vmem:[%s4179_s14 + $0x3f0] sm:$0xff] }
 0x3cd   : > { %v2602_v17 = vpop.permute.xlu1 %2601  ;;  %v2600_v0 = vpop.permute.xlu0 %2599  ;;  %v7374_v54 = vadd.f32 %v6063_v63, %v1694_v31  ;;  %v1696_v62 = vmul.f32 %v3993_v4, %v6061_v33  ;;  %v1695_v19 = vmul.f32 %v3994_v45, %v6061_v33  ;;  %v9074_v7 = vmax.f32 %v7377_v24, 0.0 }
 0x3ce   : > { %3512 = vst.msk [vmem:[%s6657_s20 + $0xf8] sm:$0xf] %vm3483_vm4, %v3398_v5  ;;  %v1698_v5 = vmul.f32 %v3995_v32, %v6061_v33  ;;  %v9689_v32 = vmax.f32 %v6644_v20, 0.0 }
 0x3cf   : > { %3511 = vst.msk [vmem:[%s6657_s20 + $0xf0] sm:$0xff] %vm3479_vm3, %v3397_v37  ;;  %2717 = vrot.lane.b32.xlu1 %v9072_v49, %s4102_s15  ;;  %2715 = vrot.lane.b32.xlu0 %v9071_v27, %s4102_s15  ;;  %v9073_v22 = vmax.f32 %v7374_v54, 0.0  ;;  %v7396_v31 = vadd.f32 %v6063_v63, %v1696_v62  ;;  %v7399_v35 = vadd.f32 %v6063_v63, %v1695_v19  ;;  %v3996_v37 = vld [vmem:[%s4179_s14 + $0x400] sm:$0xff] }
 0x3d0   : > { %v1697_v4 = vmul.f32 %v3996_v37, %v6061_v33  ;;  %v7414_v49 = vadd.f32 %v6063_v63, %v1698_v5  ;;  %v3207_v30 = vmax.f32 %v9689_v32, %v2600_v0  ;;  %v9690_v37 = vmax.f32 %v6702_v34, 0.0 }
 0x3d1   : > { %v2606_v51 = vpop.permute.xlu1 %2605  ;;  %v2604_v3 = vpop.permute.xlu0 %2603  ;;  %v9692_v27 = vmax.f32 %v7396_v31, 0.0  ;;  %v9693_v5 = vmax.f32 %v7399_v35, 0.0  ;;  %v9694_v32 = vmax.f32 %v6672_v2, 0.0  ;;  %v3999_v2 = vld [vmem:[%s4179_s14 + $0x428] sm:$0xff] }
 0x3d3   : > { %2721 = vrot.lane.b32.xlu1 %v9073_v22, %s4102_s15  ;;  %2719 = vrot.lane.b32.xlu0 %v9074_v7, %s4102_s15  ;;  %v7417_v22 = vadd.f32 %v6063_v63, %v1697_v4  ;;  %v9688_v7 = vmax.f32 %v6641_v60, 0.0  ;;  %v3997_v60 = vld [vmem:[%s4179_s14 + $0x418] sm:$0xf] }
 0x3d4   : > { %v1700_v20 = vmul.f32 %v3997_v60, %v6061_v33 }
 0x3d5   : > { %v2610_v62 = vpop.permute.xlu1 %2609  ;;  %v2608_v45 = vpop.permute.xlu0 %2607  ;;  %v3208_v53 = vmax.f32 %v9688_v7, %v2602_v17  ;;  %v3998_v17 = vld [vmem:[%s4179_s14 + $0x410] sm:$0xff]  ;;  %v9083_v4 = vmax.f32 %v7417_v22, 0.0 }
 0x3d6   : > { %v3212_v57 = vmax.f32 %v9690_v37, %v2610_v62  ;;  %v3211_v19 = vmax.f32 %v9691_v55, %v2608_v45  ;;  %v1699_v34 = vmul.f32 %v3998_v17, %v6061_v33  ;;  %v7440_v62 = vadd.f32 %v6063_v63, %v1700_v20 }
 0x3d7   : > { %2725 = vrot.lane.b32.xlu1 %v9692_v27, %s4102_s15  ;;  %2723 = vrot.lane.b32.xlu0 %v9693_v5, %s4102_s15  ;;  %v9084_v27 = vmax.f32 %v7414_v49, 0.0  ;;  %v3210_v37 = vmax.f32 %v9694_v32, %v2606_v51  ;;  %v9697_v5 = vmax.f32 %v6727_v29, 0.0  ;;  %v4000_v51 = vld [vmem:[%s4179_s14 + $0x420] sm:$0xff] }
 0x3d8   : > { %v3400_v0 = vmax.f32 %v3208_v53, %v3212_v57  ;;  %v3399_v46 = vmax.f32 %v3207_v30, %v3211_v19  ;;  %v7443_v45 = vadd.f32 %v6063_v63, %v1699_v34  ;;  %v9695_v53 = vmax.f32 %v6675_v47, 0.0 }
 0x3d9   : > { %v2614_v55 = vpop.permute.xlu1 %2613  ;;  %v2612_v7 = vpop.permute.xlu0 %2611  ;;  %v9696_v30 = vmax.f32 %v6724_v15, 0.0  ;;  %v1702_v47 = vmul.f32 %v3999_v2, %v6061_v33  ;;  %v1701_v15 = vmul.f32 %v4000_v51, %v6061_v33  ;;  %v9080_v34 = vmax.f32 %v7440_v62, 0.0 }
 0x3da   : > { %v3209_v57 = vmax.f32 %v9695_v53, %v2604_v3  ;;  %3514 = vst.msk [vmem:[%s6657_s20 + $0x108] sm:$0xff] %vm3479_vm3, %v3400_v0  ;;  %3513 = vst.msk [vmem:[%s6657_s20 + $0x100] sm:$0xff] %vm3479_vm3, %v3399_v46  ;;  %v3213_v60 = vmax.f32 %v9697_v5, %v2612_v7  ;;  %v9079_v0 = vmax.f32 %v7443_v45, 0.0  ;;  %v4001_v7 = vld [vmem:[%s4179_s14 + $0x438] sm:$0xf] }
 0x3db   : > { %v3214_v19 = vmax.f32 %v9696_v30, %v2614_v55  ;;  %2729 = vrot.lane.b32.xlu1 %v9084_v27, %s4102_s15  ;;  %2727 = vrot.lane.b32.xlu0 %v9083_v4, %s4102_s15  ;;  %v7470_v46 = vadd.f32 %v6063_v63, %v1702_v47  ;;  %v7473_v55 = vadd.f32 %v6063_v63, %v1701_v15  ;;  %v4003_v47 = vld [vmem:[%s4179_s14 + $0x448] sm:$0xff]  ;;  %v4004_v15 = vld [vmem:[%s4179_s14 + $0x440] sm:$0xff]  ;;  %v9701_v27 = vmax.f32 %v6801_v39, 0.0 }
 0x3dc   : > { %v3401_v3 = vmax.f32 %v3209_v57, %v3213_v60  ;;  %v1704_v32 = vmul.f32 %v4001_v7, %v6061_v33  ;;  %v1706_v51 = vmul.f32 %v4003_v47, %v6061_v33  ;;  %v9699_v47 = vmax.f32 %v6745_v28, 0.0 }
 0x3dd   : > { %v3402_v29 = vmax.f32 %v3210_v37, %v3214_v19  ;;  %v2618_v20 = vpop.permute.xlu1 %2617  ;;  %v2616_v17 = vpop.permute.xlu0 %2615  ;;  %v4002_v37 = vld [vmem:[%s4179_s14 + $0x430] sm:$0xff]  ;;  %v9082_v19 = vmax.f32 %v7470_v46, 0.0  ;;  %v9081_v5 = vmax.f32 %v7473_v55, 0.0 }
 0x3de   : > { %3515 = vst.msk [vmem:[%s6657_s20 + $0x110] sm:$0xff] %vm3479_vm3, %v3401_v3  ;;  %v1703_v53 = vmul.f32 %v4002_v37, %v6061_v33  ;;  %v7492_v60 = vadd.f32 %v6063_v63, %v1704_v32 }
 0x3df   : > { %3516 = vst.msk [vmem:[%s6657_s20 + $0x118] sm:$0xf] %vm3483_vm4, %v3402_v29  ;;  %2733 = vrot.lane.b32.xlu1 %v9080_v34, %s4102_s15  ;;  %2731 = vrot.lane.b32.xlu0 %v9079_v0, %s4102_s15  ;;  %v1705_v29 = vmul.f32 %v4004_v15, %v6061_v33  ;;  %v9698_v34 = vmax.f32 %v6742_v16, 0.0  ;;  %v9700_v15 = vmax.f32 %v6798_v36, 0.0  ;;  %v4005_v16 = vld [vmem:[%s4179_s14 + $0x458] sm:$0xf] }
 0x3e0   : > { %v7495_v2 = vadd.f32 %v6063_v63, %v1703_v53  ;;  %v7510_v53 = vadd.f32 %v6063_v63, %v1706_v51  ;;  %v9702_v37 = vmax.f32 %v7492_v60, 0.0  ;;  %v1708_v28 = vmul.f32 %v4005_v16, %v6061_v33 }
 0x3e1   : > { %v2622_v57 = vpop.permute.xlu1 %2621  ;;  %v2620_v30 = vpop.permute.xlu0 %2619  ;;  %v7513_v0 = vadd.f32 %v6063_v63, %v1705_v29 }
 0x3e2   : > { %v9703_v51 = vmax.f32 %v7495_v2, 0.0  ;;  %v9090_v29 = vmax.f32 %v7510_v53, 0.0 }
 0x3e3   : > { %2737 = vrot.lane.b32.xlu1 %v9082_v19, %s4102_s15  ;;  %2735 = vrot.lane.b32.xlu0 %v9081_v5, %s4102_s15  ;;  %v3216_v5 = vmax.f32 %v9698_v34, %v2618_v20  ;;  %v3215_v19 = vmax.f32 %v9699_v47, %v2616_v17  ;;  %v4006_v20 = vld [vmem:[%s4179_s14 + $0x450] sm:$0xff]  ;;  %v9704_v47 = vmax.f32 %v6768_v8, 0.0  ;;  %v4007_v8 = vld [vmem:[%s4179_s14 + $0x468] sm:$0xff] }
 0x3e4   : > { %v1707_v36 = vmul.f32 %v4006_v20, %v6061_v33 }
 0x3e5   : > { %v2626_v3 = vpop.permute.xlu1 %2625  ;;  %v2624_v7 = vpop.permute.xlu0 %2623 }
 0x3e6   : > { %v3220_v4 = vmax.f32 %v9700_v15, %v2626_v3  ;;  %v3219_v32 = vmax.f32 %v9701_v27, %v2624_v7  ;;  %v9089_v3 = vmax.f32 %v7513_v0, 0.0  ;;  %v7536_v7 = vadd.f32 %v6063_v63, %v1708_v28 }
 0x3e7   : > { %2741 = vrot.lane.b32.xlu1 %v9702_v37, %s4102_s15  ;;  %2739 = vrot.lane.b32.xlu0 %v9703_v51, %s4102_s15  ;;  %v7539_v37 = vadd.f32 %v6063_v63, %v1707_v36  ;;  %v3218_v15 = vmax.f32 %v9704_v47, %v2622_v57  ;;  %v9707_v51 = vmax.f32 %v6823_v56, 0.0  ;;  %v4008_v57 = vld [vmem:[%s4179_s14 + $0x460] sm:$0xff] }
 0x3e8   : > { %v3404_v17 = vmax.f32 %v3216_v5, %v3220_v4  ;;  %v3403_v39 = vmax.f32 %v3215_v19, %v3219_v32  ;;  %v9705_v4 = vmax.f32 %v6771_v38, 0.0  ;;  %v9706_v19 = vmax.f32 %v6820_v10, 0.0 }
 0x3e9   : > { %v2630_v27 = vpop.permute.xlu1 %2629  ;;  %v2628_v34 = vpop.permute.xlu0 %2627  ;;  %v1710_v38 = vmul.f32 %v4007_v8, %v6061_v33  ;;  %v1709_v10 = vmul.f32 %v4008_v57, %v6061_v33  ;;  %v9086_v36 = vmax.f32 %v7536_v7, 0.0 }
 0x3ea   : > { %v3217_v5 = vmax.f32 %v9705_v4, %v2620_v30  ;;  %3518 = vst.msk [vmem:[%s6657_s20 + $0x128] sm:$0xff] %vm3479_vm3, %v3404_v17  ;;  %3517 = vst.msk [vmem:[%s6657_s20 + $0x120] sm:$0xff] %vm3479_vm3, %v3403_v39  ;;  %v3222_v32 = vmax.f32 %v9706_v19, %v2630_v27  ;;  %v3221_v16 = vmax.f32 %v9707_v51, %v2628_v34  ;;  %v9085_v17 = vmax.f32 %v7539_v37, 0.0  ;;  %v4009_v34 = vld [vmem:[%s4179_s14 + $0x478] sm:$0xf] }
 0x3eb   : > { %2745 = vrot.lane.b32.xlu1 %v9090_v29, %s4102_s15  ;;  %2743 = vrot.lane.b32.xlu0 %v9089_v3, %s4102_s15  ;;  %v7566_v39 = vadd.f32 %v6063_v63, %v1710_v38  ;;  %v7569_v27 = vadd.f32 %v6063_v63, %v1709_v10  ;;  %v1712_v47 = vmul.f32 %v4009_v34, %v6061_v33  ;;  %v4011_v38 = vld [vmem:[%s4179_s14 + $0x488] sm:$0xff]  ;;  %v4012_v10 = vld [vmem:[%s4179_s14 + $0x480] sm:$0xff]  ;;  %v9711_v29 = vmax.f32 %v6897_v43, 0.0 }
 0x3ec   : > { %v3406_v56 = vmax.f32 %v3218_v15, %v3222_v32  ;;  %v3405_v30 = vmax.f32 %v3217_v5, %v3221_v16  ;;  %v4010_v15 = vld [vmem:[%s4179_s14 + $0x470] sm:$0xff]  ;;  %v1714_v57 = vmul.f32 %v4011_v38, %v6061_v33  ;;  %v9709_v38 = vmax.f32 %v6841_v12, 0.0 }
 0x3ed   : > { %v2634_v28 = vpop.permute.xlu1 %2633  ;;  %v2632_v20 = vpop.permute.xlu0 %2631  ;;  %v1711_v4 = vmul.f32 %v4010_v15, %v6061_v33  ;;  %v9088_v32 = vmax.f32 %v7566_v39, 0.0  ;;  %v9087_v51 = vmax.f32 %v7569_v27, 0.0  ;;  %v7588_v16 = vadd.f32 %v6063_v63, %v1712_v47 }
 0x3ee   : > { %3520 = vst.msk [vmem:[%s6657_s20 + $0x138] sm:$0xf] %vm3483_vm4, %v3406_v56  ;;  %v1713_v56 = vmul.f32 %v4012_v10, %v6061_v33  ;;  %v9710_v10 = vmax.f32 %v6894_v58, 0.0 }
 0x3ef   : > { %3519 = vst.msk [vmem:[%s6657_s20 + $0x130] sm:$0xff] %vm3479_vm3, %v3405_v30  ;;  %2749 = vrot.lane.b32.xlu1 %v9086_v36, %s4102_s15  ;;  %2747 = vrot.lane.b32.xlu0 %v9085_v17, %s4102_s15  ;;  %v7591_v8 = vadd.f32 %v6063_v63, %v1711_v4  ;;  %v7606_v4 = vadd.f32 %v6063_v63, %v1714_v57  ;;  %v9708_v36 = vmax.f32 %v6838_v52, 0.0  ;;  %v9712_v15 = vmax.f32 %v7588_v16, 0.0  ;;  %v4013_v52 = vld [vmem:[%s4179_s14 + $0x498] sm:$0xf] }
 0x3f0   : > { %v7609_v17 = vadd.f32 %v6063_v63, %v1713_v56  ;;  %v1716_v12 = vmul.f32 %v4013_v52, %v6061_v33 }
 0x3f1   : > { %v2638_v5 = vpop.permute.xlu1 %2637  ;;  %v2636_v19 = vpop.permute.xlu0 %2635  ;;  %v9713_v57 = vmax.f32 %v7591_v8, 0.0  ;;  %v9096_v56 = vmax.f32 %v7606_v4, 0.0 }
 0x3f3   : > { %2753 = vrot.lane.b32.xlu1 %v9088_v32, %s4102_s15  ;;  %2751 = vrot.lane.b32.xlu0 %v9087_v51, %s4102_s15  ;;  %v3224_v51 = vmax.f32 %v9708_v36, %v2634_v28  ;;  %v3223_v32 = vmax.f32 %v9709_v38, %v2632_v20  ;;  %v4014_v28 = vld [vmem:[%s4179_s14 + $0x490] sm:$0xff]  ;;  %v9714_v38 = vmax.f32 %v6864_v18, 0.0  ;;  %v4015_v18 = vld [vmem:[%s4179_s14 + $0x4a8] sm:$0xff] }
 0x3f4   : > { %v1715_v58 = vmul.f32 %v4014_v28, %v6061_v33 }
 0x3f5   : > { %v2642_v30 = vpop.permute.xlu1 %2641  ;;  %v2640_v34 = vpop.permute.xlu0 %2639 }
 0x3f6   : > { %v3228_v3 = vmax.f32 %v9710_v10, %v2642_v30  ;;  %v3227_v47 = vmax.f32 %v9711_v29, %v2640_v34  ;;  %v9095_v30 = vmax.f32 %v7609_v17, 0.0  ;;  %v7632_v34 = vadd.f32 %v6063_v63, %v1716_v12 }
 0x3f7   : > { %2757 = vrot.lane.b32.xlu1 %v9712_v15, %s4102_s15  ;;  %2755 = vrot.lane.b32.xlu0 %v9713_v57, %s4102_s15  ;;  %v7635_v15 = vadd.f32 %v6063_v63, %v1715_v58  ;;  %v3226_v10 = vmax.f32 %v9714_v38, %v2638_v5  ;;  %v9717_v57 = vmax.f32 %v6919_v9, 0.0  ;;  %v4016_v5 = vld [vmem:[%s4179_s14 + $0x4a0] sm:$0xff] }
 0x3f8   : > { %v3408_v20 = vmax.f32 %v3224_v51, %v3228_v3  ;;  %v3407_v43 = vmax.f32 %v3223_v32, %v3227_v47  ;;  %v9715_v3 = vmax.f32 %v6867_v41, 0.0  ;;  %v9716_v32 = vmax.f32 %v6916_v21, 0.0 }
 0x3f9   : > { %v2646_v29 = vpop.permute.xlu1 %2645  ;;  %v2644_v36 = vpop.permute.xlu0 %2643  ;;  %v1718_v41 = vmul.f32 %v4015_v18, %v6061_v33  ;;  %v1717_v21 = vmul.f32 %v4016_v5, %v6061_v33  ;;  %v9092_v58 = vmax.f32 %v7632_v34, 0.0 }
 0x3fa   : > { %v3225_v51 = vmax.f32 %v9715_v3, %v2636_v19  ;;  %3522 = vst.msk [vmem:[%s6657_s20 + $0x148] sm:$0xff] %vm3479_vm3, %v3408_v20  ;;  %3521 = vst.msk [vmem:[%s6657_s20 + $0x140] sm:$0xff] %vm3479_vm3, %v3407_v43  ;;  %v3230_v47 = vmax.f32 %v9716_v32, %v2646_v29  ;;  %v3229_v52 = vmax.f32 %v9717_v57, %v2644_v36  ;;  %v9091_v20 = vmax.f32 %v7635_v15, 0.0  ;;  %v4017_v36 = vld [vmem:[%s4179_s14 + $0x4b8] sm:$0xf] }
 0x3fb   : > { %2761 = vrot.lane.b32.xlu1 %v9096_v56, %s4102_s15  ;;  %2759 = vrot.lane.b32.xlu0 %v9095_v30, %s4102_s15  ;;  %v7662_v43 = vadd.f32 %v6063_v63, %v1718_v41  ;;  %v7665_v29 = vadd.f32 %v6063_v63, %v1717_v21  ;;  %v1720_v38 = vmul.f32 %v4017_v36, %v6061_v33  ;;  %v4019_v41 = vld [vmem:[%s4179_s14 + $0x4c8] sm:$0xff]  ;;  %v4020_v21 = vld [vmem:[%s4179_s14 + $0x4c0] sm:$0xff]  ;;  %v9721_v56 = vmax.f32 %v6993_v11, 0.0 }
 0x3fc   : > { %v3410_v9 = vmax.f32 %v3226_v10, %v3230_v47  ;;  %v3409_v19 = vmax.f32 %v3225_v51, %v3229_v52  ;;  %v4018_v10 = vld [vmem:[%s4179_s14 + $0x4b0] sm:$0xff]  ;;  %v1722_v5 = vmul.f32 %v4019_v41, %v6061_v33  ;;  %v9719_v41 = vmax.f32 %v6937_v14, 0.0 }
 0x3fd   : > { %v2650_v12 = vpop.permute.xlu1 %2649  ;;  %v2648_v28 = vpop.permute.xlu0 %2647  ;;  %v1719_v3 = vmul.f32 %v4018_v10, %v6061_v33  ;;  %v9094_v47 = vmax.f32 %v7662_v43, 0.0  ;;  %v9093_v57 = vmax.f32 %v7665_v29, 0.0  ;;  %v7684_v52 = vadd.f32 %v6063_v63, %v1720_v38 }
 0x3fe   : > { %3524 = vst.msk [vmem:[%s6657_s20 + $0x158] sm:$0xf] %vm3483_vm4, %v3410_v9  ;;  %v1721_v9 = vmul.f32 %v4020_v21, %v6061_v33  ;;  %v9720_v21 = vmax.f32 %v6990_v23, 0.0 }
 0x3ff   : > { %3523 = vst.msk [vmem:[%s6657_s20 + $0x150] sm:$0xff] %vm3479_vm3, %v3409_v19  ;;  %2765 = vrot.lane.b32.xlu1 %v9092_v58, %s4102_s15  ;;  %2763 = vrot.lane.b32.xlu0 %v9091_v20, %s4102_s15  ;;  %v7687_v18 = vadd.f32 %v6063_v63, %v1719_v3  ;;  %v7702_v3 = vadd.f32 %v6063_v63, %v1722_v5  ;;  %v9718_v58 = vmax.f32 %v6934_v44, 0.0  ;;  %v9722_v10 = vmax.f32 %v7684_v52, 0.0  ;;  %v4021_v44 = vld [vmem:[%s4179_s14 + $0x4d8] sm:$0xf] }
 0x400   : > { %v7705_v20 = vadd.f32 %v6063_v63, %v1721_v9  ;;  %v1724_v14 = vmul.f32 %v4021_v44, %v6061_v33 }
 0x401   : > { %v2654_v51 = vpop.permute.xlu1 %2653  ;;  %v2652_v32 = vpop.permute.xlu0 %2651  ;;  %v9723_v5 = vmax.f32 %v7687_v18, 0.0  ;;  %v9102_v9 = vmax.f32 %v7702_v3, 0.0 }
 0x403   : > { %2769 = vrot.lane.b32.xlu1 %v9094_v47, %s4102_s15  ;;  %2767 = vrot.lane.b32.xlu0 %v9093_v57, %s4102_s15  ;;  %v3232_v57 = vmax.f32 %v9718_v58, %v2650_v12  ;;  %v3231_v47 = vmax.f32 %v9719_v41, %v2648_v28  ;;  %v4022_v12 = vld [vmem:[%s4179_s14 + $0x4d0] sm:$0xff]  ;;  %v9725_v41 = vmax.f32 %v6960_v25, 0.0  ;;  %v4023_v25 = vld [vmem:[%s4179_s14 + $0x4e8] sm:$0xff] }
 0x404   : > { %v1723_v23 = vmul.f32 %v4022_v12, %v6061_v33 }
 0x405   : > { %v2658_v19 = vpop.permute.xlu1 %2657  ;;  %v2656_v36 = vpop.permute.xlu0 %2655 }
 0x406   : > { %v3236_v30 = vmax.f32 %v9720_v21, %v2658_v19  ;;  %v3235_v38 = vmax.f32 %v9721_v56, %v2656_v36  ;;  %v9101_v19 = vmax.f32 %v7705_v20, 0.0  ;;  %v7728_v36 = vadd.f32 %v6063_v63, %v1724_v14 }
 0x407   : > { %2773 = vrot.lane.b32.xlu1 %v9722_v10, %s4102_s15  ;;  %2771 = vrot.lane.b32.xlu0 %v9723_v5, %s4102_s15  ;;  %v7731_v10 = vadd.f32 %v6063_v63, %v1723_v23  ;;  %v3234_v21 = vmax.f32 %v9725_v41, %v2654_v51  ;;  %v9728_v5 = vmax.f32 %v7015_v50, 0.0  ;;  %v4024_v51 = vld [vmem:[%s4179_s14 + $0x4e0] sm:$0xff] }
 0x408   : > { %v3412_v28 = vmax.f32 %v3232_v57, %v3236_v30  ;;  %v3411_v11 = vmax.f32 %v3231_v47, %v3235_v38  ;;  %v9726_v30 = vmax.f32 %v6963_v42, 0.0  ;;  %v9727_v47 = vmax.f32 %v7012_v40, 0.0 }
 0x409   : > { %v2662_v56 = vpop.permute.xlu1 %2661  ;;  %v2660_v58 = vpop.permute.xlu0 %2659  ;;  %9724 = vst [vmem:[#allocation42_spill] sm:$0xff] %v7731_v10  ;;  %v1726_v42 = vmul.f32 %v4023_v25, %v6061_v33  ;;  %v1725_v40 = vmul.f32 %v4024_v51, %v6061_v33  ;;  %v9098_v23 = vmax.f32 %v7728_v36, 0.0 }
 0x40a   : > { %v3233_v57 = vmax.f32 %v9726_v30, %v2652_v32  ;;  %3526 = vst.msk [vmem:[%s6657_s20 + $0x168] sm:$0xff] %vm3479_vm3, %v3412_v28  ;;  %3525 = vst.msk [vmem:[%s6657_s20 + $0x160] sm:$0xff] %vm3479_vm3, %v3411_v11  ;;  %v3238_v38 = vmax.f32 %v9727_v47, %v2662_v56  ;;  %v3237_v44 = vmax.f32 %v9728_v5, %v2660_v58  ;;  %v9097_v28 = vmax.f32 %v7731_v10, 0.0  ;;  %v4025_v58 = vld [vmem:[%s4179_s14 + $0x4f8] sm:$0xf] }
 0x40b   : > { %2777 = vrot.lane.b32.xlu1 %v9102_v9, %s4102_s15  ;;  %2775 = vrot.lane.b32.xlu0 %v9101_v19, %s4102_s15  ;;  %v7758_v11 = vadd.f32 %v6063_v63, %v1726_v42  ;;  %v7761_v56 = vadd.f32 %v6063_v63, %v1725_v40  ;;  %v1728_v41 = vmul.f32 %v4025_v58, %v6061_v33  ;;  %v4027_v42 = vld [vmem:[%s4179_s14 + $0x508] sm:$0xff]  ;;  %v4028_v40 = vld [vmem:[%s4179_s14 + $0x500] sm:$0xff] }
 0x40c   : > { %v3414_v50 = vmax.f32 %v3234_v21, %v3238_v38  ;;  %v3413_v32 = vmax.f32 %v3233_v57, %v3237_v44  ;;  %v4026_v21 = vld [vmem:[%s4179_s14 + $0x4f0] sm:$0xff]  ;;  %v1730_v51 = vmul.f32 %v4027_v42, %v6061_v33  ;;  %v9734_v42 = vmax.f32 %v7033_v48, 0.0  ;;  %v9736_v9 = vld [vmem:[#allocation19_spill] sm:$0xff] }
 0x40d   : > { %v2666_v14 = vpop.permute.xlu1 %2665  ;;  %v2664_v12 = vpop.permute.xlu0 %2663  ;;  %v1727_v30 = vmul.f32 %v4026_v21, %v6061_v33  ;;  %v9100_v38 = vmax.f32 %v7758_v11, 0.0  ;;  %v9099_v5 = vmax.f32 %v7761_v56, 0.0  ;;  %v7780_v44 = vadd.f32 %v6063_v63, %v1728_v41 }
 0x40e   : > { %3528 = vst.msk [vmem:[%s6657_s20 + $0x178] sm:$0xf] %vm3483_vm4, %v3414_v50  ;;  %v1729_v50 = vmul.f32 %v4028_v40, %v6061_v33  ;;  %v9735_v40 = vmax.f32 %v7086_v13, 0.0  ;;  %v9737_v10 = vmax.f32 %v9736_v9, 0.0 }
 0x40f   : > { %3527 = vst.msk [vmem:[%s6657_s20 + $0x170] sm:$0xff] %vm3479_vm3, %v3413_v32  ;;  %2781 = vrot.lane.b32.xlu1 %v9098_v23, %s4102_s15  ;;  %2779 = vrot.lane.b32.xlu0 %v9097_v28, %s4102_s15  ;;  %9729 = vst [vmem:[#allocation39_spill] sm:$0xff] %v7780_v44  ;;  %v7783_v25 = vadd.f32 %v6063_v63, %v1727_v30  ;;  %v7798_v30 = vadd.f32 %v6063_v63, %v1730_v51  ;;  %v9733_v23 = vmax.f32 %v7030_v6, 0.0  ;;  %v4029_v6 = vld [vmem:[%s4179_s14 + $0x518] sm:$0xf] }
 0x410   : > { %v7801_v28 = vadd.f32 %v6063_v63, %v1729_v50  ;;  %v9738_v21 = vmax.f32 %v7780_v44, 0.0  ;;  %v1732_v48 = vmul.f32 %v4029_v6, %v6061_v33  ;;  %v9744_v6 = vld [vmem:[#allocation22_spill] sm:$0xff] }
 0x411   : > { %v2670_v57 = vpop.permute.xlu1 %2669  ;;  %v2668_v47 = vpop.permute.xlu0 %2667  ;;  %9730 = vst [vmem:[#allocation44_spill] sm:$0xff] %v7783_v25  ;;  %9731 = vst [vmem:[#allocation45_spill] sm:$0xff] %v7798_v30  ;;  %v9739_v51 = vmax.f32 %v7783_v25, 0.0  ;;  %v9764_v25 = vld [vmem:[#allocation27_spill] sm:$0xff] }
 0x412   : > { %9732 = vst [vmem:[#allocation46_spill] sm:$0xff] %v7801_v28  ;;  %v9765_v44 = vmax.f32 %v9764_v25, 0.0 }
 0x413   : > { %2785 = vrot.lane.b32.xlu1 %v9100_v38, %s4102_s15  ;;  %2783 = vrot.lane.b32.xlu0 %v9099_v5, %s4102_s15  ;;  %v3240_v5 = vmax.f32 %v9733_v23, %v2666_v14  ;;  %v3239_v38 = vmax.f32 %v9734_v42, %v2664_v12  ;;  %v4030_v14 = vld [vmem:[%s4179_s14 + $0x510] sm:$0xff]  ;;  %v9742_v42 = vld [vmem:[#allocation21_spill] sm:$0xff] }
 0x414   : > { %v1731_v13 = vmul.f32 %v4030_v14, %v6061_v33 }
 0x415   : > { %v2674_v32 = vpop.permute.xlu1 %2673  ;;  %v2672_v58 = vpop.permute.xlu0 %2671 }
 0x416   : > { %v3244_v19 = vmax.f32 %v9735_v40, %v2674_v32  ;;  %v3243_v41 = vmax.f32 %v9737_v10, %v2672_v58  ;;  %v7824_v58 = vadd.f32 %v6063_v63, %v1732_v48  ;;  %v9743_v40 = vmax.f32 %v9742_v42, 0.0  ;;  %v9748_v32 = vld [vmem:[#allocation25_spill] sm:$0xff] }
 0x417   : > { %2789 = vrot.lane.b32.xlu1 %v9738_v21, %s4102_s15  ;;  %2787 = vrot.lane.b32.xlu0 %v9739_v51, %s4102_s15  ;;  %v7827_v21 = vadd.f32 %v6063_v63, %v1731_v13  ;;  %v9749_v50 = vmax.f32 %v9748_v32, 0.0  ;;  %v9750_v13 = vmax.f32 %v7798_v30, 0.0 }
 0x418   : > { %v3416_v12 = vmax.f32 %v3240_v5, %v3244_v19  ;;  %v3415_v9 = vmax.f32 %v3239_v38, %v3243_v41  ;;  %9740 = vst [vmem:[#allocation172_spill] sm:$0xff] %v7824_v58  ;;  %v3242_v51 = vmax.f32 %v9743_v40, %v2670_v57  ;;  %v9745_v19 = vmax.f32 %v9744_v6, 0.0  ;;  %v9746_v38 = vld [vmem:[#allocation24_spill] sm:$0xff] }
 0x419   : > { %v2678_v10 = vpop.permute.xlu1 %2677  ;;  %v2676_v23 = vpop.permute.xlu0 %2675  ;;  %9741 = vst [vmem:[#allocation173_spill] sm:$0xff] %v7827_v21  ;;  %v9747_v41 = vmax.f32 %v9746_v38, 0.0  ;;  %v9751_v57 = vmax.f32 %v7801_v28, 0.0  ;;  %v9105_v40 = vmax.f32 %v7824_v58, 0.0  ;;  %v9104_v6 = vmax.f32 %v7827_v21, 0.0  ;;  %v9762_v28 = vld [vmem:[#allocation30_spill] sm:$0xff] }
 0x41a   : > { %v3241_v5 = vmax.f32 %v9745_v19, %v2668_v47  ;;  %3530 = vst.msk [vmem:[%s6657_s20 + $0x188] sm:$0xff] %vm3479_vm3, %v3416_v12  ;;  %3529 = vst.msk [vmem:[%s6657_s20 + $0x180] sm:$0xff] %vm3479_vm3, %v3415_v9  ;;  %v3245_v48 = vmax.f32 %v9749_v50, %v2676_v23  ;;  %v4031_v47 = vld [vmem:[%s4179_s14 + $0x528] sm:$0xff]  ;;  %v4032_v9 = vld [vmem:[%s4179_s14 + $0x520] sm:$0xff] }
 0x41b   : > { %v3246_v14 = vmax.f32 %v9747_v41, %v2678_v10  ;;  %2793 = vrot.lane.b32.xlu1 %v9750_v13, %s4102_s15  ;;  %2791 = vrot.lane.b32.xlu0 %v9751_v57, %s4102_s15  ;;  %v1734_v12 = vmul.f32 %v4031_v47, %v6061_v33  ;;  %v1733_v10 = vmul.f32 %v4032_v9, %v6061_v33  ;;  %v4034_v41 = vld [vmem:[%s4179_s14 + $0x530] sm:$0xff] }
 0x41c   : > { %v3417_v42 = vmax.f32 %v3241_v5, %v3245_v48 }
 0x41d   : > { %v3418_v32 = vmax.f32 %v3242_v51, %v3246_v14  ;;  %v2682_v23 = vpop.permute.xlu1 %2681  ;;  %v2680_v50 = vpop.permute.xlu0 %2679  ;;  %v7854_v19 = vadd.f32 %v6063_v63, %v1734_v12  ;;  %v7857_v38 = vadd.f32 %v6063_v63, %v1733_v10  ;;  %v4033_v51 = vld [vmem:[%s4179_s14 + $0x538] sm:$0xf]  ;;  %v1735_v14 = vmul.f32 %v4034_v41, %v6061_v33  ;;  %v4035_v10 = vld [vmem:[%s4179_s14 + $0x548] sm:$0xff] }
 0x41e   : > { %3531 = vst.msk [vmem:[%s6657_s20 + $0x190] sm:$0xff] %vm3479_vm3, %v3417_v42  ;;  %v1736_v5 = vmul.f32 %v4033_v51, %v6061_v33  ;;  %v4036_v42 = vld [vmem:[%s4179_s14 + $0x540] sm:$0xff] }
 0x41f   : > { %9752 = vst [vmem:[#allocation2_spill] sm:$0xff] %v7854_v19  ;;  %9753 = vst [vmem:[#allocation43_spill] sm:$0xff] %v7857_v38  ;;  %2797 = vrot.lane.b32.xlu1 %v9105_v40, %s4102_s15  ;;  %2795 = vrot.lane.b32.xlu0 %v9104_v6, %s4102_s15  ;;  %v9106_v57 = vmax.f32 %v7854_v19, 0.0  ;;  %v9107_v47 = vmax.f32 %v7857_v38, 0.0  ;;  %v7879_v9 = vadd.f32 %v6063_v63, %v1735_v14 }
 0x420   : > { %3532 = vst.msk [vmem:[%s6657_s20 + $0x198] sm:$0xf] %vm3483_vm4, %v3418_v32  ;;  %v7876_v12 = vadd.f32 %v6063_v63, %v1736_v5  ;;  %v1738_v32 = vmul.f32 %v4035_v10, %v6061_v33  ;;  %v1737_v51 = vmul.f32 %v4036_v42, %v6061_v33  ;;  %v9760_v10 = vld [vmem:[#allocation23_spill] sm:$0xff]  ;;  %v9763_v42 = vmax.f32 %v9762_v28, 0.0 }
 0x421   : > { %v2686_v48 = vpop.permute.xlu1 %2685  ;;  %v2684_v13 = vpop.permute.xlu0 %2683  ;;  %9755 = vst [vmem:[#allocation174_spill] sm:$0xff] %v7879_v9  ;;  %v9761_v38 = vmax.f32 %v9760_v10, 0.0  ;;  %v9770_v10 = vld [vmem:[#allocation28_spill] sm:$0xff] }
 0x422   : > { %9754 = vst [vmem:[#allocation48_spill] sm:$0xff] %v7876_v12  ;;  %v7894_v40 = vadd.f32 %v6063_v63, %v1738_v32  ;;  %v9766_v6 = vmax.f32 %v7876_v12, 0.0  ;;  %v9767_v32 = vmax.f32 %v7879_v9, 0.0  ;;  %v9788_v9 = vld [vmem:[#allocation35_spill] sm:$0xff] }
 0x423   : > { %2801 = vrot.lane.b32.xlu1 %v9106_v57, %s4102_s15  ;;  %2799 = vrot.lane.b32.xlu0 %v9107_v47, %s4102_s15  ;;  %v7897_v57 = vadd.f32 %v6063_v63, %v1737_v51  ;;  %v9758_v47 = vld [vmem:[#allocation26_spill] sm:$0xff]  ;;  %v3247_v19 = vmax.f32 %v9761_v38, %v2680_v50  ;;  %v4038_v50 = vld [vmem:[%s4179_s14 + $0x550] sm:$0xff]  ;;  %v9776_v51 = vld [vmem:[#allocation33_spill] sm:$0xff]  ;;  %v9789_v12 = vmax.f32 %v9788_v9, 0.0 }
 0x424   : > { %9756 = vst [vmem:[#allocation49_spill] sm:$0xff] %v7894_v40  ;;  %v9759_v21 = vmax.f32 %v9758_v47, 0.0  ;;  %v1739_v28 = vmul.f32 %v4038_v50, %v6061_v33 }
 0x425   : > { %v2690_v5 = vpop.permute.xlu1 %2689  ;;  %v2688_v41 = vpop.permute.xlu0 %2687  ;;  %9757 = vst [vmem:[#allocation175_spill] sm:$0xff] %v7897_v57 }
 0x426   : > { %v3248_v58 = vmax.f32 %v9759_v21, %v2682_v23  ;;  %v3252_v30 = vmax.f32 %v9763_v42, %v2690_v5  ;;  %v3251_v14 = vmax.f32 %v9765_v44, %v2688_v41  ;;  %v4037_v21 = vld [vmem:[%s4179_s14 + $0x558] sm:$0xf]  ;;  %v7923_v41 = vadd.f32 %v6063_v63, %v1739_v28 }
 0x427   : > { %2805 = vrot.lane.b32.xlu1 %v9766_v6, %s4102_s15  ;;  %2803 = vrot.lane.b32.xlu0 %v9767_v32, %s4102_s15  ;;  %v1740_v23 = vmul.f32 %v4037_v21, %v6061_v33  ;;  %v9771_v42 = vmax.f32 %v9770_v10, 0.0  ;;  %v9772_v21 = vld [vmem:[#allocation29_spill] sm:$0xff]  ;;  %v9777_v6 = vmax.f32 %v9776_v51, 0.0  ;;  %v9778_v28 = vmax.f32 %v7894_v40, 0.0 }
 0x428   : > { %v3420_v38 = vmax.f32 %v3248_v58, %v3252_v30  ;;  %v3419_v25 = vmax.f32 %v3247_v19, %v3251_v14  ;;  %9769 = vst [vmem:[#allocation50_spill] sm:$0xff] %v7923_v41  ;;  %v9773_v30 = vmax.f32 %v9772_v21, 0.0  ;;  %v9774_v19 = vld [vmem:[#allocation32_spill] sm:$0xff]  ;;  %v9116_v21 = vmax.f32 %v7923_v41, 0.0 }
 0x429   : > { %v2694_v44 = vpop.permute.xlu1 %2693  ;;  %v2692_v47 = vpop.permute.xlu0 %2691  ;;  %v7920_v5 = vadd.f32 %v6063_v63, %v1740_v23  ;;  %v3250_v32 = vmax.f32 %v9771_v42, %v2686_v48  ;;  %v9775_v14 = vmax.f32 %v9774_v19, 0.0  ;;  %v9779_v48 = vmax.f32 %v7897_v57, 0.0  ;;  %v9786_v57 = vld [vmem:[#allocation38_spill] sm:$0xff] }
 0x42a   : > { %v3249_v58 = vmax.f32 %v9773_v30, %v2684_v13  ;;  %3534 = vst.msk [vmem:[%s6657_s20 + $0x1a8] sm:$0xff] %vm3479_vm3, %v3420_v38  ;;  %3533 = vst.msk [vmem:[%s6657_s20 + $0x1a0] sm:$0xff] %vm3479_vm3, %v3419_v25  ;;  %v3253_v23 = vmax.f32 %v9777_v6, %v2692_v47  ;;  %v4039_v13 = vld [vmem:[%s4179_s14 + $0x568] sm:$0xff]  ;;  %v4040_v25 = vld [vmem:[%s4179_s14 + $0x560] sm:$0xff] }
 0x42b   : > { %9768 = vst [vmem:[#allocation176_spill] sm:$0xff] %v7920_v5  ;;  %v3254_v50 = vmax.f32 %v9775_v14, %v2694_v44  ;;  %2809 = vrot.lane.b32.xlu1 %v9778_v28, %s4102_s15  ;;  %2807 = vrot.lane.b32.xlu0 %v9779_v48, %s4102_s15  ;;  %v1742_v38 = vmul.f32 %v4039_v13, %v6061_v33  ;;  %v9117_v42 = vmax.f32 %v7920_v5, 0.0  ;;  %v4042_v14 = vld [vmem:[%s4179_s14 + $0x570] sm:$0xff] }
 0x42c   : > { %v1741_v44 = vmul.f32 %v4040_v25, %v6061_v33  ;;  %v3421_v10 = vmax.f32 %v3249_v58, %v3253_v23 }
 0x42d   : > { %v3422_v51 = vmax.f32 %v3250_v32, %v3254_v50  ;;  %v2698_v47 = vpop.permute.xlu1 %2697  ;;  %v2696_v6 = vpop.permute.xlu0 %2695  ;;  %v7950_v30 = vadd.f32 %v6063_v63, %v1742_v38  ;;  %v4041_v32 = vld [vmem:[%s4179_s14 + $0x578] sm:$0xf]  ;;  %v1743_v50 = vmul.f32 %v4042_v14, %v6061_v33 }
 0x42e   : > { %v7953_v19 = vadd.f32 %v6063_v63, %v1741_v44  ;;  %3535 = vst.msk [vmem:[%s6657_s20 + $0x1b0] sm:$0xff] %vm3479_vm3, %v3421_v10  ;;  %v1744_v58 = vmul.f32 %v4041_v32, %v6061_v33  ;;  %v4043_v44 = vld [vmem:[%s4179_s14 + $0x588] sm:$0xff]  ;;  %v4044_v10 = vld [vmem:[%s4179_s14 + $0x580] sm:$0xff] }
 0x42f   : > { %9780 = vst [vmem:[#allocation47_spill] sm:$0xff] %v7950_v30  ;;  %3536 = vst.msk [vmem:[%s6657_s20 + $0x1b8] sm:$0xf] %vm3483_vm4, %v3422_v51  ;;  %2813 = vrot.lane.b32.xlu1 %v9117_v42, %s4102_s15  ;;  %2811 = vrot.lane.b32.xlu0 %v9116_v21, %s4102_s15  ;;  %v9118_v48 = vmax.f32 %v7950_v30, 0.0  ;;  %v7975_v25 = vadd.f32 %v6063_v63, %v1743_v50  ;;  %v1746_v51 = vmul.f32 %v4043_v44, %v6061_v33  ;;  %v9784_v44 = vld [vmem:[#allocation31_spill] sm:$0xff] }
 0x430   : > { %9781 = vst [vmem:[#allocation4_spill] sm:$0xff] %v7953_v19  ;;  %v9119_v13 = vmax.f32 %v7953_v19, 0.0  ;;  %v7972_v38 = vadd.f32 %v6063_v63, %v1744_v58  ;;  %v1745_v32 = vmul.f32 %v4044_v10, %v6061_v33  ;;  %v9785_v19 = vmax.f32 %v9784_v44, 0.0  ;;  %v9794_v44 = vld [vmem:[#allocation36_spill] sm:$0xff] }
 0x431   : > { %v2702_v23 = vpop.permute.xlu1 %2701  ;;  %v2700_v28 = vpop.permute.xlu0 %2699  ;;  %v7990_v42 = vadd.f32 %v6063_v63, %v1746_v51  ;;  %v9787_v10 = vmax.f32 %v9786_v57, 0.0  ;;  %v9791_v51 = vmax.f32 %v7975_v25, 0.0 }
 0x432   : > { %v3255_v30 = vmax.f32 %v9785_v19, %v2696_v6  ;;  %v9790_v21 = vmax.f32 %v7972_v38, 0.0  ;;  %v4046_v6 = vld [vmem:[%s4179_s14 + $0x590] sm:$0xff] }
 0x433   : > { %2817 = vrot.lane.b32.xlu1 %v9118_v48, %s4102_s15  ;;  %2815 = vrot.lane.b32.xlu0 %v9119_v13, %s4102_s15  ;;  %v7993_v48 = vadd.f32 %v6063_v63, %v1745_v32  ;;  %v9782_v13 = vld [vmem:[#allocation34_spill] sm:$0xff]  ;;  %v1747_v57 = vmul.f32 %v4046_v6, %v6061_v33  ;;  %v9799_v6 = vmax.f32 %v7303_v26, 0.0 }
 0x434   : > { %v9783_v41 = vmax.f32 %v9782_v13, 0.0 }
 0x435   : > { %v2706_v58 = vpop.permute.xlu1 %2705  ;;  %v2704_v14 = vpop.permute.xlu0 %2703  ;;  %v9132_v32 = vmax.f32 %v7993_v48, 0.0 }
 0x436   : > { %v3256_v5 = vmax.f32 %v9783_v41, %v2698_v47  ;;  %v3260_v40 = vmax.f32 %v9787_v10, %v2706_v58  ;;  %v3259_v50 = vmax.f32 %v9789_v12, %v2704_v14  ;;  %v4045_v41 = vld [vmem:[%s4179_s14 + $0x598] sm:$0xf]  ;;  %v8019_v14 = vadd.f32 %v6063_v63, %v1747_v57  ;;  %v4048_v57 = vld [vmem:[%s4179_s14 + $0x5a0] sm:$0xff] }
 0x437   : > { %2821 = vrot.lane.b32.xlu1 %v9790_v21, %s4102_s15  ;;  %2819 = vrot.lane.b32.xlu0 %v9791_v51, %s4102_s15  ;;  %v1748_v47 = vmul.f32 %v4045_v41, %v6061_v33  ;;  %v9133_v21 = vmax.f32 %v7990_v42, 0.0  ;;  %v9795_v10 = vmax.f32 %v9794_v44, 0.0  ;;  %v9796_v41 = vld [vmem:[#allocation37_spill] sm:$0xff] }
 0x438   : > { %v3424_v19 = vmax.f32 %v3256_v5, %v3260_v40  ;;  %v3423_v9 = vmax.f32 %v3255_v30, %v3259_v50  ;;  %9793 = vst [vmem:[#allocation5_spill] sm:$0xff] %v8019_v14  ;;  %v9797_v40 = vmax.f32 %v9796_v41, 0.0  ;;  %v9798_v30 = vmax.f32 %v7300_v61, 0.0 }
 0x439   : > { %v2710_v12 = vpop.permute.xlu1 %2709  ;;  %v2708_v13 = vpop.permute.xlu0 %2707  ;;  %v8016_v58 = vadd.f32 %v6063_v63, %v1748_v47  ;;  %v3258_v51 = vmax.f32 %v9795_v10, %v2702_v23  ;;  %v4047_v23 = vld [vmem:[%s4179_s14 + $0x5a8] sm:$0xff]  ;;  %v1749_v61 = vmul.f32 %v4048_v57, %v6061_v33  ;;  %v9128_v44 = vmax.f32 %v8019_v14, 0.0 }
 0x43a   : > { %v3257_v5 = vmax.f32 %v9797_v40, %v2700_v28  ;;  %3538 = vst.msk [vmem:[%s6657_s20 + $0x1c8] sm:$0xff] %vm3479_vm3, %v3424_v19  ;;  %3537 = vst.msk [vmem:[%s6657_s20 + $0x1c0] sm:$0xff] %vm3479_vm3, %v3423_v9  ;;  %v3262_v50 = vmax.f32 %v9798_v30, %v2710_v12  ;;  %v3261_v47 = vmax.f32 %v9799_v6, %v2708_v13 }
 0x43b   : > { %9792 = vst [vmem:[#allocation52_spill] sm:$0xff] %v8016_v58  ;;  %2825 = vrot.lane.b32.xlu1 %v9133_v21, %s4102_s15  ;;  %2823 = vrot.lane.b32.xlu0 %v9132_v32, %s4102_s15  ;;  %v1750_v28 = vmul.f32 %v4047_v23, %v6061_v33  ;;  %v9129_v13 = vmax.f32 %v8016_v58, 0.0  ;;  %v8049_v41 = vadd.f32 %v6063_v63, %v1749_v61  ;;  %v4051_v61 = vld [vmem:[%s4179_s14 + $0x5c8] sm:$0xff]  ;;  %v9803_v58 = vmax.f32 %v7377_v24, 0.0 }
 0x43c   : > { %v3426_v26 = vmax.f32 %v3258_v51, %v3262_v50  ;;  %v3425_v19 = vmax.f32 %v3257_v5, %v3261_v47  ;;  %v4049_v51 = vld [vmem:[%s4179_s14 + $0x5b8] sm:$0xf]  ;;  %v4050_v5 = vld [vmem:[%s4179_s14 + $0x5b0] sm:$0xff] }
 0x43d   : > { %v2714_v9 = vpop.permute.xlu1 %2713  ;;  %v2712_v12 = vpop.permute.xlu0 %2711  ;;  %v8046_v10 = vadd.f32 %v6063_v63, %v1750_v28  ;;  %v1752_v40 = vmul.f32 %v4049_v51, %v6061_v33  ;;  %v1751_v30 = vmul.f32 %v4050_v5, %v6061_v33  ;;  %v9131_v23 = vmax.f32 %v8049_v41, 0.0 }
 0x43e   : > { %3540 = vst.msk [vmem:[%s6657_s20 + $0x1d8] sm:$0xf] %vm3483_vm4, %v3426_v26  ;;  %v1754_v26 = vmul.f32 %v4051_v61, %v6061_v33  ;;  %v9801_v61 = vmax.f32 %v7321_v1, 0.0 }
 0x43f   : > { %3539 = vst.msk [vmem:[%s6657_s20 + $0x1d0] sm:$0xff] %vm3479_vm3, %v3425_v19  ;;  %2829 = vrot.lane.b32.xlu1 %v9129_v13, %s4102_s15  ;;  %2827 = vrot.lane.b32.xlu0 %v9128_v44, %s4102_s15  ;;  %v9130_v47 = vmax.f32 %v8046_v10, 0.0  ;;  %v8068_v28 = vadd.f32 %v6063_v63, %v1752_v40  ;;  %v8071_v57 = vadd.f32 %v6063_v63, %v1751_v30  ;;  %v4052_v19 = vld [vmem:[%s4179_s14 + $0x5c0] sm:$0xff] }
 0x440   : > { %v1753_v51 = vmul.f32 %v4052_v19, %v6061_v33  ;;  %v8086_v13 = vadd.f32 %v6063_v63, %v1754_v26  ;;  %v3263_v21 = vmax.f32 %v9801_v61, %v2712_v12  ;;  %v9802_v19 = vmax.f32 %v7374_v54, 0.0  ;;  %v9808_v61 = vld [vmem:[#allocation40_spill] sm:$0xff] }
 0x441   : > { %v2718_v50 = vpop.permute.xlu1 %2717  ;;  %v2716_v6 = vpop.permute.xlu0 %2715  ;;  %v9804_v44 = vmax.f32 %v8068_v28, 0.0  ;;  %v9805_v26 = vmax.f32 %v8071_v57, 0.0 }
 0x443   : > { %2833 = vrot.lane.b32.xlu1 %v9130_v47, %s4102_s15  ;;  %2831 = vrot.lane.b32.xlu0 %v9131_v23, %s4102_s15  ;;  %v8089_v47 = vadd.f32 %v6063_v63, %v1753_v51  ;;  %v9800_v23 = vmax.f32 %v7318_v59, 0.0  ;;  %v4053_v59 = vld [vmem:[%s4179_s14 + $0x5d8] sm:$0xf] }
 0x444   : > { %v1756_v1 = vmul.f32 %v4053_v59, %v6061_v33  ;;  %v9810_v59 = vld [vmem:[#allocation41_spill] sm:$0xff] }
 0x445   : > { %v2722_v40 = vpop.permute.xlu1 %2721  ;;  %v2720_v5 = vpop.permute.xlu0 %2719  ;;  %v3264_v32 = vmax.f32 %v9800_v23, %v2714_v9  ;;  %v4054_v9 = vld [vmem:[%s4179_s14 + $0x5d0] sm:$0xff]  ;;  %v9140_v51 = vmax.f32 %v8089_v47, 0.0 }
 0x446   : > { %v3268_v14 = vmax.f32 %v9802_v19, %v2722_v40  ;;  %v3267_v30 = vmax.f32 %v9803_v58, %v2720_v5  ;;  %v1755_v54 = vmul.f32 %v4054_v9, %v6061_v33  ;;  %v8112_v40 = vadd.f32 %v6063_v63, %v1756_v1 }
 0x447   : > { %2837 = vrot.lane.b32.xlu1 %v9804_v44, %s4102_s15  ;;  %2835 = vrot.lane.b32.xlu0 %v9805_v26, %s4102_s15  ;;  %v9141_v44 = vmax.f32 %v8086_v13, 0.0  ;;  %v9809_v19 = vmax.f32 %v9808_v61, 0.0  ;;  %v9813_v9 = vmax.f32 %v7399_v35, 0.0 }
 0x448   : > { %v3428_v12 = vmax.f32 %v3264_v32, %v3268_v14  ;;  %v3427_v24 = vmax.f32 %v3263_v21, %v3267_v30  ;;  %9806 = vst [vmem:[#allocation53_spill] sm:$0xff] %v8112_v40  ;;  %v8115_v5 = vadd.f32 %v6063_v63, %v1755_v54  ;;  %v9811_v32 = vmax.f32 %v9810_v59, 0.0  ;;  %v4056_v54 = vld [vmem:[%s4179_s14 + $0x5e0] sm:$0xff] }
 0x449   : > { %v2726_v58 = vpop.permute.xlu1 %2725  ;;  %v2724_v23 = vpop.permute.xlu0 %2723  ;;  %v3266_v26 = vmax.f32 %v9809_v19, %v2718_v50  ;;  %v9812_v21 = vmax.f32 %v7396_v31, 0.0  ;;  %v4055_v50 = vld [vmem:[%s4179_s14 + $0x5e8] sm:$0xff]  ;;  %v1757_v31 = vmul.f32 %v4056_v54, %v6061_v33 }
 0x44a   : > { %9807 = vst [vmem:[#allocation54_spill] sm:$0xff] %v8115_v5  ;;  %v3265_v14 = vmax.f32 %v9811_v32, %v2716_v6  ;;  %3542 = vst.msk [vmem:[%s6657_s20 + $0x1e8] sm:$0xff] %vm3479_vm3, %v3428_v12  ;;  %v3269_v1 = vmax.f32 %v9813_v9, %v2724_v23  ;;  %v1758_v6 = vmul.f32 %v4055_v50, %v6061_v33  ;;  %v9137_v23 = vmax.f32 %v8112_v40, 0.0 }
 0x44b   : > { %3541 = vst.msk [vmem:[%s6657_s20 + $0x1e0] sm:$0xff] %vm3479_vm3, %v3427_v24  ;;  %v3270_v30 = vmax.f32 %v9812_v21, %v2726_v58  ;;  %2841 = vrot.lane.b32.xlu1 %v9141_v44, %s4102_s15  ;;  %2839 = vrot.lane.b32.xlu0 %v9140_v51, %s4102_s15  ;;  %v9136_v61 = vmax.f32 %v8115_v5, 0.0  ;;  %v8145_v59 = vadd.f32 %v6063_v63, %v1757_v31  ;;  %v4059_v31 = vld [vmem:[%s4179_s14 + $0x608] sm:$0xff]  ;;  %v9817_v40 = vmax.f32 %v7473_v55, 0.0 }
 0x44c   : > { %v3429_v12 = vmax.f32 %v3265_v14, %v3269_v1  ;;  %v8142_v19 = vadd.f32 %v6063_v63, %v1758_v6  ;;  %v4058_v14 = vld [vmem:[%s4179_s14 + $0x5f0] sm:$0xff] }
 0x44d   : > { %v3430_v35 = vmax.f32 %v3266_v26, %v3270_v30  ;;  %v2730_v24 = vpop.permute.xlu1 %2729  ;;  %v2728_v58 = vpop.permute.xlu0 %2727  ;;  %v4057_v26 = vld [vmem:[%s4179_s14 + $0x5f8] sm:$0xf]  ;;  %v1759_v21 = vmul.f32 %v4058_v14, %v6061_v33  ;;  %v9139_v50 = vmax.f32 %v8145_v59, 0.0 }
 0x44e   : > { %3543 = vst.msk [vmem:[%s6657_s20 + $0x1f0] sm:$0xff] %vm3479_vm3, %v3429_v12  ;;  %v1760_v32 = vmul.f32 %v4057_v26, %v6061_v33  ;;  %v9138_v1 = vmax.f32 %v8142_v19, 0.0  ;;  %v4060_v12 = vld [vmem:[%s4179_s14 + $0x600] sm:$0xff] }
 0x44f   : > { %3544 = vst.msk [vmem:[%s6657_s20 + $0x1f8] sm:$0xf] %vm3483_vm4, %v3430_v35  ;;  %2845 = vrot.lane.b32.xlu1 %v9137_v23, %s4102_s15  ;;  %2843 = vrot.lane.b32.xlu0 %v9136_v61, %s4102_s15  ;;  %v8167_v54 = vadd.f32 %v6063_v63, %v1759_v21  ;;  %v1762_v35 = vmul.f32 %v4059_v31, %v6061_v33  ;;  %v9815_v31 = vmax.f32 %v7417_v22, 0.0 }
 0x450   : > { %v8164_v6 = vadd.f32 %v6063_v63, %v1760_v32  ;;  %v1761_v26 = vmul.f32 %v4060_v12, %v6061_v33  ;;  %v9816_v12 = vmax.f32 %v7470_v46, 0.0 }
 0x451   : > { %v2734_v30 = vpop.permute.xlu1 %2733  ;;  %v2732_v9 = vpop.permute.xlu0 %2731  ;;  %v8182_v23 = vadd.f32 %v6063_v63, %v1762_v35  ;;  %v3271_v44 = vmax.f32 %v9815_v31, %v2728_v58  ;;  %v9819_v35 = vmax.f32 %v8167_v54, 0.0  ;;  %v9820_v31 = vmax.f32 %v7440_v62, 0.0  ;;  %v4063_v62 = vld [vmem:[%s4179_s14 + $0x628] sm:$0xff] }
 0x452   : > { %v9818_v61 = vmax.f32 %v8164_v6, 0.0 }
 0x453   : > { %2849 = vrot.lane.b32.xlu1 %v9138_v1, %s4102_s15  ;;  %2847 = vrot.lane.b32.xlu0 %v9139_v50, %s4102_s15  ;;  %v8185_v1 = vadd.f32 %v6063_v63, %v1761_v26  ;;  %v9814_v50 = vmax.f32 %v7414_v49, 0.0  ;;  %v4061_v49 = vld [vmem:[%s4179_s14 + $0x618] sm:$0xf] }
 0x454   : > { %v1764_v22 = vmul.f32 %v4061_v49, %v6061_v33 }
 0x455   : > { %v2738_v32 = vpop.permute.xlu1 %2737  ;;  %v2736_v14 = vpop.permute.xlu0 %2735  ;;  %v3272_v51 = vmax.f32 %v9814_v50, %v2730_v24  ;;  %v4062_v24 = vld [vmem:[%s4179_s14 + $0x610] sm:$0xff]  ;;  %v9148_v26 = vmax.f32 %v8185_v1, 0.0 }
 0x456   : > { %v3276_v5 = vmax.f32 %v9816_v12, %v2738_v32  ;;  %v3275_v21 = vmax.f32 %v9817_v40, %v2736_v14  ;;  %v1763_v46 = vmul.f32 %v4062_v24, %v6061_v33  ;;  %v8208_v32 = vadd.f32 %v6063_v63, %v1764_v22 }
 0x457   : > { %2853 = vrot.lane.b32.xlu1 %v9818_v61, %s4102_s15  ;;  %2851 = vrot.lane.b32.xlu0 %v9819_v35, %s4102_s15  ;;  %v9149_v61 = vmax.f32 %v8182_v23, 0.0  ;;  %v3274_v12 = vmax.f32 %v9820_v31, %v2734_v30  ;;  %v9823_v35 = vmax.f32 %v7495_v2, 0.0  ;;  %v4064_v30 = vld [vmem:[%s4179_s14 + $0x620] sm:$0xff] }
 0x458   : > { %v3432_v58 = vmax.f32 %v3272_v51, %v3276_v5  ;;  %v3431_v55 = vmax.f32 %v3271_v44, %v3275_v21  ;;  %v8211_v14 = vadd.f32 %v6063_v63, %v1763_v46  ;;  %v9821_v51 = vmax.f32 %v7443_v45, 0.0 }
 0x459   : > { %v2742_v40 = vpop.permute.xlu1 %2741  ;;  %v2740_v50 = vpop.permute.xlu0 %2739  ;;  %v9822_v44 = vmax.f32 %v7492_v60, 0.0  ;;  %v1766_v45 = vmul.f32 %v4063_v62, %v6061_v33  ;;  %v1765_v60 = vmul.f32 %v4064_v30, %v6061_v33  ;;  %v9145_v46 = vmax.f32 %v8208_v32, 0.0 }
 0x45a   : > { %v3273_v5 = vmax.f32 %v9821_v51, %v2732_v9  ;;  %3546 = vst.msk [vmem:[%s6657_s20 + $0x208] sm:$0xff] %vm3479_vm3, %v3432_v58  ;;  %3545 = vst.msk [vmem:[%s6657_s20 + $0x200] sm:$0xff] %vm3479_vm3, %v3431_v55  ;;  %v3277_v49 = vmax.f32 %v9823_v35, %v2740_v50  ;;  %v9144_v58 = vmax.f32 %v8211_v14, 0.0  ;;  %v4065_v50 = vld [vmem:[%s4179_s14 + $0x638] sm:$0xf] }
 0x45b   : > { %v3278_v21 = vmax.f32 %v9822_v44, %v2742_v40  ;;  %2857 = vrot.lane.b32.xlu1 %v9149_v61, %s4102_s15  ;;  %2855 = vrot.lane.b32.xlu0 %v9148_v26, %s4102_s15  ;;  %v8238_v55 = vadd.f32 %v6063_v63, %v1766_v45  ;;  %v8241_v40 = vadd.f32 %v6063_v63, %v1765_v60  ;;  %v4067_v45 = vld [vmem:[%s4179_s14 + $0x648] sm:$0xff]  ;;  %v4068_v60 = vld [vmem:[%s4179_s14 + $0x640] sm:$0xff]  ;;  %v9827_v61 = vmax.f32 %v7569_v27, 0.0 }
 0x45c   : > { %v3433_v9 = vmax.f32 %v3273_v5, %v3277_v49  ;;  %v1768_v31 = vmul.f32 %v4065_v50, %v6061_v33  ;;  %v1770_v30 = vmul.f32 %v4067_v45, %v6061_v33  ;;  %v9825_v45 = vmax.f32 %v7513_v0, 0.0 }
 0x45d   : > { %v3434_v2 = vmax.f32 %v3274_v12, %v3278_v21  ;;  %v2746_v22 = vpop.permute.xlu1 %2745  ;;  %v2744_v24 = vpop.permute.xlu0 %2743  ;;  %v4066_v12 = vld [vmem:[%s4179_s14 + $0x630] sm:$0xff]  ;;  %v9147_v21 = vmax.f32 %v8238_v55, 0.0  ;;  %v9146_v35 = vmax.f32 %v8241_v40, 0.0 }
 0x45e   : > { %3547 = vst.msk [vmem:[%s6657_s20 + $0x210] sm:$0xff] %vm3479_vm3, %v3433_v9  ;;  %v1767_v51 = vmul.f32 %v4066_v12, %v6061_v33  ;;  %v8260_v49 = vadd.f32 %v6063_v63, %v1768_v31 }
 0x45f   : > { %3548 = vst.msk [vmem:[%s6657_s20 + $0x218] sm:$0xf] %vm3483_vm4, %v3434_v2  ;;  %2861 = vrot.lane.b32.xlu1 %v9145_v46, %s4102_s15  ;;  %2859 = vrot.lane.b32.xlu0 %v9144_v58, %s4102_s15  ;;  %v1769_v2 = vmul.f32 %v4068_v60, %v6061_v33  ;;  %v9824_v46 = vmax.f32 %v7510_v53, 0.0  ;;  %v9826_v60 = vmax.f32 %v7566_v39, 0.0  ;;  %v4069_v53 = vld [vmem:[%s4179_s14 + $0x658] sm:$0xf] }
 0x460   : > { %v8263_v62 = vadd.f32 %v6063_v63, %v1767_v51  ;;  %v8278_v51 = vadd.f32 %v6063_v63, %v1770_v30  ;;  %v9828_v12 = vmax.f32 %v8260_v49, 0.0  ;;  %v1772_v0 = vmul.f32 %v4069_v53, %v6061_v33 }
 0x461   : > { %v2750_v5 = vpop.permute.xlu1 %2749  ;;  %v2748_v44 = vpop.permute.xlu0 %2747  ;;  %v8281_v58 = vadd.f32 %v6063_v63, %v1769_v2 }
 0x462   : > { %v9829_v30 = vmax.f32 %v8263_v62, 0.0  ;;  %v9155_v2 = vmax.f32 %v8278_v51, 0.0 }
 0x463   : > { %2865 = vrot.lane.b32.xlu1 %v9147_v21, %s4102_s15  ;;  %2863 = vrot.lane.b32.xlu0 %v9146_v35, %s4102_s15  ;;  %v3280_v35 = vmax.f32 %v9824_v46, %v2746_v22  ;;  %v3279_v21 = vmax.f32 %v9825_v45, %v2744_v24  ;;  %v4070_v22 = vld [vmem:[%s4179_s14 + $0x650] sm:$0xff]  ;;  %v9830_v45 = vmax.f32 %v7536_v7, 0.0  ;;  %v4071_v7 = vld [vmem:[%s4179_s14 + $0x668] sm:$0xff] }
 0x464   : > { %v1771_v39 = vmul.f32 %v4070_v22, %v6061_v33 }
 0x465   : > { %v2754_v9 = vpop.permute.xlu1 %2753  ;;  %v2752_v50 = vpop.permute.xlu0 %2751 }
 0x466   : > { %v3284_v26 = vmax.f32 %v9826_v60, %v2754_v9  ;;  %v3283_v31 = vmax.f32 %v9827_v61, %v2752_v50  ;;  %v9154_v9 = vmax.f32 %v8281_v58, 0.0  ;;  %v8304_v50 = vadd.f32 %v6063_v63, %v1772_v0 }
 0x467   : > { %2869 = vrot.lane.b32.xlu1 %v9828_v12, %s4102_s15  ;;  %2867 = vrot.lane.b32.xlu0 %v9829_v30, %s4102_s15  ;;  %v8307_v12 = vadd.f32 %v6063_v63, %v1771_v39  ;;  %v3282_v60 = vmax.f32 %v9830_v45, %v2750_v5  ;;  %v9833_v30 = vmax.f32 %v7591_v8, 0.0  ;;  %v4072_v5 = vld [vmem:[%s4179_s14 + $0x660] sm:$0xff] }
 0x468   : > { %v3436_v24 = vmax.f32 %v3280_v35, %v3284_v26  ;;  %v3435_v27 = vmax.f32 %v3279_v21, %v3283_v31  ;;  %v9831_v26 = vmax.f32 %v7539_v37, 0.0  ;;  %v9832_v21 = vmax.f32 %v7588_v16, 0.0 }
 0x469   : > { %v2758_v61 = vpop.permute.xlu1 %2757  ;;  %v2756_v46 = vpop.permute.xlu0 %2755  ;;  %v1774_v37 = vmul.f32 %v4071_v7, %v6061_v33  ;;  %v1773_v16 = vmul.f32 %v4072_v5, %v6061_v33  ;;  %v9151_v39 = vmax.f32 %v8304_v50, 0.0 }
 0x46a   : > { %v3281_v35 = vmax.f32 %v9831_v26, %v2748_v44  ;;  %3550 = vst.msk [vmem:[%s6657_s20 + $0x228] sm:$0xff] %vm3479_vm3, %v3436_v24  ;;  %3549 = vst.msk [vmem:[%s6657_s20 + $0x220] sm:$0xff] %vm3479_vm3, %v3435_v27  ;;  %v3286_v31 = vmax.f32 %v9832_v21, %v2758_v61  ;;  %v3285_v53 = vmax.f32 %v9833_v30, %v2756_v46  ;;  %v9150_v24 = vmax.f32 %v8307_v12, 0.0  ;;  %v4073_v46 = vld [vmem:[%s4179_s14 + $0x678] sm:$0xf] }
 0x46b   : > { %2873 = vrot.lane.b32.xlu1 %v9155_v2, %s4102_s15  ;;  %2871 = vrot.lane.b32.xlu0 %v9154_v9, %s4102_s15  ;;  %v8334_v27 = vadd.f32 %v6063_v63, %v1774_v37  ;;  %v8337_v61 = vadd.f32 %v6063_v63, %v1773_v16  ;;  %v1776_v45 = vmul.f32 %v4073_v46, %v6061_v33  ;;  %v4075_v37 = vld [vmem:[%s4179_s14 + $0x688] sm:$0xff]  ;;  %v4076_v16 = vld [vmem:[%s4179_s14 + $0x680] sm:$0xff]  ;;  %v9837_v2 = vmax.f32 %v7665_v29, 0.0 }
 0x46c   : > { %v3438_v8 = vmax.f32 %v3282_v60, %v3286_v31  ;;  %v3437_v44 = vmax.f32 %v3281_v35, %v3285_v53  ;;  %v4074_v60 = vld [vmem:[%s4179_s14 + $0x670] sm:$0xff]  ;;  %v1778_v5 = vmul.f32 %v4075_v37, %v6061_v33  ;;  %v9835_v37 = vmax.f32 %v7609_v17, 0.0 }
 0x46d   : > { %v2762_v0 = vpop.permute.xlu1 %2761  ;;  %v2760_v22 = vpop.permute.xlu0 %2759  ;;  %v1775_v26 = vmul.f32 %v4074_v60, %v6061_v33  ;;  %v9153_v31 = vmax.f32 %v8334_v27, 0.0  ;;  %v9152_v30 = vmax.f32 %v8337_v61, 0.0  ;;  %v8356_v53 = vadd.f32 %v6063_v63, %v1776_v45 }
 0x46e   : > { %3552 = vst.msk [vmem:[%s6657_s20 + $0x238] sm:$0xf] %vm3483_vm4, %v3438_v8  ;;  %v1777_v8 = vmul.f32 %v4076_v16, %v6061_v33  ;;  %v9836_v16 = vmax.f32 %v7662_v43, 0.0 }
 0x46f   : > { %3551 = vst.msk [vmem:[%s6657_s20 + $0x230] sm:$0xff] %vm3479_vm3, %v3437_v44  ;;  %2877 = vrot.lane.b32.xlu1 %v9151_v39, %s4102_s15  ;;  %2875 = vrot.lane.b32.xlu0 %v9150_v24, %s4102_s15  ;;  %v8359_v7 = vadd.f32 %v6063_v63, %v1775_v26  ;;  %v8374_v26 = vadd.f32 %v6063_v63, %v1778_v5  ;;  %v9834_v39 = vmax.f32 %v7606_v4, 0.0  ;;  %v9838_v60 = vmax.f32 %v8356_v53, 0.0  ;;  %v4077_v4 = vld [vmem:[%s4179_s14 + $0x698] sm:$0xf] }
 0x470   : > { %v8377_v24 = vadd.f32 %v6063_v63, %v1777_v8  ;;  %v1780_v17 = vmul.f32 %v4077_v4, %v6061_v33 }
 0x471   : > { %v2766_v35 = vpop.permute.xlu1 %2765  ;;  %v2764_v21 = vpop.permute.xlu0 %2763  ;;  %v9839_v5 = vmax.f32 %v8359_v7, 0.0  ;;  %v9161_v8 = vmax.f32 %v8374_v26, 0.0 }
 0x473   : > { %2881 = vrot.lane.b32.xlu1 %v9153_v31, %s4102_s15  ;;  %2879 = vrot.lane.b32.xlu0 %v9152_v30, %s4102_s15  ;;  %v3288_v30 = vmax.f32 %v9834_v39, %v2762_v0  ;;  %v3287_v31 = vmax.f32 %v9835_v37, %v2760_v22  ;;  %v4078_v0 = vld [vmem:[%s4179_s14 + $0x690] sm:$0xff]  ;;  %v9840_v37 = vmax.f32 %v7632_v34, 0.0  ;;  %v4079_v34 = vld [vmem:[%s4179_s14 + $0x6a8] sm:$0xff] }
 0x474   : > { %v1779_v43 = vmul.f32 %v4078_v0, %v6061_v33 }
 0x475   : > { %v2770_v44 = vpop.permute.xlu1 %2769  ;;  %v2768_v46 = vpop.permute.xlu0 %2767 }
 0x476   : > { %v3292_v9 = vmax.f32 %v9836_v16, %v2770_v44  ;;  %v3291_v45 = vmax.f32 %v9837_v2, %v2768_v46  ;;  %v9160_v44 = vmax.f32 %v8377_v24, 0.0  ;;  %v8400_v46 = vadd.f32 %v6063_v63, %v1780_v17 }
 0x477   : > { %2885 = vrot.lane.b32.xlu1 %v9838_v60, %s4102_s15  ;;  %2883 = vrot.lane.b32.xlu0 %v9839_v5, %s4102_s15  ;;  %v8403_v60 = vadd.f32 %v6063_v63, %v1779_v43  ;;  %v3290_v16 = vmax.f32 %v9840_v37, %v2766_v35  ;;  %v9843_v5 = vmax.f32 %v7687_v18, 0.0  ;;  %v4080_v35 = vld [vmem:[%s4179_s14 + $0x6a0] sm:$0xff] }
 0x478   : > { %v3440_v22 = vmax.f32 %v3288_v30, %v3292_v9  ;;  %v3439_v29 = vmax.f32 %v3287_v31, %v3291_v45  ;;  %v9841_v9 = vmax.f32 %v7635_v15, 0.0  ;;  %v9842_v31 = vmax.f32 %v7684_v52, 0.0 }
 0x479   : > { %v2774_v2 = vpop.permute.xlu1 %2773  ;;  %v2772_v39 = vpop.permute.xlu0 %2771  ;;  %v1782_v15 = vmul.f32 %v4079_v34, %v6061_v33  ;;  %v1781_v52 = vmul.f32 %v4080_v35, %v6061_v33  ;;  %v9157_v43 = vmax.f32 %v8400_v46, 0.0 }
 0x47a   : > { %v3289_v30 = vmax.f32 %v9841_v9, %v2764_v21  ;;  %3554 = vst.msk [vmem:[%s6657_s20 + $0x248] sm:$0xff] %vm3479_vm3, %v3440_v22  ;;  %3553 = vst.msk [vmem:[%s6657_s20 + $0x240] sm:$0xff] %vm3479_vm3, %v3439_v29  ;;  %v3294_v45 = vmax.f32 %v9842_v31, %v2774_v2  ;;  %v3293_v4 = vmax.f32 %v9843_v5, %v2772_v39  ;;  %v9156_v22 = vmax.f32 %v8403_v60, 0.0  ;;  %v4081_v39 = vld [vmem:[%s4179_s14 + $0x6b8] sm:$0xf] }
 0x47b   : > { %2889 = vrot.lane.b32.xlu1 %v9161_v8, %s4102_s15  ;;  %2887 = vrot.lane.b32.xlu0 %v9160_v44, %s4102_s15  ;;  %v8430_v29 = vadd.f32 %v6063_v63, %v1782_v15  ;;  %v8433_v2 = vadd.f32 %v6063_v63, %v1781_v52  ;;  %v1784_v37 = vmul.f32 %v4081_v39, %v6061_v33  ;;  %v4083_v15 = vld [vmem:[%s4179_s14 + $0x6c8] sm:$0xff]  ;;  %v4084_v52 = vld [vmem:[%s4179_s14 + $0x6c0] sm:$0xff]  ;;  %v9848_v8 = vmax.f32 %v7761_v56, 0.0 }
 0x47c   : > { %v3442_v18 = vmax.f32 %v3290_v16, %v3294_v45  ;;  %v3441_v21 = vmax.f32 %v3289_v30, %v3293_v4  ;;  %v4082_v16 = vld [vmem:[%s4179_s14 + $0x6b0] sm:$0xff]  ;;  %v1786_v35 = vmul.f32 %v4083_v15, %v6061_v33  ;;  %v9846_v15 = vmax.f32 %v7705_v20, 0.0 }
 0x47d   : > { %v2778_v17 = vpop.permute.xlu1 %2777  ;;  %v2776_v0 = vpop.permute.xlu0 %2775  ;;  %v1783_v9 = vmul.f32 %v4082_v16, %v6061_v33  ;;  %v9159_v45 = vmax.f32 %v8430_v29, 0.0  ;;  %v9158_v5 = vmax.f32 %v8433_v2, 0.0  ;;  %v8452_v4 = vadd.f32 %v6063_v63, %v1784_v37 }
 0x47e   : > { %3556 = vst.msk [vmem:[%s6657_s20 + $0x258] sm:$0xf] %vm3483_vm4, %v3442_v18  ;;  %v1785_v18 = vmul.f32 %v4084_v52, %v6061_v33  ;;  %v9847_v52 = vmax.f32 %v7758_v11, 0.0 }
 0x47f   : > { %3555 = vst.msk [vmem:[%s6657_s20 + $0x250] sm:$0xff] %vm3479_vm3, %v3441_v21  ;;  %2893 = vrot.lane.b32.xlu1 %v9157_v43, %s4102_s15  ;;  %2891 = vrot.lane.b32.xlu0 %v9156_v22, %s4102_s15  ;;  %v8455_v34 = vadd.f32 %v6063_v63, %v1783_v9  ;;  %v8470_v9 = vadd.f32 %v6063_v63, %v1786_v35  ;;  %v9845_v43 = vmax.f32 %v7702_v3, 0.0  ;;  %v9849_v16 = vmax.f32 %v8452_v4, 0.0  ;;  %v4085_v3 = vld [vmem:[%s4179_s14 + $0x6d8] sm:$0xf] }
 0x480   : > { %v8473_v22 = vadd.f32 %v6063_v63, %v1785_v18  ;;  %v1788_v20 = vmul.f32 %v4085_v3, %v6061_v33 }
 0x481   : > { %v2782_v30 = vpop.permute.xlu1 %2781  ;;  %v2780_v31 = vpop.permute.xlu0 %2779  ;;  %v9850_v35 = vmax.f32 %v8455_v34, 0.0  ;;  %v9165_v18 = vmax.f32 %v8470_v9, 0.0 }
 0x482   : > { %9844 = vst [vmem:[#allocation6_spill] sm:$0xff] %v8473_v22 }
 0x483   : > { %2897 = vrot.lane.b32.xlu1 %v9159_v45, %s4102_s15  ;;  %2895 = vrot.lane.b32.xlu0 %v9158_v5, %s4102_s15  ;;  %v3296_v5 = vmax.f32 %v9845_v43, %v2778_v17  ;;  %v3295_v45 = vmax.f32 %v9846_v15, %v2776_v0  ;;  %v4086_v17 = vld [vmem:[%s4179_s14 + $0x6d0] sm:$0xff]  ;;  %v9853_v15 = vmax.f32 %v7728_v36, 0.0  ;;  %v9860_v36 = vmax.f32 %v8473_v22, 0.0 }
 0x484   : > { %v1787_v11 = vmul.f32 %v4086_v17, %v6061_v33  ;;  %v9858_v17 = vld [vmem:[#allocation44_spill] sm:$0xff] }
 0x485   : > { %v2786_v21 = vpop.permute.xlu1 %2785  ;;  %v2784_v39 = vpop.permute.xlu0 %2783 }
 0x486   : > { %v3300_v44 = vmax.f32 %v9847_v52, %v2786_v21  ;;  %v3299_v37 = vmax.f32 %v9848_v8, %v2784_v39  ;;  %v8496_v39 = vadd.f32 %v6063_v63, %v1788_v20  ;;  %v3298_v52 = vmax.f32 %v9853_v15, %v2782_v30  ;;  %v4087_v30 = vld [vmem:[%s4179_s14 + $0x6e8] sm:$0xff] }
 0x487   : > { %2901 = vrot.lane.b32.xlu1 %v9849_v16, %s4102_s15  ;;  %2899 = vrot.lane.b32.xlu0 %v9850_v35, %s4102_s15  ;;  %v8499_v16 = vadd.f32 %v6063_v63, %v1787_v11  ;;  %v9854_v35 = vld [vmem:[#allocation42_spill] sm:$0xff]  ;;  %v9859_v21 = vmax.f32 %v9858_v17, 0.0 }
 0x488   : > { %v3444_v0 = vmax.f32 %v3296_v5, %v3300_v44  ;;  %v3443_v56 = vmax.f32 %v3295_v45, %v3299_v37  ;;  %9851 = vst [vmem:[#allocation51_spill] sm:$0xff] %v8496_v39  ;;  %v9855_v44 = vmax.f32 %v9854_v35, 0.0  ;;  %v9856_v45 = vld [vmem:[#allocation39_spill] sm:$0xff]  ;;  %v4088_v11 = vld [vmem:[%s4179_s14 + $0x6e0] sm:$0xff]  ;;  %v9163_v15 = vmax.f32 %v8496_v39, 0.0 }
 0x489   : > { %v2790_v8 = vpop.permute.xlu1 %2789  ;;  %v2788_v43 = vpop.permute.xlu0 %2787  ;;  %9852 = vst [vmem:[#allocation3_spill] sm:$0xff] %v8499_v16  ;;  %v9857_v37 = vmax.f32 %v9856_v45, 0.0  ;;  %v9162_v35 = vmax.f32 %v8499_v16, 0.0  ;;  %v9871_v16 = vld [vmem:[#allocation43_spill] sm:$0xff] }
 0x48a   : > { %v3297_v5 = vmax.f32 %v9855_v44, %v2780_v31  ;;  %3558 = vst.msk [vmem:[%s6657_s20 + $0x268] sm:$0xff] %vm3479_vm3, %v3444_v0  ;;  %3557 = vst.msk [vmem:[%s6657_s20 + $0x260] sm:$0xff] %vm3479_vm3, %v3443_v56  ;;  %v3301_v20 = vmax.f32 %v9859_v21, %v2788_v43  ;;  %v1790_v31 = vmul.f32 %v4087_v30, %v6061_v33  ;;  %v9872_v39 = vmax.f32 %v9871_v16, 0.0 }
 0x48b   : > { %v3302_v3 = vmax.f32 %v9857_v37, %v2790_v8  ;;  %2905 = vrot.lane.b32.xlu1 %v9165_v18, %s4102_s15  ;;  %2903 = vrot.lane.b32.xlu0 %v9860_v36, %s4102_s15  ;;  %v1789_v0 = vmul.f32 %v4088_v11, %v6061_v33  ;;  %v4090_v37 = vld [vmem:[%s4179_s14 + $0x6f0] sm:$0xff] }
 0x48c   : > { %v3445_v8 = vmax.f32 %v3297_v5, %v3301_v20  ;;  %v8526_v44 = vadd.f32 %v6063_v63, %v1790_v31 }
 0x48d   : > { %v3446_v56 = vmax.f32 %v3298_v52, %v3302_v3  ;;  %v2794_v43 = vpop.permute.xlu1 %2793  ;;  %v2792_v21 = vpop.permute.xlu0 %2791  ;;  %v8529_v45 = vadd.f32 %v6063_v63, %v1789_v0  ;;  %v4089_v52 = vld [vmem:[%s4179_s14 + $0x6f8] sm:$0xf]  ;;  %v1791_v3 = vmul.f32 %v4090_v37, %v6061_v33  ;;  %v9867_v37 = vld [vmem:[#allocation46_spill] sm:$0xff] }
 0x48e   : > { %9861 = vst [vmem:[#allocation8_spill] sm:$0xff] %v8526_v44  ;;  %3559 = vst.msk [vmem:[%s6657_s20 + $0x270] sm:$0xff] %vm3479_vm3, %v3445_v8  ;;  %v1792_v5 = vmul.f32 %v4089_v52, %v6061_v33  ;;  %v9164_v36 = vmax.f32 %v8526_v44, 0.0  ;;  %v9865_v52 = vld [vmem:[#allocation45_spill] sm:$0xff] }
 0x48f   : > { %9862 = vst [vmem:[#allocation56_spill] sm:$0xff] %v8529_v45  ;;  %3560 = vst.msk [vmem:[%s6657_s20 + $0x278] sm:$0xf] %vm3483_vm4, %v3446_v56  ;;  %2909 = vrot.lane.b32.xlu1 %v9163_v15, %s4102_s15  ;;  %2907 = vrot.lane.b32.xlu0 %v9162_v35, %s4102_s15  ;;  %v9168_v30 = vmax.f32 %v8529_v45, 0.0  ;;  %v8551_v11 = vadd.f32 %v6063_v63, %v1791_v3  ;;  %v9868_v3 = vmax.f32 %v9867_v37, 0.0  ;;  %v9869_v15 = vld [vmem:[#allocation2_spill] sm:$0xff] }
 0x490   : > { %v8548_v31 = vadd.f32 %v6063_v63, %v1792_v5  ;;  %v9866_v5 = vmax.f32 %v9865_v52, 0.0  ;;  %v9873_v37 = vld [vmem:[#allocation172_spill] sm:$0xff] }
 0x491   : > { %v2798_v17 = vpop.permute.xlu1 %2797  ;;  %v2796_v20 = vpop.permute.xlu0 %2795  ;;  %9864 = vst [vmem:[#allocation155_spill] sm:$0xff] %v8551_v11  ;;  %v9171_v8 = vmax.f32 %v8551_v11, 0.0  ;;  %v3303_v35 = vmax.f32 %v9868_v3, %v2792_v21  ;;  %v9879_v11 = vld [vmem:[#allocation174_spill] sm:$0xff]  ;;  %v9889_v45 = vld [vmem:[#allocation176_spill] sm:$0xff] }
 0x492   : > { %9863 = vst [vmem:[#allocation57_spill] sm:$0xff] %v8548_v31  ;;  %v9169_v56 = vmax.f32 %v8548_v31, 0.0  ;;  %v3304_v63 = vmax.f32 %v9866_v5, %v2794_v43  ;;  %v9890_v44 = vmax.f32 %v9889_v45, 0.0 }
 0x493   : > { %2913 = vrot.lane.b32.xlu1 %v9164_v36, %s4102_s15  ;;  %2911 = vrot.lane.b32.xlu0 %v9168_v30, %s4102_s15  ;;  %v9870_v36 = vmax.f32 %v9869_v15, 0.0  ;;  %v9874_v15 = vmax.f32 %v9873_v37, 0.0  ;;  %v9881_v37 = vld [vmem:[#allocation49_spill] sm:$0xff] }
 0x495   : > { %v2802_v33 = vpop.permute.xlu1 %2801  ;;  %v2800_v0 = vpop.permute.xlu0 %2799 }
 0x496   : > { %v3308_v18 = vmax.f32 %v9870_v36, %v2802_v33  ;;  %v3307_v30 = vmax.f32 %v9872_v39, %v2800_v0  ;;  %v3306_v36 = vmax.f32 %v9874_v15, %v2798_v17  ;;  %v9875_v33 = vld [vmem:[#allocation173_spill] sm:$0xff]  ;;  %v9877_v0 = vld [vmem:[#allocation48_spill] sm:$0xff]  ;;  %v9882_v15 = vmax.f32 %v9881_v37, 0.0  ;;  %v9891_v37 = vld [vmem:[#allocation50_spill] sm:$0xff] }
 0x497   : > { %2917 = vrot.lane.b32.xlu1 %v9169_v56, %s4102_s15  ;;  %2915 = vrot.lane.b32.xlu0 %v9171_v8, %s4102_s15  ;;  %v9876_v16 = vmax.f32 %v9875_v33, 0.0  ;;  %v9878_v3 = vmax.f32 %v9877_v0, 0.0  ;;  %v9880_v8 = vmax.f32 %v9879_v11, 0.0  ;;  %v9883_v33 = vld [vmem:[#allocation175_spill] sm:$0xff] }
 0x498   : > { %v3448_v43 = vmax.f32 %v3304_v63, %v3308_v18  ;;  %v3447_v52 = vmax.f32 %v3303_v35, %v3307_v30  ;;  %v9884_v11 = vmax.f32 %v9883_v33, 0.0 }
 0x499   : > { %v2806_v5 = vpop.permute.xlu1 %2805  ;;  %v2804_v21 = vpop.permute.xlu0 %2803  ;;  %v3305_v39 = vmax.f32 %v9876_v16, %v2796_v20 }
 0x49a   : > { %3562 = vst.msk [vmem:[%s6657_s20 + $0x288] sm:$0xff] %vm3479_vm3, %v3448_v43  ;;  %3561 = vst.msk [vmem:[%s6657_s20 + $0x280] sm:$0xff] %vm3479_vm3, %v3447_v52  ;;  %v3310_v56 = vmax.f32 %v9878_v3, %v2806_v5  ;;  %v3309_v31 = vmax.f32 %v9880_v8, %v2804_v21 }
 0x49c   : > { %v3450_v18 = vmax.f32 %v3306_v36, %v3310_v56  ;;  %v3449_v35 = vmax.f32 %v3305_v39, %v3309_v31  ;;  %v9885_v56 = vld [vmem:[#allocation47_spill] sm:$0xff]  ;;  %v9887_v36 = vld [vmem:[#allocation4_spill] sm:$0xff] }
 0x49d   : > { %v2810_v30 = vpop.permute.xlu1 %2809  ;;  %v2808_v63 = vpop.permute.xlu0 %2807  ;;  %v9886_v31 = vmax.f32 %v9885_v56, 0.0  ;;  %v9888_v16 = vmax.f32 %v9887_v36, 0.0 }
 0x49e   : > { %3564 = vst.msk [vmem:[%s6657_s20 + $0x298] sm:$0xf] %vm3483_vm4, %v3450_v18  ;;  %v3312_v5 = vmax.f32 %v9882_v15, %v2810_v30  ;;  %v3311_v8 = vmax.f32 %v9884_v11, %v2808_v63  ;;  %v9892_v30 = vmax.f32 %v9891_v37, 0.0  ;;  %v9893_v63 = vmax.f32 %v7972_v38, 0.0  ;;  %v9899_v37 = vld [vmem:[#allocation52_spill] sm:$0xff] }
 0x49f   : > { %3563 = vst.msk [vmem:[%s6657_s20 + $0x290] sm:$0xff] %vm3479_vm3, %v3449_v35  ;;  %v9895_v38 = vmax.f32 %v7990_v42, 0.0  ;;  %v9901_v42 = vld [vmem:[#allocation5_spill] sm:$0xff] }
 0x4a1   : > { %v2814_v17 = vpop.permute.xlu1 %2813  ;;  %v2812_v20 = vpop.permute.xlu0 %2811 }
 0x4a2   : > { %v3314_v22 = vmax.f32 %v9890_v44, %v2814_v17  ;;  %v3313_v15 = vmax.f32 %v9892_v30, %v2812_v20  ;;  %v9900_v30 = vmax.f32 %v9899_v37, 0.0 }
 0x4a5   : > { %v2818_v43 = vpop.permute.xlu1 %2817  ;;  %v2816_v52 = vpop.permute.xlu0 %2815 }
 0x4a6   : > { %v3316_v21 = vmax.f32 %v9886_v31, %v2818_v43  ;;  %v3315_v39 = vmax.f32 %v9888_v16, %v2816_v52  ;;  %v9894_v52 = vmax.f32 %v7975_v25, 0.0  ;;  %v9896_v25 = vmax.f32 %v7993_v48, 0.0 }
 0x4a7   : > { %v9898_v16 = vmax.f32 %v8049_v41, 0.0  ;;  %v9903_v48 = vmax.f32 %v8068_v28, 0.0  ;;  %v9904_v41 = vmax.f32 %v8071_v57, 0.0  ;;  %v9905_v28 = vmax.f32 %v8086_v13, 0.0  ;;  %v9911_v13 = vld [vmem:[#allocation54_spill] sm:$0xff] }
 0x4a8   : > { %v3452_v0 = vmax.f32 %v3312_v5, %v3316_v21  ;;  %v3451_v3 = vmax.f32 %v3311_v8, %v3315_v39  ;;  %v9906_v57 = vmax.f32 %v8089_v47, 0.0  ;;  %v9912_v37 = vmax.f32 %v9911_v13, 0.0 }
 0x4a9   : > { %v2822_v18 = vpop.permute.xlu1 %2821  ;;  %v2820_v35 = vpop.permute.xlu0 %2819  ;;  %v9913_v47 = vmax.f32 %v8164_v6, 0.0  ;;  %v9915_v6 = vmax.f32 %v8182_v23, 0.0  ;;  %v9920_v23 = vmax.f32 %v8211_v14, 0.0  ;;  %v9925_v13 = vmax.f32 %v8334_v27, 0.0 }
 0x4aa   : > { %3566 = vst.msk [vmem:[%s6657_s20 + $0x2a8] sm:$0xff] %vm3479_vm3, %v3452_v0  ;;  %3565 = vst.msk [vmem:[%s6657_s20 + $0x2a0] sm:$0xff] %vm3479_vm3, %v3451_v3  ;;  %v3318_v43 = vmax.f32 %v9893_v63, %v2822_v18  ;;  %v3317_v33 = vmax.f32 %v9894_v52, %v2820_v35  ;;  %v9902_v63 = vmax.f32 %v9901_v42, 0.0 }
 0x4ac   : > { %v3454_v5 = vmax.f32 %v3314_v22, %v3318_v43  ;;  %v3453_v11 = vmax.f32 %v3313_v15, %v3317_v33  ;;  %v9897_v22 = vmax.f32 %v8046_v10, 0.0 }
 0x4ad   : > { %v2826_v8 = vpop.permute.xlu1 %2825  ;;  %v2824_v56 = vpop.permute.xlu0 %2823 }
 0x4ae   : > { %3568 = vst.msk [vmem:[%s6657_s20 + $0x2b8] sm:$0xf] %vm3483_vm4, %v3454_v5  ;;  %v3320_v31 = vmax.f32 %v9895_v38, %v2826_v8  ;;  %v3319_v21 = vmax.f32 %v9896_v25, %v2824_v56 }
 0x4af   : > { %3567 = vst.msk [vmem:[%s6657_s20 + $0x2b0] sm:$0xff] %vm3479_vm3, %v3453_v11 }
 0x4b1   : > { %v2830_v44 = vpop.permute.xlu1 %2829  ;;  %v2828_v45 = vpop.permute.xlu0 %2827 }
 0x4b2   : > { %v3322_v15 = vmax.f32 %v9900_v30, %v2830_v44  ;;  %v3321_v43 = vmax.f32 %v9902_v63, %v2828_v45 }
 0x4b5   : > { %v2834_v17 = vpop.permute.xlu1 %2833  ;;  %v2832_v20 = vpop.permute.xlu0 %2831 }
 0x4b6   : > { %v3324_v36 = vmax.f32 %v9897_v22, %v2834_v17  ;;  %v3323_v39 = vmax.f32 %v9898_v16, %v2832_v20 }
 0x4b8   : > { %v3456_v0 = vmax.f32 %v3320_v31, %v3324_v36  ;;  %v3455_v3 = vmax.f32 %v3319_v21, %v3323_v39  ;;  %v9907_v31 = vmax.f32 %v8142_v19, 0.0  ;;  %v9908_v21 = vmax.f32 %v8145_v59, 0.0 }
 0x4b9   : > { %v2838_v18 = vpop.permute.xlu1 %2837  ;;  %v2836_v35 = vpop.permute.xlu0 %2835  ;;  %v9914_v59 = vmax.f32 %v8167_v54, 0.0  ;;  %v9916_v54 = vmax.f32 %v8185_v1, 0.0  ;;  %v9921_v1 = vmax.f32 %v8260_v49, 0.0  ;;  %v9923_v49 = vmax.f32 %v8278_v51, 0.0 }
 0x4ba   : > { %3570 = vst.msk [vmem:[%s6657_s20 + $0x2c8] sm:$0xff] %vm3479_vm3, %v3456_v0  ;;  %3569 = vst.msk [vmem:[%s6657_s20 + $0x2c0] sm:$0xff] %vm3479_vm3, %v3455_v3  ;;  %v3326_v10 = vmax.f32 %v9903_v48, %v2838_v18  ;;  %v3325_v52 = vmax.f32 %v9904_v41, %v2836_v35  ;;  %v9909_v3 = vld [vmem:[#allocation53_spill] sm:$0xff]  ;;  %v9928_v51 = vmax.f32 %v8307_v12, 0.0 }
 0x4bb   : > { %v9910_v18 = vmax.f32 %v9909_v3, 0.0 }
 0x4bc   : > { %v3458_v33 = vmax.f32 %v3322_v15, %v3326_v10  ;;  %v3457_v5 = vmax.f32 %v3321_v43, %v3325_v52 }
 0x4bd   : > { %v2842_v11 = vpop.permute.xlu1 %2841  ;;  %v2840_v8 = vpop.permute.xlu0 %2839 }
 0x4be   : > { %3572 = vst.msk [vmem:[%s6657_s20 + $0x2d8] sm:$0xf] %vm3483_vm4, %v3458_v33  ;;  %v3328_v20 = vmax.f32 %v9905_v28, %v2842_v11  ;;  %v3327_v38 = vmax.f32 %v9906_v57, %v2840_v8  ;;  %v9917_v8 = vmax.f32 %v8238_v55, 0.0 }
 0x4bf   : > { %3571 = vst.msk [vmem:[%s6657_s20 + $0x2d0] sm:$0xff] %vm3479_vm3, %v3457_v5 }
 0x4c1   : > { %v2846_v56 = vpop.permute.xlu1 %2845  ;;  %v2844_v44 = vpop.permute.xlu0 %2843 }
 0x4c2   : > { %v3330_v35 = vmax.f32 %v9910_v18, %v2846_v56  ;;  %v3329_v30 = vmax.f32 %v9912_v37, %v2844_v44  ;;  %v9918_v44 = vmax.f32 %v8241_v40, 0.0  ;;  %v9922_v40 = vmax.f32 %v8263_v62, 0.0 }
 0x4c3   : > { %v9924_v62 = vmax.f32 %v8281_v58, 0.0  ;;  %v9929_v58 = vmax.f32 %v8356_v53, 0.0  ;;  %v9931_v53 = vmax.f32 %v8374_v26, 0.0  ;;  %v9936_v26 = vmax.f32 %v8403_v60, 0.0 }
 0x4c5   : > { %v2850_v45 = vpop.permute.xlu1 %2849  ;;  %v2848_v17 = vpop.permute.xlu0 %2847 }
 0x4c6   : > { %v3332_v25 = vmax.f32 %v9907_v31, %v2850_v45  ;;  %v3331_v22 = vmax.f32 %v9908_v21, %v2848_v17 }
 0x4c8   : > { %v3460_v36 = vmax.f32 %v3328_v20, %v3332_v25  ;;  %v3459_v16 = vmax.f32 %v3327_v38, %v3331_v22  ;;  %v9919_v38 = vmax.f32 %v8208_v32, 0.0 }
 0x4c9   : > { %v2854_v39 = vpop.permute.xlu1 %2853  ;;  %v2852_v0 = vpop.permute.xlu0 %2851 }
 0x4ca   : > { %3574 = vst.msk [vmem:[%s6657_s20 + $0x2e8] sm:$0xff] %vm3479_vm3, %v3460_v36  ;;  %3573 = vst.msk [vmem:[%s6657_s20 + $0x2e0] sm:$0xff] %vm3479_vm3, %v3459_v16  ;;  %v3334_v19 = vmax.f32 %v9913_v47, %v2854_v39  ;;  %v3333_v15 = vmax.f32 %v9914_v59, %v2852_v0 }
 0x4cc   : > { %v3462_v42 = vmax.f32 %v3330_v35, %v3334_v19  ;;  %v3461_v63 = vmax.f32 %v3329_v30, %v3333_v15  ;;  %v9926_v30 = vmax.f32 %v8337_v61, 0.0  ;;  %v9930_v61 = vmax.f32 %v8359_v7, 0.0 }
 0x4cd   : > { %v2858_v43 = vpop.permute.xlu1 %2857  ;;  %v2856_v48 = vpop.permute.xlu0 %2855  ;;  %v9932_v7 = vmax.f32 %v8377_v24, 0.0  ;;  %v9937_v24 = vmax.f32 %v8452_v4, 0.0  ;;  %v9939_v4 = vmax.f32 %v8470_v9, 0.0  ;;  %v9948_v9 = vld [vmem:[#allocation3_spill] sm:$0xff] }
 0x4ce   : > { %3576 = vst.msk [vmem:[%s6657_s20 + $0x2f8] sm:$0xf] %vm3483_vm4, %v3462_v42  ;;  %v3336_v5 = vmax.f32 %v9915_v6, %v2858_v43  ;;  %v3335_v11 = vmax.f32 %v9916_v54, %v2856_v48 }
 0x4cf   : > { %3575 = vst.msk [vmem:[%s6657_s20 + $0x2f0] sm:$0xff] %vm3479_vm3, %v3461_v63  ;;  %v9927_v63 = vmax.f32 %v8304_v50, 0.0 }
 0x4d1   : > { %v2862_v10 = vpop.permute.xlu1 %2861  ;;  %v2860_v41 = vpop.permute.xlu0 %2859 }
 0x4d2   : > { %v3338_v31 = vmax.f32 %v9919_v38, %v2862_v10  ;;  %v3337_v25 = vmax.f32 %v9920_v23, %v2860_v41 }
 0x4d5   : > { %v2866_v52 = vpop.permute.xlu1 %2865  ;;  %v2864_v33 = vpop.permute.xlu0 %2863 }
 0x4d6   : > { %v3340_v56 = vmax.f32 %v9917_v8, %v2866_v52  ;;  %v3339_v45 = vmax.f32 %v9918_v44, %v2864_v33 }
 0x4d8   : > { %v3464_v17 = vmax.f32 %v3336_v5, %v3340_v56  ;;  %v3463_v28 = vmax.f32 %v3335_v11, %v3339_v45  ;;  %v9933_v56 = vmax.f32 %v8430_v29, 0.0  ;;  %v9934_v45 = vmax.f32 %v8433_v2, 0.0 }
 0x4d9   : > { %v2870_v20 = vpop.permute.xlu1 %2869  ;;  %v2868_v57 = vpop.permute.xlu0 %2867  ;;  %v9938_v2 = vmax.f32 %v8455_v34, 0.0 }
 0x4da   : > { %3578 = vst.msk [vmem:[%s6657_s20 + $0x308] sm:$0xff] %vm3479_vm3, %v3464_v17  ;;  %3577 = vst.msk [vmem:[%s6657_s20 + $0x300] sm:$0xff] %vm3479_vm3, %v3463_v28  ;;  %v3342_v55 = vmax.f32 %v9921_v1, %v2870_v20  ;;  %v3341_v21 = vmax.f32 %v9922_v40, %v2868_v57 }
 0x4dc   : > { %v3466_v22 = vmax.f32 %v3338_v31, %v3342_v55  ;;  %v3465_v36 = vmax.f32 %v3337_v25, %v3341_v21  ;;  %v9935_v31 = vmax.f32 %v8400_v46, 0.0 }
 0x4dd   : > { %v2874_v16 = vpop.permute.xlu1 %2873  ;;  %v2872_v39 = vpop.permute.xlu0 %2871 }
 0x4de   : > { %3580 = vst.msk [vmem:[%s6657_s20 + $0x318] sm:$0xf] %vm3483_vm4, %v3466_v22  ;;  %v3344_v18 = vmax.f32 %v9923_v49, %v2874_v16  ;;  %v3343_v35 = vmax.f32 %v9924_v62, %v2872_v39 }
 0x4df   : > { %3579 = vst.msk [vmem:[%s6657_s20 + $0x310] sm:$0xff] %vm3479_vm3, %v3465_v36 }
 0x4e1   : > { %v2878_v32 = vpop.permute.xlu1 %2877  ;;  %v2876_v14 = vpop.permute.xlu0 %2875 }
 0x4e2   : > { %v3346_v43 = vmax.f32 %v9927_v63, %v2878_v32  ;;  %v3345_v48 = vmax.f32 %v9928_v51, %v2876_v14  ;;  %v9940_v32 = vld [vmem:[#allocation6_spill] sm:$0xff] }
 0x4e3   : > { %v9941_v34 = vmax.f32 %v9940_v32, 0.0 }
 0x4e5   : > { %v2882_v0 = vpop.permute.xlu1 %2881  ;;  %v2880_v3 = vpop.permute.xlu0 %2879 }
 0x4e6   : > { %v3348_v37 = vmax.f32 %v9925_v13, %v2882_v0  ;;  %v3347_v47 = vmax.f32 %v9926_v30, %v2880_v3  ;;  %v9942_v0 = vld [vmem:[#allocation8_spill] sm:$0xff] }
 0x4e7   : > { %v9943_v3 = vmax.f32 %v9942_v0, 0.0 }
 0x4e8   : > { %v3468_v19 = vmax.f32 %v3344_v18, %v3348_v37  ;;  %v3467_v59 = vmax.f32 %v3343_v35, %v3347_v47  ;;  %v9944_v18 = vld [vmem:[#allocation56_spill] sm:$0xff] }
 0x4e9   : > { %v2886_v15 = vpop.permute.xlu1 %2885  ;;  %v2884_v42 = vpop.permute.xlu0 %2883  ;;  %v9945_v62 = vmax.f32 %v9944_v18, 0.0 }
 0x4ea   : > { %3582 = vst.msk [vmem:[%s6657_s20 + $0x328] sm:$0xff] %vm3479_vm3, %v3468_v19  ;;  %3581 = vst.msk [vmem:[%s6657_s20 + $0x320] sm:$0xff] %vm3479_vm3, %v3467_v59  ;;  %v3350_v27 = vmax.f32 %v9929_v58, %v2886_v15  ;;  %v3349_v10 = vmax.f32 %v9930_v61, %v2884_v42  ;;  %v9946_v19 = vld [vmem:[#allocation51_spill] sm:$0xff]  ;;  %v9949_v42 = vmax.f32 %v9948_v9, 0.0 }
 0x4eb   : > { %v9947_v59 = vmax.f32 %v9946_v19, 0.0  ;;  %v9952_v58 = vld [vmem:[#allocation155_spill] sm:$0xff] }
 0x4ec   : > { %v3470_v41 = vmax.f32 %v3346_v43, %v3350_v27  ;;  %v3469_v52 = vmax.f32 %v3345_v48, %v3349_v10  ;;  %v9950_v43 = vld [vmem:[#allocation57_spill] sm:$0xff]  ;;  %v9953_v27 = vmax.f32 %v9952_v58, 0.0 }
 0x4ed   : > { %v2890_v33 = vpop.permute.xlu1 %2889  ;;  %v2888_v6 = vpop.permute.xlu0 %2887  ;;  %v9951_v51 = vmax.f32 %v9950_v43, 0.0 }
 0x4ee   : > { %3584 = vst.msk [vmem:[%s6657_s20 + $0x338] sm:$0xf] %vm3483_vm4, %v3470_v41  ;;  %v3352_v11 = vmax.f32 %v9931_v53, %v2890_v33  ;;  %v3351_v8 = vmax.f32 %v9932_v7, %v2888_v6 }
 0x4ef   : > { %3583 = vst.msk [vmem:[%s6657_s20 + $0x330] sm:$0xff] %vm3479_vm3, %v3469_v52 }
 0x4f1   : > { %v2894_v50 = vpop.permute.xlu1 %2893  ;;  %v2892_v12 = vpop.permute.xlu0 %2891 }
 0x4f2   : > { %v3354_v23 = vmax.f32 %v9935_v31, %v2894_v50  ;;  %v3353_v25 = vmax.f32 %v9936_v26, %v2892_v12 }
 0x4f5   : > { %v2898_v5 = vpop.permute.xlu1 %2897  ;;  %v2896_v54 = vpop.permute.xlu0 %2895 }
 0x4f6   : > { %v3356_v44 = vmax.f32 %v9933_v56, %v2898_v5  ;;  %v3355_v17 = vmax.f32 %v9934_v45, %v2896_v54 }
 0x4f8   : > { %v3472_v28 = vmax.f32 %v3352_v11, %v3356_v44  ;;  %v3471_v20 = vmax.f32 %v3351_v8, %v3355_v17 }
 0x4f9   : > { %v2902_v57 = vpop.permute.xlu1 %2901  ;;  %v2900_v38 = vpop.permute.xlu0 %2899 }
 0x4fa   : > { %3586 = vst.msk [vmem:[%s6657_s20 + $0x348] sm:$0xff] %vm3479_vm3, %v3472_v28  ;;  %3585 = vst.msk [vmem:[%s6657_s20 + $0x340] sm:$0xff] %vm3479_vm3, %v3471_v20  ;;  %v3358_v29 = vmax.f32 %v9937_v24, %v2902_v57  ;;  %v3357_v1 = vmax.f32 %v9938_v2, %v2900_v38 }
 0x4fc   : > { %v3474_v55 = vmax.f32 %v3354_v23, %v3358_v29  ;;  %v3473_v40 = vmax.f32 %v3353_v25, %v3357_v1 }
 0x4fd   : > { %v2906_v21 = vpop.permute.xlu1 %2905  ;;  %v2904_v22 = vpop.permute.xlu0 %2903 }
 0x4fe   : > { %3588 = vst.msk [vmem:[%s6657_s20 + $0x358] sm:$0xf] %vm3483_vm4, %v3474_v55  ;;  %v3360_v39 = vmax.f32 %v9939_v4, %v2906_v21  ;;  %v3359_v14 = vmax.f32 %v9941_v34, %v2904_v22 }
 0x4ff   : > { %3587 = vst.msk [vmem:[%s6657_s20 + $0x350] sm:$0xff] %vm3479_vm3, %v3473_v40 }
 0x501   : > { %v2910_v46 = vpop.permute.xlu1 %2909  ;;  %v2908_v60 = vpop.permute.xlu0 %2907 }
 0x502   : > { %v3362_v15 = vmax.f32 %v9947_v59, %v2910_v46  ;;  %v3361_v63 = vmax.f32 %v9949_v42, %v2908_v60 }
 0x505   : > { %v2914_v36 = vpop.permute.xlu1 %2913  ;;  %v2912_v16 = vpop.permute.xlu0 %2911 }
 0x506   : > { %v3364_v49 = vmax.f32 %v9943_v3, %v2914_v36  ;;  %v3363_v35 = vmax.f32 %v9945_v62, %v2912_v16 }
 0x508   : > { %v3476_v13 = vmax.f32 %v3360_v39, %v3364_v49  ;;  %v3475_v37 = vmax.f32 %v3359_v14, %v3363_v35 }
 0x509   : > { %v2918_v30 = vpop.permute.xlu1 %2917  ;;  %v2916_v47 = vpop.permute.xlu0 %2915 }
 0x50a   : > { %3590 = vst.msk [vmem:[%s6657_s20 + $0x368] sm:$0xff] %vm3479_vm3, %v3476_v13  ;;  %3589 = vst.msk [vmem:[%s6657_s20 + $0x360] sm:$0xff] %vm3479_vm3, %v3475_v37  ;;  %v3366_v48 = vmax.f32 %v9951_v51, %v2918_v30  ;;  %v3365_v61 = vmax.f32 %v9953_v27, %v2916_v47 }
 0x50c   : > { %v3478_v10 = vmax.f32 %v3362_v15, %v3366_v48  ;;  %v3477_v41 = vmax.f32 %v3361_v63, %v3365_v61 }
 0x50e   : > { %3592 = vst.msk [vmem:[%s6657_s20 + $0x378] sm:$0xf] %vm3483_vm4, %v3478_v10 }
 0x50f   : > { %3591 = vst.msk [vmem:[%s6657_s20 + $0x370] sm:$0xff] %vm3479_vm3, %v3477_v41 }
 0x510 PF: > { %s15_s18 = sadd.s32 1, %s4097_s18  }
 0x511   : > { %p12_p4 = scmp.ge.s32.totalorder %s15_s18, 4  }
 0x513   :  { %14 = sbr.rel (!%p12_p4) target bundleno = 1 (0x1), region = 70 }

// kernel: tile.33
= control target key start
LH: loop header
LB: loop body
LE: loop exit
PB: predicated region body
PF: predicated region fallthrough
CT: control target
= control target key end

     0   :  { %s22_s0 = inlined_call_operand.vmem [shape: f32[32], index: 0, kind: input, shape index: {}]   ;;  %s23_s1 = inlined_call_operand.vmem [shape: f32[2,32], index: 1, kind: output, shape index: {}]  }
   0x1   :  { %v4_v0 = vld [vmem:[%s22_s0] ss:$0 sm:$0xff] }
   0x2   :  { %5 = vst [vmem:[%s23_s1] sm:$0x3] %v4_v0 }

// kernel: tile.34
= control target key start
LH: loop header
LB: loop body
LE: loop exit
PB: predicated region body
PF: predicated region fallthrough
CT: control target
= control target key end

     0   :  { %vm7_vm0 = vcmask 261120   ;;  %vm13_vm1 = vcmask 523520   ;;  %s39_s0 = inlined_call_operand.vmem [shape: f32[2,32], index: 0, kind: input, shape index: {}]   ;;  %s40_s1 = inlined_call_operand.vmem [shape: f32[1,1,64], index: 1, kind: output, shape index: {}]  }
   0x1   :  { %v4_v0 = vld [vmem:[%s39_s0] sm:$0x3]  ;;  %s22_s0 = smov 32  }
   0x2   :  { %5 = vst [vmem:[#allocation1] sm:$0x3] %v4_v0 }
   0x9   :  { %v10_v1 = vld [vmem:[#allocation1 + $0x1] sm:$0x1]   ;;  %v6_v2 = vld [vmem:[#allocation1] sm:$0x1]  }
   0xa   :  { %11 = vrot.lane.b32.xlu0 %v10_v1, %s22_s0  ;;  %8 = vst.msk [vmem:[#allocation0] sm:$0x1] %vm7_vm0, %v6_v2  }
  0x7c   :  { %v12_v3 = vpop.permute.xlu0 %11  }
  0x7d   :  { %14 = vst.msk [vmem:[#allocation0] sm:$0x1] %vm13_vm1, %v12_v3  }
  0x84   :  { %v18_v4 = vld [vmem:[#allocation0] sm:$0x1] }
  0x85   :  { %20 = vst [vmem:[%s40_s1] sm:$0x1] %v18_v4 }

// kernel: forward.7
= control target key start
LH: loop header
LB: loop body
LE: loop exit
PB: predicated region body
PF: predicated region fallthrough
CT: control target
= control target key end

     0   :  { %s3249_s9 = smov 0   ;;  %s4650_s0 = inlined_call_operand.vmem [shape: f32[392,3136], index: 0, kind: input, shape index: {}]   ;;  %s4651_s1 = inlined_call_operand.vmem [shape: f32[3136,32], index: 1, kind: input, shape index: {}]   ;;  %s4652_s2 = inlined_call_operand.vmem [shape: f32[392,32], index: 2, kind: output, shape index: {}]  }
   0x1 LB: > { %s2103_s10 = sadd.s32 4294967295, %s3229_s9   ;;  %p2107_p0 = scmp.ge.s32.totalorder %s3229_s9, 1  ;;  %s3229_s9 = sphi %s3249_s9, %s12_s9  }
   0x2   : > { %p114_p1 = scmp.lt.s32.totalorder %s3229_s9, 8 }
   0x4   : > { %p115_p2 = pnand %p2107_p0, %p114_p1 }
   0x5   : > { %v341_v0 = vld [vmem:[%s4651_s1 + $0x80] sm:$0xff] (!%p115_p2)  ;;  %v342_v1 = vld [vmem:[%s4651_s1 + $0x88] sm:$0xff] (!%p115_p2)  ;;  %v343_v11 = vld [vmem:[%s4651_s1 + $0x90] sm:$0xff] (!%p115_p2)  ;;  %s3284_s29 = smul.u32 (!%p115_p2), 7, %s2103_s10  ;;  %vm3232_vm0 = vmmov (!%p115_p2), 0   ;;  %vm717_vm1 = vcmask (!%p115_p2), 523264  }
   0x6   : > { %118 = sbr.rel (%p115_p2) target bundleno = 456 (0x1c8), region = 28  ;;  %v373_v2 = vld [vmem:[%s4651_s1 + $0x180] sm:$0xff] (!%p115_p2)  ;;  %v2807_v3 = vpack.c.bf16 (!%p115_p2), %v342_v1, %v341_v0  ;;  %v374_v4 = vld [vmem:[%s4651_s1 + $0x188] sm:$0xff] (!%p115_p2)  ;;  %v344_v13 = vld [vmem:[%s4651_s1 + $0x98] sm:$0xff] (!%p115_p2)  ;;  %vm2039_vm2 = vcmask (!%p115_p2), 261120  }
   0x7   : > { %v325_v5 = vld [vmem:[%s4651_s1] sm:$0xff] (!%p115_p2)  ;;  %v326_v6 = vld [vmem:[%s4651_s1 + $0x8] sm:$0xff] (!%p115_p2)  ;;  %v2839_v7 = vpack.c.bf16 (!%p115_p2), %v374_v4, %v373_v2  ;;  %v375_v14 = vld [vmem:[%s4651_s1 + $0x190] sm:$0xff] (!%p115_p2)  ;;  %v2811_v16 = vpack.c.bf16 (!%p115_p2), %v344_v13, %v343_v11  ;;  %p138_p3 = scmp.lt.s32.totalorder (!%p115_p2), %s3284_s29, 48 }
   0x8   : > { %v2809_v8 = vpack.c.bf16 (!%p115_p2), %v326_v6, %v325_v5  ;;  %v357_v9 = vld [vmem:[%s4651_s1 + $0x100] sm:$0xff] (!%p115_p2)  ;;  %v358_v10 = vld [vmem:[%s4651_s1 + $0x108] sm:$0xff] (!%p115_p2)  ;;  %2808 = vmatprep.subr.bf16.mxu0 (!%p115_p2), %v2807_v3  ;;  %v376_v15 = vld [vmem:[%s4651_s1 + $0x198] sm:$0xff] (!%p115_p2) }
   0x9   : > { %v2841_v12 = vpack.c.bf16 (!%p115_p2), %v358_v10, %v357_v9  ;;  %2840 = vmatprep.subr.bf16.mxu1 (!%p115_p2), %v2839_v7  ;;  %v2843_v17 = vpack.c.bf16 (!%p115_p2), %v376_v15, %v375_v14  ;;  %v327_v18 = vld [vmem:[%s4651_s1 + $0x10] sm:$0xff] (!%p115_p2)  ;;  %v328_v19 = vld [vmem:[%s4651_s1 + $0x18] sm:$0xff] (!%p115_p2)  ;;  %v345_v23 = vld [vmem:[%s4651_s1 + $0xa0] sm:$0xff] (!%p115_p2) }
   0xa   : > { %2810 = vmatpush3.bf16.msra.mxu0 (!%p115_p2), %v2809_v8  ;;  %v359_v20 = vld [vmem:[%s4651_s1 + $0x110] sm:$0xff] (!%p115_p2)  ;;  %v2813_v21 = vpack.c.bf16 (!%p115_p2), %v328_v19, %v327_v18  ;;  %v360_v22 = vld [vmem:[%s4651_s1 + $0x118] sm:$0xff] (!%p115_p2)  ;;  %v346_v24 = vld [vmem:[%s4651_s1 + $0xa8] sm:$0xff] (!%p115_p2) }
   0xb   : > { %2842 = vmatpush3.bf16.msra.mxu1 (!%p115_p2), %v2841_v12  ;;  %2812 = vmatprep.subr.bf16.mxu0 (!%p115_p2), %v2811_v16  ;;  %v2845_v25 = vpack.c.bf16 (!%p115_p2), %v360_v22, %v359_v20  ;;  %v2815_v26 = vpack.c.bf16 (!%p115_p2), %v346_v24, %v345_v23  ;;  %v377_v27 = vld [vmem:[%s4651_s1 + $0x1a0] sm:$0xff] (!%p115_p2)  ;;  %v378_v28 = vld [vmem:[%s4651_s1 + $0x1a8] sm:$0xff] (!%p115_p2)  ;;  %v347_v35 = vld [vmem:[%s4651_s1 + $0xb0] sm:$0xff] (!%p115_p2) }
   0xc   : > { %2844 = vmatprep.subr.bf16.mxu1 (!%p115_p2), %v2843_v17  ;;  %v329_v29 = vld [vmem:[%s4651_s1 + $0x20] sm:$0xff] (!%p115_p2)  ;;  %v2847_v30 = vpack.c.bf16 (!%p115_p2), %v378_v28, %v377_v27  ;;  %v330_v31 = vld [vmem:[%s4651_s1 + $0x28] sm:$0xff] (!%p115_p2)  ;;  %v348_v36 = vld [vmem:[%s4651_s1 + $0xb8] sm:$0xff] (!%p115_p2) }
   0xd   : > { %v361_v32 = vld [vmem:[%s4651_s1 + $0x120] sm:$0xff]  ;;  %v362_v33 = vld [vmem:[%s4651_s1 + $0x128] sm:$0xff]  ;;  %v2817_v34 = vpack.c.bf16 %v330_v31, %v329_v29  ;;  %v379_v37 = vld [vmem:[%s4651_s1 + $0x1b0] sm:$0xff]  ;;  %v2819_v39 = vpack.c.bf16 %v348_v36, %v347_v35  ;;  %s4654_s29 = smov (!%p138_p3, %s3284_s29), 48 }
   0xe   : > { %2814 = vmatpush3.bf16.msra.mxu0 %v2813_v21  ;;  %v2849_v38 = vpack.c.bf16 %v362_v33, %v361_v32  ;;  %v380_v40 = vld [vmem:[%s4651_s1 + $0x1b8] sm:$0xff]  ;;  %v331_v41 = vld [vmem:[%s4651_s1 + $0x30] sm:$0xff]  ;;  %v349_v46 = vld [vmem:[%s4651_s1 + $0xc0] sm:$0xff]  ;;  %s3211_s17 = smul.u32 200, %s4654_s29 }
   0xf   : > { %2846 = vmatpush3.bf16.msra.mxu1 %v2845_v25  ;;  %2816 = vmatprep.subr.bf16.mxu0 %v2815_v26  ;;  %v332_v42 = vld [vmem:[%s4651_s1 + $0x38] sm:$0xff]  ;;  %v2851_v43 = vpack.c.bf16 %v380_v40, %v379_v37  ;;  %v363_v44 = vld [vmem:[%s4651_s1 + $0x130] sm:$0xff]  ;;  %v350_v47 = vld [vmem:[%s4651_s1 + $0xc8] sm:$0xff] }
  0x10   : > { %2848 = vmatprep.subr.bf16.mxu1 %v2847_v30  ;;  %v364_v45 = vld [vmem:[%s4651_s1 + $0x138] sm:$0xff]  ;;  %v381_v48 = vld [vmem:[%s4651_s1 + $0x1c0] sm:$0xff]  ;;  %v382_v49 = vld [vmem:[%s4651_s1 + $0x1c8] sm:$0xff]  ;;  %v2821_v50 = vpack.c.bf16 %v332_v42, %v331_v41  ;;  %v2823_v52 = vpack.c.bf16 %v350_v47, %v349_v46  ;;  %s3419_s10 = scalar_lea.vmem %s4650_s0, %s3211_s17 }
  0x11   : > { %v2853_v51 = vpack.c.bf16 %v364_v45, %v363_v44  ;;  %v333_v53 = vld [vmem:[%s4651_s1 + $0x40] sm:$0xff]  ;;  %v334_v54 = vld [vmem:[%s4651_s1 + $0x48] sm:$0xff]  ;;  %v2855_v56 = vpack.c.bf16 %v382_v49, %v381_v48  ;;  %v351_v58 = vld [vmem:[%s4651_s1 + $0xd0] sm:$0xff] }
  0x12   : > { %2818 = vmatpush3.bf16.msra.mxu0 %v2817_v34  ;;  %v365_v55 = vld [vmem:[%s4651_s1 + $0x140] sm:$0xff]  ;;  %v366_v57 = vld [vmem:[%s4651_s1 + $0x148] sm:$0xff]  ;;  %v352_v59 = vld [vmem:[%s4651_s1 + $0xd8] sm:$0xff]  ;;  %v2825_v62 = vpack.c.bf16 %v334_v54, %v333_v53 }
  0x13   : > { %2850 = vmatpush3.bf16.msra.mxu1 %v2849_v38  ;;  %2820 = vmatprep.subr.bf16.mxu0 %v2819_v39  ;;  %v383_v60 = vld [vmem:[%s4651_s1 + $0x1d0] sm:$0xff]  ;;  %v384_v61 = vld [vmem:[%s4651_s1 + $0x1d8] sm:$0xff]  ;;  %v2857_v63 = vpack.c.bf16 %v366_v57, %v365_v55  ;;  %v2827_v0 = vpack.c.bf16 %v352_v59, %v351_v58  ;;  %v353_v6 = vld [vmem:[%s4651_s1 + $0xe0] sm:$0xff] }
  0x14   : > { %2852 = vmatprep.subr.bf16.mxu1 %v2851_v43  ;;  %v335_v1 = vld [vmem:[%s4651_s1 + $0x50] sm:$0xff]  ;;  %v336_v2 = vld [vmem:[%s4651_s1 + $0x58] sm:$0xff]  ;;  %v2859_v4 = vpack.c.bf16 %v384_v61, %v383_v60  ;;  %v354_v7 = vld [vmem:[%s4651_s1 + $0xe8] sm:$0xff] }
  0x15   : > { %v367_v3 = vld [vmem:[%s4651_s1 + $0x150] sm:$0xff]  ;;  %v368_v5 = vld [vmem:[%s4651_s1 + $0x158] sm:$0xff]  ;;  %v385_v8 = vld [vmem:[%s4651_s1 + $0x1e0] sm:$0xff]  ;;  %v2829_v10 = vpack.c.bf16 %v336_v2, %v335_v1  ;;  %v2831_v14 = vpack.c.bf16 %v354_v7, %v353_v6 }
  0x16   : > { %2822 = vmatpush3.bf16.msra.mxu0 %v2821_v50  ;;  %v386_v9 = vld [vmem:[%s4651_s1 + $0x1e8] sm:$0xff]  ;;  %v337_v11 = vld [vmem:[%s4651_s1 + $0x60] sm:$0xff]  ;;  %v2861_v13 = vpack.c.bf16 %v368_v5, %v367_v3  ;;  %v153_v17 = vld [vmem:[%s3419_s10 + $0x18] sm:$0xff] }
  0x17   : > { %2854 = vmatpush3.bf16.msra.mxu1 %v2853_v51  ;;  %2824 = vmatprep.subr.bf16.mxu0 %v2823_v52  ;;  %v338_v12 = vld [vmem:[%s4651_s1 + $0x68] sm:$0xff]  ;;  %v369_v15 = vld [vmem:[%s4651_s1 + $0x160] sm:$0xff]  ;;  %v2863_v18 = vpack.c.bf16 %v386_v9, %v385_v8  ;;  %v355_v20 = vld [vmem:[%s4651_s1 + $0xf0] sm:$0xff] }
  0x18   : > { %2856 = vmatprep.subr.bf16.mxu1 %v2855_v56  ;;  %v151_v16 = vld [vmem:[%s3419_s10 + $0x8] sm:$0xff]  ;;  %v356_v21 = vld [vmem:[%s4651_s1 + $0xf8] sm:$0xff]  ;;  %v387_v22 = vld [vmem:[%s4651_s1 + $0x1f0] sm:$0xff]  ;;  %903 = vmatprep.mubr.f32.mxu1 %v153_v17  ;;  %v2833_v24 = vpack.c.bf16 %v338_v12, %v337_v11 }
  0x19   : > { %v370_v19 = vld [vmem:[%s4651_s1 + $0x168] sm:$0xff]  ;;  %803 = vmatprep.mubr.f32.mxu0 %v151_v16  ;;  %v388_v23 = vld [vmem:[%s4651_s1 + $0x1f8] sm:$0xff]  ;;  %v2835_v26 = vpack.c.bf16 %v356_v21, %v355_v20  ;;  %v339_v27 = vld [vmem:[%s4651_s1 + $0x70] sm:$0xff] }
  0x1a   : > { %2826 = vmatpush3.bf16.msra.mxu0 %v2825_v62  ;;  %v2865_v25 = vpack.c.bf16 %v370_v19, %v369_v15  ;;  %v340_v28 = vld [vmem:[%s4651_s1 + $0x78] sm:$0xff]  ;;  %v371_v29 = vld [vmem:[%s4651_s1 + $0x170] sm:$0xff]  ;;  %v2867_v30 = vpack.c.bf16 %v388_v23, %v387_v22  ;;  %v405_v32 = vld [vmem:[%s4651_s1 + $0x280] sm:$0xff] }
  0x1b   : > { %2858 = vmatpush3.bf16.msra.mxu1 %v2857_v63  ;;  %2828 = vmatprep.subr.bf16.mxu0 %v2827_v0  ;;  %v372_v31 = vld [vmem:[%s4651_s1 + $0x178] sm:$0xff]  ;;  %v406_v33 = vld [vmem:[%s4651_s1 + $0x288] sm:$0xff]  ;;  %v437_v34 = vld [vmem:[%s4651_s1 + $0x380] sm:$0xff]  ;;  %v2837_v36 = vpack.c.bf16 %v340_v28, %v339_v27 }
  0x1c   : > { %2860 = vmatprep.subr.bf16.mxu1 %v2859_v4  ;;  %v438_v35 = vld [vmem:[%s4651_s1 + $0x388] sm:$0xff]  ;;  %v2869_v37 = vpack.c.bf16 %v372_v31, %v371_v29  ;;  %v2871_v38 = vpack.c.bf16 %v406_v33, %v405_v32  ;;  %v389_v39 = vld [vmem:[%s4651_s1 + $0x200] sm:$0xff]  ;;  %v407_v44 = vld [vmem:[%s4651_s1 + $0x290] sm:$0xff] }
  0x1d   : > { %v390_v40 = vld [vmem:[%s4651_s1 + $0x208] sm:$0xff]  ;;  %v421_v41 = vld [vmem:[%s4651_s1 + $0x300] sm:$0xff]  ;;  %v2903_v42 = vpack.c.bf16 %v438_v35, %v437_v34  ;;  %v408_v45 = vld [vmem:[%s4651_s1 + $0x298] sm:$0xff] }
  0x1e   : > { %2830 = vmatpush3.bf16.msra.mxu0 %v2829_v10  ;;  %v422_v43 = vld [vmem:[%s4651_s1 + $0x308] sm:$0xff]  ;;  %v439_v46 = vld [vmem:[%s4651_s1 + $0x390] sm:$0xff]  ;;  %v440_v47 = vld [vmem:[%s4651_s1 + $0x398] sm:$0xff]  ;;  %v2873_v50 = vpack.c.bf16 %v390_v40, %v389_v39  ;;  %v2875_v52 = vpack.c.bf16 %v408_v45, %v407_v44 }
  0x1f   : > { %2862 = vmatpush3.bf16.msra.mxu1 %v2861_v13  ;;  %2832 = vmatprep.subr.bf16.mxu0 %v2831_v14  ;;  %v150_v48 = vld [vmem:[%s3419_s10] sm:$0xff]  ;;  %v152_v49 = vld [vmem:[%s3419_s10 + $0x10] sm:$0xff]  ;;  %v2905_v51 = vpack.c.bf16 %v422_v43, %v421_v41  ;;  %v392_v54 = vld [vmem:[%s4651_s1 + $0x218] sm:$0xff]  ;;  %v2907_v56 = vpack.c.bf16 %v440_v47, %v439_v46 }
  0x20   : > { %2864 = vmatprep.subr.bf16.mxu1 %v2863_v18  ;;  %v391_v53 = vld [vmem:[%s4651_s1 + $0x210] sm:$0xff]  ;;  %v424_v57 = vld [vmem:[%s4651_s1 + $0x318] sm:$0xff]  ;;  %v409_v58 = vld [vmem:[%s4651_s1 + $0x2a0] sm:$0xff] }
  0x21   : > { %v423_v55 = vld [vmem:[%s4651_s1 + $0x310] sm:$0xff]  ;;  %v410_v59 = vld [vmem:[%s4651_s1 + $0x2a8] sm:$0xff]  ;;  %v441_v61 = vld [vmem:[%s4651_s1 + $0x3a0] sm:$0xff]  ;;  %v2877_v63 = vpack.c.bf16 %v392_v54, %v391_v53 }
  0x22   : > { %2834 = vmatpush3.bf16.msra.mxu0 %v2833_v24  ;;  %v176_v60 = vld [vmem:[%s3419_s10 + $0xd0] sm:$0xff]  ;;  %v442_v62 = vld [vmem:[%s4651_s1 + $0x3a8] sm:$0xff]  ;;  %v178_v0 = vld [vmem:[%s3419_s10 + $0xe0] sm:$0xff]  ;;  %v2909_v3 = vpack.c.bf16 %v424_v57, %v423_v55  ;;  %v2879_v4 = vpack.c.bf16 %v410_v59, %v409_v58 }
  0x23   : > { %2866 = vmatpush3.bf16.msra.mxu1 %v2865_v25  ;;  %2836 = vmatprep.subr.bf16.mxu0 %v2835_v26  ;;  %v175_v1 = vld [vmem:[%s3419_s10 + $0xc8] sm:$0xff]  ;;  %v177_v2 = vld [vmem:[%s3419_s10 + $0xd8] sm:$0xff]  ;;  %v393_v5 = vld [vmem:[%s4651_s1 + $0x220] sm:$0xff]  ;;  %v2911_v8 = vpack.c.bf16 %v442_v62, %v441_v61 }
  0x24   : > { %2868 = vmatprep.subr.bf16.mxu1 %v2867_v30  ;;  %v394_v6 = vld [vmem:[%s4651_s1 + $0x228] sm:$0xff]  ;;  %v425_v7 = vld [vmem:[%s4651_s1 + $0x320] sm:$0xff]  ;;  %v411_v10 = vld [vmem:[%s4651_s1 + $0x2b0] sm:$0xff] }
  0x25   : > { %v426_v9 = vld [vmem:[%s4651_s1 + $0x328] sm:$0xff]  ;;  %v412_v11 = vld [vmem:[%s4651_s1 + $0x2b8] sm:$0xff]  ;;  %v443_v13 = vld [vmem:[%s4651_s1 + $0x3b0] sm:$0xff]  ;;  %v2881_v15 = vpack.c.bf16 %v394_v6, %v393_v5 }
  0x26   : > { %2838 = vmatpush3.bf16.msra.mxu0 %v2837_v36  ;;  %v201_v12 = vld [vmem:[%s3419_s10 + $0x198] sm:$0xff]  ;;  %v203_v16 = vld [vmem:[%s3419_s10 + $0x1a8] sm:$0xff]  ;;  %v200_v17 = vld [vmem:[%s3419_s10 + $0x190] sm:$0xff]  ;;  %v2913_v19 = vpack.c.bf16 %v426_v9, %v425_v7  ;;  %v2883_v20 = vpack.c.bf16 %v412_v11, %v411_v10 }
  0x27   : > { %2870 = vmatpush3.bf16.msra.mxu1 %v2869_v37  ;;  %2872 = vmatprep.subr.bf16.mxu0 %v2871_v38  ;;  %v444_v14 = vld [vmem:[%s4651_s1 + $0x3b8] sm:$0xff]  ;;  %v202_v18 = vld [vmem:[%s3419_s10 + $0x1a0] sm:$0xff]  ;;  %v395_v21 = vld [vmem:[%s4651_s1 + $0x230] sm:$0xff] }
  0x28   : > { %2904 = vmatprep.subr.bf16.mxu1 %v2903_v42  ;;  %v396_v22 = vld [vmem:[%s4651_s1 + $0x238] sm:$0xff]  ;;  %v427_v23 = vld [vmem:[%s4651_s1 + $0x330] sm:$0xff]  ;;  %v2915_v24 = vpack.c.bf16 %v444_v14, %v443_v13  ;;  %v413_v26 = vld [vmem:[%s4651_s1 + $0x2c0] sm:$0xff] }
  0x29   : > { %804 = vmatmul.mubr.f32.vlgmr.msra.gmra.mrb[0].mxu0 %v150_v48  ;;  %v428_v25 = vld [vmem:[%s4651_s1 + $0x338] sm:$0xff]  ;;  %v414_v27 = vld [vmem:[%s4651_s1 + $0x2c8] sm:$0xff]  ;;  %v226_v28 = vld [vmem:[%s3419_s10 + $0x260] sm:$0xff]  ;;  %v2885_v31 = vpack.c.bf16 %v396_v22, %v395_v21 }
  0x2a   : > { %904 = vmatmul.mubr.f32.vlgmr.msra.gmra.mrb[0].mxu1 %v152_v49  ;;  %2874 = vmatpush3.bf16.msra.mxu0 %v2873_v50  ;;  %v445_v29 = vld [vmem:[%s4651_s1 + $0x3c0] sm:$0xff]  ;;  %v446_v30 = vld [vmem:[%s4651_s1 + $0x3c8] sm:$0xff]  ;;  %v228_v32 = vld [vmem:[%s3419_s10 + $0x270] sm:$0xff]  ;;  %v2917_v35 = vpack.c.bf16 %v428_v25, %v427_v23  ;;  %v2887_v36 = vpack.c.bf16 %v414_v27, %v413_v26 }
  0x2b   : > { %2906 = vmatpush3.bf16.msra.mxu1 %v2905_v51  ;;  %2876 = vmatprep.subr.bf16.mxu0 %v2875_v52  ;;  %v225_v33 = vld [vmem:[%s3419_s10 + $0x258] sm:$0xff]  ;;  %v227_v34 = vld [vmem:[%s3419_s10 + $0x268] sm:$0xff]  ;;  %v397_v37 = vld [vmem:[%s4651_s1 + $0x240] sm:$0xff]  ;;  %v2919_v40 = vpack.c.bf16 %v446_v30, %v445_v29 }
  0x2c   : > { %2908 = vmatprep.subr.bf16.mxu1 %v2907_v56  ;;  %808 = vmatprep.mubr.f32.mxu0 %v176_v60  ;;  %v398_v38 = vld [vmem:[%s4651_s1 + $0x248] sm:$0xff]  ;;  %v429_v39 = vld [vmem:[%s4651_s1 + $0x340] sm:$0xff]  ;;  %v415_v42 = vld [vmem:[%s4651_s1 + $0x2d0] sm:$0xff] }
  0x2d   : > { %908 = vmatprep.mubr.f32.mxu1 %v178_v0  ;;  %809 = vmatmul.mubr.f32.gmra.mrb[2].mxu0 %v175_v1  ;;  %v430_v41 = vld [vmem:[%s4651_s1 + $0x348] sm:$0xff]  ;;  %v416_v43 = vld [vmem:[%s4651_s1 + $0x2d8] sm:$0xff]  ;;  %v447_v45 = vld [vmem:[%s4651_s1 + $0x3d0] sm:$0xff]  ;;  %v2889_v47 = vpack.c.bf16 %v398_v38, %v397_v37 }
  0x2e   : > { %2878 = vmatpush3.bf16.msra.mxu0 %v2877_v63  ;;  %909 = vmatmul.mubr.f32.gmra.mrb[2].mxu1 %v177_v2  ;;  %v251_v44 = vld [vmem:[%s3419_s10 + $0x328] sm:$0xff]  ;;  %v448_v46 = vld [vmem:[%s4651_s1 + $0x3d8] sm:$0xff]  ;;  %v250_v49 = vld [vmem:[%s3419_s10 + $0x320] sm:$0xff]  ;;  %v2921_v51 = vpack.c.bf16 %v430_v41, %v429_v39  ;;  %v2891_v52 = vpack.c.bf16 %v416_v43, %v415_v42 }
  0x2f   : > { %2910 = vmatpush3.bf16.msra.mxu1 %v2909_v3  ;;  %2880 = vmatprep.subr.bf16.mxu0 %v2879_v4  ;;  %v253_v48 = vld [vmem:[%s3419_s10 + $0x338] sm:$0xff]  ;;  %v252_v50 = vld [vmem:[%s3419_s10 + $0x330] sm:$0xff]  ;;  %v2923_v56 = vpack.c.bf16 %v448_v46, %v447_v45  ;;  %v417_v58 = vld [vmem:[%s4651_s1 + $0x2e0] sm:$0xff] }
  0x30   : > { %2912 = vmatprep.subr.bf16.mxu1 %v2911_v8  ;;  %813 = vmatprep.mubr.f32.mxu0 %v201_v12  ;;  %v399_v53 = vld [vmem:[%s4651_s1 + $0x250] sm:$0xff]  ;;  %v400_v54 = vld [vmem:[%s4651_s1 + $0x258] sm:$0xff]  ;;  %v418_v59 = vld [vmem:[%s4651_s1 + $0x2e8] sm:$0xff] }
  0x31   : > { %913 = vmatprep.mubr.f32.mxu1 %v203_v16  ;;  %814 = vmatmul.mubr.f32.gmra.mrb[4].mxu0 %v200_v17  ;;  %v431_v55 = vld [vmem:[%s4651_s1 + $0x350] sm:$0xff]  ;;  %v432_v57 = vld [vmem:[%s4651_s1 + $0x358] sm:$0xff]  ;;  %v449_v61 = vld [vmem:[%s4651_s1 + $0x3e0] sm:$0xff]  ;;  %v2893_v63 = vpack.c.bf16 %v400_v54, %v399_v53  ;;  %v2895_v4 = vpack.c.bf16 %v418_v59, %v417_v58 }
  0x32   : > { %2882 = vmatpush3.bf16.msra.mxu0 %v2881_v15  ;;  %914 = vmatmul.mubr.f32.gmra.mrb[4].mxu1 %v202_v18  ;;  %v276_v60 = vld [vmem:[%s3419_s10 + $0x3f0] sm:$0xff]  ;;  %v450_v62 = vld [vmem:[%s4651_s1 + $0x3e8] sm:$0xff]  ;;  %v278_v0 = vld [vmem:[%s3419_s10 + $0x400] sm:$0xff]  ;;  %v2925_v3 = vpack.c.bf16 %v432_v57, %v431_v55 }
  0x33   : > { %2914 = vmatpush3.bf16.msra.mxu1 %v2913_v19  ;;  %2884 = vmatprep.subr.bf16.mxu0 %v2883_v20  ;;  %v275_v1 = vld [vmem:[%s3419_s10 + $0x3e8] sm:$0xff]  ;;  %v277_v2 = vld [vmem:[%s3419_s10 + $0x3f8] sm:$0xff]  ;;  %v401_v5 = vld [vmem:[%s4651_s1 + $0x260] sm:$0xff]  ;;  %v2927_v8 = vpack.c.bf16 %v450_v62, %v449_v61 }
  0x34   : > { %2916 = vmatprep.subr.bf16.mxu1 %v2915_v24  ;;  %818 = vmatprep.mubr.f32.mxu0 %v226_v28  ;;  %v402_v6 = vld [vmem:[%s4651_s1 + $0x268] sm:$0xff]  ;;  %v433_v7 = vld [vmem:[%s4651_s1 + $0x360] sm:$0xff]  ;;  %v419_v10 = vld [vmem:[%s4651_s1 + $0x2f0] sm:$0xff] }
  0x35   : > { %918 = vmatprep.mubr.f32.mxu1 %v228_v32  ;;  %819 = vmatmul.mubr.f32.gmra.mrb[6].mxu0 %v225_v33  ;;  %v434_v9 = vld [vmem:[%s4651_s1 + $0x368] sm:$0xff]  ;;  %v420_v11 = vld [vmem:[%s4651_s1 + $0x2f8] sm:$0xff]  ;;  %v451_v13 = vld [vmem:[%s4651_s1 + $0x3f0] sm:$0xff]  ;;  %v2897_v15 = vpack.c.bf16 %v402_v6, %v401_v5 }
  0x36   : > { %2886 = vmatpush3.bf16.msra.mxu0 %v2885_v31  ;;  %919 = vmatmul.mubr.f32.gmra.mrb[6].mxu1 %v227_v34  ;;  %v301_v12 = vld [vmem:[%s3419_s10 + $0x4b8] sm:$0xff]  ;;  %v303_v16 = vld [vmem:[%s3419_s10 + $0x4c8] sm:$0xff]  ;;  %v300_v17 = vld [vmem:[%s3419_s10 + $0x4b0] sm:$0xff]  ;;  %v2929_v19 = vpack.c.bf16 %v434_v9, %v433_v7  ;;  %v2899_v20 = vpack.c.bf16 %v420_v11, %v419_v10 }
  0x37   : > { %2918 = vmatpush3.bf16.msra.mxu1 %v2917_v35  ;;  %2888 = vmatprep.subr.bf16.mxu0 %v2887_v36  ;;  %v452_v14 = vld [vmem:[%s4651_s1 + $0x3f8] sm:$0xff]  ;;  %v302_v18 = vld [vmem:[%s3419_s10 + $0x4c0] sm:$0xff]  ;;  %v403_v21 = vld [vmem:[%s4651_s1 + $0x270] sm:$0xff] }
  0x38   : > { %2920 = vmatprep.subr.bf16.mxu1 %v2919_v40  ;;  %823 = vmatprep.mubr.f32.mxu0 %v251_v44  ;;  %v404_v22 = vld [vmem:[%s4651_s1 + $0x278] sm:$0xff]  ;;  %v435_v23 = vld [vmem:[%s4651_s1 + $0x370] sm:$0xff]  ;;  %v2931_v24 = vpack.c.bf16 %v452_v14, %v451_v13  ;;  %v469_v26 = vld [vmem:[%s4651_s1 + $0x480] sm:$0xff] }
  0x39   : > { %923 = vmatprep.mubr.f32.mxu1 %v253_v48  ;;  %824 = vmatmul.mubr.f32.gmra.mrb[8].mxu0 %v250_v49  ;;  %v436_v25 = vld [vmem:[%s4651_s1 + $0x378] sm:$0xff]  ;;  %v470_v27 = vld [vmem:[%s4651_s1 + $0x488] sm:$0xff]  ;;  %v501_v29 = vld [vmem:[%s4651_s1 + $0x580] sm:$0xff]  ;;  %v2901_v31 = vpack.c.bf16 %v404_v22, %v403_v21 }
  0x3a   : > { %2890 = vmatpush3.bf16.msra.mxu0 %v2889_v47  ;;  %924 = vmatmul.mubr.f32.gmra.mrb[8].mxu1 %v252_v50  ;;  %v155_v28 = vld [vmem:[%s3419_s10 + $0x28] sm:$0xff]  ;;  %v157_v32 = vld [vmem:[%s3419_s10 + $0x38] sm:$0xff]  ;;  %v2933_v33 = vpack.c.bf16 %v436_v25, %v435_v23  ;;  %v2935_v34 = vpack.c.bf16 %v470_v27, %v469_v26  ;;  %v453_v35 = vld [vmem:[%s4651_s1 + $0x400] sm:$0xff] }
  0x3b   : > { %2922 = vmatpush3.bf16.msra.mxu1 %v2921_v51  ;;  %2892 = vmatprep.subr.bf16.mxu0 %v2891_v52  ;;  %v502_v30 = vld [vmem:[%s4651_s1 + $0x588] sm:$0xff]  ;;  %v485_v38 = vld [vmem:[%s4651_s1 + $0x500] sm:$0xff]  ;;  %v471_v40 = vld [vmem:[%s4651_s1 + $0x490] sm:$0xff] }
  0x3c   : > { %2924 = vmatprep.subr.bf16.mxu1 %v2923_v56  ;;  %828 = vmatprep.mubr.f32.mxu0 %v276_v60  ;;  %v454_v36 = vld [vmem:[%s4651_s1 + $0x408] sm:$0xff]  ;;  %v2967_v37 = vpack.c.bf16 %v502_v30, %v501_v29  ;;  %v472_v41 = vld [vmem:[%s4651_s1 + $0x498] sm:$0xff]  ;;  %v503_v42 = vld [vmem:[%s4651_s1 + $0x590] sm:$0xff] }
  0x3d   : > { %928 = vmatprep.mubr.f32.mxu1 %v278_v0  ;;  %829 = vmatmul.mubr.f32.gmra.mrb[10].mxu0 %v275_v1  ;;  %v486_v39 = vld [vmem:[%s4651_s1 + $0x508] sm:$0xff]  ;;  %v504_v43 = vld [vmem:[%s4651_s1 + $0x598] sm:$0xff]  ;;  %v154_v44 = vld [vmem:[%s3419_s10 + $0x20] sm:$0xff]  ;;  %v2937_v46 = vpack.c.bf16 %v454_v36, %v453_v35  ;;  %v2939_v51 = vpack.c.bf16 %v472_v41, %v471_v40 }
  0x3e   : > { %2894 = vmatpush3.bf16.msra.mxu0 %v2893_v63  ;;  %929 = vmatmul.mubr.f32.gmra.mrb[10].mxu1 %v277_v2  ;;  %v156_v45 = vld [vmem:[%s3419_s10 + $0x30] sm:$0xff]  ;;  %v2969_v47 = vpack.c.bf16 %v486_v39, %v485_v38  ;;  %v456_v50 = vld [vmem:[%s4651_s1 + $0x418] sm:$0xff]  ;;  %v2971_v52 = vpack.c.bf16 %v504_v43, %v503_v42  ;;  %v473_v55 = vld [vmem:[%s4651_s1 + $0x4a0] sm:$0xff] }
  0x3f   : > { %2926 = vmatpush3.bf16.msra.mxu1 %v2925_v3  ;;  %2896 = vmatprep.subr.bf16.mxu0 %v2895_v4  ;;  %v180_v48 = vld [vmem:[%s3419_s10 + $0xf0] sm:$0xff]  ;;  %v488_v54 = vld [vmem:[%s4651_s1 + $0x518] sm:$0xff]  ;;  %v474_v56 = vld [vmem:[%s4651_s1 + $0x4a8] sm:$0xff] }
  0x40   : > { %2928 = vmatprep.subr.bf16.mxu1 %v2927_v8  ;;  %833 = vmatprep.mubr.f32.mxu0 %v301_v12  ;;  %v455_v49 = vld [vmem:[%s4651_s1 + $0x410] sm:$0xff]  ;;  %v505_v57 = vld [vmem:[%s4651_s1 + $0x5a0] sm:$0xff]  ;;  %v506_v58 = vld [vmem:[%s4651_s1 + $0x5a8] sm:$0xff]  ;;  %v2943_v3 = vpack.c.bf16 %v474_v56, %v473_v55 }
  0x41   : > { %933 = vmatprep.mubr.f32.mxu1 %v303_v16  ;;  %834 = vmatmul.mubr.f32.gmra.mrb[12].mxu0 %v300_v17  ;;  %v487_v53 = vld [vmem:[%s4651_s1 + $0x510] sm:$0xff]  ;;  %v179_v59 = vld [vmem:[%s3419_s10 + $0xe8] sm:$0xff]  ;;  %v182_v60 = vld [vmem:[%s3419_s10 + $0x100] sm:$0xff]  ;;  %v2941_v61 = vpack.c.bf16 %v456_v50, %v455_v49  ;;  %v2975_v4 = vpack.c.bf16 %v506_v58, %v505_v57 }
  0x42   : > { %2898 = vmatpush3.bf16.msra.mxu0 %v2897_v15  ;;  %934 = vmatmul.mubr.f32.gmra.mrb[12].mxu1 %v302_v18  ;;  %v181_v62 = vld [vmem:[%s3419_s10 + $0xf8] sm:$0xff]  ;;  %v2973_v63 = vpack.c.bf16 %v488_v54, %v487_v53  ;;  %v457_v1 = vld [vmem:[%s4651_s1 + $0x420] sm:$0xff]  ;;  %v458_v2 = vld [vmem:[%s4651_s1 + $0x428] sm:$0xff] }
  0x43   : > { %2930 = vmatpush3.bf16.msra.mxu1 %v2929_v19  ;;  %2900 = vmatprep.subr.bf16.mxu0 %v2899_v20  ;;  %v205_v0 = vld [vmem:[%s3419_s10 + $0x1b8] sm:$0xff]  ;;  %v489_v5 = vld [vmem:[%s4651_s1 + $0x520] sm:$0xff]  ;;  %v490_v6 = vld [vmem:[%s4651_s1 + $0x528] sm:$0xff]  ;;  %v2945_v13 = vpack.c.bf16 %v458_v2, %v457_v1 }
  0x44   : > { %2932 = vmatprep.subr.bf16.mxu1 %v2931_v24  ;;  %1003 = vmatprep.mubr.f32.mxu0 %v155_v28  ;;  %v475_v7 = vld [vmem:[%s4651_s1 + $0x4b0] sm:$0xff]  ;;  %v476_v8 = vld [vmem:[%s4651_s1 + $0x4b8] sm:$0xff]  ;;  %v207_v12 = vld [vmem:[%s3419_s10 + $0x1c8] sm:$0xff]  ;;  %v2977_v15 = vpack.c.bf16 %v490_v6, %v489_v5 }
  0x45   : > { %1103 = vmatprep.mubr.f32.mxu1 %v157_v32  ;;  %v507_v9 = vld [vmem:[%s4651_s1 + $0x5b0] sm:$0xff]  ;;  %v508_v10 = vld [vmem:[%s4651_s1 + $0x5b8] sm:$0xff]  ;;  %v206_v14 = vld [vmem:[%s3419_s10 + $0x1c0] sm:$0xff]  ;;  %v2947_v19 = vpack.c.bf16 %v476_v8, %v475_v7 }
  0x46   : > { %2902 = vmatpush3.bf16.msra.mxu0 %v2901_v31  ;;  %v204_v11 = vld [vmem:[%s3419_s10 + $0x1b0] sm:$0xff]  ;;  %v230_v16 = vld [vmem:[%s3419_s10 + $0x280] sm:$0xff]  ;;  %v460_v18 = vld [vmem:[%s4651_s1 + $0x438] sm:$0xff]  ;;  %v2979_v20 = vpack.c.bf16 %v508_v10, %v507_v9 }
  0x47   : > { %2934 = vmatpush3.bf16.msra.mxu1 %v2933_v33  ;;  %2936 = vmatprep.subr.bf16.mxu0 %v2935_v34  ;;  %v459_v17 = vld [vmem:[%s4651_s1 + $0x430] sm:$0xff]  ;;  %v492_v22 = vld [vmem:[%s4651_s1 + $0x538] sm:$0xff]  ;;  %v477_v23 = vld [vmem:[%s4651_s1 + $0x4c0] sm:$0xff] }
  0x48   : > { %2968 = vmatprep.subr.bf16.mxu1 %v2967_v37  ;;  %v491_v21 = vld [vmem:[%s4651_s1 + $0x530] sm:$0xff]  ;;  %v478_v24 = vld [vmem:[%s4651_s1 + $0x4c8] sm:$0xff]  ;;  %v509_v25 = vld [vmem:[%s4651_s1 + $0x5c0] sm:$0xff]  ;;  %v2949_v29 = vpack.c.bf16 %v460_v18, %v459_v17 }
  0x49   : > { %1004 = vmatmul.mubr.f32.vlgmr.msra.gmra.mrb[14].mxu0 %v154_v44  ;;  %v510_v26 = vld [vmem:[%s4651_s1 + $0x5c8] sm:$0xff]  ;;  %v229_v27 = vld [vmem:[%s3419_s10 + $0x278] sm:$0xff]  ;;  %v232_v28 = vld [vmem:[%s3419_s10 + $0x290] sm:$0xff]  ;;  %v2981_v31 = vpack.c.bf16 %v492_v22, %v491_v21  ;;  %v2951_v35 = vpack.c.bf16 %v478_v24, %v477_v23 }
  0x4a   : > { %1104 = vmatmul.mubr.f32.vlgmr.msra.gmra.mrb[14].mxu1 %v156_v45  ;;  %2938 = vmatpush3.bf16.msra.mxu0 %v2937_v46  ;;  %v231_v30 = vld [vmem:[%s3419_s10 + $0x288] sm:$0xff]  ;;  %v461_v33 = vld [vmem:[%s4651_s1 + $0x440] sm:$0xff]  ;;  %v2983_v36 = vpack.c.bf16 %v510_v26, %v509_v25  ;;  %v479_v39 = vld [vmem:[%s4651_s1 + $0x4d0] sm:$0xff] }
  0x4b   : > { %2970 = vmatpush3.bf16.msra.mxu1 %v2969_v47  ;;  %1008 = vmatprep.mubr.f32.mxu0 %v180_v48  ;;  %v255_v32 = vld [vmem:[%s3419_s10 + $0x348] sm:$0xff]  ;;  %v493_v37 = vld [vmem:[%s4651_s1 + $0x540] sm:$0xff]  ;;  %v480_v40 = vld [vmem:[%s4651_s1 + $0x4d8] sm:$0xff] }
  0x4c   : > { %2940 = vmatprep.subr.bf16.mxu0 %v2939_v51  ;;  %2972 = vmatprep.subr.bf16.mxu1 %v2971_v52  ;;  %v462_v34 = vld [vmem:[%s4651_s1 + $0x448] sm:$0xff]  ;;  %v511_v41 = vld [vmem:[%s4651_s1 + $0x5d0] sm:$0xff]  ;;  %v512_v42 = vld [vmem:[%s4651_s1 + $0x5d8] sm:$0xff]  ;;  %v2955_v52 = vpack.c.bf16 %v480_v40, %v479_v39 }
  0x4d   : > { %1009 = vmatmul.mubr.f32.gmra.mrb[16].mxu0 %v179_v59  ;;  %1108 = vmatprep.mubr.f32.mxu1 %v182_v60  ;;  %v494_v38 = vld [vmem:[%s4651_s1 + $0x548] sm:$0xff]  ;;  %v254_v43 = vld [vmem:[%s3419_s10 + $0x340] sm:$0xff]  ;;  %v257_v44 = vld [vmem:[%s3419_s10 + $0x358] sm:$0xff]  ;;  %v2953_v45 = vpack.c.bf16 %v462_v34, %v461_v33  ;;  %v2987_v53 = vpack.c.bf16 %v512_v42, %v511_v41 }
  0x4e   : > { %2942 = vmatpush3.bf16.msra.mxu0 %v2941_v61  ;;  %1109 = vmatmul.mubr.f32.gmra.mrb[16].mxu1 %v181_v62  ;;  %v256_v46 = vld [vmem:[%s3419_s10 + $0x350] sm:$0xff]  ;;  %v2985_v47 = vpack.c.bf16 %v494_v38, %v493_v37  ;;  %v464_v50 = vld [vmem:[%s4651_s1 + $0x458] sm:$0xff]  ;;  %v279_v51 = vld [vmem:[%s3419_s10 + $0x408] sm:$0xff] }
  0x4f   : > { %2974 = vmatpush3.bf16.msra.mxu1 %v2973_v63  ;;  %1013 = vmatprep.mubr.f32.mxu0 %v205_v0  ;;  %v280_v48 = vld [vmem:[%s3419_s10 + $0x410] sm:$0xff]  ;;  %v496_v55 = vld [vmem:[%s4651_s1 + $0x558] sm:$0xff]  ;;  %v481_v56 = vld [vmem:[%s4651_s1 + $0x4e0] sm:$0xff] }
  0x50   : > { %2944 = vmatprep.subr.bf16.mxu0 %v2943_v3  ;;  %2976 = vmatprep.subr.bf16.mxu1 %v2975_v4  ;;  %v463_v49 = vld [vmem:[%s4651_s1 + $0x450] sm:$0xff]  ;;  %v482_v57 = vld [vmem:[%s4651_s1 + $0x4e8] sm:$0xff]  ;;  %v513_v58 = vld [vmem:[%s4651_s1 + $0x5e0] sm:$0xff] }
  0x51   : > { %1014 = vmatmul.mubr.f32.gmra.mrb[18].mxu0 %v204_v11  ;;  %1113 = vmatprep.mubr.f32.mxu1 %v207_v12  ;;  %v495_v54 = vld [vmem:[%s4651_s1 + $0x550] sm:$0xff]  ;;  %v514_v59 = vld [vmem:[%s4651_s1 + $0x5e8] sm:$0xff]  ;;  %v282_v60 = vld [vmem:[%s3419_s10 + $0x420] sm:$0xff]  ;;  %v2957_v61 = vpack.c.bf16 %v464_v50, %v463_v49  ;;  %v2959_v4 = vpack.c.bf16 %v482_v57, %v481_v56 }
  0x52   : > { %2946 = vmatpush3.bf16.msra.mxu0 %v2945_v13  ;;  %1114 = vmatmul.mubr.f32.gmra.mrb[18].mxu1 %v206_v14  ;;  %v281_v62 = vld [vmem:[%s3419_s10 + $0x418] sm:$0xff]  ;;  %v2989_v0 = vpack.c.bf16 %v496_v55, %v495_v54  ;;  %v465_v1 = vld [vmem:[%s4651_s1 + $0x460] sm:$0xff]  ;;  %v466_v2 = vld [vmem:[%s4651_s1 + $0x468] sm:$0xff]  ;;  %v2991_v5 = vpack.c.bf16 %v514_v59, %v513_v58 }
  0x53   : > { %2978 = vmatpush3.bf16.msra.mxu1 %v2977_v15  ;;  %1018 = vmatprep.mubr.f32.mxu0 %v230_v16  ;;  %v305_v63 = vld [vmem:[%s3419_s10 + $0x4d8] sm:$0xff]  ;;  %v497_v3 = vld [vmem:[%s4651_s1 + $0x560] sm:$0xff]  ;;  %v498_v6 = vld [vmem:[%s4651_s1 + $0x568] sm:$0xff]  ;;  %v2961_v13 = vpack.c.bf16 %v466_v2, %v465_v1 }
  0x54   : > { %2948 = vmatprep.subr.bf16.mxu0 %v2947_v19  ;;  %2980 = vmatprep.subr.bf16.mxu1 %v2979_v20  ;;  %v483_v7 = vld [vmem:[%s4651_s1 + $0x4f0] sm:$0xff]  ;;  %v484_v8 = vld [vmem:[%s4651_s1 + $0x4f8] sm:$0xff]  ;;  %v307_v12 = vld [vmem:[%s3419_s10 + $0x4e8] sm:$0xff]  ;;  %v2993_v15 = vpack.c.bf16 %v498_v6, %v497_v3 }
  0x55   : > { %1019 = vmatmul.mubr.f32.gmra.mrb[20].mxu0 %v229_v27  ;;  %1118 = vmatprep.mubr.f32.mxu1 %v232_v28  ;;  %v515_v9 = vld [vmem:[%s4651_s1 + $0x5f0] sm:$0xff]  ;;  %v516_v10 = vld [vmem:[%s4651_s1 + $0x5f8] sm:$0xff]  ;;  %v306_v14 = vld [vmem:[%s3419_s10 + $0x4e0] sm:$0xff]  ;;  %v2963_v16 = vpack.c.bf16 %v484_v8, %v483_v7 }
  0x56   : > { %2950 = vmatpush3.bf16.msra.mxu0 %v2949_v29  ;;  %1119 = vmatmul.mubr.f32.gmra.mrb[20].mxu1 %v231_v30  ;;  %v304_v11 = vld [vmem:[%s3419_s10 + $0x4d0] sm:$0xff]  ;;  %v468_v18 = vld [vmem:[%s4651_s1 + $0x478] sm:$0xff]  ;;  %v2995_v20 = vpack.c.bf16 %v516_v10, %v515_v9  ;;  %v533_v22 = vld [vmem:[%s4651_s1 + $0x680] sm:$0xff] }
  0x57   : > { %2982 = vmatpush3.bf16.msra.mxu1 %v2981_v31  ;;  %1023 = vmatprep.mubr.f32.mxu0 %v255_v32  ;;  %v467_v17 = vld [vmem:[%s4651_s1 + $0x470] sm:$0xff]  ;;  %v500_v21 = vld [vmem:[%s4651_s1 + $0x578] sm:$0xff]  ;;  %v534_v23 = vld [vmem:[%s4651_s1 + $0x688] sm:$0xff] }
  0x58   : > { %2952 = vmatprep.subr.bf16.mxu0 %v2951_v35  ;;  %2984 = vmatprep.subr.bf16.mxu1 %v2983_v36  ;;  %v499_v19 = vld [vmem:[%s4651_s1 + $0x570] sm:$0xff]  ;;  %v159_v24 = vld [vmem:[%s3419_s10 + $0x48] sm:$0xff]  ;;  %v565_v25 = vld [vmem:[%s4651_s1 + $0x780] sm:$0xff]  ;;  %v2965_v27 = vpack.c.bf16 %v468_v18, %v467_v17  ;;  %v2999_v30 = vpack.c.bf16 %v534_v23, %v533_v22 }
  0x59   : > { %1024 = vmatmul.mubr.f32.gmra.mrb[22].mxu0 %v254_v43  ;;  %1123 = vmatprep.mubr.f32.mxu1 %v257_v44  ;;  %v566_v26 = vld [vmem:[%s4651_s1 + $0x788] sm:$0xff]  ;;  %v161_v28 = vld [vmem:[%s3419_s10 + $0x58] sm:$0xff]  ;;  %v2997_v29 = vpack.c.bf16 %v500_v21, %v499_v19  ;;  %v517_v31 = vld [vmem:[%s4651_s1 + $0x600] sm:$0xff] }
  0x5a   : > { %2954 = vmatpush3.bf16.msra.mxu0 %v2953_v45  ;;  %1124 = vmatmul.mubr.f32.gmra.mrb[22].mxu1 %v256_v46  ;;  %v518_v32 = vld [vmem:[%s4651_s1 + $0x608] sm:$0xff]  ;;  %v3031_v33 = vpack.c.bf16 %v566_v26, %v565_v25  ;;  %v549_v34 = vld [vmem:[%s4651_s1 + $0x700] sm:$0xff]  ;;  %v535_v36 = vld [vmem:[%s4651_s1 + $0x690] sm:$0xff] }
  0x5b   : > { %2986 = vmatpush3.bf16.msra.mxu1 %v2985_v47  ;;  %1028 = vmatprep.mubr.f32.mxu0 %v280_v48  ;;  %v550_v35 = vld [vmem:[%s4651_s1 + $0x708] sm:$0xff]  ;;  %v536_v37 = vld [vmem:[%s4651_s1 + $0x698] sm:$0xff]  ;;  %v567_v38 = vld [vmem:[%s4651_s1 + $0x790] sm:$0xff]  ;;  %v3001_v42 = vpack.c.bf16 %v518_v32, %v517_v31 }
  0x5c   : > { %2956 = vmatprep.subr.bf16.mxu0 %v2955_v52  ;;  %2988 = vmatprep.subr.bf16.mxu1 %v2987_v53  ;;  %v568_v39 = vld [vmem:[%s4651_s1 + $0x798] sm:$0xff]  ;;  %v158_v40 = vld [vmem:[%s3419_s10 + $0x40] sm:$0xff]  ;;  %v160_v41 = vld [vmem:[%s3419_s10 + $0x50] sm:$0xff]  ;;  %v3033_v43 = vpack.c.bf16 %v550_v35, %v549_v34  ;;  %v3003_v47 = vpack.c.bf16 %v536_v37, %v535_v36 }
  0x5d   : > { %1029 = vmatmul.mubr.f32.gmra.mrb[24].mxu0 %v279_v51  ;;  %1128 = vmatprep.mubr.f32.mxu1 %v282_v60  ;;  %v184_v44 = vld [vmem:[%s3419_s10 + $0x110] sm:$0xff]  ;;  %v520_v46 = vld [vmem:[%s4651_s1 + $0x618] sm:$0xff]  ;;  %v3035_v48 = vpack.c.bf16 %v568_v39, %v567_v38  ;;  %v537_v51 = vld [vmem:[%s4651_s1 + $0x6a0] sm:$0xff] }
  0x5e   : > { %2958 = vmatpush3.bf16.msra.mxu0 %v2957_v61  ;;  %1129 = vmatmul.mubr.f32.gmra.mrb[24].mxu1 %v281_v62  ;;  %v519_v45 = vld [vmem:[%s4651_s1 + $0x610] sm:$0xff]  ;;  %v552_v50 = vld [vmem:[%s4651_s1 + $0x718] sm:$0xff]  ;;  %v538_v52 = vld [vmem:[%s4651_s1 + $0x6a8] sm:$0xff] }
  0x5f   : > { %2990 = vmatpush3.bf16.msra.mxu1 %v2989_v0  ;;  %1033 = vmatprep.mubr.f32.mxu0 %v305_v63  ;;  %v551_v49 = vld [vmem:[%s4651_s1 + $0x710] sm:$0xff]  ;;  %v569_v53 = vld [vmem:[%s4651_s1 + $0x7a0] sm:$0xff]  ;;  %v570_v54 = vld [vmem:[%s4651_s1 + $0x7a8] sm:$0xff]  ;;  %v3005_v57 = vpack.c.bf16 %v520_v46, %v519_v45  ;;  %v3007_v63 = vpack.c.bf16 %v538_v52, %v537_v51 }
  0x60   : > { %2960 = vmatprep.subr.bf16.mxu0 %v2959_v4  ;;  %2992 = vmatprep.subr.bf16.mxu1 %v2991_v5  ;;  %v183_v55 = vld [vmem:[%s3419_s10 + $0x108] sm:$0xff]  ;;  %v186_v56 = vld [vmem:[%s3419_s10 + $0x120] sm:$0xff]  ;;  %v185_v58 = vld [vmem:[%s3419_s10 + $0x118] sm:$0xff]  ;;  %v3037_v59 = vpack.c.bf16 %v552_v50, %v551_v49  ;;  %v3039_v0 = vpack.c.bf16 %v570_v54, %v569_v53 }
  0x61   : > { %1034 = vmatmul.mubr.f32.gmra.mrb[26].mxu0 %v304_v11  ;;  %1133 = vmatprep.mubr.f32.mxu1 %v307_v12  ;;  %v209_v60 = vld [vmem:[%s3419_s10 + $0x1d8] sm:$0xff]  ;;  %v521_v61 = vld [vmem:[%s4651_s1 + $0x620] sm:$0xff]  ;;  %v522_v62 = vld [vmem:[%s4651_s1 + $0x628] sm:$0xff] }
  0x62   : > { %2962 = vmatpush3.bf16.msra.mxu0 %v2961_v13  ;;  %1134 = vmatmul.mubr.f32.gmra.mrb[26].mxu1 %v306_v14  ;;  %v553_v1 = vld [vmem:[%s4651_s1 + $0x720] sm:$0xff]  ;;  %v554_v2 = vld [vmem:[%s4651_s1 + $0x728] sm:$0xff]  ;;  %v539_v3 = vld [vmem:[%s4651_s1 + $0x6b0] sm:$0xff]  ;;  %v3009_v9 = vpack.c.bf16 %v522_v62, %v521_v61 }
  0x63   : > { %2994 = vmatpush3.bf16.msra.mxu1 %v2993_v15  ;;  %2964 = vmatprep.subr.bf16.mxu0 %v2963_v16  ;;  %v540_v4 = vld [vmem:[%s4651_s1 + $0x6b8] sm:$0xff]  ;;  %v571_v5 = vld [vmem:[%s4651_s1 + $0x7b0] sm:$0xff]  ;;  %v211_v8 = vld [vmem:[%s3419_s10 + $0x1e8] sm:$0xff]  ;;  %v3041_v11 = vpack.c.bf16 %v554_v2, %v553_v1 }
  0x64   : > { %2996 = vmatprep.subr.bf16.mxu1 %v2995_v20  ;;  %1203 = vmatprep.mubr.f32.mxu0 %v159_v24  ;;  %v572_v6 = vld [vmem:[%s4651_s1 + $0x7b8] sm:$0xff]  ;;  %v208_v7 = vld [vmem:[%s3419_s10 + $0x1d0] sm:$0xff]  ;;  %v210_v10 = vld [vmem:[%s3419_s10 + $0x1e0] sm:$0xff]  ;;  %v3011_v15 = vpack.c.bf16 %v540_v4, %v539_v3 }
  0x65   : > { %1303 = vmatprep.mubr.f32.mxu1 %v161_v28  ;;  %v234_v12 = vld [vmem:[%s3419_s10 + $0x2a0] sm:$0xff]  ;;  %v523_v13 = vld [vmem:[%s4651_s1 + $0x630] sm:$0xff]  ;;  %v524_v14 = vld [vmem:[%s4651_s1 + $0x638] sm:$0xff]  ;;  %v3043_v16 = vpack.c.bf16 %v572_v6, %v571_v5 }
  0x66   : > { %2966 = vmatpush3.bf16.msra.mxu0 %v2965_v27  ;;  %v555_v17 = vld [vmem:[%s4651_s1 + $0x730] sm:$0xff]  ;;  %v556_v18 = vld [vmem:[%s4651_s1 + $0x738] sm:$0xff]  ;;  %v541_v19 = vld [vmem:[%s4651_s1 + $0x6c0] sm:$0xff]  ;;  %v3013_v25 = vpack.c.bf16 %v524_v14, %v523_v13 }
  0x67   : > { %2998 = vmatpush3.bf16.msra.mxu1 %v2997_v29  ;;  %3000 = vmatprep.subr.bf16.mxu0 %v2999_v30  ;;  %v542_v20 = vld [vmem:[%s4651_s1 + $0x6c8] sm:$0xff]  ;;  %v573_v21 = vld [vmem:[%s4651_s1 + $0x7c0] sm:$0xff]  ;;  %v233_v23 = vld [vmem:[%s3419_s10 + $0x298] sm:$0xff]  ;;  %v3045_v27 = vpack.c.bf16 %v556_v18, %v555_v17 }
  0x68   : > { %3032 = vmatprep.subr.bf16.mxu1 %v3031_v33  ;;  %v574_v22 = vld [vmem:[%s4651_s1 + $0x7c8] sm:$0xff]  ;;  %v236_v24 = vld [vmem:[%s3419_s10 + $0x2b0] sm:$0xff]  ;;  %v525_v29 = vld [vmem:[%s4651_s1 + $0x640] sm:$0xff]  ;;  %v3015_v31 = vpack.c.bf16 %v542_v20, %v541_v19 }
  0x69   : > { %1204 = vmatmul.mubr.f32.vlgmr.msra.gmra.mrb[28].mxu0 %v158_v40  ;;  %v235_v26 = vld [vmem:[%s3419_s10 + $0x2a8] sm:$0xff]  ;;  %v3047_v32 = vpack.c.bf16 %v574_v22, %v573_v21  ;;  %v557_v33 = vld [vmem:[%s4651_s1 + $0x740] sm:$0xff]  ;;  %v543_v35 = vld [vmem:[%s4651_s1 + $0x6d0] sm:$0xff] }
  0x6a   : > { %1304 = vmatmul.mubr.f32.vlgmr.msra.gmra.mrb[28].mxu1 %v160_v41  ;;  %3002 = vmatpush3.bf16.msra.mxu0 %v3001_v42  ;;  %v259_v28 = vld [vmem:[%s3419_s10 + $0x368] sm:$0xff]  ;;  %v544_v36 = vld [vmem:[%s4651_s1 + $0x6d8] sm:$0xff]  ;;  %v575_v37 = vld [vmem:[%s4651_s1 + $0x7d0] sm:$0xff] }
  0x6b   : > { %3034 = vmatpush3.bf16.msra.mxu1 %v3033_v43  ;;  %1208 = vmatprep.mubr.f32.mxu0 %v184_v44  ;;  %v526_v30 = vld [vmem:[%s4651_s1 + $0x648] sm:$0xff]  ;;  %v576_v38 = vld [vmem:[%s4651_s1 + $0x7d8] sm:$0xff]  ;;  %v258_v39 = vld [vmem:[%s3419_s10 + $0x360] sm:$0xff] }
  0x6c   : > { %3004 = vmatprep.subr.bf16.mxu0 %v3003_v47  ;;  %3036 = vmatprep.subr.bf16.mxu1 %v3035_v48  ;;  %v558_v34 = vld [vmem:[%s4651_s1 + $0x748] sm:$0xff]  ;;  %v261_v40 = vld [vmem:[%s3419_s10 + $0x378] sm:$0xff]  ;;  %v3017_v41 = vpack.c.bf16 %v526_v30, %v525_v29  ;;  %v260_v42 = vld [vmem:[%s3419_s10 + $0x370] sm:$0xff]  ;;  %v3019_v48 = vpack.c.bf16 %v544_v36, %v543_v35  ;;  %v3051_v49 = vpack.c.bf16 %v576_v38, %v575_v37 }
  0x6d   : > { %1209 = vmatmul.mubr.f32.gmra.mrb[30].mxu0 %v183_v55  ;;  %1308 = vmatprep.mubr.f32.mxu1 %v186_v56  ;;  %v3049_v43 = vpack.c.bf16 %v558_v34, %v557_v33  ;;  %v284_v44 = vld [vmem:[%s3419_s10 + $0x430] sm:$0xff]  ;;  %v528_v46 = vld [vmem:[%s4651_s1 + $0x658] sm:$0xff]  ;;  %v283_v47 = vld [vmem:[%s3419_s10 + $0x428] sm:$0xff] }
  0x6e   : > { %3006 = vmatpush3.bf16.msra.mxu0 %v3005_v57  ;;  %1309 = vmatmul.mubr.f32.gmra.mrb[30].mxu1 %v185_v58  ;;  %v527_v45 = vld [vmem:[%s4651_s1 + $0x650] sm:$0xff]  ;;  %v560_v51 = vld [vmem:[%s4651_s1 + $0x758] sm:$0xff]  ;;  %v545_v52 = vld [vmem:[%s4651_s1 + $0x6e0] sm:$0xff] }
  0x6f   : > { %3038 = vmatpush3.bf16.msra.mxu1 %v3037_v59  ;;  %1213 = vmatprep.mubr.f32.mxu0 %v209_v60  ;;  %v559_v50 = vld [vmem:[%s4651_s1 + $0x750] sm:$0xff]  ;;  %v546_v53 = vld [vmem:[%s4651_s1 + $0x6e8] sm:$0xff]  ;;  %v577_v54 = vld [vmem:[%s4651_s1 + $0x7e0] sm:$0xff]  ;;  %v3021_v57 = vpack.c.bf16 %v528_v46, %v527_v45 }
  0x70   : > { %3008 = vmatprep.subr.bf16.mxu0 %v3007_v63  ;;  %3040 = vmatprep.subr.bf16.mxu1 %v3039_v0  ;;  %v578_v55 = vld [vmem:[%s4651_s1 + $0x7e8] sm:$0xff]  ;;  %v286_v56 = vld [vmem:[%s3419_s10 + $0x440] sm:$0xff]  ;;  %v285_v58 = vld [vmem:[%s3419_s10 + $0x438] sm:$0xff]  ;;  %v3053_v60 = vpack.c.bf16 %v560_v51, %v559_v50  ;;  %v3023_v0 = vpack.c.bf16 %v546_v53, %v545_v52 }
  0x71   : > { %1214 = vmatmul.mubr.f32.gmra.mrb[32].mxu0 %v208_v7  ;;  %1313 = vmatprep.mubr.f32.mxu1 %v211_v8  ;;  %v309_v59 = vld [vmem:[%s3419_s10 + $0x4f8] sm:$0xff]  ;;  %v529_v61 = vld [vmem:[%s4651_s1 + $0x660] sm:$0xff]  ;;  %v530_v62 = vld [vmem:[%s4651_s1 + $0x668] sm:$0xff]  ;;  %v3055_v1 = vpack.c.bf16 %v578_v55, %v577_v54 }
  0x72   : > { %3010 = vmatpush3.bf16.msra.mxu0 %v3009_v9  ;;  %1314 = vmatmul.mubr.f32.gmra.mrb[32].mxu1 %v210_v10  ;;  %v561_v63 = vld [vmem:[%s4651_s1 + $0x760] sm:$0xff]  ;;  %v562_v2 = vld [vmem:[%s4651_s1 + $0x768] sm:$0xff]  ;;  %v547_v3 = vld [vmem:[%s4651_s1 + $0x6f0] sm:$0xff]  ;;  %v3025_v9 = vpack.c.bf16 %v530_v62, %v529_v61 }
  0x73   : > { %3042 = vmatpush3.bf16.msra.mxu1 %v3041_v11  ;;  %1218 = vmatprep.mubr.f32.mxu0 %v234_v12  ;;  %v548_v4 = vld [vmem:[%s4651_s1 + $0x6f8] sm:$0xff]  ;;  %v579_v5 = vld [vmem:[%s4651_s1 + $0x7f0] sm:$0xff]  ;;  %v311_v8 = vld [vmem:[%s3419_s10 + $0x508] sm:$0xff]  ;;  %v3057_v11 = vpack.c.bf16 %v562_v2, %v561_v63 }
  0x74   : > { %3012 = vmatprep.subr.bf16.mxu0 %v3011_v15  ;;  %3044 = vmatprep.subr.bf16.mxu1 %v3043_v16  ;;  %v580_v6 = vld [vmem:[%s4651_s1 + $0x7f8] sm:$0xff]  ;;  %v308_v7 = vld [vmem:[%s3419_s10 + $0x4f0] sm:$0xff]  ;;  %v310_v10 = vld [vmem:[%s3419_s10 + $0x500] sm:$0xff]  ;;  %v3027_v12 = vpack.c.bf16 %v548_v4, %v547_v3 }
  0x75   : > { %1219 = vmatmul.mubr.f32.gmra.mrb[34].mxu0 %v233_v23  ;;  %1318 = vmatprep.mubr.f32.mxu1 %v236_v24  ;;  %v531_v13 = vld [vmem:[%s4651_s1 + $0x670] sm:$0xff]  ;;  %v532_v14 = vld [vmem:[%s4651_s1 + $0x678] sm:$0xff]  ;;  %v3059_v16 = vpack.c.bf16 %v580_v6, %v579_v5  ;;  %v597_v18 = vld [vmem:[%s4651_s1 + $0x880] sm:$0xff] }
  0x76   : > { %3014 = vmatpush3.bf16.msra.mxu0 %v3013_v25  ;;  %1319 = vmatmul.mubr.f32.gmra.mrb[34].mxu1 %v235_v26  ;;  %v563_v15 = vld [vmem:[%s4651_s1 + $0x770] sm:$0xff]  ;;  %v564_v17 = vld [vmem:[%s4651_s1 + $0x778] sm:$0xff]  ;;  %v598_v19 = vld [vmem:[%s4651_s1 + $0x888] sm:$0xff]  ;;  %v3029_v23 = vpack.c.bf16 %v532_v14, %v531_v13 }
  0x77   : > { %3046 = vmatpush3.bf16.msra.mxu1 %v3045_v27  ;;  %1223 = vmatprep.mubr.f32.mxu0 %v259_v28  ;;  %v163_v20 = vld [vmem:[%s3419_s10 + $0x68] sm:$0xff]  ;;  %v629_v21 = vld [vmem:[%s4651_s1 + $0x980] sm:$0xff]  ;;  %v165_v24 = vld [vmem:[%s3419_s10 + $0x78] sm:$0xff]  ;;  %v3061_v25 = vpack.c.bf16 %v564_v17, %v563_v15  ;;  %v3063_v26 = vpack.c.bf16 %v598_v19, %v597_v18 }
  0x78   : > { %3016 = vmatprep.subr.bf16.mxu0 %v3015_v31  ;;  %3048 = vmatprep.subr.bf16.mxu1 %v3047_v32  ;;  %v630_v22 = vld [vmem:[%s4651_s1 + $0x988] sm:$0xff]  ;;  %v581_v27 = vld [vmem:[%s4651_s1 + $0x800] sm:$0xff]  ;;  %v599_v32 = vld [vmem:[%s4651_s1 + $0x890] sm:$0xff] }
  0x79   : > { %1224 = vmatmul.mubr.f32.gmra.mrb[36].mxu0 %v258_v39  ;;  %1323 = vmatprep.mubr.f32.mxu1 %v261_v40  ;;  %v582_v28 = vld [vmem:[%s4651_s1 + $0x808] sm:$0xff]  ;;  %v3095_v29 = vpack.c.bf16 %v630_v22, %v629_v21  ;;  %v613_v30 = vld [vmem:[%s4651_s1 + $0x900] sm:$0xff]  ;;  %v600_v33 = vld [vmem:[%s4651_s1 + $0x898] sm:$0xff] }
  0x7a   : > { %3018 = vmatpush3.bf16.msra.mxu0 %v3017_v41  ;;  %1324 = vmatmul.mubr.f32.gmra.mrb[36].mxu1 %v260_v42  ;;  %v614_v31 = vld [vmem:[%s4651_s1 + $0x908] sm:$0xff]  ;;  %v631_v34 = vld [vmem:[%s4651_s1 + $0x990] sm:$0xff]  ;;  %v632_v35 = vld [vmem:[%s4651_s1 + $0x998] sm:$0xff]  ;;  %v3065_v38 = vpack.c.bf16 %v582_v28, %v581_v27 }
  0x7b   : > { %3050 = vmatpush3.bf16.msra.mxu1 %v3049_v43  ;;  %1228 = vmatprep.mubr.f32.mxu0 %v284_v44  ;;  %v162_v36 = vld [vmem:[%s3419_s10 + $0x60] sm:$0xff]  ;;  %v164_v37 = vld [vmem:[%s3419_s10 + $0x70] sm:$0xff]  ;;  %v3097_v39 = vpack.c.bf16 %v614_v31, %v613_v30  ;;  %v584_v42 = vld [vmem:[%s4651_s1 + $0x818] sm:$0xff]  ;;  %v3067_v43 = vpack.c.bf16 %v600_v33, %v599_v32  ;;  %v3099_v44 = vpack.c.bf16 %v632_v35, %v631_v34 }
  0x7c   : > { %3020 = vmatprep.subr.bf16.mxu0 %v3019_v48  ;;  %3052 = vmatprep.subr.bf16.mxu1 %v3051_v49  ;;  %v188_v40 = vld [vmem:[%s3419_s10 + $0x130] sm:$0xff]  ;;  %v616_v46 = vld [vmem:[%s4651_s1 + $0x918] sm:$0xff]  ;;  %v602_v48 = vld [vmem:[%s4651_s1 + $0x8a8] sm:$0xff] }
  0x7d   : > { %1229 = vmatmul.mubr.f32.gmra.mrb[38].mxu0 %v283_v47  ;;  %1328 = vmatprep.mubr.f32.mxu1 %v286_v56  ;;  %v583_v41 = vld [vmem:[%s4651_s1 + $0x810] sm:$0xff]  ;;  %v601_v47 = vld [vmem:[%s4651_s1 + $0x8a0] sm:$0xff]  ;;  %v634_v50 = vld [vmem:[%s4651_s1 + $0x9a8] sm:$0xff] }
  0x7e   : > { %3022 = vmatpush3.bf16.msra.mxu0 %v3021_v57  ;;  %1329 = vmatmul.mubr.f32.gmra.mrb[38].mxu1 %v285_v58  ;;  %v615_v45 = vld [vmem:[%s4651_s1 + $0x910] sm:$0xff]  ;;  %v633_v49 = vld [vmem:[%s4651_s1 + $0x9a0] sm:$0xff]  ;;  %v187_v51 = vld [vmem:[%s3419_s10 + $0x128] sm:$0xff]  ;;  %v3069_v53 = vpack.c.bf16 %v584_v42, %v583_v41 }
  0x7f   : > { %3054 = vmatpush3.bf16.msra.mxu1 %v3053_v60  ;;  %1233 = vmatprep.mubr.f32.mxu0 %v309_v59  ;;  %v190_v52 = vld [vmem:[%s3419_s10 + $0x140] sm:$0xff]  ;;  %v189_v54 = vld [vmem:[%s3419_s10 + $0x138] sm:$0xff]  ;;  %v3101_v55 = vpack.c.bf16 %v616_v46, %v615_v45  ;;  %v586_v58 = vld [vmem:[%s4651_s1 + $0x828] sm:$0xff]  ;;  %v3071_v59 = vpack.c.bf16 %v602_v48, %v601_v47  ;;  %v3103_v60 = vpack.c.bf16 %v634_v50, %v633_v49 }
  0x80   : > { %3024 = vmatprep.subr.bf16.mxu0 %v3023_v0  ;;  %3056 = vmatprep.subr.bf16.mxu1 %v3055_v1  ;;  %v213_v56 = vld [vmem:[%s3419_s10 + $0x1f8] sm:$0xff]  ;;  %v585_v57 = vld [vmem:[%s4651_s1 + $0x820] sm:$0xff]  ;;  %v618_v62 = vld [vmem:[%s4651_s1 + $0x928] sm:$0xff] }
  0x81   : > { %1234 = vmatmul.mubr.f32.gmra.mrb[40].mxu0 %v308_v7  ;;  %1333 = vmatprep.mubr.f32.mxu1 %v311_v8  ;;  %v617_v61 = vld [vmem:[%s4651_s1 + $0x920] sm:$0xff]  ;;  %v603_v63 = vld [vmem:[%s4651_s1 + $0x8b0] sm:$0xff]  ;;  %v604_v0 = vld [vmem:[%s4651_s1 + $0x8b8] sm:$0xff]  ;;  %v3073_v5 = vpack.c.bf16 %v586_v58, %v585_v57 }
  0x82   : > { %3026 = vmatpush3.bf16.msra.mxu0 %v3025_v9  ;;  %1334 = vmatmul.mubr.f32.gmra.mrb[40].mxu1 %v310_v10  ;;  %v635_v1 = vld [vmem:[%s4651_s1 + $0x9b0] sm:$0xff]  ;;  %v636_v2 = vld [vmem:[%s4651_s1 + $0x9b8] sm:$0xff]  ;;  %v215_v4 = vld [vmem:[%s3419_s10 + $0x208] sm:$0xff]  ;;  %v3105_v7 = vpack.c.bf16 %v618_v62, %v617_v61 }
  0x83   : > { %3058 = vmatpush3.bf16.msra.mxu1 %v3057_v11  ;;  %3028 = vmatprep.subr.bf16.mxu0 %v3027_v12  ;;  %v212_v3 = vld [vmem:[%s3419_s10 + $0x1f0] sm:$0xff]  ;;  %v214_v6 = vld [vmem:[%s3419_s10 + $0x200] sm:$0xff]  ;;  %v588_v10 = vld [vmem:[%s4651_s1 + $0x838] sm:$0xff]  ;;  %v3075_v11 = vpack.c.bf16 %v604_v0, %v603_v63  ;;  %v3107_v12 = vpack.c.bf16 %v636_v2, %v635_v1 }
  0x84   : > { %3060 = vmatprep.subr.bf16.mxu1 %v3059_v16  ;;  %1403 = vmatprep.mubr.f32.mxu0 %v163_v20  ;;  %v238_v8 = vld [vmem:[%s3419_s10 + $0x2c0] sm:$0xff]  ;;  %v587_v9 = vld [vmem:[%s4651_s1 + $0x830] sm:$0xff]  ;;  %v620_v14 = vld [vmem:[%s4651_s1 + $0x938] sm:$0xff] }
  0x85   : > { %1503 = vmatprep.mubr.f32.mxu1 %v165_v24  ;;  %v619_v13 = vld [vmem:[%s4651_s1 + $0x930] sm:$0xff]  ;;  %v605_v15 = vld [vmem:[%s4651_s1 + $0x8c0] sm:$0xff]  ;;  %v606_v16 = vld [vmem:[%s4651_s1 + $0x8c8] sm:$0xff]  ;;  %v3077_v21 = vpack.c.bf16 %v588_v10, %v587_v9 }
  0x86   : > { %3030 = vmatpush3.bf16.msra.mxu0 %v3029_v23  ;;  %v637_v17 = vld [vmem:[%s4651_s1 + $0x9c0] sm:$0xff]  ;;  %v638_v18 = vld [vmem:[%s4651_s1 + $0x9c8] sm:$0xff]  ;;  %v237_v19 = vld [vmem:[%s3419_s10 + $0x2b8] sm:$0xff]  ;;  %v3109_v23 = vpack.c.bf16 %v620_v14, %v619_v13  ;;  %v3079_v27 = vpack.c.bf16 %v606_v16, %v605_v15 }
  0x87   : > { %3062 = vmatpush3.bf16.msra.mxu1 %v3061_v25  ;;  %3064 = vmatprep.subr.bf16.mxu0 %v3063_v26  ;;  %v240_v20 = vld [vmem:[%s3419_s10 + $0x2d0] sm:$0xff]  ;;  %v239_v22 = vld [vmem:[%s3419_s10 + $0x2c8] sm:$0xff]  ;;  %v589_v25 = vld [vmem:[%s4651_s1 + $0x840] sm:$0xff]  ;;  %v3111_v28 = vpack.c.bf16 %v638_v18, %v637_v17 }
  0x88   : > { %3096 = vmatprep.subr.bf16.mxu1 %v3095_v29  ;;  %v263_v24 = vld [vmem:[%s3419_s10 + $0x388] sm:$0xff]  ;;  %v621_v29 = vld [vmem:[%s4651_s1 + $0x940] sm:$0xff]  ;;  %v607_v31 = vld [vmem:[%s4651_s1 + $0x8d0] sm:$0xff] }
  0x89   : > { %1404 = vmatmul.mubr.f32.vlgmr.msra.gmra.mrb[42].mxu0 %v162_v36  ;;  %v590_v26 = vld [vmem:[%s4651_s1 + $0x848] sm:$0xff]  ;;  %v608_v32 = vld [vmem:[%s4651_s1 + $0x8d8] sm:$0xff]  ;;  %v639_v33 = vld [vmem:[%s4651_s1 + $0x9d0] sm:$0xff] }
  0x8a   : > { %1504 = vmatmul.mubr.f32.vlgmr.msra.gmra.mrb[42].mxu1 %v164_v37  ;;  %3066 = vmatpush3.bf16.msra.mxu0 %v3065_v38  ;;  %v622_v30 = vld [vmem:[%s4651_s1 + $0x948] sm:$0xff]  ;;  %v640_v34 = vld [vmem:[%s4651_s1 + $0x9d8] sm:$0xff]  ;;  %v262_v35 = vld [vmem:[%s3419_s10 + $0x380] sm:$0xff]  ;;  %v3081_v37 = vpack.c.bf16 %v590_v26, %v589_v25 }
  0x8b   : > { %3098 = vmatpush3.bf16.msra.mxu1 %v3097_v39  ;;  %1408 = vmatprep.mubr.f32.mxu0 %v188_v40  ;;  %v265_v36 = vld [vmem:[%s3419_s10 + $0x398] sm:$0xff]  ;;  %v264_v38 = vld [vmem:[%s3419_s10 + $0x390] sm:$0xff]  ;;  %v3113_v39 = vpack.c.bf16 %v622_v30, %v621_v29  ;;  %v3115_v45 = vpack.c.bf16 %v640_v34, %v639_v33  ;;  %v609_v48 = vld [vmem:[%s4651_s1 + $0x8e0] sm:$0xff] }
  0x8c   : > { %3068 = vmatprep.subr.bf16.mxu0 %v3067_v43  ;;  %3100 = vmatprep.subr.bf16.mxu1 %v3099_v44  ;;  %v288_v40 = vld [vmem:[%s3419_s10 + $0x450] sm:$0xff]  ;;  %v592_v42 = vld [vmem:[%s4651_s1 + $0x858] sm:$0xff]  ;;  %v287_v43 = vld [vmem:[%s3419_s10 + $0x448] sm:$0xff]  ;;  %v3083_v44 = vpack.c.bf16 %v608_v32, %v607_v31 }
  0x8d   : > { %1409 = vmatmul.mubr.f32.gmra.mrb[44].mxu0 %v187_v51  ;;  %1508 = vmatprep.mubr.f32.mxu1 %v190_v52  ;;  %v591_v41 = vld [vmem:[%s4651_s1 + $0x850] sm:$0xff]  ;;  %v624_v47 = vld [vmem:[%s4651_s1 + $0x958] sm:$0xff]  ;;  %v610_v49 = vld [vmem:[%s4651_s1 + $0x8e8] sm:$0xff] }
  0x8e   : > { %3070 = vmatpush3.bf16.msra.mxu0 %v3069_v53  ;;  %1509 = vmatmul.mubr.f32.gmra.mrb[44].mxu1 %v189_v54  ;;  %v623_v46 = vld [vmem:[%s4651_s1 + $0x950] sm:$0xff]  ;;  %v641_v50 = vld [vmem:[%s4651_s1 + $0x9e0] sm:$0xff]  ;;  %v642_v51 = vld [vmem:[%s4651_s1 + $0x9e8] sm:$0xff]  ;;  %v3085_v53 = vpack.c.bf16 %v592_v42, %v591_v41 }
  0x8f   : > { %3102 = vmatpush3.bf16.msra.mxu1 %v3101_v55  ;;  %1413 = vmatprep.mubr.f32.mxu0 %v213_v56  ;;  %v290_v52 = vld [vmem:[%s3419_s10 + $0x460] sm:$0xff]  ;;  %v289_v54 = vld [vmem:[%s3419_s10 + $0x458] sm:$0xff]  ;;  %v3117_v56 = vpack.c.bf16 %v624_v47, %v623_v46  ;;  %v594_v58 = vld [vmem:[%s4651_s1 + $0x868] sm:$0xff]  ;;  %v3119_v61 = vpack.c.bf16 %v642_v51, %v641_v50 }
  0x90   : > { %3072 = vmatprep.subr.bf16.mxu0 %v3071_v59  ;;  %3104 = vmatprep.subr.bf16.mxu1 %v3103_v60  ;;  %v313_v55 = vld [vmem:[%s3419_s10 + $0x518] sm:$0xff]  ;;  %v593_v57 = vld [vmem:[%s4651_s1 + $0x860] sm:$0xff]  ;;  %v3087_v60 = vpack.c.bf16 %v610_v49, %v609_v48  ;;  %v626_v62 = vld [vmem:[%s4651_s1 + $0x968] sm:$0xff] }
  0x91   : > { %1414 = vmatmul.mubr.f32.gmra.mrb[46].mxu0 %v212_v3  ;;  %1513 = vmatprep.mubr.f32.mxu1 %v215_v4  ;;  %v625_v59 = vld [vmem:[%s4651_s1 + $0x960] sm:$0xff]  ;;  %v611_v63 = vld [vmem:[%s4651_s1 + $0x8f0] sm:$0xff]  ;;  %v612_v0 = vld [vmem:[%s4651_s1 + $0x8f8] sm:$0xff] }
  0x92   : > { %3074 = vmatpush3.bf16.msra.mxu0 %v3073_v5  ;;  %1514 = vmatmul.mubr.f32.gmra.mrb[46].mxu1 %v214_v6  ;;  %v643_v1 = vld [vmem:[%s4651_s1 + $0x9f0] sm:$0xff]  ;;  %v644_v2 = vld [vmem:[%s4651_s1 + $0x9f8] sm:$0xff]  ;;  %v315_v4 = vld [vmem:[%s3419_s10 + $0x528] sm:$0xff]  ;;  %v3089_v5 = vpack.c.bf16 %v594_v58, %v593_v57 }
  0x93   : > { %3106 = vmatpush3.bf16.msra.mxu1 %v3105_v7  ;;  %1418 = vmatprep.mubr.f32.mxu0 %v238_v8  ;;  %v312_v3 = vld [vmem:[%s3419_s10 + $0x510] sm:$0xff]  ;;  %v314_v6 = vld [vmem:[%s3419_s10 + $0x520] sm:$0xff]  ;;  %v3121_v7 = vpack.c.bf16 %v626_v62, %v625_v59  ;;  %v3091_v8 = vpack.c.bf16 %v612_v0, %v611_v63  ;;  %v596_v10 = vld [vmem:[%s4651_s1 + $0x878] sm:$0xff] }
  0x94   : > { %3076 = vmatprep.subr.bf16.mxu0 %v3075_v11  ;;  %3108 = vmatprep.subr.bf16.mxu1 %v3107_v12  ;;  %v595_v9 = vld [vmem:[%s4651_s1 + $0x870] sm:$0xff]  ;;  %v3123_v12 = vpack.c.bf16 %v644_v2, %v643_v1  ;;  %v628_v13 = vld [vmem:[%s4651_s1 + $0x978] sm:$0xff]  ;;  %v661_v14 = vld [vmem:[%s4651_s1 + $0xa80] sm:$0xff] }
  0x95   : > { %1419 = vmatmul.mubr.f32.gmra.mrb[48].mxu0 %v237_v19  ;;  %1518 = vmatprep.mubr.f32.mxu1 %v240_v20  ;;  %v627_v11 = vld [vmem:[%s4651_s1 + $0x970] sm:$0xff]  ;;  %v662_v15 = vld [vmem:[%s4651_s1 + $0xa88] sm:$0xff]  ;;  %v693_v17 = vld [vmem:[%s4651_s1 + $0xb80] sm:$0xff]  ;;  %v3093_v19 = vpack.c.bf16 %v596_v10, %v595_v9 }
  0x96   : > { %3078 = vmatpush3.bf16.msra.mxu0 %v3077_v21  ;;  %1519 = vmatmul.mubr.f32.gmra.mrb[48].mxu1 %v239_v22  ;;  %v167_v16 = vld [vmem:[%s3419_s10 + $0x88] sm:$0xff]  ;;  %v169_v20 = vld [vmem:[%s3419_s10 + $0x98] sm:$0xff]  ;;  %v3125_v21 = vpack.c.bf16 %v628_v13, %v627_v11  ;;  %v3127_v22 = vpack.c.bf16 %v662_v15, %v661_v14  ;;  %v677_v26 = vld [vmem:[%s4651_s1 + $0xb00] sm:$0xff] }
  0x97   : > { %3110 = vmatpush3.bf16.msra.mxu1 %v3109_v23  ;;  %1423 = vmatprep.mubr.f32.mxu0 %v263_v24  ;;  %v694_v18 = vld [vmem:[%s4651_s1 + $0xb88] sm:$0xff]  ;;  %v645_v23 = vld [vmem:[%s4651_s1 + $0xa00] sm:$0xff]  ;;  %v664_v29 = vld [vmem:[%s4651_s1 + $0xa98] sm:$0xff] }
  0x98   : > { %3080 = vmatprep.subr.bf16.mxu0 %v3079_v27  ;;  %3112 = vmatprep.subr.bf16.mxu1 %v3111_v28  ;;  %v646_v24 = vld [vmem:[%s4651_s1 + $0xa08] sm:$0xff]  ;;  %v3159_v25 = vpack.c.bf16 %v694_v18, %v693_v17  ;;  %v663_v28 = vld [vmem:[%s4651_s1 + $0xa90] sm:$0xff]  ;;  %v696_v31 = vld [vmem:[%s4651_s1 + $0xb98] sm:$0xff] }
  0x99   : > { %1424 = vmatmul.mubr.f32.gmra.mrb[50].mxu0 %v262_v35  ;;  %1523 = vmatprep.mubr.f32.mxu1 %v265_v36  ;;  %v678_v27 = vld [vmem:[%s4651_s1 + $0xb08] sm:$0xff]  ;;  %v695_v30 = vld [vmem:[%s4651_s1 + $0xb90] sm:$0xff]  ;;  %v166_v32 = vld [vmem:[%s3419_s10 + $0x80] sm:$0xff]  ;;  %v3129_v34 = vpack.c.bf16 %v646_v24, %v645_v23 }
  0x9a   : > { %3082 = vmatpush3.bf16.msra.mxu0 %v3081_v37  ;;  %1524 = vmatmul.mubr.f32.gmra.mrb[50].mxu1 %v264_v38  ;;  %v168_v33 = vld [vmem:[%s3419_s10 + $0x90] sm:$0xff]  ;;  %v3161_v35 = vpack.c.bf16 %v678_v27, %v677_v26  ;;  %v648_v38 = vld [vmem:[%s4651_s1 + $0xa18] sm:$0xff]  ;;  %v698_v46 = vld [vmem:[%s4651_s1 + $0xba8] sm:$0xff] }
  0x9b   : > { %3114 = vmatpush3.bf16.msra.mxu1 %v3113_v39  ;;  %1428 = vmatprep.mubr.f32.mxu0 %v288_v40  ;;  %v192_v36 = vld [vmem:[%s3419_s10 + $0x150] sm:$0xff]  ;;  %v3131_v39 = vpack.c.bf16 %v664_v29, %v663_v28  ;;  %v3163_v40 = vpack.c.bf16 %v696_v31, %v695_v30  ;;  %v680_v42 = vld [vmem:[%s4651_s1 + $0xb18] sm:$0xff]  ;;  %v191_v47 = vld [vmem:[%s3419_s10 + $0x148] sm:$0xff] }
  0x9c   : > { %3084 = vmatprep.subr.bf16.mxu0 %v3083_v44  ;;  %3116 = vmatprep.subr.bf16.mxu1 %v3115_v45  ;;  %v647_v37 = vld [vmem:[%s4651_s1 + $0xa10] sm:$0xff]  ;;  %v666_v44 = vld [vmem:[%s4651_s1 + $0xaa8] sm:$0xff]  ;;  %v697_v45 = vld [vmem:[%s4651_s1 + $0xba0] sm:$0xff] }
  0x9d   : > { %1429 = vmatmul.mubr.f32.gmra.mrb[52].mxu0 %v287_v43  ;;  %1528 = vmatprep.mubr.f32.mxu1 %v290_v52  ;;  %v679_v41 = vld [vmem:[%s4651_s1 + $0xb10] sm:$0xff]  ;;  %v665_v43 = vld [vmem:[%s4651_s1 + $0xaa0] sm:$0xff]  ;;  %v3133_v49 = vpack.c.bf16 %v648_v38, %v647_v37  ;;  %v193_v50 = vld [vmem:[%s3419_s10 + $0x158] sm:$0xff] }
  0x9e   : > { %3086 = vmatpush3.bf16.msra.mxu0 %v3085_v53  ;;  %1529 = vmatmul.mubr.f32.gmra.mrb[52].mxu1 %v289_v54  ;;  %v194_v48 = vld [vmem:[%s3419_s10 + $0x160] sm:$0xff]  ;;  %v3165_v51 = vpack.c.bf16 %v680_v42, %v679_v41  ;;  %v217_v52 = vld [vmem:[%s3419_s10 + $0x218] sm:$0xff]  ;;  %v650_v54 = vld [vmem:[%s4651_s1 + $0xa28] sm:$0xff] }
  0x9f   : > { %3118 = vmatpush3.bf16.msra.mxu1 %v3117_v56  ;;  %1433 = vmatprep.mubr.f32.mxu0 %v313_v55  ;;  %v649_v53 = vld [vmem:[%s4651_s1 + $0xa20] sm:$0xff]  ;;  %v3135_v55 = vpack.c.bf16 %v666_v44, %v665_v43  ;;  %v3167_v56 = vpack.c.bf16 %v698_v46, %v697_v45  ;;  %v682_v58 = vld [vmem:[%s4651_s1 + $0xb28] sm:$0xff]  ;;  %v667_v59 = vld [vmem:[%s4651_s1 + $0xab0] sm:$0xff] }
  0xa0   : > { %3088 = vmatprep.subr.bf16.mxu0 %v3087_v60  ;;  %3120 = vmatprep.subr.bf16.mxu1 %v3119_v61  ;;  %v681_v57 = vld [vmem:[%s4651_s1 + $0xb20] sm:$0xff]  ;;  %v668_v60 = vld [vmem:[%s4651_s1 + $0xab8] sm:$0xff]  ;;  %v699_v61 = vld [vmem:[%s4651_s1 + $0xbb0] sm:$0xff]  ;;  %v3137_v1 = vpack.c.bf16 %v650_v54, %v649_v53 }
  0xa1   : > { %1434 = vmatmul.mubr.f32.gmra.mrb[54].mxu0 %v312_v3  ;;  %1533 = vmatprep.mubr.f32.mxu1 %v315_v4  ;;  %v700_v62 = vld [vmem:[%s4651_s1 + $0xbb8] sm:$0xff]  ;;  %v216_v63 = vld [vmem:[%s3419_s10 + $0x210] sm:$0xff]  ;;  %v219_v0 = vld [vmem:[%s3419_s10 + $0x228] sm:$0xff]  ;;  %v3169_v3 = vpack.c.bf16 %v682_v58, %v681_v57 }
  0xa2   : > { %3090 = vmatpush3.bf16.msra.mxu0 %v3089_v5  ;;  %1534 = vmatmul.mubr.f32.gmra.mrb[54].mxu1 %v314_v6  ;;  %v218_v2 = vld [vmem:[%s3419_s10 + $0x220] sm:$0xff]  ;;  %v651_v5 = vld [vmem:[%s4651_s1 + $0xa30] sm:$0xff]  ;;  %v652_v6 = vld [vmem:[%s4651_s1 + $0xa38] sm:$0xff] }
  0xa3   : > { %3122 = vmatpush3.bf16.msra.mxu1 %v3121_v7  ;;  %3092 = vmatprep.subr.bf16.mxu0 %v3091_v8  ;;  %v242_v4 = vld [vmem:[%s3419_s10 + $0x2e0] sm:$0xff]  ;;  %v3139_v7 = vpack.c.bf16 %v668_v60, %v667_v59  ;;  %v3171_v8 = vpack.c.bf16 %v700_v62, %v699_v61  ;;  %v683_v9 = vld [vmem:[%s4651_s1 + $0xb30] sm:$0xff]  ;;  %v684_v10 = vld [vmem:[%s4651_s1 + $0xb38] sm:$0xff]  ;;  %v3141_v17 = vpack.c.bf16 %v652_v6, %v651_v5 }
  0xa4   : > { %3124 = vmatprep.subr.bf16.mxu1 %v3123_v12  ;;  %1603 = vmatprep.mubr.f32.mxu0 %v167_v16  ;;  %v669_v11 = vld [vmem:[%s4651_s1 + $0xac0] sm:$0xff]  ;;  %v670_v12 = vld [vmem:[%s4651_s1 + $0xac8] sm:$0xff]  ;;  %v241_v15 = vld [vmem:[%s3419_s10 + $0x2d8] sm:$0xff] }
  0xa5   : > { %1703 = vmatprep.mubr.f32.mxu1 %v169_v20  ;;  %v701_v13 = vld [vmem:[%s4651_s1 + $0xbc0] sm:$0xff]  ;;  %v702_v14 = vld [vmem:[%s4651_s1 + $0xbc8] sm:$0xff]  ;;  %v244_v16 = vld [vmem:[%s3419_s10 + $0x2f0] sm:$0xff]  ;;  %v3143_v23 = vpack.c.bf16 %v670_v12, %v669_v11 }
  0xa6   : > { %3094 = vmatpush3.bf16.msra.mxu0 %v3093_v19  ;;  %v243_v18 = vld [vmem:[%s3419_s10 + $0x2e8] sm:$0xff]  ;;  %v3173_v19 = vpack.c.bf16 %v684_v10, %v683_v9  ;;  %v3175_v24 = vpack.c.bf16 %v702_v14, %v701_v13  ;;  %v671_v27 = vld [vmem:[%s4651_s1 + $0xad0] sm:$0xff]  ;;  %v672_v28 = vld [vmem:[%s4651_s1 + $0xad8] sm:$0xff] }
  0xa7   : > { %3126 = vmatpush3.bf16.msra.mxu1 %v3125_v21  ;;  %3128 = vmatprep.subr.bf16.mxu0 %v3127_v22  ;;  %v267_v20 = vld [vmem:[%s3419_s10 + $0x3a8] sm:$0xff]  ;;  %v653_v21 = vld [vmem:[%s4651_s1 + $0xa40] sm:$0xff]  ;;  %v703_v29 = vld [vmem:[%s4651_s1 + $0xbd0] sm:$0xff] }
  0xa8   : > { %3160 = vmatprep.subr.bf16.mxu1 %v3159_v25  ;;  %v654_v22 = vld [vmem:[%s4651_s1 + $0xa48] sm:$0xff]  ;;  %v685_v25 = vld [vmem:[%s4651_s1 + $0xb40] sm:$0xff]  ;;  %v704_v30 = vld [vmem:[%s4651_s1 + $0xbd8] sm:$0xff] }
  0xa9   : > { %1604 = vmatmul.mubr.f32.vlgmr.msra.gmra.mrb[56].mxu0 %v166_v32  ;;  %v686_v26 = vld [vmem:[%s4651_s1 + $0xb48] sm:$0xff]  ;;  %v266_v31 = vld [vmem:[%s3419_s10 + $0x3a0] sm:$0xff]  ;;  %v269_v32 = vld [vmem:[%s3419_s10 + $0x3b8] sm:$0xff]  ;;  %v3179_v41 = vpack.c.bf16 %v704_v30, %v703_v29 }
  0xaa   : > { %1704 = vmatmul.mubr.f32.vlgmr.msra.gmra.mrb[56].mxu1 %v168_v33  ;;  %3130 = vmatpush3.bf16.msra.mxu0 %v3129_v34  ;;  %v3145_v33 = vpack.c.bf16 %v654_v22, %v653_v21  ;;  %v268_v34 = vld [vmem:[%s3419_s10 + $0x3b0] sm:$0xff]  ;;  %v656_v38 = vld [vmem:[%s4651_s1 + $0xa58] sm:$0xff]  ;;  %v673_v44 = vld [vmem:[%s4651_s1 + $0xae0] sm:$0xff] }
  0xab   : > { %3162 = vmatpush3.bf16.msra.mxu1 %v3161_v35  ;;  %1608 = vmatprep.mubr.f32.mxu0 %v192_v36  ;;  %v3177_v35 = vpack.c.bf16 %v686_v26, %v685_v25  ;;  %v292_v36 = vld [vmem:[%s3419_s10 + $0x470] sm:$0xff]  ;;  %v688_v43 = vld [vmem:[%s4651_s1 + $0xb58] sm:$0xff]  ;;  %v674_v45 = vld [vmem:[%s4651_s1 + $0xae8] sm:$0xff] }
  0xac   : > { %3132 = vmatprep.subr.bf16.mxu0 %v3131_v39  ;;  %3164 = vmatprep.subr.bf16.mxu1 %v3163_v40  ;;  %v655_v37 = vld [vmem:[%s4651_s1 + $0xa50] sm:$0xff]  ;;  %v291_v39 = vld [vmem:[%s3419_s10 + $0x468] sm:$0xff]  ;;  %v3147_v40 = vpack.c.bf16 %v672_v28, %v671_v27  ;;  %v705_v46 = vld [vmem:[%s4651_s1 + $0xbe0] sm:$0xff] }
  0xad   : > { %1609 = vmatmul.mubr.f32.gmra.mrb[58].mxu0 %v191_v47  ;;  %1708 = vmatprep.mubr.f32.mxu1 %v194_v48  ;;  %v687_v42 = vld [vmem:[%s4651_s1 + $0xb50] sm:$0xff]  ;;  %v706_v47 = vld [vmem:[%s4651_s1 + $0xbe8] sm:$0xff]  ;;  %v294_v48 = vld [vmem:[%s3419_s10 + $0x480] sm:$0xff] }
  0xae   : > { %3134 = vmatpush3.bf16.msra.mxu0 %v3133_v49  ;;  %1709 = vmatmul.mubr.f32.gmra.mrb[58].mxu1 %v193_v50  ;;  %v3149_v49 = vpack.c.bf16 %v656_v38, %v655_v37  ;;  %v293_v50 = vld [vmem:[%s3419_s10 + $0x478] sm:$0xff]  ;;  %v657_v53 = vld [vmem:[%s4651_s1 + $0xa60] sm:$0xff]  ;;  %v658_v54 = vld [vmem:[%s4651_s1 + $0xa68] sm:$0xff]  ;;  %v3183_v57 = vpack.c.bf16 %v706_v47, %v705_v46 }
  0xaf   : > { %3166 = vmatpush3.bf16.msra.mxu1 %v3165_v51  ;;  %1613 = vmatprep.mubr.f32.mxu0 %v217_v52  ;;  %v317_v51 = vld [vmem:[%s3419_s10 + $0x538] sm:$0xff]  ;;  %v3181_v52 = vpack.c.bf16 %v688_v43, %v687_v42  ;;  %v690_v58 = vld [vmem:[%s4651_s1 + $0xb68] sm:$0xff]  ;;  %v675_v59 = vld [vmem:[%s4651_s1 + $0xaf0] sm:$0xff] }
  0xb0   : > { %3136 = vmatprep.subr.bf16.mxu0 %v3135_v55  ;;  %3168 = vmatprep.subr.bf16.mxu1 %v3167_v56  ;;  %v689_v55 = vld [vmem:[%s4651_s1 + $0xb60] sm:$0xff]  ;;  %v3151_v56 = vpack.c.bf16 %v674_v45, %v673_v44  ;;  %v676_v60 = vld [vmem:[%s4651_s1 + $0xaf8] sm:$0xff]  ;;  %v707_v61 = vld [vmem:[%s4651_s1 + $0xbf0] sm:$0xff] }
  0xb1   : > { %1614 = vmatmul.mubr.f32.gmra.mrb[60].mxu0 %v216_v63  ;;  %1713 = vmatprep.mubr.f32.mxu1 %v219_v0  ;;  %v708_v62 = vld [vmem:[%s4651_s1 + $0xbf8] sm:$0xff]  ;;  %v316_v63 = vld [vmem:[%s3419_s10 + $0x530] sm:$0xff]  ;;  %v319_v0 = vld [vmem:[%s3419_s10 + $0x548] sm:$0xff] }
  0xb2   : > { %3138 = vmatpush3.bf16.msra.mxu0 %v3137_v1  ;;  %1714 = vmatmul.mubr.f32.gmra.mrb[60].mxu1 %v218_v2  ;;  %v3153_v1 = vpack.c.bf16 %v658_v54, %v657_v53  ;;  %v3185_v2 = vpack.c.bf16 %v690_v58, %v689_v55  ;;  %v659_v5 = vld [vmem:[%s4651_s1 + $0xa70] sm:$0xff]  ;;  %v660_v6 = vld [vmem:[%s4651_s1 + $0xa78] sm:$0xff]  ;;  %v171_v10 = vld [vmem:[%s3419_s10 + $0xa8] sm:$0xff]  ;;  %v3233_v53 = vmov 0.0  }
  0xb3   : > { %3170 = vmatpush3.bf16.msra.mxu1 %v3169_v3  ;;  %1618 = vmatprep.mubr.f32.mxu0 %v242_v4  ;;  %v318_v3 = vld [vmem:[%s3419_s10 + $0x540] sm:$0xff]  ;;  %v3155_v4 = vpack.c.bf16 %v676_v60, %v675_v59  ;;  %v692_v9 = vld [vmem:[%s4651_s1 + $0xb78] sm:$0xff]  ;;  %v3157_v11 = vpack.c.bf16 %v660_v6, %v659_v5  ;;  %v711_v22 = vld [vmem:[%s4651_s1 + $0xc10] sm:$0xff] }
  0xb4   : > { %3140 = vmatprep.subr.bf16.mxu0 %v3139_v7  ;;  %3172 = vmatprep.subr.bf16.mxu1 %v3171_v8  ;;  %v3187_v7 = vpack.c.bf16 %v708_v62, %v707_v61  ;;  %v691_v8 = vld [vmem:[%s4651_s1 + $0xb70] sm:$0xff]  ;;  %v173_v12 = vld [vmem:[%s3419_s10 + $0xb8] sm:$0xff]  ;;  %v709_v14 = vld [vmem:[%s4651_s1 + $0xc00] sm:$0xff] }
  0xb5   : > { %1619 = vmatmul.mubr.f32.gmra.mrb[62].mxu0 %v241_v15  ;;  %1718 = vmatprep.mubr.f32.mxu1 %v244_v16  ;;  %v3189_v13 = vpack.c.bf16 %v692_v9, %v691_v8  ;;  %v710_v15 = vld [vmem:[%s4651_s1 + $0xc08] sm:$0xff]  ;;  %v170_v16 = vld [vmem:[%s3419_s10 + $0xa0] sm:$0xff]  ;;  %v197_v25 = vld [vmem:[%s3419_s10 + $0x178] sm:$0xff] }
  0xb6   : > { %3142 = vmatpush3.bf16.msra.mxu0 %v3141_v17  ;;  %1719 = vmatmul.mubr.f32.gmra.mrb[62].mxu1 %v243_v18  ;;  %v3192_v17 = vpack.c.bf16 %v710_v15, %v709_v14  ;;  %v172_v18 = vld [vmem:[%s3419_s10 + $0xb0] sm:$0xff]  ;;  %v198_v21 = vld [vmem:[%s3419_s10 + $0x180] sm:$0xff]  ;;  %v221_v26 = vld [vmem:[%s3419_s10 + $0x238] sm:$0xff] }
  0xb7   : > { %3174 = vmatpush3.bf16.msra.mxu1 %v3173_v19  ;;  %1623 = vmatprep.mubr.f32.mxu0 %v267_v20  ;;  %v3231_v19 = vmov 0.0|0.0   ;;  %v196_v20 = vld [vmem:[%s3419_s10 + $0x170] sm:$0xff]  ;;  %v223_v28 = vld [vmem:[%s3419_s10 + $0x248] sm:$0xff]  ;;  %v713_v29 = vld [vmem:[%s4651_s1 + $0xc20] sm:$0xff] }
  0xb8   : > { %3144 = vmatprep.subr.bf16.mxu0 %v3143_v23  ;;  %3176 = vmatprep.subr.bf16.mxu1 %v3175_v24  ;;  %v712_v23 = vld [vmem:[%s4651_s1 + $0xc18] sm:$0xff]  ;;  %v195_v24 = vld [vmem:[%s3419_s10 + $0x168] sm:$0xff]  ;;  %v270_v43 = vld [vmem:[%s3419_s10 + $0x3c0] sm:$0xff] }
  0xb9   : > { %1624 = vmatmul.mubr.f32.gmra.mrb[64].mxu0 %v266_v31  ;;  %1723 = vmatprep.mubr.f32.mxu1 %v269_v32  ;;  %v3195_v27 = vpack.c.bf16 %v712_v23, %v711_v22  ;;  %v714_v30 = vld [vmem:[%s4651_s1 + $0xc28] sm:$0xff]  ;;  %v220_v31 = vld [vmem:[%s3419_s10 + $0x230] sm:$0xff]  ;;  %v222_v32 = vld [vmem:[%s3419_s10 + $0x240] sm:$0xff] }
  0xba   : > { %3146 = vmatpush3.bf16.msra.mxu0 %v3145_v33  ;;  %1724 = vmatmul.mubr.f32.gmra.mrb[64].mxu1 %v268_v34  ;;  %v246_v33 = vld [vmem:[%s3419_s10 + $0x300] sm:$0xff]  ;;  %v3198_v34 = vpack.c.bf16 %v714_v30, %v713_v29  ;;  %v716_v37 = vld [vmem:[%s4651_s1 + $0xc38] sm:$0xff]  ;;  %v272_v44 = vld [vmem:[%s3419_s10 + $0x3d0] sm:$0xff] }
  0xbb   : > { %3178 = vmatpush3.bf16.msra.mxu1 %v3177_v35  ;;  %1628 = vmatprep.mubr.f32.mxu0 %v292_v36  ;;  %v248_v35 = vld [vmem:[%s3419_s10 + $0x310] sm:$0xff]  ;;  %v245_v38 = vld [vmem:[%s3419_s10 + $0x2f8] sm:$0xff]  ;;  %v298_v46 = vld [vmem:[%s3419_s10 + $0x4a0] sm:$0xff] }
  0xbc   : > { %3148 = vmatprep.subr.bf16.mxu0 %v3147_v40  ;;  %3180 = vmatprep.subr.bf16.mxu1 %v3179_v41  ;;  %v715_v36 = vld [vmem:[%s4651_s1 + $0xc30] sm:$0xff]  ;;  %v271_v40 = vld [vmem:[%s3419_s10 + $0x3c8] sm:$0xff]  ;;  %v273_v42 = vld [vmem:[%s3419_s10 + $0x3d8] sm:$0xff] }
  0xbd   : > { %1629 = vmatmul.mubr.f32.gmra.mrb[66].mxu0 %v291_v39  ;;  %1728 = vmatprep.mubr.f32.mxu1 %v294_v48  ;;  %v247_v39 = vld [vmem:[%s3419_s10 + $0x308] sm:$0xff]  ;;  %v3201_v41 = vpack.c.bf16 %v716_v37, %v715_v36  ;;  %v296_v45 = vld [vmem:[%s3419_s10 + $0x490] sm:$0xff]  ;;  %v297_v48 = vld [vmem:[%s3419_s10 + $0x498] sm:$0xff] }
  0xbe   : > { %3150 = vmatpush3.bf16.msra.mxu0 %v3149_v49  ;;  %1729 = vmatmul.mubr.f32.gmra.mrb[66].mxu1 %v293_v50  ;;  %v295_v47 = vld [vmem:[%s3419_s10 + $0x488] sm:$0xff]  ;;  %v321_v49 = vld [vmem:[%s3419_s10 + $0x558] sm:$0xff]  ;;  %v174_v54 = vld [vmem:[%s3419_s10 + $0xc0] sm:$0xff] }
  0xbf   : > { %3182 = vmatpush3.bf16.msra.mxu1 %v3181_v52  ;;  %1633 = vmatprep.mubr.f32.mxu0 %v317_v51  ;;  %v323_v50 = vld [vmem:[%s3419_s10 + $0x568] sm:$0xff]  ;;  %v320_v51 = vld [vmem:[%s3419_s10 + $0x550] sm:$0xff]  ;;  %v322_v52 = vld [vmem:[%s3419_s10 + $0x560] sm:$0xff] }
  0xc0   : > { %3152 = vmatprep.subr.bf16.mxu0 %v3151_v56  ;;  %3184 = vmatprep.subr.bf16.mxu1 %v3183_v57  ;;  %v274_v55 = vld [vmem:[%s3419_s10 + $0x3e0] sm:$0xff]  ;;  %v199_v56 = vld [vmem:[%s3419_s10 + $0x188] sm:$0xff]  ;;  %v224_v58 = vld [vmem:[%s3419_s10 + $0x250] sm:$0xff] }
  0xc1   : > { %1634 = vmatmul.mubr.f32.gmra.mrb[68].mxu0 %v316_v63  ;;  %1733 = vmatprep.mubr.f32.mxu1 %v319_v0  ;;  %v299_v57 = vld [vmem:[%s3419_s10 + $0x4a8] sm:$0xff]  ;;  %v324_v59 = vld [vmem:[%s3419_s10 + $0x570] sm:$0xff]  ;;  %v249_v60 = vld [vmem:[%s3419_s10 + $0x318] sm:$0xff]  ;;  %s2109_s10 = sshll.u32 %s4654_s29, 3 }
  0xc2   : > { %3154 = vmatpush3.bf16.msra.mxu0 %v3153_v1  ;;  %1734 = vmatmul.mubr.f32.gmra.mrb[68].mxu1 %v318_v3  ;;  %s148_s22 = scalar_lea.vmem %s4652_s2, %s2109_s10 }
  0xc3   : > { %3186 = vmatpush3.bf16.msra.mxu1 %v3185_v2  ;;  %3156 = vmatprep.subr.bf16.mxu0 %v3155_v4 }
  0xc4   : > { %3188 = vmatprep.subr.bf16.mxu1 %v3187_v7  ;;  %1803 = vmatprep.mubr.f32.mxu0 %v171_v10 }
  0xc5   : > { %1903 = vmatprep.mubr.f32.mxu1 %v173_v12 }
  0xc6   : > { %3158 = vmatpush3.bf16.msra.mxu0 %v3157_v11 }
  0xc7   : > { %3190 = vmatpush3.bf16.msra.mxu1 %v3189_v13  ;;  %3191 = vmatprep.subr.bf16.mxu0 %v3231_v19 }
  0xc8   : > { %3203 = vmatprep.subr.bf16.mxu1 %v3231_v19 }
  0xc9   : > { %1804 = vmatmul.mubr.f32.vlgmr.msra.gmra.mrb[70].mxu0 %v170_v16 }
  0xca   : > { %1904 = vmatmul.mubr.f32.vlgmr.msra.gmra.mrb[70].mxu1 %v172_v18  ;;  %3193 = vmatpush3.bf16.msra.mxu0 %v3192_v17 }
  0xcb   : > { %1808 = vmatprep.mubr.f32.mxu0 %v196_v20  ;;  %1908 = vmatprep.mubr.f32.mxu1 %v198_v21 }
  0xcc   : > { %3207 = vmatpush3.bf16.msra.mxu1 %v3192_v17  ;;  %3194 = vmatprep.subr.bf16.mxu0 %v3231_v19 }
  0xcd   : > { %1809 = vmatmul.mubr.f32.gmra.mrb[72].mxu0 %v195_v24  ;;  %3204 = vmatprep.subr.bf16.mxu1 %v3231_v19 }
  0xce   : > { %1909 = vmatmul.mubr.f32.gmra.mrb[72].mxu1 %v197_v25  ;;  %1813 = vmatprep.mubr.f32.mxu0 %v221_v26 }
  0xcf   : > { %1913 = vmatprep.mubr.f32.mxu1 %v223_v28  ;;  %3196 = vmatpush3.bf16.msra.mxu0 %v3195_v27 }
  0xd0   : > { %3208 = vmatpush3.bf16.msra.mxu1 %v3195_v27  ;;  %3197 = vmatprep.subr.bf16.mxu0 %v3231_v19 }
  0xd1   : > { %1814 = vmatmul.mubr.f32.gmra.mrb[74].mxu0 %v220_v31  ;;  %3205 = vmatprep.subr.bf16.mxu1 %v3231_v19 }
  0xd2   : > { %1914 = vmatmul.mubr.f32.gmra.mrb[74].mxu1 %v222_v32  ;;  %1818 = vmatprep.mubr.f32.mxu0 %v246_v33 }
  0xd3   : > { %1918 = vmatprep.mubr.f32.mxu1 %v248_v35  ;;  %3199 = vmatpush3.bf16.msra.mxu0 %v3198_v34 }
  0xd4   : > { %3209 = vmatpush3.bf16.msra.mxu1 %v3198_v34  ;;  %3200 = vmatprep.subr.bf16.mxu0 %v3231_v19 }
  0xd5   : > { %1819 = vmatmul.mubr.f32.gmra.mrb[76].mxu0 %v245_v38  ;;  %3206 = vmatprep.subr.bf16.mxu1 %v3231_v19 }
  0xd6   : > { %1919 = vmatmul.mubr.f32.gmra.mrb[76].mxu1 %v247_v39  ;;  %1823 = vmatprep.mubr.f32.mxu0 %v271_v40 }
  0xd7   : > { %1923 = vmatprep.mubr.f32.mxu1 %v273_v42  ;;  %3202 = vmatpush3.bf16.msra.mxu0 %v3201_v41 }
  0xd8   : > { %3210 = vmatpush3.bf16.msra.mxu1 %v3201_v41 }
  0xd9   : > { %1824 = vmatmul.mubr.f32.gmra.mrb[78].mxu0 %v270_v43 }
  0xda   : > { %1924 = vmatmul.mubr.f32.gmra.mrb[78].mxu1 %v272_v44  ;;  %1828 = vmatprep.mubr.f32.mxu0 %v296_v45 }
  0xdb   : > { %1928 = vmatprep.mubr.f32.mxu1 %v298_v46 }
  0xdd   : > { %1829 = vmatmul.mubr.f32.gmra.mrb[80].mxu0 %v295_v47 }
  0xde   : > { %1929 = vmatmul.mubr.f32.gmra.mrb[80].mxu1 %v297_v48  ;;  %1833 = vmatprep.mubr.f32.mxu0 %v321_v49 }
  0xdf   : > { %1933 = vmatprep.mubr.f32.mxu1 %v323_v50 }
  0xe1   : > { %1834 = vmatmul.mubr.f32.gmra.mrb[82].mxu0 %v320_v51 }
  0xe2   : > { %1934 = vmatmul.mubr.f32.gmra.mrb[82].mxu1 %v322_v52  ;;  %2786 = vmatprep.mubr.msk.f32.mxu0 %vm3232_vm0, %v3233_v53 }
  0xe3   : > { %2798 = vmatprep.mubr.msk.f32.mxu1 %vm3232_vm0, %v3233_v53 }
  0xe5   : > { %2787 = vmatmul.mubr.msk.f32.vlgmr.msra.gmra.mrb[84].mxu0 %vm717_vm1, %v174_v54 }
  0xe6   : > { %2799 = vmatmul.mubr.msk.f32.vlgmr.msra.gmra.mrb[84].mxu1 %vm717_vm1, %v274_v55  ;;  %2789 = vmatprep.mubr.msk.f32.mxu0 %vm3232_vm0, %v3233_v53 }
  0xe7   : > { %2801 = vmatprep.mubr.msk.f32.mxu1 %vm3232_vm0, %v3233_v53 }
  0xe9   : > { %2790 = vmatmul.mubr.msk.f32.gmra.mrb[86].mxu0 %vm717_vm1, %v199_v56 }
  0xea   : > { %2802 = vmatmul.mubr.msk.f32.gmra.mrb[86].mxu1 %vm717_vm1, %v299_v57  ;;  %2792 = vmatprep.mubr.msk.f32.mxu0 %vm3232_vm0, %v3233_v53 }
  0xeb   : > { %2804 = vmatprep.mubr.msk.f32.mxu1 %vm3232_vm0, %v3233_v53 }
  0xed   : > { %2793 = vmatmul.mubr.msk.f32.gmra.mrb[88].mxu0 %vm717_vm1, %v224_v58 }
  0xee   : > { %2805 = vmatmul.mubr.msk.f32.gmra.mrb[88].mxu1 %vm717_vm1, %v324_v59  ;;  %2795 = vmatprep.mubr.msk.f32.mxu0 %vm3232_vm0, %v3233_v53 }
  0xf1   : > { %2796 = vmatmul.mubr.msk.f32.gmra.mrb[90].mxu0 %vm717_vm1, %v249_v60 }
  0xfc   : > { %v2151_v61 = vpop.f32.mrb[0].mxu0 }
  0xfd   : > { %v2204_v62 = vpop.f32.mrb[0].mxu1  ;;  %v2152_v63 = vpop.f32.mrb[1].mxu0 }
  0xfe   : > { %v2153_v0 = vadd.f32 %v2152_v63, %v2151_v61  ;;  %v2205_v1 = vpop.f32.mrb[1].mxu1 }
  0xff   : > { %v2206_v2 = vadd.f32 %v2205_v1, %v2204_v62 }
 0x100   : > { %v2154_v3 = vpop.f32.mrb[2].mxu0 }
 0x101   : > { %v906_v4 = vadd.f32 %v2206_v2, %v2153_v0  ;;  %v2207_v5 = vpop.f32.mrb[2].mxu1  ;;  %v2155_v6 = vpop.f32.mrb[3].mxu0 }
 0x102   : > { %v2156_v7 = vadd.f32 %v2155_v6, %v2154_v3  ;;  %v2208_v8 = vpop.f32.mrb[3].mxu1 }
 0x103   : > { %v2209_v9 = vadd.f32 %v2208_v8, %v2207_v5 }
 0x104   : > { %v2157_v10 = vpop.f32.mrb[4].mxu0 }
 0x105   : > { %v911_v11 = vadd.f32 %v2209_v9, %v2156_v7  ;;  %v2210_v12 = vpop.f32.mrb[4].mxu1  ;;  %v2158_v13 = vpop.f32.mrb[5].mxu0 }
 0x106   : > { %v2159_v14 = vadd.f32 %v2158_v13, %v2157_v10  ;;  %v2211_v15 = vpop.f32.mrb[5].mxu1 }
 0x107   : > { %v2212_v16 = vadd.f32 %v2211_v15, %v2210_v12 }
 0x108   : > { %v2160_v17 = vpop.f32.mrb[6].mxu0 }
 0x109   : > { %v916_v18 = vadd.f32 %v2212_v16, %v2159_v14  ;;  %v2213_v19 = vpop.f32.mrb[6].mxu1  ;;  %v2161_v20 = vpop.f32.mrb[7].mxu0 }
 0x10a   : > { %v2162_v21 = vadd.f32 %v2161_v20, %v2160_v17  ;;  %v2214_v22 = vpop.f32.mrb[7].mxu1 }
 0x10b   : > { %v2215_v23 = vadd.f32 %v2214_v22, %v2213_v19 }
 0x10c   : > { %v2163_v24 = vpop.f32.mrb[8].mxu0 }
 0x10d   : > { %v921_v25 = vadd.f32 %v2215_v23, %v2162_v21  ;;  %v2216_v26 = vpop.f32.mrb[8].mxu1  ;;  %v2164_v27 = vpop.f32.mrb[9].mxu0 }
 0x10e   : > { %v2165_v28 = vadd.f32 %v2164_v27, %v2163_v24  ;;  %v2217_v29 = vpop.f32.mrb[9].mxu1 }
 0x10f   : > { %v2218_v30 = vadd.f32 %v2217_v29, %v2216_v26 }
 0x110   : > { %v2166_v31 = vpop.f32.mrb[10].mxu0 }
 0x111   : > { %v926_v32 = vadd.f32 %v2218_v30, %v2165_v28  ;;  %v2219_v33 = vpop.f32.mrb[10].mxu1  ;;  %v2167_v34 = vpop.f32.mrb[11].mxu0 }
 0x112   : > { %v2168_v35 = vadd.f32 %v2167_v34, %v2166_v31  ;;  %v2220_v36 = vpop.f32.mrb[11].mxu1 }
 0x113   : > { %v2221_v37 = vadd.f32 %v2220_v36, %v2219_v33 }
 0x114   : > { %v2169_v38 = vpop.f32.mrb[12].mxu0 }
 0x115   : > { %v931_v39 = vadd.f32 %v2221_v37, %v2168_v35  ;;  %v2222_v40 = vpop.f32.mrb[12].mxu1  ;;  %v2170_v41 = vpop.f32.mrb[13].mxu0 }
 0x116   : > { %v2171_v42 = vadd.f32 %v2170_v41, %v2169_v38  ;;  %v2223_v43 = vpop.f32.mrb[13].mxu1 }
 0x117   : > { %v2224_v44 = vadd.f32 %v2223_v43, %v2222_v40 }
 0x119   : > { %v936_v45 = vadd.f32 %v2224_v44, %v2171_v42 }
 0x11c   : > { %v2257_v46 = vpop.f32.mrb[14].mxu0 }
 0x11d   : > { %v2258_v47 = vpop.f32.mrb[15].mxu0  ;;  %v2310_v48 = vpop.f32.mrb[14].mxu1 }
 0x11e   : > { %v2259_v49 = vadd.f32 %v2258_v47, %v2257_v46  ;;  %v2311_v50 = vpop.f32.mrb[15].mxu1 }
 0x11f   : > { %v2312_v51 = vadd.f32 %v2311_v50, %v2310_v48 }
 0x120   : > { %v1006_v52 = vadd.f32 %v2259_v49, %v906_v4  ;;  %v2260_v53 = vpop.f32.mrb[16].mxu0 }
 0x121   : > { %v2261_v54 = vpop.f32.mrb[17].mxu0  ;;  %v2313_v55 = vpop.f32.mrb[16].mxu1 }
 0x122   : > { %v1106_v56 = vadd.f32 %v2312_v51, %v1006_v52  ;;  %v2262_v57 = vadd.f32 %v2261_v54, %v2260_v53  ;;  %v2314_v58 = vpop.f32.mrb[17].mxu1 }
 0x123   : > { %v2315_v59 = vadd.f32 %v2314_v58, %v2313_v55 }
 0x124   : > { %v1011_v60 = vadd.f32 %v2262_v57, %v911_v11  ;;  %v2263_v61 = vpop.f32.mrb[18].mxu0 }
 0x125   : > { %v2264_v62 = vpop.f32.mrb[19].mxu0  ;;  %v2316_v63 = vpop.f32.mrb[18].mxu1 }
 0x126   : > { %v1111_v0 = vadd.f32 %v2315_v59, %v1011_v60  ;;  %v2265_v1 = vadd.f32 %v2264_v62, %v2263_v61  ;;  %v2317_v2 = vpop.f32.mrb[19].mxu1 }
 0x127   : > { %v2318_v3 = vadd.f32 %v2317_v2, %v2316_v63 }
 0x128   : > { %v1016_v5 = vadd.f32 %v2265_v1, %v916_v18  ;;  %v2266_v6 = vpop.f32.mrb[20].mxu0 }
 0x129   : > { %v2267_v7 = vpop.f32.mrb[21].mxu0  ;;  %v2319_v8 = vpop.f32.mrb[20].mxu1 }
 0x12a   : > { %v1116_v4 = vadd.f32 %v2318_v3, %v1016_v5  ;;  %v2268_v9 = vadd.f32 %v2267_v7, %v2266_v6  ;;  %v2320_v10 = vpop.f32.mrb[21].mxu1 }
 0x12b   : > { %v2321_v12 = vadd.f32 %v2320_v10, %v2319_v8 }
 0x12c   : > { %v1021_v13 = vadd.f32 %v2268_v9, %v921_v25  ;;  %v2269_v14 = vpop.f32.mrb[22].mxu0 }
 0x12d   : > { %v2270_v15 = vpop.f32.mrb[23].mxu0  ;;  %v2322_v16 = vpop.f32.mrb[22].mxu1 }
 0x12e   : > { %v1121_v11 = vadd.f32 %v2321_v12, %v1021_v13  ;;  %v2271_v17 = vadd.f32 %v2270_v15, %v2269_v14  ;;  %v2323_v19 = vpop.f32.mrb[23].mxu1 }
 0x12f   : > { %v2324_v20 = vadd.f32 %v2323_v19, %v2322_v16 }
 0x130   : > { %v1026_v21 = vadd.f32 %v2271_v17, %v926_v32  ;;  %v2272_v22 = vpop.f32.mrb[24].mxu0 }
 0x131   : > { %v2273_v23 = vpop.f32.mrb[25].mxu0  ;;  %v2325_v24 = vpop.f32.mrb[24].mxu1 }
 0x132   : > { %v1126_v18 = vadd.f32 %v2324_v20, %v1026_v21  ;;  %v2274_v26 = vadd.f32 %v2273_v23, %v2272_v22  ;;  %v2326_v27 = vpop.f32.mrb[25].mxu1 }
 0x133   : > { %v2327_v28 = vadd.f32 %v2326_v27, %v2325_v24 }
 0x134   : > { %v1031_v29 = vadd.f32 %v2274_v26, %v931_v39  ;;  %v2275_v30 = vpop.f32.mrb[26].mxu0 }
 0x135   : > { %v2276_v31 = vpop.f32.mrb[27].mxu0  ;;  %v2328_v33 = vpop.f32.mrb[26].mxu1 }
 0x136   : > { %v1131_v25 = vadd.f32 %v2327_v28, %v1031_v29  ;;  %v2277_v34 = vadd.f32 %v2276_v31, %v2275_v30  ;;  %v2329_v35 = vpop.f32.mrb[27].mxu1 }
 0x137   : > { %v2330_v36 = vadd.f32 %v2329_v35, %v2328_v33 }
 0x138   : > { %v1036_v37 = vadd.f32 %v2277_v34, %v936_v45 }
 0x13a   : > { %v1136_v38 = vadd.f32 %v2330_v36, %v1036_v37 }
 0x13c   : > { %v2363_v40 = vpop.f32.mrb[28].mxu0 }
 0x13d   : > { %v2364_v41 = vpop.f32.mrb[29].mxu0  ;;  %v2416_v32 = vpop.f32.mrb[28].mxu1 }
 0x13e   : > { %v2365_v42 = vadd.f32 %v2364_v41, %v2363_v40  ;;  %v2417_v43 = vpop.f32.mrb[29].mxu1 }
 0x13f   : > { %v2418_v44 = vadd.f32 %v2417_v43, %v2416_v32 }
 0x140   : > { %v1206_v46 = vadd.f32 %v2365_v42, %v1106_v56  ;;  %v2366_v47 = vpop.f32.mrb[30].mxu0 }
 0x141   : > { %v2367_v48 = vpop.f32.mrb[31].mxu0  ;;  %v2419_v49 = vpop.f32.mrb[30].mxu1 }
 0x142   : > { %v1306_v39 = vadd.f32 %v2418_v44, %v1206_v46  ;;  %v2368_v50 = vadd.f32 %v2367_v48, %v2366_v47  ;;  %v2420_v51 = vpop.f32.mrb[31].mxu1 }
 0x143   : > { %v2421_v52 = vadd.f32 %v2420_v51, %v2419_v49 }
 0x144   : > { %v1211_v53 = vadd.f32 %v2368_v50, %v1111_v0  ;;  %v2369_v54 = vpop.f32.mrb[32].mxu0 }
 0x145   : > { %v2370_v55 = vpop.f32.mrb[33].mxu0  ;;  %v2422_v57 = vpop.f32.mrb[32].mxu1 }
 0x146   : > { %v1311_v45 = vadd.f32 %v2421_v52, %v1211_v53  ;;  %v2371_v58 = vadd.f32 %v2370_v55, %v2369_v54  ;;  %v2423_v59 = vpop.f32.mrb[33].mxu1 }
 0x147   : > { %v2424_v60 = vadd.f32 %v2423_v59, %v2422_v57 }
 0x148   : > { %v1216_v61 = vadd.f32 %v2371_v58, %v1116_v4  ;;  %v2372_v62 = vpop.f32.mrb[34].mxu0 }
 0x149   : > { %v2373_v63 = vpop.f32.mrb[35].mxu0  ;;  %v2425_v1 = vpop.f32.mrb[34].mxu1 }
 0x14a   : > { %v1316_v56 = vadd.f32 %v2424_v60, %v1216_v61  ;;  %v2374_v2 = vadd.f32 %v2373_v63, %v2372_v62  ;;  %v2426_v3 = vpop.f32.mrb[35].mxu1 }
 0x14b   : > { %v2427_v5 = vadd.f32 %v2426_v3, %v2425_v1 }
 0x14c   : > { %v1221_v6 = vadd.f32 %v2374_v2, %v1121_v11  ;;  %v2375_v7 = vpop.f32.mrb[36].mxu0 }
 0x14d   : > { %v2376_v8 = vpop.f32.mrb[37].mxu0  ;;  %v2428_v9 = vpop.f32.mrb[36].mxu1 }
 0x14e   : > { %v1321_v0 = vadd.f32 %v2427_v5, %v1221_v6  ;;  %v2377_v10 = vadd.f32 %v2376_v8, %v2375_v7  ;;  %v2429_v12 = vpop.f32.mrb[37].mxu1 }
 0x14f   : > { %v2430_v13 = vadd.f32 %v2429_v12, %v2428_v9 }
 0x150   : > { %v1226_v14 = vadd.f32 %v2377_v10, %v1126_v18  ;;  %v2378_v15 = vpop.f32.mrb[38].mxu0 }
 0x151   : > { %v2379_v16 = vpop.f32.mrb[39].mxu0  ;;  %v2431_v17 = vpop.f32.mrb[38].mxu1 }
 0x152   : > { %v1326_v4 = vadd.f32 %v2430_v13, %v1226_v14  ;;  %v2380_v19 = vadd.f32 %v2379_v16, %v2378_v15  ;;  %v2432_v20 = vpop.f32.mrb[39].mxu1 }
 0x153   : > { %v2433_v21 = vadd.f32 %v2432_v20, %v2431_v17 }
 0x154   : > { %v1231_v22 = vadd.f32 %v2380_v19, %v1131_v25  ;;  %v2381_v23 = vpop.f32.mrb[40].mxu0 }
 0x155   : > { %v2382_v24 = vpop.f32.mrb[41].mxu0  ;;  %v2434_v26 = vpop.f32.mrb[40].mxu1 }
 0x156   : > { %v1331_v11 = vadd.f32 %v2433_v21, %v1231_v22  ;;  %v2383_v27 = vadd.f32 %v2382_v24, %v2381_v23  ;;  %v2435_v28 = vpop.f32.mrb[41].mxu1 }
 0x157   : > { %v2436_v29 = vadd.f32 %v2435_v28, %v2434_v26 }
 0x158   : > { %v1236_v30 = vadd.f32 %v2383_v27, %v1136_v38 }
 0x15a   : > { %v1336_v31 = vadd.f32 %v2436_v29, %v1236_v30 }
 0x15c   : > { %v2469_v33 = vpop.f32.mrb[42].mxu0 }
 0x15d   : > { %v2470_v34 = vpop.f32.mrb[43].mxu0  ;;  %v2522_v18 = vpop.f32.mrb[42].mxu1 }
 0x15e   : > { %v2471_v35 = vadd.f32 %v2470_v34, %v2469_v33  ;;  %v2523_v36 = vpop.f32.mrb[43].mxu1 }
 0x15f   : > { %v2524_v37 = vadd.f32 %v2523_v36, %v2522_v18 }
 0x160   : > { %v1406_v40 = vadd.f32 %v2471_v35, %v1306_v39  ;;  %v2472_v41 = vpop.f32.mrb[44].mxu0 }
 0x161   : > { %v2473_v32 = vpop.f32.mrb[45].mxu0  ;;  %v2525_v42 = vpop.f32.mrb[44].mxu1 }
 0x162   : > { %v1506_v25 = vadd.f32 %v2524_v37, %v1406_v40  ;;  %v2474_v43 = vadd.f32 %v2473_v32, %v2472_v41  ;;  %v2526_v44 = vpop.f32.mrb[45].mxu1 }
 0x163   : > { %v2527_v46 = vadd.f32 %v2526_v44, %v2525_v42 }
 0x164   : > { %v1411_v47 = vadd.f32 %v2474_v43, %v1311_v45  ;;  %v2475_v48 = vpop.f32.mrb[46].mxu0 }
 0x165   : > { %v2476_v49 = vpop.f32.mrb[47].mxu0  ;;  %v2528_v50 = vpop.f32.mrb[46].mxu1 }
 0x166   : > { %v1511_v38 = vadd.f32 %v2527_v46, %v1411_v47  ;;  %v2477_v51 = vadd.f32 %v2476_v49, %v2475_v48  ;;  %v2529_v52 = vpop.f32.mrb[47].mxu1 }
 0x167   : > { %v2530_v53 = vadd.f32 %v2529_v52, %v2528_v50 }
 0x168   : > { %v1416_v54 = vadd.f32 %v2477_v51, %v1316_v56  ;;  %v2478_v55 = vpop.f32.mrb[48].mxu0 }
 0x169   : > { %v2479_v57 = vpop.f32.mrb[49].mxu0  ;;  %v2531_v58 = vpop.f32.mrb[48].mxu1 }
 0x16a   : > { %v1516_v39 = vadd.f32 %v2530_v53, %v1416_v54  ;;  %v2480_v59 = vadd.f32 %v2479_v57, %v2478_v55  ;;  %v2532_v60 = vpop.f32.mrb[49].mxu1 }
 0x16b   : > { %v2533_v61 = vadd.f32 %v2532_v60, %v2531_v58 }
 0x16c   : > { %v1421_v62 = vadd.f32 %v2480_v59, %v1321_v0  ;;  %v2481_v63 = vpop.f32.mrb[50].mxu0 }
 0x16d   : > { %v2482_v1 = vpop.f32.mrb[51].mxu0  ;;  %v2534_v2 = vpop.f32.mrb[50].mxu1 }
 0x16e   : > { %v1521_v45 = vadd.f32 %v2533_v61, %v1421_v62  ;;  %v2483_v3 = vadd.f32 %v2482_v1, %v2481_v63  ;;  %v2535_v5 = vpop.f32.mrb[51].mxu1 }
 0x16f   : > { %v2536_v6 = vadd.f32 %v2535_v5, %v2534_v2 }
 0x170   : > { %v1426_v7 = vadd.f32 %v2483_v3, %v1326_v4  ;;  %v2484_v8 = vpop.f32.mrb[52].mxu0 }
 0x171   : > { %v2485_v9 = vpop.f32.mrb[53].mxu0  ;;  %v2537_v10 = vpop.f32.mrb[52].mxu1 }
 0x172   : > { %v1526_v56 = vadd.f32 %v2536_v6, %v1426_v7  ;;  %v2486_v12 = vadd.f32 %v2485_v9, %v2484_v8  ;;  %v2538_v13 = vpop.f32.mrb[53].mxu1 }
 0x173   : > { %v2539_v14 = vadd.f32 %v2538_v13, %v2537_v10 }
 0x174   : > { %v1431_v15 = vadd.f32 %v2486_v12, %v1331_v11  ;;  %v2487_v16 = vpop.f32.mrb[54].mxu0 }
 0x175   : > { %v2488_v17 = vpop.f32.mrb[55].mxu0  ;;  %v2540_v19 = vpop.f32.mrb[54].mxu1 }
 0x176   : > { %v1531_v0 = vadd.f32 %v2539_v14, %v1431_v15  ;;  %v2489_v20 = vadd.f32 %v2488_v17, %v2487_v16  ;;  %v2541_v21 = vpop.f32.mrb[55].mxu1 }
 0x177   : > { %v2542_v22 = vadd.f32 %v2541_v21, %v2540_v19 }
 0x178   : > { %v1436_v23 = vadd.f32 %v2489_v20, %v1336_v31 }
 0x17a   : > { %v1536_v24 = vadd.f32 %v2542_v22, %v1436_v23 }
 0x17c   : > { %v2575_v26 = vpop.f32.mrb[56].mxu0 }
 0x17d   : > { %v2576_v27 = vpop.f32.mrb[57].mxu0  ;;  %v2628_v4 = vpop.f32.mrb[56].mxu1 }
 0x17e   : > { %v2577_v28 = vadd.f32 %v2576_v27, %v2575_v26  ;;  %v2629_v29 = vpop.f32.mrb[57].mxu1 }
 0x17f   : > { %v2630_v30 = vadd.f32 %v2629_v29, %v2628_v4 }
 0x180   : > { %v1606_v33 = vadd.f32 %v2577_v28, %v1506_v25  ;;  %v2578_v34 = vpop.f32.mrb[58].mxu0 }
 0x181   : > { %v2579_v18 = vpop.f32.mrb[59].mxu0  ;;  %v2631_v35 = vpop.f32.mrb[58].mxu1 }
 0x182   : > { %v1706_v11 = vadd.f32 %v2630_v30, %v1606_v33  ;;  %v2580_v36 = vadd.f32 %v2579_v18, %v2578_v34  ;;  %v2632_v37 = vpop.f32.mrb[59].mxu1 }
 0x183   : > { %v2633_v40 = vadd.f32 %v2632_v37, %v2631_v35 }
 0x184   : > { %v1611_v41 = vadd.f32 %v2580_v36, %v1511_v38  ;;  %v2581_v32 = vpop.f32.mrb[60].mxu0 }
 0x185   : > { %v2582_v42 = vpop.f32.mrb[61].mxu0  ;;  %v2634_v43 = vpop.f32.mrb[60].mxu1 }
 0x186   : > { %v1711_v31 = vadd.f32 %v2633_v40, %v1611_v41  ;;  %v2583_v44 = vadd.f32 %v2582_v42, %v2581_v32  ;;  %v2635_v46 = vpop.f32.mrb[61].mxu1 }
 0x187   : > { %v2636_v47 = vadd.f32 %v2635_v46, %v2634_v43 }
 0x188   : > { %v1616_v48 = vadd.f32 %v2583_v44, %v1516_v39  ;;  %v2584_v49 = vpop.f32.mrb[62].mxu0 }
 0x189   : > { %v2585_v50 = vpop.f32.mrb[63].mxu0  ;;  %v2637_v51 = vpop.f32.mrb[62].mxu1 }
 0x18a   : > { %v1716_v25 = vadd.f32 %v2636_v47, %v1616_v48  ;;  %v2586_v52 = vadd.f32 %v2585_v50, %v2584_v49  ;;  %v2638_v53 = vpop.f32.mrb[63].mxu1 }
 0x18b   : > { %v2639_v54 = vadd.f32 %v2638_v53, %v2637_v51 }
 0x18c   : > { %v1621_v55 = vadd.f32 %v2586_v52, %v1521_v45  ;;  %v2587_v57 = vpop.f32.mrb[64].mxu0 }
 0x18d   : > { %v2588_v58 = vpop.f32.mrb[65].mxu0  ;;  %v2640_v59 = vpop.f32.mrb[64].mxu1 }
 0x18e   : > { %v1721_v38 = vadd.f32 %v2639_v54, %v1621_v55  ;;  %v2589_v60 = vadd.f32 %v2588_v58, %v2587_v57  ;;  %v2641_v61 = vpop.f32.mrb[65].mxu1 }
 0x18f   : > { %v2642_v62 = vadd.f32 %v2641_v61, %v2640_v59 }
 0x190   : > { %v1626_v63 = vadd.f32 %v2589_v60, %v1526_v56  ;;  %v2590_v1 = vpop.f32.mrb[66].mxu0 }
 0x191   : > { %v2591_v2 = vpop.f32.mrb[67].mxu0  ;;  %v2643_v3 = vpop.f32.mrb[66].mxu1 }
 0x192   : > { %v1726_v39 = vadd.f32 %v2642_v62, %v1626_v63  ;;  %v2592_v5 = vadd.f32 %v2591_v2, %v2590_v1  ;;  %v2644_v6 = vpop.f32.mrb[67].mxu1 }
 0x193   : > { %v2645_v7 = vadd.f32 %v2644_v6, %v2643_v3 }
 0x194   : > { %v1631_v8 = vadd.f32 %v2592_v5, %v1531_v0  ;;  %v2593_v9 = vpop.f32.mrb[68].mxu0 }
 0x195   : > { %v2594_v10 = vpop.f32.mrb[69].mxu0  ;;  %v2646_v12 = vpop.f32.mrb[68].mxu1 }
 0x196   : > { %v1731_v45 = vadd.f32 %v2645_v7, %v1631_v8  ;;  %v2595_v13 = vadd.f32 %v2594_v10, %v2593_v9  ;;  %v2647_v14 = vpop.f32.mrb[69].mxu1 }
 0x197   : > { %v2648_v15 = vadd.f32 %v2647_v14, %v2646_v12 }
 0x198   : > { %v1636_v16 = vadd.f32 %v2595_v13, %v1536_v24 }
 0x19a   : > { %v1736_v17 = vadd.f32 %v2648_v15, %v1636_v16 }
 0x19c   : > { %v2681_v19 = vpop.f32.mrb[70].mxu0 }
 0x19d   : > { %v2682_v20 = vpop.f32.mrb[71].mxu0  ;;  %v2734_v56 = vpop.f32.mrb[70].mxu1 }
 0x19e   : > { %v2683_v21 = vadd.f32 %v2682_v20, %v2681_v19  ;;  %v2735_v22 = vpop.f32.mrb[71].mxu1 }
 0x19f   : > { %v2736_v23 = vadd.f32 %v2735_v22, %v2734_v56 }
 0x1a0   : > { %v1806_v26 = vadd.f32 %v2683_v21, %v1706_v11  ;;  %v2684_v27 = vpop.f32.mrb[72].mxu0 }
 0x1a1   : > { %v2685_v4 = vpop.f32.mrb[73].mxu0  ;;  %v2737_v28 = vpop.f32.mrb[72].mxu1 }
 0x1a2   : > { %v2686_v0 = vadd.f32 %v2685_v4, %v2684_v27  ;;  %v2738_v29 = vpop.f32.mrb[73].mxu1  ;;  %v1906_v30 = vadd.f32 %v2736_v23, %v1806_v26 }
 0x1a3   : > { %v2739_v33 = vadd.f32 %v2738_v29, %v2737_v28 }
 0x1a4   : > { %v1811_v34 = vadd.f32 %v2686_v0, %v1711_v31  ;;  %v2687_v18 = vpop.f32.mrb[74].mxu0 }
 0x1a5   : > { %v2688_v35 = vpop.f32.mrb[75].mxu0  ;;  %v2740_v36 = vpop.f32.mrb[74].mxu1 }
 0x1a6   : > { %v2689_v24 = vadd.f32 %v2688_v35, %v2687_v18  ;;  %v2741_v37 = vpop.f32.mrb[75].mxu1  ;;  %v1911_v40 = vadd.f32 %v2739_v33, %v1811_v34 }
 0x1a7   : > { %v2742_v41 = vadd.f32 %v2741_v37, %v2740_v36 }
 0x1a8   : > { %v1816_v32 = vadd.f32 %v2689_v24, %v1716_v25  ;;  %v2690_v42 = vpop.f32.mrb[76].mxu0 }
 0x1a9   : > { %v2691_v43 = vpop.f32.mrb[77].mxu0  ;;  %v2743_v44 = vpop.f32.mrb[76].mxu1 }
 0x1aa   : > { %v2692_v11 = vadd.f32 %v2691_v43, %v2690_v42  ;;  %v2744_v46 = vpop.f32.mrb[77].mxu1  ;;  %v1916_v47 = vadd.f32 %v2742_v41, %v1816_v32 }
 0x1ab   : > { %v2745_v48 = vadd.f32 %v2744_v46, %v2743_v44 }
 0x1ac   : > { %v1821_v49 = vadd.f32 %v2692_v11, %v1721_v38  ;;  %v2693_v50 = vpop.f32.mrb[78].mxu0 }
 0x1ad   : > { %v2694_v51 = vpop.f32.mrb[79].mxu0  ;;  %v2746_v52 = vpop.f32.mrb[78].mxu1 }
 0x1ae   : > { %v2695_v31 = vadd.f32 %v2694_v51, %v2693_v50  ;;  %v2747_v53 = vpop.f32.mrb[79].mxu1  ;;  %v1921_v54 = vadd.f32 %v2745_v48, %v1821_v49 }
 0x1af   : > { %v2748_v55 = vadd.f32 %v2747_v53, %v2746_v52 }
 0x1b0   : > { %v1826_v57 = vadd.f32 %v2695_v31, %v1726_v39  ;;  %v2696_v58 = vpop.f32.mrb[80].mxu0 }
 0x1b1   : > { %v2697_v59 = vpop.f32.mrb[81].mxu0  ;;  %v2749_v25 = vpop.f32.mrb[80].mxu1 }
 0x1b2   : > { %v2698_v60 = vadd.f32 %v2697_v59, %v2696_v58  ;;  %v2750_v61 = vpop.f32.mrb[81].mxu1  ;;  %v1926_v62 = vadd.f32 %v2748_v55, %v1826_v57 }
 0x1b3   : > { %v2751_v63 = vadd.f32 %v2750_v61, %v2749_v25 }
 0x1b4   : > { %v1831_v1 = vadd.f32 %v2698_v60, %v1731_v45  ;;  %v2699_v2 = vpop.f32.mrb[82].mxu0 }
 0x1b5   : > { %v2700_v3 = vpop.f32.mrb[83].mxu0  ;;  %v2752_v38 = vpop.f32.mrb[82].mxu1 }
 0x1b6   : > { %v2701_v5 = vadd.f32 %v2700_v3, %v2699_v2  ;;  %v2753_v6 = vpop.f32.mrb[83].mxu1  ;;  %v1931_v7 = vadd.f32 %v2751_v63, %v1831_v1 }
 0x1b7   : > { %v2754_v8 = vadd.f32 %v2753_v6, %v2752_v38 }
 0x1b8   : > { %v1836_v9 = vadd.f32 %v2701_v5, %v1736_v17  ;;  %v2005_v39 = vpop.f32.mrb[84].mxu0 }
 0x1b9   : > { %v2006_v10 = vadd.f32 %v2005_v39, %v1906_v30  ;;  %v2025_v12 = vpop.f32.mrb[84].mxu1  ;;  %v2788_v13 = vpop.f32.mrb[85].mxu0 }
 0x1ba   : > { %v2026_v14 = vadd.f32 %v2025_v12, %v1926_v62  ;;  %v2800_v45 = vpop.f32.mrb[85].mxu1  ;;  %v1936_v15 = vadd.f32 %v2754_v8, %v1836_v9 }
 0x1bb   : > { %2040 = vst.msk [vmem:[%s148_s22] sm:$0xff] %vm2039_vm2, %v2006_v10 }
 0x1bc   : > { %2044 = vst.msk [vmem:[%s148_s22 + $0x20] sm:$0xff] %vm2039_vm2, %v2026_v14  ;;  %v2010_v16 = vpop.f32.mrb[86].mxu0 }
 0x1bd   : > { %v2011_v19 = vadd.f32 %v2010_v16, %v1911_v40  ;;  %v2030_v20 = vpop.f32.mrb[86].mxu1  ;;  %v2791_v17 = vpop.f32.mrb[87].mxu0 }
 0x1be   : > { %v2031_v56 = vadd.f32 %v2030_v20, %v1931_v7  ;;  %v2803_v21 = vpop.f32.mrb[87].mxu1 }
 0x1bf   : > { %2041 = vst.msk [vmem:[%s148_s22 + $0x8] sm:$0xff] %vm2039_vm2, %v2011_v19 }
 0x1c0   : > { %2045 = vst.msk [vmem:[%s148_s22 + $0x28] sm:$0xff] %vm2039_vm2, %v2031_v56  ;;  %v2015_v22 = vpop.f32.mrb[88].mxu0 }
 0x1c1   : > { %v2016_v23 = vadd.f32 %v2015_v22, %v1916_v47  ;;  %v2035_v26 = vpop.f32.mrb[88].mxu1  ;;  %v2794_v27 = vpop.f32.mrb[89].mxu0 }
 0x1c2   : > { %v2036_v4 = vadd.f32 %v2035_v26, %v1936_v15  ;;  %v2806_v28 = vpop.f32.mrb[89].mxu1 }
 0x1c3   : > { %2042 = vst.msk [vmem:[%s148_s22 + $0x10] sm:$0xff] %vm2039_vm2, %v2016_v23 }
 0x1c4   : > { %2046 = vst.msk [vmem:[%s148_s22 + $0x30] sm:$0xff] %vm2039_vm2, %v2036_v4  ;;  %v2020_v0 = vpop.f32.mrb[90].mxu0 }
 0x1c5   : > { %v2021_v29 = vadd.f32 %v2020_v0, %v1921_v54  ;;  %v2797_v30 = vpop.f32.mrb[91].mxu0 }
 0x1c7   : > { %2043 = vst.msk [vmem:[%s148_s22 + $0x18] sm:$0xff] %vm2039_vm2, %v2021_v29 }
 0x1c8 PF: > { %s12_s9 = sadd.s32 1, %s3229_s9  }
 0x1c9   : > { %p9_p4 = scmp.ge.s32.totalorder %s12_s9, 9  }
 0x1cb   :  { %11 = sbr.rel (!%p9_p4) target bundleno = 1 (0x1), region = 58 }

// kernel: forward.8
= control target key start
LH: loop header
LB: loop body
LE: loop exit
PB: predicated region body
PF: predicated region fallthrough
CT: control target
= control target key end

     0   :  { %s1000_s18 = smov 0   ;;  %s1242_s0 = inlined_call_operand.vmem [shape: f32[2,14,7,64], index: 0, kind: input, shape index: {}]   ;;  %s1243_s1 = inlined_call_operand.vmem [shape: f32[64,2], index: 1, kind: input, shape index: {}]   ;;  %s1244_s2 = inlined_call_operand.vmem [shape: f32[2,64], index: 2, kind: input, shape index: {}]   ;;  %s1245_s3 = inlined_call_operand.vmem [shape: f32[1,1,64], index: 3, kind: input, shape index: {}]   ;;  %s1246_s4 = inlined_call_operand.vmem [shape: f32[1,1,64], index: 4, kind: input, shape index: {}]   ;;  %s1247_s5 = inlined_call_operand.vmem [shape: f32[2,7,7,32], index: 5, kind: output, shape index: {}]  }
   0x1 LB: > { %s833_s19 = sadd.s32 4294967295, %s964_s18   ;;  %p837_p0 = scmp.ge.s32.totalorder %s964_s18, 1  ;;  %s964_s18 = sphi %s1000_s18, %s15_s18  }
   0x2   : > { %p187_p1 = scmp.lt.s32.totalorder %s964_s18, 3 }
   0x4   : > { %p188_p2 = pnand %p837_p0, %p187_p1 }
   0x5   : > { %v322_v0 = vld [vmem:[%s1243_s1] sm:$0xff] (!%p188_p2)  ;;  %v323_v1 = vld [vmem:[%s1243_s1 + $0x8] sm:$0xff] (!%p188_p2)  ;;  %v324_v2 = vld [vmem:[%s1243_s1 + $0x10] sm:$0xff] (!%p188_p2)  ;;  %v966_v3 = vmov (!%p188_p2), 0.0|0.0   ;;  %p215_p3 = scmp.lt.s32.totalorder (!%p188_p2), %s833_s19, 1  ;;  %vm967_vm0 = vmmov (!%p188_p2), 0  }
   0x6   : > { %191 = sbr.rel (%p188_p2) target bundleno = 658 (0x292), region = 40  ;;  %918 = vmatprep.subr.bf16.mxu0 (!%p188_p2), %v966_v3  ;;  %v919_v4 = vpack.c.bf16 (!%p188_p2), %v323_v1, %v322_v0  ;;  %930 = vmatprep.subr.bf16.mxu1 (!%p188_p2), %v966_v3  ;;  %v325_v5 = vld [vmem:[%s1243_s1 + $0x18] sm:$0xff] (!%p188_p2)  ;;  %v968_v6 = vmov (!%p188_p2), 0.0   ;;  %v326_v8 = vld [vmem:[%s1243_s1 + $0x20] sm:$0xff] (!%p188_p2)  ;;  %v327_v9 = vld [vmem:[%s1243_s1 + $0x28] sm:$0xff] (!%p188_p2)  ;;  %vm239_vm1 = vcmask (!%p188_p2), 522240  }
   0x7   : > { %886 = vmatprep.mubr.msk.f32.mxu0 (!%p188_p2), %vm967_vm0, %v968_v6  ;;  %905 = vmatprep.mubr.msk.f32.mxu1 (!%p188_p2), %vm967_vm0, %v968_v6  ;;  %v922_v7 = vpack.c.bf16 (!%p188_p2), %v325_v5, %v324_v2  ;;  %v925_v10 = vpack.c.bf16 (!%p188_p2), %v327_v9, %v326_v8  ;;  %v328_v11 = vld [vmem:[%s1243_s1 + $0x30] sm:$0xff] (!%p188_p2)  ;;  %v329_v12 = vld [vmem:[%s1243_s1 + $0x38] sm:$0xff] (!%p188_p2)  ;;  %vm330_vm2 = vcmask (!%p188_p2), 523264   ;;  %vm489_vm3 = vcmask (!%p188_p2), 1041408   ;;  %s969_s23 = smov (!%p188_p2), 96  }
   0x8   : > { %920 = vmatpush3.bf16.msra.mxu0 (!%p188_p2), %v919_v4  ;;  %932 = vmatpush3.bf16.msra.mxu1 (!%p188_p2), %v919_v4  ;;  %v928_v16 = vpack.c.bf16 (!%p188_p2), %v329_v12, %v328_v11  ;;  %vm485_vm4 = vcmask (!%p188_p2), 15360   ;;  %vm770_vm5 = vcmask (!%p188_p2), 260096  }
   0x9   : > { %921 = vmatprep.subr.bf16.mxu0 (!%p188_p2), %v966_v3  ;;  %933 = vmatprep.subr.bf16.mxu1 (!%p188_p2), %v966_v3 }
   0xc   : > { %923 = vmatpush3.bf16.msra.mxu0 (!%p188_p2), %v922_v7  ;;  %935 = vmatpush3.bf16.msra.mxu1 (!%p188_p2), %v922_v7 }
   0xd   : > { %s1249_s19 = smov (!%p215_p3, %s833_s19), 1  ;;  %924 = vmatprep.subr.bf16.mxu0 %v966_v3  ;;  %936 = vmatprep.subr.bf16.mxu1 %v966_v3 }
   0xe   : > { %s942_s7 = smul.u32 112, %s1249_s19 }
   0xf   : > { %s943_s24 = smul.u32 56, %s1249_s19 }
  0x10   : > { %s1036_s10 = scalar_lea.vmem %s1242_s0, %s942_s7  ;;  %926 = vmatpush3.bf16.msra.mxu0 %v925_v10  ;;  %938 = vmatpush3.bf16.msra.mxu1 %v925_v10 }
  0x11   : > { %v1045_v13 = vld [vmem:[%s1036_s10] sm:$0x7f]  ;;  %v1048_v14 = vld [vmem:[%s1036_s10 + $0x8] sm:$0x7f]  ;;  %v1051_v15 = vld [vmem:[%s1036_s10 + $0x10] sm:$0x7f]  ;;  %927 = vmatprep.subr.bf16.mxu0 %v966_v3  ;;  %939 = vmatprep.subr.bf16.mxu1 %v966_v3  ;;  %s1223_s27 = scalar_lea.vmem %s1247_s5, %s943_s24 }
  0x12   : > { %v1054_v17 = vld [vmem:[%s1036_s10 + $0x18] sm:$0x7f]  ;;  %v240_v18 = vsel %vm239_vm1, %v1045_v13, 0.0  ;;  %v241_v19 = vsel %vm239_vm1, %v1048_v14, 0.0  ;;  %v1061_v20 = vld [vmem:[%s1036_s10 + $0x20] sm:$0x7f]  ;;  %v267_v23 = vmul.f32 %v1045_v13, %v1045_v13  ;;  %v268_v24 = vmul.f32 %v1048_v14, %v1048_v14 }
  0x13   : > { %v242_v21 = vadd.f32 %v241_v19, %v240_v18  ;;  %v243_v22 = vsel %vm239_vm1, %v1051_v15, 0.0  ;;  %v245_v25 = vsel %vm239_vm1, %v1054_v17, 0.0  ;;  %v269_v26 = vmul.f32 %v1051_v15, %v1051_v15  ;;  %v1074_v27 = vld [vmem:[%s1036_s10 + $0x28] sm:$0x7f]  ;;  %v1083_v31 = vld [vmem:[%s1036_s10 + $0x30] sm:$0x7f] }
  0x14   : > { %929 = vmatpush3.bf16.msra.mxu0 %v928_v16  ;;  %941 = vmatpush3.bf16.msra.mxu1 %v928_v16  ;;  %v270_v29 = vmul.f32 %v1054_v17, %v1054_v17  ;;  %v247_v30 = vsel %vm239_vm1, %v1061_v20, 0.0  ;;  %v271_v33 = vmul.f32 %v1061_v20, %v1061_v20  ;;  %v281_v34 = vsel %vm239_vm1, %v267_v23, 0.0  ;;  %v1093_v39 = vld [vmem:[%s1036_s10 + $0x38] sm:$0x7f]  ;;  %v1101_v45 = vld [vmem:[%s1036_s10 + $0x40] sm:$0x7f] }
  0x15   : > { %v244_v28 = vadd.f32 %v243_v22, %v242_v21  ;;  %908 = vmatprep.subr.mxu0 %v968_v6  ;;  %913 = vmatprep.subr.mxu1 %v968_v6  ;;  %v282_v35 = vsel %vm239_vm1, %v268_v24, 0.0  ;;  %v249_v36 = vsel %vm239_vm1, %v1074_v27, 0.0  ;;  %v284_v38 = vsel %vm239_vm1, %v269_v26, 0.0  ;;  %v1109_v51 = vld [vmem:[%s1036_s10 + $0x48] sm:$0x7f] }
  0x16   : > { %v283_v37 = vadd.f32 %v282_v35, %v281_v34  ;;  %v272_v41 = vmul.f32 %v1074_v27, %v1074_v27  ;;  %v286_v42 = vsel %vm239_vm1, %v270_v29, 0.0  ;;  %v251_v43 = vsel %vm239_vm1, %v1083_v31, 0.0  ;;  %v1117_v57 = vld [vmem:[%s1036_s10 + $0x50] sm:$0x7f]  ;;  %v1125_v63 = vld [vmem:[%s1036_s10 + $0x58] sm:$0x7f] }
  0x17   : > { %v246_v32 = vadd.f32 %v245_v25, %v244_v28  ;;  %v273_v47 = vmul.f32 %v1083_v31, %v1083_v31  ;;  %v288_v48 = vsel %vm239_vm1, %v271_v33, 0.0  ;;  %v253_v49 = vsel %vm239_vm1, %v1093_v39, 0.0  ;;  %v1133_v5 = vld [vmem:[%s1036_s10 + $0x60] sm:$0x7f]  ;;  %v1141_v12 = vld [vmem:[%s1036_s10 + $0x68] sm:$0x7f] }
  0x18   : > { %v285_v44 = vadd.f32 %v284_v38, %v283_v37  ;;  %v274_v53 = vmul.f32 %v1093_v39, %v1093_v39  ;;  %v290_v54 = vsel %vm239_vm1, %v272_v41, 0.0  ;;  %v255_v55 = vsel %vm239_vm1, %v1101_v45, 0.0 }
  0x19   : > { %v248_v40 = vadd.f32 %v247_v30, %v246_v32  ;;  %v275_v59 = vmul.f32 %v1101_v45, %v1101_v45  ;;  %v292_v60 = vsel %vm239_vm1, %v273_v47, 0.0  ;;  %v257_v61 = vsel %vm239_vm1, %v1109_v51, 0.0 }
  0x1a   : > { %v287_v50 = vadd.f32 %v286_v42, %v285_v44  ;;  %v276_v1 = vmul.f32 %v1109_v51, %v1109_v51  ;;  %v294_v2 = vsel %vm239_vm1, %v274_v53, 0.0  ;;  %v259_v3 = vsel %vm239_vm1, %v1117_v57, 0.0 }
  0x1b   : > { %v250_v46 = vadd.f32 %v249_v36, %v248_v40  ;;  %v277_v8 = vmul.f32 %v1117_v57, %v1117_v57  ;;  %v296_v9 = vsel %vm239_vm1, %v275_v59, 0.0  ;;  %v261_v10 = vsel %vm239_vm1, %v1125_v63, 0.0 }
  0x1c   : > { %v289_v56 = vadd.f32 %v288_v48, %v287_v50  ;;  %v278_v18 = vmul.f32 %v1125_v63, %v1125_v63  ;;  %v298_v19 = vsel %vm239_vm1, %v276_v1, 0.0  ;;  %v263_v21 = vsel %vm239_vm1, %v1133_v5, 0.0 }
  0x1d   : > { %v252_v52 = vadd.f32 %v251_v43, %v250_v46  ;;  %v279_v24 = vmul.f32 %v1133_v5, %v1133_v5  ;;  %v300_v25 = vsel %vm239_vm1, %v277_v8, 0.0  ;;  %v265_v26 = vsel %vm239_vm1, %v1141_v12, 0.0 }
  0x1e   : > { %v291_v62 = vadd.f32 %v290_v54, %v289_v56  ;;  %v280_v30 = vmul.f32 %v1141_v12, %v1141_v12  ;;  %v302_v32 = vsel %vm239_vm1, %v278_v18, 0.0 }
  0x1f   : > { %v254_v58 = vadd.f32 %v253_v49, %v252_v52  ;;  %v304_v35 = vsel %vm239_vm1, %v279_v24, 0.0 }
  0x20   : > { %v293_v4 = vadd.f32 %v292_v60, %v291_v62  ;;  %v306_v38 = vsel %vm239_vm1, %v280_v30, 0.0 }
  0x21   : > { %v256_v0 = vadd.f32 %v255_v55, %v254_v58  ;;  %v484_v58 = vld [vmem:[%s1244_s2] sm:$0x3] }
  0x22   : > { %v295_v11 = vadd.f32 %v294_v2, %v293_v4 }
  0x23   : > { %v258_v7 = vadd.f32 %v257_v61, %v256_v0 }
  0x24   : > { %v297_v22 = vadd.f32 %v296_v9, %v295_v11  ;;  %v641_v9 = vlaneseq  ;;  %v636_v11 = vld [vmem:[%s1245_s3] sm:$0x1] }
  0x25   : > { %v260_v16 = vadd.f32 %v259_v3, %v258_v7 }
  0x26   : > { %v299_v28 = vadd.f32 %v298_v19, %v297_v22  ;;  %v638_v22 = vld [vmem:[%s1246_s4] sm:$0x1] }
  0x27   : > { %v262_v23 = vadd.f32 %v261_v10, %v260_v16  ;;  %v642_v10 = vshrl.u32 %v641_v9, 7 }
  0x28   : > { %v301_v33 = vadd.f32 %v300_v25, %v299_v28 }
  0x29   : > { %v264_v29 = vadd.f32 %v263_v21, %v262_v23  ;;  %v643_v16 = vsub.s32 0, %v642_v10 }
  0x2a   : > { %v303_v36 = vadd.f32 %v302_v32, %v301_v33 }
  0x2b   : > { %v266_v34 = vadd.f32 %v265_v26, %v264_v29 }
  0x2c   : > { %v305_v41 = vadd.f32 %v304_v35, %v303_v36 }
  0x2d   : > { %v308_v37 = vsel %vm239_vm1, %v266_v34, 0.0 }
  0x2e   : > { %v309_v40 = vrot.slane %v308_v37, 4  ;;  %v307_v43 = vadd.f32 %v306_v38, %v305_v41 }
  0x30   : > { %v310_v42 = vadd.f32 %v309_v40, %v308_v37  ;;  %v315_v46 = vsel %vm239_vm1, %v307_v43, 0.0 }
  0x31   : > { %v316_v47 = vrot.slane %v315_v46, 4 }
  0x32   : > { %v311_v44 = vrot.slane %v310_v42, 2 }
  0x33   : > { %v317_v49 = vadd.f32 %v316_v47, %v315_v46 }
  0x34   : > { %v312_v48 = vadd.f32 %v311_v44, %v310_v42 }
  0x35   : > { %v318_v52 = vrot.slane %v317_v49, 2 }
  0x36   : > { %v313_v50 = vrot.slane %v312_v48, 1 }
  0x37   : > { %v319_v54 = vadd.f32 %v318_v52, %v317_v49 }
  0x38   : > { %v314_v53 = vadd.f32 %v313_v50, %v312_v48 }
  0x39   : > { %v320_v55 = vrot.slane %v319_v54, 1 }
  0x3a   : > { %887 = vmatmul.mubr.msk.f32.vlgmr.msra.gmra.mrb[0].mxu0 %vm330_vm2, %v314_v53 }
  0x3b   : > { %910 = vmatprep.mubr.msk.f32.mxu0 %vm967_vm0, %v968_v6  ;;  %v321_v56 = vadd.f32 %v320_v55, %v319_v54  ;;  %909 = vmatpush3.msk.msra.mxu0 %vm489_vm3, %v484_v58 }
  0x3d   : > { %906 = vmatmul.mubr.msk.f32.vlgmr.msra.gmra.mrb[0].mxu1 %vm330_vm2, %v321_v56 }
  0x3e   : > { %915 = vmatprep.mubr.msk.f32.mxu1 %vm967_vm0, %v968_v6  ;;  %914 = vmatpush3.msk.msra.mxu1 %vm489_vm3, %v484_v58 }
 0x10d   : > { %v400_v59 = vpop.f32.mrb[0].mxu0 }
 0x10e   : > { %v478_v60 = vmul.f32 0.00031887754, %v400_v59  ;;  %v888_v61 = vpop.f32.mrb[1].mxu0 }
 0x110   : > { %911 = vmatmul.mubr.msk.f32.vlgmr.msra.gmra.mrb[2].mxu0 %vm485_vm4, %v478_v60  ;;  %v480_v62 = vmul.f32 %v478_v60, %v478_v60  ;;  %v473_v0 = vpop.f32.mrb[0].mxu1 }
 0x111   : > { %v479_v1 = vmul.f32 0.00031887754, %v473_v0  ;;  %v907_v2 = vpop.f32.mrb[1].mxu1 }
 0x113   : > { %v481_v3 = vsub.f32 %v479_v1, %v480_v62 }
 0x115   : > { %v482_v4 = vadd.f32 1e-05, %v481_v3 }
 0x117   : > { %956 = vrsqrt.f32 %v482_v4 }
 0x121   : > { %v957_v6 = vpop.eup %956 }
 0x122   : > { %916 = vmatmul.mubr.msk.f32.vlgmr.msra.gmra.mrb[2].mxu1 %vm485_vm4, %v957_v6 }
 0x1e3   : > { %v559_v7 = vpop.f32.mrb[2].mxu0 }
 0x1e4   : > { %v912_v8 = vpop.f32.mrb[3].mxu0 }
 0x1f5   : > { %v632_v18 = vpop.f32.mrb[2].mxu1 }
 0x1f6   : > { %v637_v19 = vmul.f32 %v636_v11, %v632_v18  ;;  %v917_v21 = vpop.f32.mrb[3].mxu1 }
 0x1f8   : > { %v639_v23 = vmul.f32 %v637_v19, %v559_v7  ;;  %v644_v24 = vrot.slane %v637_v19, %v643_v16 }
 0x1fa   : > { %v640_v25 = vsub.f32 %v638_v22, %v639_v23  ;;  %v647_v26 = vmul.f32 %v644_v24, %v1051_v15  ;;  %v645_v28 = vmul.f32 %v644_v24, %v1045_v13  ;;  %v648_v30 = vmul.f32 %v644_v24, %v1054_v17 }
 0x1fb   : > { %v646_v32 = vmul.f32 %v644_v24, %v1048_v14  ;;  %v650_v33 = vmul.f32 %v644_v24, %v1074_v27  ;;  %v649_v34 = vmul.f32 %v644_v24, %v1061_v20  ;;  %v652_v35 = vmul.f32 %v644_v24, %v1093_v39 }
 0x1fc   : > { %v663_v29 = vrot.slane %v640_v25, %v643_v16  ;;  %v651_v36 = vmul.f32 %v644_v24, %v1083_v31  ;;  %v654_v37 = vmul.f32 %v644_v24, %v1109_v51  ;;  %v653_v20 = vmul.f32 %v644_v24, %v1101_v45 }
 0x1fd   : > { %v656_v39 = vmul.f32 %v644_v24, %v1125_v63  ;;  %v655_v31 = vmul.f32 %v644_v24, %v1117_v57  ;;  %v658_v51 = vmul.f32 %v644_v24, %v1141_v12  ;;  %v657_v44 = vmul.f32 %v644_v24, %v1133_v5 }
 0x1fe   : > { %v667_v38 = vadd.f32 %v663_v29, %v647_v26  ;;  %v665_v40 = vadd.f32 %v663_v29, %v645_v28  ;;  %v668_v15 = vadd.f32 %v663_v29, %v648_v30  ;;  %v666_v41 = vadd.f32 %v663_v29, %v646_v32 }
 0x1ff   : > { %v670_v13 = vadd.f32 %v663_v29, %v650_v33  ;;  %v669_v42 = vadd.f32 %v663_v29, %v649_v34  ;;  %v1182_v43 = vadd.f32 %v663_v29, %v652_v35  ;;  %v1184_v17 = vadd.f32 %v663_v29, %v651_v36 }
 0x200   : > { %v681_v14 = vmax.f32 %v667_v38, 0.0  ;;  %v679_v27 = vmax.f32 %v665_v40, 0.0  ;;  %v674_v46 = vadd.f32 %v663_v29, %v654_v37  ;;  %v673_v47 = vadd.f32 %v663_v29, %v653_v20 }
 0x201   : > { %v1193_v48 = vadd.f32 %v663_v29, %v656_v39  ;;  %v1195_v49 = vadd.f32 %v663_v29, %v655_v31  ;;  %v1197_v45 = vadd.f32 %v663_v29, %v658_v51  ;;  %v1199_v63 = vadd.f32 %v663_v29, %v657_v44 }
 0x202   : > { %711 = vrot.lane.b32.xlu1 %v681_v14, %s969_s23  ;;  %707 = vrot.lane.b32.xlu0 %v679_v27, %s969_s23  ;;  %v682_v57 = vmax.f32 %v668_v15, 0.0  ;;  %v680_v50 = vmax.f32 %v666_v41, 0.0  ;;  %v684_v5 = vmax.f32 %v670_v13, 0.0  ;;  %v683_v12 = vmax.f32 %v669_v42, 0.0 }
 0x203   : > { %v686_v52 = vmax.f32 %v1182_v43, 0.0  ;;  %v685_v53 = vmax.f32 %v1184_v17, 0.0  ;;  %v688_v54 = vmax.f32 %v674_v46, 0.0  ;;  %v687_v55 = vmax.f32 %v673_v47, 0.0 }
 0x204   : > { %v690_v56 = vmax.f32 %v1193_v48, 0.0  ;;  %v689_v58 = vmax.f32 %v1195_v49, 0.0  ;;  %v692_v59 = vmax.f32 %v1197_v45, 0.0  ;;  %v691_v60 = vmax.f32 %v1199_v63, 0.0 }
 0x206   : > { %713 = vrot.lane.b32.xlu1 %v682_v57, %s969_s23  ;;  %709 = vrot.lane.b32.xlu0 %v680_v50, %s969_s23 }
 0x20a   : > { %717 = vrot.lane.b32.xlu1 %v684_v5, %s969_s23  ;;  %715 = vrot.lane.b32.xlu0 %v683_v12, %s969_s23 }
 0x20e   : > { %721 = vrot.lane.b32.xlu1 %v686_v52, %s969_s23  ;;  %719 = vrot.lane.b32.xlu0 %v685_v53, %s969_s23 }
 0x212   : > { %725 = vrot.lane.b32.xlu1 %v688_v54, %s969_s23  ;;  %723 = vrot.lane.b32.xlu0 %v687_v55, %s969_s23 }
 0x216   : > { %729 = vrot.lane.b32.xlu1 %v690_v56, %s969_s23  ;;  %727 = vrot.lane.b32.xlu0 %v689_v58, %s969_s23 }
 0x21a   : > { %733 = vrot.lane.b32.xlu1 %v692_v59, %s969_s23  ;;  %731 = vrot.lane.b32.xlu0 %v691_v60, %s969_s23 }
 0x274   : > { %v712_v61 = vpop.permute.xlu1 %711  ;;  %v708_v62 = vpop.permute.xlu0 %707 }
 0x275   : > { %v751_v2 = vmax.f32 %v681_v14, %v712_v61  ;;  %v749_v3 = vmax.f32 %v679_v27, %v708_v62 }
 0x278   : > { %v714_v0 = vpop.permute.xlu1 %713  ;;  %v710_v1 = vpop.permute.xlu0 %709 }
 0x279   : > { %v752_v4 = vmax.f32 %v682_v57, %v714_v0  ;;  %v750_v6 = vmax.f32 %v680_v50, %v710_v1 }
 0x27b   : > { %v764_v7 = vmax.f32 %v751_v2, %v752_v4  ;;  %v763_v8 = vmax.f32 %v749_v3, %v750_v6 }
 0x27c   : > { %v718_v9 = vpop.permute.xlu1 %717  ;;  %v716_v10 = vpop.permute.xlu0 %715 }
 0x27d   : > { %772 = vst.msk [vmem:[%s1223_s27 + $0x8] sm:$0x7f] %vm770_vm5, %v764_v7  ;;  %771 = vst.msk [vmem:[%s1223_s27] sm:$0x7f] %vm770_vm5, %v763_v8  ;;  %v754_v11 = vmax.f32 %v684_v5, %v718_v9  ;;  %v753_v16 = vmax.f32 %v683_v12, %v716_v10 }
 0x27f   : > { %v765_v18 = vmax.f32 %v753_v16, %v754_v11 }
 0x280   : > { %v722_v19 = vpop.permute.xlu1 %721  ;;  %v720_v21 = vpop.permute.xlu0 %719 }
 0x281   : > { %773 = vst.msk [vmem:[%s1223_s27 + $0x10] sm:$0x7f] %vm770_vm5, %v765_v18  ;;  %v756_v22 = vmax.f32 %v686_v52, %v722_v19  ;;  %v755_v23 = vmax.f32 %v685_v53, %v720_v21 }
 0x283   : > { %v766_v24 = vmax.f32 %v755_v23, %v756_v22 }
 0x284   : > { %v726_v25 = vpop.permute.xlu1 %725  ;;  %v724_v26 = vpop.permute.xlu0 %723 }
 0x285   : > { %774 = vst.msk [vmem:[%s1223_s27 + $0x18] sm:$0x7f] %vm770_vm5, %v766_v24  ;;  %v758_v28 = vmax.f32 %v688_v54, %v726_v25  ;;  %v757_v29 = vmax.f32 %v687_v55, %v724_v26 }
 0x287   : > { %v767_v30 = vmax.f32 %v757_v29, %v758_v28 }
 0x288   : > { %v730_v32 = vpop.permute.xlu1 %729  ;;  %v728_v33 = vpop.permute.xlu0 %727 }
 0x289   : > { %775 = vst.msk [vmem:[%s1223_s27 + $0x20] sm:$0x7f] %vm770_vm5, %v767_v30  ;;  %v760_v34 = vmax.f32 %v690_v56, %v730_v32  ;;  %v759_v35 = vmax.f32 %v689_v58, %v728_v33 }
 0x28b   : > { %v768_v36 = vmax.f32 %v759_v35, %v760_v34 }
 0x28c   : > { %v734_v37 = vpop.permute.xlu1 %733  ;;  %v732_v38 = vpop.permute.xlu0 %731 }
 0x28d   : > { %776 = vst.msk [vmem:[%s1223_s27 + $0x28] sm:$0x7f] %vm770_vm5, %v768_v36  ;;  %v762_v40 = vmax.f32 %v692_v59, %v734_v37  ;;  %v761_v15 = vmax.f32 %v691_v60, %v732_v38 }
 0x28f   : > { %v769_v41 = vmax.f32 %v761_v15, %v762_v40 }
 0x291   : > { %777 = vst.msk [vmem:[%s1223_s27 + $0x30] sm:$0x7f] %vm770_vm5, %v769_v41 }
 0x292 PF: > { %s15_s18 = sadd.s32 1, %s964_s18  }
 0x293   : > { %p12_p4 = scmp.ge.s32.totalorder %s15_s18, 4  }
 0x295   :  { %14 = sbr.rel (!%p12_p4) target bundleno = 1 (0x1), region = 70 }

// kernel: forward.9
= control target key start
LH: loop header
LB: loop body
LE: loop exit
PB: predicated region body
PF: predicated region fallthrough
CT: control target
= control target key end

     0   :  { %v1228_v43 = vmov 1983009808   ;;  %v229_v45 = vlaneseq  ;;  %vm1230_vm0 = vmmov 0   ;;  %vm295_vm1 = vcmask 261120   ;;  %s1886_s1 = inlined_call_operand.vmem [shape: f32[1568,12], index: 1, kind: input, shape index: {}]   ;;  %s1887_s0 = inlined_call_operand.vmem [shape: f32[2,1568], index: 0, kind: input, shape index: {}]   ;;  %s1888_s2 = inlined_call_operand.vmem [shape: f32[1,12], index: 2, kind: input, shape index: {}]   ;;  %s1889_s3 = inlined_call_operand.vmem [shape: f32[2,12], index: 3, kind: output, shape index: {}]  }
   0x1   :  { %v34_v0 = vld [vmem:[%s1886_s1 + $0x80] sm:$0xff]  ;;  %v35_v1 = vld [vmem:[%s1886_s1 + $0x88] sm:$0xff]  ;;  %v36_v11 = vld [vmem:[%s1886_s1 + $0x90] sm:$0xff]  ;;  %v227_v44 = vunpack.c.l.s4 %v1228_v43  ;;  %vm788_vm2 = vcmask 91136  }
   0x2   :  { %v18_v2 = vld [vmem:[%s1886_s1] sm:$0xff]  ;;  %v1023_v3 = vpack.c.bf16 %v35_v1, %v34_v0  ;;  %v19_v4 = vld [vmem:[%s1886_s1 + $0x8] sm:$0xff]  ;;  %v37_v13 = vld [vmem:[%s1886_s1 + $0x98] sm:$0xff]  ;;  %v230_v60 = vshrl.u32 %v229_v45, 7 }
   0x3   :  { %v66_v5 = vld [vmem:[%s1886_s1 + $0x180] sm:$0xff]  ;;  %v67_v6 = vld [vmem:[%s1886_s1 + $0x188] sm:$0xff]  ;;  %v1025_v7 = vpack.c.bf16 %v19_v4, %v18_v2  ;;  %v20_v14 = vld [vmem:[%s1886_s1 + $0x10] sm:$0xff]  ;;  %v1027_v16 = vpack.c.bf16 %v37_v13, %v36_v11  ;;  %v228_v59 = vunpack.c.0.s8 %v227_v44 }
   0x4   :  { %v1055_v8 = vpack.c.bf16 %v67_v6, %v66_v5  ;;  %v50_v9 = vld [vmem:[%s1886_s1 + $0x100] sm:$0xff]  ;;  %v51_v10 = vld [vmem:[%s1886_s1 + $0x108] sm:$0xff]  ;;  %1024 = vmatprep.subr.bf16.mxu0 %v1023_v3  ;;  %v21_v15 = vld [vmem:[%s1886_s1 + $0x18] sm:$0xff] }
   0x5   :  { %v1057_v12 = vpack.c.bf16 %v51_v10, %v50_v9  ;;  %1026 = vmatpush3.bf16.msra.mxu0 %v1025_v7  ;;  %v1029_v17 = vpack.c.bf16 %v21_v15, %v20_v14  ;;  %v68_v18 = vld [vmem:[%s1886_s1 + $0x190] sm:$0xff]  ;;  %v69_v19 = vld [vmem:[%s1886_s1 + $0x198] sm:$0xff]  ;;  %v38_v23 = vld [vmem:[%s1886_s1 + $0xa0] sm:$0xff]  ;;  %v1396_v10 = vsub.s32 %v228_v59, %v230_v60 }
   0x6   :  { %1056 = vmatprep.subr.bf16.mxu1 %v1055_v8  ;;  %v52_v20 = vld [vmem:[%s1886_s1 + $0x110] sm:$0xff]  ;;  %v1059_v21 = vpack.c.bf16 %v69_v19, %v68_v18  ;;  %v53_v22 = vld [vmem:[%s1886_s1 + $0x118] sm:$0xff]  ;;  %v39_v24 = vld [vmem:[%s1886_s1 + $0xa8] sm:$0xff]  ;;  %1028 = vmatprep.subr.bf16.mxu0 %v1027_v16 }
   0x7   :  { %1058 = vmatpush3.bf16.msra.mxu1 %v1057_v12  ;;  %v1061_v25 = vpack.c.bf16 %v53_v22, %v52_v20  ;;  %v1031_v26 = vpack.c.bf16 %v39_v24, %v38_v23  ;;  %v22_v27 = vld [vmem:[%s1886_s1 + $0x20] sm:$0xff]  ;;  %v23_v28 = vld [vmem:[%s1886_s1 + $0x28] sm:$0xff]  ;;  %v40_v35 = vld [vmem:[%s1886_s1 + $0xb0] sm:$0xff] }
   0x8   :  { %v70_v29 = vld [vmem:[%s1886_s1 + $0x1a0] sm:$0xff]  ;;  %1060 = vmatprep.subr.bf16.mxu1 %v1059_v21  ;;  %v71_v30 = vld [vmem:[%s1886_s1 + $0x1a8] sm:$0xff]  ;;  %v1033_v33 = vpack.c.bf16 %v23_v28, %v22_v27  ;;  %v41_v36 = vld [vmem:[%s1886_s1 + $0xb8] sm:$0xff] }
   0x9   :  { %v54_v31 = vld [vmem:[%s1886_s1 + $0x120] sm:$0xff]  ;;  %v55_v32 = vld [vmem:[%s1886_s1 + $0x128] sm:$0xff]  ;;  %1030 = vmatpush3.bf16.msra.mxu0 %v1029_v17  ;;  %v1063_v34 = vpack.c.bf16 %v71_v30, %v70_v29  ;;  %v24_v37 = vld [vmem:[%s1886_s1 + $0x30] sm:$0xff]  ;;  %v1035_v39 = vpack.c.bf16 %v41_v36, %v40_v35 }
   0xa   :  { %1032 = vmatprep.subr.bf16.mxu0 %v1031_v26  ;;  %v1065_v38 = vpack.c.bf16 %v55_v32, %v54_v31  ;;  %v25_v40 = vld [vmem:[%s1886_s1 + $0x38] sm:$0xff]  ;;  %v72_v41 = vld [vmem:[%s1886_s1 + $0x1b0] sm:$0xff]  ;;  %v42_v49 = vld [vmem:[%s1886_s1 + $0xc0] sm:$0xff] }
   0xb   :  { %1062 = vmatpush3.bf16.msra.mxu1 %v1061_v25  ;;  %v73_v42 = vld [vmem:[%s1886_s1 + $0x1b8] sm:$0xff]  ;;  %v56_v47 = vld [vmem:[%s1886_s1 + $0x130] sm:$0xff]  ;;  %v43_v50 = vld [vmem:[%s1886_s1 + $0xc8] sm:$0xff]  ;;  %v1037_v51 = vpack.c.bf16 %v25_v40, %v24_v37 }
   0xc   :  { %1064 = vmatprep.subr.bf16.mxu1 %v1063_v34  ;;  %v1067_v46 = vpack.c.bf16 %v73_v42, %v72_v41  ;;  %v57_v48 = vld [vmem:[%s1886_s1 + $0x138] sm:$0xff]  ;;  %v74_v52 = vld [vmem:[%s1886_s1 + $0x1c0] sm:$0xff]  ;;  %v75_v53 = vld [vmem:[%s1886_s1 + $0x1c8] sm:$0xff]  ;;  %v1039_v55 = vpack.c.bf16 %v43_v50, %v42_v49 }
   0xd   :  { %1034 = vmatpush3.bf16.msra.mxu0 %v1033_v33  ;;  %v1069_v54 = vpack.c.bf16 %v57_v48, %v56_v47  ;;  %v26_v56 = vld [vmem:[%s1886_s1 + $0x40] sm:$0xff]  ;;  %v27_v57 = vld [vmem:[%s1886_s1 + $0x48] sm:$0xff]  ;;  %v1071_v61 = vpack.c.bf16 %v75_v53, %v74_v52  ;;  %v44_v63 = vld [vmem:[%s1886_s1 + $0xd0] sm:$0xff] }
   0xe   :  { %1036 = vmatprep.subr.bf16.mxu0 %v1035_v39  ;;  %v58_v58 = vld [vmem:[%s1886_s1 + $0x140] sm:$0xff]  ;;  %v59_v62 = vld [vmem:[%s1886_s1 + $0x148] sm:$0xff]  ;;  %v45_v0 = vld [vmem:[%s1886_s1 + $0xd8] sm:$0xff]  ;;  %v1041_v3 = vpack.c.bf16 %v27_v57, %v26_v56 }
   0xf   :  { %1066 = vmatpush3.bf16.msra.mxu1 %v1065_v38  ;;  %v76_v1 = vld [vmem:[%s1886_s1 + $0x1d0] sm:$0xff]  ;;  %v77_v2 = vld [vmem:[%s1886_s1 + $0x1d8] sm:$0xff]  ;;  %v1073_v5 = vpack.c.bf16 %v59_v62, %v58_v58  ;;  %v1043_v6 = vpack.c.bf16 %v45_v0, %v44_v63  ;;  %v46_v12 = vld [vmem:[%s1886_s1 + $0xe0] sm:$0xff] }
  0x10   :  { %1068 = vmatprep.subr.bf16.mxu1 %v1067_v46  ;;  %v28_v4 = vld [vmem:[%s1886_s1 + $0x50] sm:$0xff]  ;;  %v29_v7 = vld [vmem:[%s1886_s1 + $0x58] sm:$0xff]  ;;  %v1075_v11 = vpack.c.bf16 %v77_v2, %v76_v1  ;;  %v47_v13 = vld [vmem:[%s1886_s1 + $0xe8] sm:$0xff] }
  0x11   :  { %1038 = vmatpush3.bf16.msra.mxu0 %v1037_v51  ;;  %v60_v8 = vld [vmem:[%s1886_s1 + $0x150] sm:$0xff]  ;;  %v61_v9 = vld [vmem:[%s1886_s1 + $0x158] sm:$0xff]  ;;  %v78_v14 = vld [vmem:[%s1886_s1 + $0x1e0] sm:$0xff]  ;;  %v1045_v16 = vpack.c.bf16 %v29_v7, %v28_v4  ;;  %v1047_v19 = vpack.c.bf16 %v47_v13, %v46_v12 }
  0x12   :  { %1040 = vmatprep.subr.bf16.mxu0 %v1039_v55  ;;  %v79_v15 = vld [vmem:[%s1886_s1 + $0x1e8] sm:$0xff]  ;;  %v1077_v17 = vpack.c.bf16 %v61_v9, %v60_v8  ;;  %v14_v18 = vld [vmem:[%s1887_s0] sm:$0xff]  ;;  %v48_v27 = vld [vmem:[%s1886_s1 + $0xf0] sm:$0xff] }
  0x13   :  { %1070 = vmatpush3.bf16.msra.mxu1 %v1069_v54  ;;  %v30_v20 = vld [vmem:[%s1886_s1 + $0x60] sm:$0xff]  ;;  %v31_v21 = vld [vmem:[%s1886_s1 + $0x68] sm:$0xff]  ;;  %v232_v23 = vrot.slane %v14_v18, %v1396_v10  ;;  %v225_v24 = vcombine.high %v14_v18, %v14_v18  ;;  %v1079_v25 = vpack.c.bf16 %v79_v15, %v78_v14  ;;  %v49_v28 = vld [vmem:[%s1886_s1 + $0xf8] sm:$0xff] }
  0x14   :  { %1072 = vmatprep.subr.bf16.mxu1 %v1071_v61  ;;  %v62_v22 = vld [vmem:[%s1886_s1 + $0x160] sm:$0xff]  ;;  %v63_v26 = vld [vmem:[%s1886_s1 + $0x168] sm:$0xff]  ;;  %v80_v29 = vld [vmem:[%s1886_s1 + $0x1f0] sm:$0xff]  ;;  %v1049_v33 = vpack.c.bf16 %v31_v21, %v30_v20  ;;  %v1051_v35 = vpack.c.bf16 %v49_v28, %v48_v27 }
  0x15   :  { %1042 = vmatpush3.bf16.msra.mxu0 %v1041_v3  ;;  %v81_v30 = vld [vmem:[%s1886_s1 + $0x1f8] sm:$0xff]  ;;  %v240_v31 = vcombine.high %v232_v23, %v232_v23  ;;  %v239_v32 = vrot.slane %v225_v24, %v1396_v10  ;;  %v1081_v34 = vpack.c.bf16 %v63_v26, %v62_v22  ;;  %v32_v36 = vld [vmem:[%s1886_s1 + $0x70] sm:$0xff]  ;;  %v98_v42 = vld [vmem:[%s1886_s1 + $0x280] sm:$0xff] }
  0x16   :  { %1044 = vmatprep.subr.bf16.mxu0 %v1043_v6  ;;  %v33_v37 = vld [vmem:[%s1886_s1 + $0x78] sm:$0xff]  ;;  %v64_v38 = vld [vmem:[%s1886_s1 + $0x170] sm:$0xff]  ;;  %v1083_v40 = vpack.c.bf16 %v81_v30, %v80_v29  ;;  %v99_v43 = vld [vmem:[%s1886_s1 + $0x288] sm:$0xff] }
  0x17   :  { %1074 = vmatpush3.bf16.msra.mxu1 %v1073_v5  ;;  %v241_v39 = vcombine.high %v239_v32, %v239_v32  ;;  %362 = vmatprep.mubr.f32.mxu0 %v240_v31  ;;  %v65_v41 = vld [vmem:[%s1886_s1 + $0x178] sm:$0xff]  ;;  %v130_v44 = vld [vmem:[%s1886_s1 + $0x380] sm:$0xff]  ;;  %v131_v45 = vld [vmem:[%s1886_s1 + $0x388] sm:$0xff]  ;;  %v1053_v46 = vpack.c.bf16 %v33_v37, %v32_v36  ;;  %v1087_v48 = vpack.c.bf16 %v99_v43, %v98_v42 }
  0x18   :  { %1076 = vmatprep.subr.bf16.mxu1 %v1075_v11  ;;  %v1085_v47 = vpack.c.bf16 %v65_v41, %v64_v38  ;;  %v82_v49 = vld [vmem:[%s1886_s1 + $0x200] sm:$0xff]  ;;  %v83_v50 = vld [vmem:[%s1886_s1 + $0x208] sm:$0xff]  ;;  %v1119_v52 = vpack.c.bf16 %v131_v45, %v130_v44  ;;  %v100_v54 = vld [vmem:[%s1886_s1 + $0x290] sm:$0xff] }
  0x19   :  { %1046 = vmatpush3.bf16.msra.mxu0 %v1045_v16  ;;  %432 = vmatprep.mubr.f32.mxu1 %v241_v39  ;;  %v114_v51 = vld [vmem:[%s1886_s1 + $0x300] sm:$0xff]  ;;  %v115_v53 = vld [vmem:[%s1886_s1 + $0x308] sm:$0xff]  ;;  %v101_v55 = vld [vmem:[%s1886_s1 + $0x298] sm:$0xff]  ;;  %v1089_v58 = vpack.c.bf16 %v83_v50, %v82_v49 }
  0x1a   :  { %1048 = vmatprep.subr.bf16.mxu0 %v1047_v19  ;;  %v132_v56 = vld [vmem:[%s1886_s1 + $0x390] sm:$0xff]  ;;  %v133_v57 = vld [vmem:[%s1886_s1 + $0x398] sm:$0xff]  ;;  %v1121_v59 = vpack.c.bf16 %v115_v53, %v114_v51  ;;  %v1091_v60 = vpack.c.bf16 %v101_v55, %v100_v54  ;;  %v102_v2 = vld [vmem:[%s1886_s1 + $0x2a0] sm:$0xff] }
  0x1b   :  { %1078 = vmatpush3.bf16.msra.mxu1 %v1077_v17  ;;  %v84_v61 = vld [vmem:[%s1886_s1 + $0x210] sm:$0xff]  ;;  %v85_v62 = vld [vmem:[%s1886_s1 + $0x218] sm:$0xff]  ;;  %v1123_v0 = vpack.c.bf16 %v133_v57, %v132_v56  ;;  %v103_v3 = vld [vmem:[%s1886_s1 + $0x2a8] sm:$0xff] }
  0x1c   :  { %1080 = vmatprep.subr.bf16.mxu1 %v1079_v25  ;;  %v116_v63 = vld [vmem:[%s1886_s1 + $0x310] sm:$0xff]  ;;  %v117_v1 = vld [vmem:[%s1886_s1 + $0x318] sm:$0xff]  ;;  %v134_v4 = vld [vmem:[%s1886_s1 + $0x3a0] sm:$0xff]  ;;  %v1093_v6 = vpack.c.bf16 %v85_v62, %v84_v61  ;;  %v1095_v8 = vpack.c.bf16 %v103_v3, %v102_v2 }
  0x1d   :  { %1050 = vmatpush3.bf16.msra.mxu0 %v1049_v33  ;;  %v135_v5 = vld [vmem:[%s1886_s1 + $0x3a8] sm:$0xff]  ;;  %v1125_v7 = vpack.c.bf16 %v117_v1, %v116_v63  ;;  %v86_v9 = vld [vmem:[%s1886_s1 + $0x220] sm:$0xff]  ;;  %v104_v15 = vld [vmem:[%s1886_s1 + $0x2b0] sm:$0xff] }
  0x1e   :  { %1052 = vmatprep.subr.bf16.mxu0 %v1051_v35  ;;  %v87_v11 = vld [vmem:[%s1886_s1 + $0x228] sm:$0xff]  ;;  %v118_v12 = vld [vmem:[%s1886_s1 + $0x320] sm:$0xff]  ;;  %v1127_v13 = vpack.c.bf16 %v135_v5, %v134_v4  ;;  %v105_v16 = vld [vmem:[%s1886_s1 + $0x2b8] sm:$0xff] }
  0x1f   :  { %1082 = vmatpush3.bf16.msra.mxu1 %v1081_v34  ;;  %v119_v14 = vld [vmem:[%s1886_s1 + $0x328] sm:$0xff]  ;;  %v136_v17 = vld [vmem:[%s1886_s1 + $0x3b0] sm:$0xff]  ;;  %v137_v18 = vld [vmem:[%s1886_s1 + $0x3b8] sm:$0xff]  ;;  %v1097_v19 = vpack.c.bf16 %v87_v11, %v86_v9  ;;  %v1099_v22 = vpack.c.bf16 %v105_v16, %v104_v15 }
  0x20   :  { %1084 = vmatprep.subr.bf16.mxu1 %v1083_v40  ;;  %v88_v20 = vld [vmem:[%s1886_s1 + $0x230] sm:$0xff]  ;;  %v1129_v21 = vpack.c.bf16 %v119_v14, %v118_v12  ;;  %v121_v25 = vld [vmem:[%s1886_s1 + $0x338] sm:$0xff]  ;;  %v1131_v26 = vpack.c.bf16 %v137_v18, %v136_v17  ;;  %v106_v27 = vld [vmem:[%s1886_s1 + $0x2c0] sm:$0xff] }
  0x21   :  { %1054 = vmatpush3.bf16.msra.mxu0 %v1053_v46  ;;  %v120_v24 = vld [vmem:[%s1886_s1 + $0x330] sm:$0xff]  ;;  %v107_v28 = vld [vmem:[%s1886_s1 + $0x2c8] sm:$0xff]  ;;  %v138_v30 = vld [vmem:[%s1886_s1 + $0x3c0] sm:$0xff] }
  0x22   :  { %1088 = vmatprep.subr.bf16.mxu0 %v1087_v48  ;;  %v15_v29 = vld [vmem:[%s1887_s0 + $0x8] sm:$0xff]  ;;  %v1133_v35 = vpack.c.bf16 %v121_v25, %v120_v24  ;;  %v1103_v36 = vpack.c.bf16 %v107_v28, %v106_v27  ;;  %v90_v37 = vld [vmem:[%s1886_s1 + $0x240] sm:$0xff]  ;;  %v108_v44 = vld [vmem:[%s1886_s1 + $0x2d0] sm:$0xff] }
  0x23   :  { %1086 = vmatpush3.bf16.msra.mxu1 %v1085_v47  ;;  %v139_v31 = vld [vmem:[%s1886_s1 + $0x3c8] sm:$0xff]  ;;  %v242_v33 = vcombine.high %v15_v29, %v15_v29  ;;  %v122_v39 = vld [vmem:[%s1886_s1 + $0x340] sm:$0xff]  ;;  %v109_v45 = vld [vmem:[%s1886_s1 + $0x2d8] sm:$0xff] }
  0x24   :  { %1120 = vmatprep.subr.bf16.mxu1 %v1119_v52  ;;  %363 = vmatmul.mubr.f32.vlgmr.msra.gmra.mrb[0].mxu0 %v232_v23  ;;  %v89_v23 = vld [vmem:[%s1886_s1 + $0x238] sm:$0xff]  ;;  %v91_v38 = vld [vmem:[%s1886_s1 + $0x248] sm:$0xff]  ;;  %v1135_v42 = vpack.c.bf16 %v139_v31, %v138_v30  ;;  %v140_v46 = vld [vmem:[%s1886_s1 + $0x3d0] sm:$0xff]  ;;  %v1107_v51 = vpack.c.bf16 %v109_v45, %v108_v44 }
  0x25   :  { %1090 = vmatpush3.bf16.msra.mxu0 %v1089_v58  ;;  %v1101_v34 = vpack.c.bf16 %v89_v23, %v88_v20  ;;  %v1577_v41 = vrot.slane %v242_v33, %v1396_v10  ;;  %v123_v43 = vld [vmem:[%s1886_s1 + $0x348] sm:$0xff]  ;;  %v141_v47 = vld [vmem:[%s1886_s1 + $0x3d8] sm:$0xff]  ;;  %v1105_v49 = vpack.c.bf16 %v91_v38, %v90_v37  ;;  %v92_v52 = vld [vmem:[%s1886_s1 + $0x250] sm:$0xff] }
  0x26   :  { %433 = vmatmul.mubr.f32.vlgmr.msra.gmra.mrb[0].mxu1 %v239_v32  ;;  %1092 = vmatprep.subr.bf16.mxu0 %v1091_v60  ;;  %v1563_v32 = vrot.slane %v15_v29, %v1396_v10  ;;  %v1137_v50 = vpack.c.bf16 %v123_v43, %v122_v39  ;;  %v93_v53 = vld [vmem:[%s1886_s1 + $0x258] sm:$0xff]  ;;  %v124_v54 = vld [vmem:[%s1886_s1 + $0x350] sm:$0xff]  ;;  %v1139_v55 = vpack.c.bf16 %v141_v47, %v140_v46  ;;  %v110_v57 = vld [vmem:[%s1886_s1 + $0x2e0] sm:$0xff] }
  0x27   :  { %1122 = vmatpush3.bf16.msra.mxu1 %v1121_v59  ;;  %v258_v48 = vcombine.high %v1577_v41, %v1577_v41  ;;  %v125_v56 = vld [vmem:[%s1886_s1 + $0x358] sm:$0xff]  ;;  %v111_v58 = vld [vmem:[%s1886_s1 + $0x2e8] sm:$0xff]  ;;  %v142_v59 = vld [vmem:[%s1886_s1 + $0x3e0] sm:$0xff]  ;;  %v1109_v61 = vpack.c.bf16 %v93_v53, %v92_v52 }
  0x28   :  { %1124 = vmatprep.subr.bf16.mxu1 %v1123_v0  ;;  %v257_v40 = vcombine.high %v1563_v32, %v1563_v32  ;;  %v143_v60 = vld [vmem:[%s1886_s1 + $0x3e8] sm:$0xff]  ;;  %v1141_v62 = vpack.c.bf16 %v125_v56, %v124_v54  ;;  %v1111_v63 = vpack.c.bf16 %v111_v58, %v110_v57  ;;  %v94_v0 = vld [vmem:[%s1886_s1 + $0x260] sm:$0xff]  ;;  %v112_v5 = vld [vmem:[%s1886_s1 + $0x2f0] sm:$0xff] }
  0x29   :  { %1094 = vmatpush3.bf16.msra.mxu0 %v1093_v6  ;;  %572 = vmatprep.mubr.f32.mxu1 %v258_v48  ;;  %v95_v1 = vld [vmem:[%s1886_s1 + $0x268] sm:$0xff]  ;;  %v126_v2 = vld [vmem:[%s1886_s1 + $0x360] sm:$0xff]  ;;  %v1143_v3 = vpack.c.bf16 %v143_v60, %v142_v59  ;;  %v113_v6 = vld [vmem:[%s1886_s1 + $0x2f8] sm:$0xff] }
  0x2a   :  { %1096 = vmatprep.subr.bf16.mxu0 %v1095_v8  ;;  %502 = vmatprep.mubr.f32.mxu0 %v257_v40  ;;  %v127_v4 = vld [vmem:[%s1886_s1 + $0x368] sm:$0xff]  ;;  %v145_v8 = vld [vmem:[%s1886_s1 + $0x3f8] sm:$0xff]  ;;  %v1113_v9 = vpack.c.bf16 %v95_v1, %v94_v0  ;;  %v1115_v12 = vpack.c.bf16 %v113_v6, %v112_v5  ;;  %v128_v15 = vld [vmem:[%s1886_s1 + $0x370] sm:$0xff] }
  0x2b   :  { %1126 = vmatpush3.bf16.msra.mxu1 %v1125_v7  ;;  %v144_v7 = vld [vmem:[%s1886_s1 + $0x3f0] sm:$0xff]  ;;  %v1145_v11 = vpack.c.bf16 %v127_v4, %v126_v2  ;;  %v97_v14 = vld [vmem:[%s1886_s1 + $0x278] sm:$0xff]  ;;  %v162_v18 = vld [vmem:[%s1886_s1 + $0x480] sm:$0xff] }
  0x2c   :  { %1128 = vmatprep.subr.bf16.mxu1 %v1127_v13  ;;  %v96_v13 = vld [vmem:[%s1886_s1 + $0x270] sm:$0xff]  ;;  %v1147_v16 = vpack.c.bf16 %v145_v8, %v144_v7  ;;  %v129_v17 = vld [vmem:[%s1886_s1 + $0x378] sm:$0xff]  ;;  %v194_v20 = vld [vmem:[%s1886_s1 + $0x580] sm:$0xff] }
  0x2d   :  { %1098 = vmatpush3.bf16.msra.mxu0 %v1097_v19  ;;  %v163_v19 = vld [vmem:[%s1886_s1 + $0x488] sm:$0xff]  ;;  %v146_v23 = vld [vmem:[%s1886_s1 + $0x400] sm:$0xff]  ;;  %v1149_v24 = vpack.c.bf16 %v129_v17, %v128_v15  ;;  %v164_v30 = vld [vmem:[%s1886_s1 + $0x490] sm:$0xff] }
  0x2e   :  { %1100 = vmatprep.subr.bf16.mxu0 %v1099_v22  ;;  %v1117_v22 = vpack.c.bf16 %v97_v14, %v96_v13  ;;  %v1151_v25 = vpack.c.bf16 %v163_v19, %v162_v18  ;;  %v178_v27 = vld [vmem:[%s1886_s1 + $0x500] sm:$0xff]  ;;  %v179_v28 = vld [vmem:[%s1886_s1 + $0x508] sm:$0xff]  ;;  %v165_v31 = vld [vmem:[%s1886_s1 + $0x498] sm:$0xff] }
  0x2f   :  { %1130 = vmatpush3.bf16.msra.mxu1 %v1129_v21  ;;  %v195_v21 = vld [vmem:[%s1886_s1 + $0x588] sm:$0xff]  ;;  %v196_v33 = vld [vmem:[%s1886_s1 + $0x590] sm:$0xff]  ;;  %v1155_v38 = vpack.c.bf16 %v165_v31, %v164_v30  ;;  %v149_v40 = vld [vmem:[%s1886_s1 + $0x418] sm:$0xff] }
  0x30   :  { %1132 = vmatprep.subr.bf16.mxu1 %v1131_v26  ;;  %v147_v26 = vld [vmem:[%s1886_s1 + $0x408] sm:$0xff]  ;;  %v1183_v29 = vpack.c.bf16 %v195_v21, %v194_v20  ;;  %v16_v37 = vld [vmem:[%s1887_s0 + $0x10] sm:$0xff]  ;;  %v181_v46 = vld [vmem:[%s1886_s1 + $0x518] sm:$0xff] }
  0x31   :  { %1102 = vmatpush3.bf16.msra.mxu0 %v1101_v34  ;;  %v197_v34 = vld [vmem:[%s1886_s1 + $0x598] sm:$0xff]  ;;  %v148_v39 = vld [vmem:[%s1886_s1 + $0x410] sm:$0xff]  ;;  %v1705_v43 = vrot.slane %v16_v37, %v1396_v10  ;;  %v259_v44 = vcombine.high %v16_v37, %v16_v37  ;;  %v166_v47 = vld [vmem:[%s1886_s1 + $0x4a0] sm:$0xff] }
  0x32   :  { %1104 = vmatprep.subr.bf16.mxu0 %v1103_v36  ;;  %v1185_v36 = vpack.c.bf16 %v179_v28, %v178_v27  ;;  %v1187_v45 = vpack.c.bf16 %v197_v34, %v196_v33  ;;  %v167_v48 = vld [vmem:[%s1886_s1 + $0x4a8] sm:$0xff]  ;;  %v1157_v53 = vpack.c.bf16 %v149_v40, %v148_v39  ;;  %v168_v59 = vld [vmem:[%s1886_s1 + $0x4b0] sm:$0xff]  ;;  %v169_v60 = vld [vmem:[%s1886_s1 + $0x4b8] sm:$0xff] }
  0x33   :  { %1134 = vmatpush3.bf16.msra.mxu1 %v1133_v35  ;;  %v1153_v35 = vpack.c.bf16 %v147_v26, %v146_v23  ;;  %v1726_v52 = vrot.slane %v259_v44, %v1396_v10  ;;  %v1159_v54 = vpack.c.bf16 %v167_v48, %v166_v47  ;;  %v151_v56 = vld [vmem:[%s1886_s1 + $0x428] sm:$0xff]  ;;  %v182_v10 = vld [vmem:[%s1886_s1 + $0x520] sm:$0xff]  ;;  %v1163_v1 = vpack.c.bf16 %v169_v60, %v168_v59  ;;  %v152_v2 = vld [vmem:[%s1886_s1 + $0x430] sm:$0xff] }
  0x34   :  { %1136 = vmatprep.subr.bf16.mxu1 %v1135_v42  ;;  %v180_v42 = vld [vmem:[%s1886_s1 + $0x510] sm:$0xff]  ;;  %v183_v58 = vld [vmem:[%s1886_s1 + $0x528] sm:$0xff]  ;;  %v185_v6 = vld [vmem:[%s1886_s1 + $0x538] sm:$0xff] }
  0x35   :  { %1106 = vmatpush3.bf16.msra.mxu0 %v1105_v49  ;;  %v198_v49 = vld [vmem:[%s1886_s1 + $0x5a0] sm:$0xff]  ;;  %v1193_v0 = vpack.c.bf16 %v183_v58, %v182_v10  ;;  %v184_v4 = vld [vmem:[%s1886_s1 + $0x530] sm:$0xff]  ;;  %v171_v8 = vld [vmem:[%s1886_s1 + $0x4c8] sm:$0xff] }
  0x36   :  { %1108 = vmatprep.subr.bf16.mxu0 %v1107_v51  ;;  %v274_v51 = vcombine.high %v1705_v43, %v1705_v43  ;;  %v170_v7 = vld [vmem:[%s1886_s1 + $0x4c0] sm:$0xff]  ;;  %v1197_v13 = vpack.c.bf16 %v185_v6, %v184_v4  ;;  %v187_v19 = vld [vmem:[%s1886_s1 + $0x548] sm:$0xff]  ;;  %v172_v20 = vld [vmem:[%s1886_s1 + $0x4d0] sm:$0xff] }
  0x37   :  { %1138 = vmatpush3.bf16.msra.mxu1 %v1137_v50  ;;  %v199_v50 = vld [vmem:[%s1886_s1 + $0x5a8] sm:$0xff]  ;;  %v1167_v14 = vpack.c.bf16 %v171_v8, %v170_v7  ;;  %v154_v15 = vld [vmem:[%s1886_s1 + $0x440] sm:$0xff]  ;;  %v173_v21 = vld [vmem:[%s1886_s1 + $0x4d8] sm:$0xff] }
  0x38   :  { %1140 = vmatprep.subr.bf16.mxu1 %v1139_v55  ;;  %v150_v55 = vld [vmem:[%s1886_s1 + $0x420] sm:$0xff]  ;;  %v1191_v57 = vpack.c.bf16 %v199_v50, %v198_v49  ;;  %v205_v23 = vld [vmem:[%s1886_s1 + $0x5d8] sm:$0xff]  ;;  %v1171_v26 = vpack.c.bf16 %v173_v21, %v172_v20  ;;  %v156_v27 = vld [vmem:[%s1886_s1 + $0x450] sm:$0xff] }
  0x39   :  { %1110 = vmatpush3.bf16.msra.mxu0 %v1109_v61  ;;  %v200_v61 = vld [vmem:[%s1886_s1 + $0x5b0] sm:$0xff]  ;;  %v186_v17 = vld [vmem:[%s1886_s1 + $0x540] sm:$0xff]  ;;  %v157_v28 = vld [vmem:[%s1886_s1 + $0x458] sm:$0xff] }
  0x3a   :  { %1112 = vmatprep.subr.bf16.mxu0 %v1111_v63  ;;  %v1161_v63 = vpack.c.bf16 %v151_v56, %v150_v55  ;;  %v189_v31 = vld [vmem:[%s1886_s1 + $0x558] sm:$0xff]  ;;  %v174_v33 = vld [vmem:[%s1886_s1 + $0x4e0] sm:$0xff]  ;;  %v175_v34 = vld [vmem:[%s1886_s1 + $0x4e8] sm:$0xff]  ;;  %v1173_v37 = vpack.c.bf16 %v157_v28, %v156_v27 }
  0x3b   :  { %1142 = vmatpush3.bf16.msra.mxu1 %v1141_v62  ;;  %v201_v62 = vld [vmem:[%s1886_s1 + $0x5b8] sm:$0xff]  ;;  %v1175_v39 = vpack.c.bf16 %v175_v34, %v174_v33  ;;  %v158_v40 = vld [vmem:[%s1886_s1 + $0x460] sm:$0xff]  ;;  %v176_v47 = vld [vmem:[%s1886_s1 + $0x4f0] sm:$0xff] }
  0x3c   :  { %1144 = vmatprep.subr.bf16.mxu1 %v1143_v3  ;;  %v153_v3 = vld [vmem:[%s1886_s1 + $0x438] sm:$0xff]  ;;  %v1195_v5 = vpack.c.bf16 %v201_v62, %v200_v61  ;;  %v190_v44 = vld [vmem:[%s1886_s1 + $0x560] sm:$0xff]  ;;  %v208_v49 = vld [vmem:[%s1886_s1 + $0x5f0] sm:$0xff]  ;;  %v1229_v62 = vmov 0.0|0.0  }
  0x3d   :  { %1114 = vmatpush3.bf16.msra.mxu0 %v1113_v9  ;;  %v202_v9 = vld [vmem:[%s1886_s1 + $0x5c0] sm:$0xff]  ;;  %v177_v48 = vld [vmem:[%s1886_s1 + $0x4f8] sm:$0xff]  ;;  %v192_v10 = vld [vmem:[%s1886_s1 + $0x570] sm:$0xff] }
  0x3e   :  { %1116 = vmatprep.subr.bf16.mxu0 %v1115_v12  ;;  %v1165_v12 = vpack.c.bf16 %v153_v3, %v152_v2  ;;  %v209_v50 = vld [vmem:[%s1886_s1 + $0x5f8] sm:$0xff]  ;;  %v210_v59 = vld [vmem:[%s1886_s1 + $0x600] sm:$0xff]  ;;  %v211_v60 = vld [vmem:[%s1886_s1 + $0x608] sm:$0xff]  ;;  %v1231_v2 = vmov 0.0  }
  0x3f   :  { %1146 = vmatpush3.bf16.msra.mxu1 %v1145_v11  ;;  %v203_v11 = vld [vmem:[%s1886_s1 + $0x5c8] sm:$0xff]  ;;  %v161_v55 = vld [vmem:[%s1886_s1 + $0x478] sm:$0xff]  ;;  %v1211_v56 = vpack.c.bf16 %v209_v50, %v208_v49  ;;  %v1216_v61 = vpack.c.bf16 %v211_v60, %v210_v59 }
  0x40   :  { %1148 = vmatprep.subr.bf16.mxu1 %v1147_v16  ;;  %v155_v16 = vld [vmem:[%s1886_s1 + $0x448] sm:$0xff]  ;;  %v1199_v18 = vpack.c.bf16 %v203_v11, %v202_v9  ;;  %v795_v3 = vld.sshfl [vmem:[%s1887_s0 + $0x18] sm:$0x3 pattern:$0x76325410] }
  0x41   :  { %1118 = vmatpush3.bf16.msra.mxu0 %v1117_v22  ;;  %v204_v22 = vld [vmem:[%s1886_s1 + $0x5d0] sm:$0xff] }
  0x42   :  { %1152 = vmatprep.subr.bf16.mxu0 %v1151_v25  ;;  %v1201_v25 = vpack.c.bf16 %v187_v19, %v186_v17  ;;  %v1203_v30 = vpack.c.bf16 %v205_v23, %v204_v22 }
  0x43   :  { %1150 = vmatpush3.bf16.msra.mxu1 %v1149_v24  ;;  %v1169_v24 = vpack.c.bf16 %v155_v16, %v154_v15 }
  0x44   :  { %1184 = vmatprep.subr.bf16.mxu1 %v1183_v29  ;;  %503 = vmatmul.mubr.f32.vlgmr.msra.gmra.mrb[2].mxu0 %v1563_v32  ;;  %v1189_v32 = vpack.c.bf16 %v181_v46, %v180_v42  ;;  %v188_v29 = vld [vmem:[%s1886_s1 + $0x550] sm:$0xff]  ;;  %v159_v42 = vld [vmem:[%s1886_s1 + $0x468] sm:$0xff] }
  0x45   :  { %1154 = vmatpush3.bf16.msra.mxu0 %v1153_v35  ;;  %642 = vmatprep.mubr.f32.mxu0 %v274_v51  ;;  %v206_v35 = vld [vmem:[%s1886_s1 + $0x5e0] sm:$0xff]  ;;  %v191_v46 = vld [vmem:[%s1886_s1 + $0x568] sm:$0xff]  ;;  %v1177_v51 = vpack.c.bf16 %v159_v42, %v158_v40 }
  0x46   :  { %573 = vmatmul.mubr.f32.vlgmr.msra.gmra.mrb[2].mxu1 %v1577_v41  ;;  %1156 = vmatprep.subr.bf16.mxu0 %v1155_v38  ;;  %v275_v41 = vcombine.high %v1726_v52, %v1726_v52  ;;  %v1205_v38 = vpack.c.bf16 %v189_v31, %v188_v29 }
  0x47   :  { %1186 = vmatpush3.bf16.msra.mxu1 %v1185_v36  ;;  %v207_v36 = vld [vmem:[%s1886_s1 + $0x5e8] sm:$0xff] }
  0x48   :  { %1188 = vmatprep.subr.bf16.mxu1 %v1187_v45  ;;  %712 = vmatprep.mubr.f32.mxu1 %v275_v41  ;;  %v1207_v45 = vpack.c.bf16 %v207_v36, %v206_v35  ;;  %v193_v41 = vld [vmem:[%s1886_s1 + $0x578] sm:$0xff] }
  0x49   :  { %1158 = vmatpush3.bf16.msra.mxu0 %v1157_v53  ;;  %v1209_v53 = vpack.c.bf16 %v191_v46, %v190_v44  ;;  %v1213_v58 = vpack.c.bf16 %v193_v41, %v192_v10 }
  0x4a   :  { %1160 = vmatprep.subr.bf16.mxu0 %v1159_v54  ;;  %v160_v54 = vld [vmem:[%s1886_s1 + $0x470] sm:$0xff] }
  0x4b   :  { %1190 = vmatpush3.bf16.msra.mxu1 %v1189_v32  ;;  %v1179_v32 = vpack.c.bf16 %v177_v48, %v176_v47 }
  0x4c   :  { %1192 = vmatprep.subr.bf16.mxu1 %v1191_v57  ;;  %v1181_v57 = vpack.c.bf16 %v161_v55, %v160_v54 }
  0x4d   :  { %1162 = vmatpush3.bf16.msra.mxu0 %v1161_v63  ;;  %v212_v63 = vld [vmem:[%s1886_s1 + $0x610] sm:$0xff] }
  0x4e   :  { %1164 = vmatprep.subr.bf16.mxu0 %v1163_v1 }
  0x4f   :  { %1194 = vmatpush3.bf16.msra.mxu1 %v1193_v0  ;;  %v213_v0 = vld [vmem:[%s1886_s1 + $0x618] sm:$0xff] }
  0x50   :  { %1196 = vmatprep.subr.bf16.mxu1 %v1195_v5  ;;  %v1219_v1 = vpack.c.bf16 %v213_v0, %v212_v63 }
  0x51   :  { %1166 = vmatpush3.bf16.msra.mxu0 %v1165_v12 }
  0x52   :  { %1168 = vmatprep.subr.bf16.mxu0 %v1167_v14 }
  0x53   :  { %1198 = vmatpush3.bf16.msra.mxu1 %v1197_v13 }
  0x54   :  { %1200 = vmatprep.subr.bf16.mxu1 %v1199_v18 }
  0x55   :  { %1170 = vmatpush3.bf16.msra.mxu0 %v1169_v24 }
  0x56   :  { %1172 = vmatprep.subr.bf16.mxu0 %v1171_v26 }
  0x57   :  { %1202 = vmatpush3.bf16.msra.mxu1 %v1201_v25 }
  0x58   :  { %1204 = vmatprep.subr.bf16.mxu1 %v1203_v30 }
  0x59   :  { %1174 = vmatpush3.bf16.msra.mxu0 %v1173_v37 }
  0x5a   :  { %1176 = vmatprep.subr.bf16.mxu0 %v1175_v39 }
  0x5b   :  { %1206 = vmatpush3.bf16.msra.mxu1 %v1205_v38 }
  0x5c   :  { %1208 = vmatprep.subr.bf16.mxu1 %v1207_v45 }
  0x5d   :  { %1178 = vmatpush3.bf16.msra.mxu0 %v1177_v51 }
  0x5e   :  { %1180 = vmatprep.subr.bf16.mxu0 %v1179_v32 }
  0x5f   :  { %1210 = vmatpush3.bf16.msra.mxu1 %v1209_v53 }
  0x60   :  { %1212 = vmatprep.subr.bf16.mxu1 %v1211_v56 }
  0x61   :  { %1182 = vmatpush3.bf16.msra.mxu0 %v1181_v57 }
  0x62   :  { %1215 = vmatprep.subr.bf16.mxu0 %v1229_v62 }
  0x63   :  { %1214 = vmatpush3.bf16.msra.mxu1 %v1213_v58 }
  0x64   :  { %643 = vmatmul.mubr.f32.vlgmr.msra.gmra.mrb[4].mxu0 %v1705_v43  ;;  %v794_v43 = vld [vmem:[%s1888_s2] ss:$0 sm:$0xff] }
  0x65   :  { %1217 = vmatpush3.bf16.msra.mxu0 %v1216_v61  ;;  %1020 = vmatprep.mubr.msk.f32.mxu0 %vm1230_vm0, %v1231_v2 }
  0x66   :  { %713 = vmatmul.mubr.f32.vlgmr.msra.gmra.mrb[4].mxu1 %v1726_v52  ;;  %1218 = vmatprep.subr.bf16.mxu0 %v1229_v62 }
  0x69   :  { %1220 = vmatpush3.bf16.msra.mxu0 %v1219_v1 }
  0x6c   :  { %1021 = vmatmul.mubr.msk.f32.vlgmr.msra.gmra.mrb[6].mxu0 %vm295_vm1, %v795_v3 }
  0xf7   :  { %v829_v4 = vpop.f32.mrb[0].mxu0 }
  0xf8   :  { %v830_v5 = vpop.f32.mrb[1].mxu0 }
  0xf9   :  { %v864_v6 = vpop.f32.mrb[0].mxu1  ;;  %v831_v52 = vadd.f32 %v830_v5, %v829_v4 }
  0xfa   :  { %v865_v7 = vpop.f32.mrb[1].mxu1 }
  0xfb   :  { %v866_v8 = vadd.f32 %v865_v7, %v864_v6  ;;  %v365_v9 = vadd.f32 %v831_v52, %v794_v43 }
  0xfd   :  { %v435_v11 = vadd.f32 %v866_v8, %v365_v9 }
 0x117   :  { %v899_v12 = vpop.f32.mrb[2].mxu0 }
 0x118   :  { %v900_v13 = vpop.f32.mrb[3].mxu0 }
 0x119   :  { %v934_v14 = vpop.f32.mrb[2].mxu1  ;;  %v901_v15 = vadd.f32 %v900_v13, %v899_v12 }
 0x11a   :  { %v935_v16 = vpop.f32.mrb[3].mxu1 }
 0x11b   :  { %v936_v17 = vadd.f32 %v935_v16, %v934_v14  ;;  %v505_v18 = vadd.f32 %v901_v15, %v435_v11 }
 0x11d   :  { %v575_v19 = vadd.f32 %v936_v17, %v505_v18 }
 0x137   :  { %v969_v20 = vpop.f32.mrb[4].mxu0 }
 0x138   :  { %v970_v21 = vpop.f32.mrb[5].mxu0 }
 0x139   :  { %v1004_v22 = vpop.f32.mrb[4].mxu1  ;;  %v971_v23 = vadd.f32 %v970_v21, %v969_v20 }
 0x13a   :  { %v1005_v24 = vpop.f32.mrb[5].mxu1 }
 0x13b   :  { %v1006_v25 = vadd.f32 %v1005_v24, %v1004_v22  ;;  %v645_v26 = vadd.f32 %v971_v23, %v575_v19 }
 0x13d   :  { %v715_v27 = vadd.f32 %v1006_v25, %v645_v26 }
 0x13f   :  { %v784_v28 = vpop.f32.mrb[6].mxu0 }
 0x140   :  { %v785_v29 = vadd.f32 %v784_v28, %v715_v27  ;;  %v1022_v30 = vpop.f32.mrb[7].mxu0 }
 0x142   :  { %789 = vst.msk [vmem:[%s1889_s3] sm:$0x3] %vm788_vm2, %v785_v29 }

</bundles_post_ra>
